<compile_context>
chip_gen: v7x
topology: tpu7x:2x2x1
jax: 0.10.0
libtpu: 0.0.40
codegen_flags: <defaults>
</compile_context>

<pallas_src>
import jax
import jax.numpy as jnp
from jax.experimental import pallas as pl
from jax.experimental.pallas import tpu as pltpu

_VMEM_LIMIT = 32 * 1024 * 1024   # generation-safe (well under v7x's 64 MiB physical VMEM)

# Conv output channels are zero-padded up to these values so every GEMM output is
# lane-dense (multiple of 128).  The padding is mathematically inert: zero weights and
# zero bias give zero activations, and the next layer's weight rows for those channels
# are zero as well.
_CONV_COUT_PAD = (128, 128, 128, 256)


# ---------------------------------------------------------------------------
# Conv GEMM kernel: out = relu(patches @ W + b), single K block, M tiled ("parallel")
# ---------------------------------------------------------------------------
def _conv_gemm_kernel(a_ref, w_ref, b_ref, o_ref):
    # a: (tm, K) bf16 patches, w: (K, N) bf16, b: (1, N) f32  ->  o: (tm, N) bf16
    acc = jnp.dot(a_ref[...], w_ref[...], preferred_element_type=jnp.float32)
    o_ref[...] = jnp.maximum(acc + b_ref[...], 0.0).astype(o_ref.dtype)


def conv_gemm_bias_relu(patches, w_mat, bias, *, tm_max=1024):
    """relu(patches @ w_mat + bias); patches (M,K) bf16, w_mat (K,N) bf16, bias (N,) f32."""
    M, K = patches.shape
    K2, N = w_mat.shape
    assert K == K2 and bias.shape == (N,)
    tm = min(M, tm_max)
    assert M % tm == 0, (M, tm)
    return pl.pallas_call(
        _conv_gemm_kernel,
        out_shape=jax.ShapeDtypeStruct((M, N), jnp.bfloat16),
        grid_spec=pltpu.PrefetchScalarGridSpec(
            num_scalar_prefetch=0,
            grid=(M // tm,),
            in_specs=[
                pl.BlockSpec((tm, K), lambda i: (i, 0)),   # patch tile (pipelined)
                pl.BlockSpec((K, N), lambda i: (0, 0)),    # weights (resident)
                pl.BlockSpec((1, N), lambda i: (0, 0)),    # bias (resident)
            ],
            out_specs=pl.BlockSpec((tm, N), lambda i: (i, 0)),
        ),
        compiler_params=pltpu.CompilerParams(
            dimension_semantics=("parallel",),
            vmem_limit_bytes=_VMEM_LIMIT,
        ),
    )(patches, w_mat, bias.reshape(1, N))


# ---------------------------------------------------------------------------
# FC GEMM kernel: out = relu(x @ W + b), K tiled ("arbitrary"), N tiled ("parallel")
# ---------------------------------------------------------------------------
def _fc_gemm_kernel(a_ref, w_ref, b_ref, o_ref, acc_ref):
    k = pl.program_id(1)

    @pl.when(k == 0)
    def _():
        acc_ref[...] = jnp.zeros_like(acc_ref)

    acc_ref[...] += jnp.dot(a_ref[...], w_ref[...], preferred_element_type=jnp.float32)

    @pl.when(k == pl.num_programs(1) - 1)
    def _():
        o_ref[...] = jnp.maximum(acc_ref[...] + b_ref[...], 0.0).astype(o_ref.dtype)


def fc_gemm_bias_relu(x, w_mat, bias, *, tk=4096, tn=128):
    """relu(x @ w_mat + bias); x (M,K) bf16, w_mat (K,N) bf16 (pre-transposed), bias (N,) f32."""
    M, K = x.shape
    K2, N = w_mat.shape
    assert K == K2 and bias.shape == (N,)
    tk = min(tk, K)
    while K % tk:       # keep tk a divisor of K (robust to other layer sizes)
        tk //= 2
    tn = min(tn, N)
    assert N % tn == 0
    return pl.pallas_call(
        _fc_gemm_kernel,
        out_shape=jax.ShapeDtypeStruct((M, N), jnp.float32),
        grid_spec=pltpu.PrefetchScalarGridSpec(
            num_scalar_prefetch=0,
            grid=(N // tn, K // tk),            # (parallel N-tiles, K reduction last)
            in_specs=[
                pl.BlockSpec((M, tk), lambda j, k: (0, k)),
                pl.BlockSpec((tk, tn), lambda j, k: (k, j)),   # bf16 weight streaming
                pl.BlockSpec((1, tn), lambda j, k: (0, j)),
            ],
            out_specs=pl.BlockSpec((M, tn), lambda j, k: (0, j)),
            scratch_shapes=[pltpu.VMEM((M, tn), jnp.float32)],
        ),
        compiler_params=pltpu.CompilerParams(
            dimension_semantics=("parallel", "arbitrary"),
            vmem_limit_bytes=_VMEM_LIMIT,
        ),
    )(x, w_mat, bias.reshape(1, N))


# ---------------------------------------------------------------------------
# im2col for k=3, s=2, p=1: strided slices + concat (no stack / transpose)
# ---------------------------------------------------------------------------
def _im2col_s2(x_hwc):
    """(H, W, C) -> patches (OH*OW, 9*C) bf16, columns ordered (kh, kw, c)."""
    H, W, C = x_hwc.shape
    OH, OW = H // 2, W // 2
    xp = jnp.pad(x_hwc, ((1, 1), (1, 1), (0, 0)))
    cols = [xp[kh:kh + 2 * OH:2, kw:kw + 2 * OW:2, :]
            for kh in range(3) for kw in range(3)]
    patches = jnp.concatenate(cols, axis=-1)               # (OH, OW, 9*C)
    return patches.reshape(OH * OW, 9 * C).astype(jnp.bfloat16), OH, OW


# ---------------------------------------------------------------------------
# Full forward
# ---------------------------------------------------------------------------
def cnn_plus_fc_forward(x_nchw, params):
    """x_nchw: (1, Cin, 128, 128) f32; params from prepare_params().  Returns (256,) f32."""
    assert x_nchw.shape[0] == 1, "Flatten(0,-1) + Linear(16384) implies batch == 1"
    h = jnp.transpose(x_nchw[0], (1, 2, 0)).astype(jnp.bfloat16)   # HWC (128, 128, Cin)
    for i in range(4):
        patches, OH, OW = _im2col_s2(h)
        w = params[f"conv{i}_w"]
        y = conv_gemm_bias_relu(patches, w, params[f"conv{i}_b"])  # (OH*OW, Npad) bf16
        h = y.reshape(OH, OW, w.shape[1])
    # h: (8, 8, 256) bf16; rows are in (h, w) order and fc_w was permuted to match,
    # so the flatten is a plain reshape (no transpose in the hot path).
    flat = h.reshape(1, -1)                                        # (1, 16384)
    out = fc_gemm_bias_relu(flat, params["fc_w"], params["fc_b"])  # (1, 256) f32
    return out[0]


# ---------------------------------------------------------------------------
# Parameters: torch-layout init + one-time conversion to kernel-ready layouts
# ---------------------------------------------------------------------------
def init_torch_params(key, in_channels):
    """Random parameters in the PyTorch module's native layouts (f32)."""
    params = {}
    chans = [in_channels, 32, 64, 128, 256]
    keys = jax.random.split(key, 10)
    for i in range(4):
        cin, cout = chans[i], chans[i + 1]
        params[f"conv{i}_w"] = (
            jax.random.normal(keys[2 * i], (cout, cin, 3, 3), jnp.float32)
            / jnp.sqrt(float(cin * 9)))
        params[f"conv{i}_b"] = jax.random.normal(keys[2 * i + 1], (cout,), jnp.float32) * 0.01
    params["fc_w"] = jax.random.normal(keys[8], (256, 16384), jnp.float32) / jnp.sqrt(16384.0)
    params["fc_b"] = jax.random.normal(keys[9], (256,), jnp.float32) * 0.01
    return params


def prepare_params(torch_params, in_channels):
    """One-time conversion (hoisted out of the forward): permute, pad, pre-transpose, bf16."""
    p = {}
    cin_pad = in_channels
    for i, cout_pad in enumerate(_CONV_COUT_PAD):
        w = torch_params[f"conv{i}_w"]            # (cout, cin, 3, 3)
        b = torch_params[f"conv{i}_b"]            # (cout,)
        cout, cin = w.shape[0], w.shape[1]
        w = jnp.pad(w, ((0, cout_pad - cout), (0, cin_pad - cin), (0, 0), (0, 0)))
        b = jnp.pad(b, ((0, cout_pad - cout),))
        # (cout_pad, cin_pad, 3, 3) -> (kh, kw, cin, cout) -> (9*cin_pad, cout_pad)
        w = jnp.transpose(w, (2, 3, 1, 0)).reshape(9 * cin_pad, cout_pad)
        p[f"conv{i}_w"] = w.astype(jnp.bfloat16)
        p[f"conv{i}_b"] = b.astype(jnp.float32)
        cin_pad = cout_pad
    # Linear(16384, 256): torch flattens (c, h, w); our activations flatten as (h, w, c).
    fcw = torch_params["fc_w"].reshape(256, 256, 8, 8)             # (nout, c, h, w)
    fcw = jnp.transpose(fcw, (2, 3, 1, 0)).reshape(16384, 256)     # rows in (h, w, c) order
    p["fc_w"] = fcw.astype(jnp.bfloat16)
    p["fc_b"] = torch_params["fc_b"].astype(jnp.float32)
    return p


# ---------------------------------------------------------------------------
# Pure-XLA reference (matching precision: bf16 operands, f32 accumulation)
# ---------------------------------------------------------------------------
def reference_forward(x_nchw, torch_params):
    h = x_nchw.astype(jnp.bfloat16)
    for i in range(4):
        w = torch_params[f"conv{i}_w"].astype(jnp.bfloat16)
        h = jax.lax.conv_general_dilated(
            h, w, window_strides=(2, 2), padding=((1, 1), (1, 1)),
            dimension_numbers=("NCHW", "OIHW", "NCHW"),
            preferred_element_type=jnp.float32)
        h = jnp.maximum(h + torch_params[f"conv{i}_b"].reshape(1, -1, 1, 1), 0.0)
        h = h.astype(jnp.bfloat16)
    flat = h.reshape(-1)                                           # torch (c, h, w) order
    y = jnp.dot(torch_params["fc_w"].astype(jnp.bfloat16), flat,
                preferred_element_type=jnp.float32) + torch_params["fc_b"]
    return jnp.maximum(y, 0.0)


if __name__ == "__main__":
    in_channels = 4
    key = jax.random.PRNGKey(0)
    k_x, k_p = jax.random.split(key)
    # Flatten(0,-1) + Linear(16384, 256) fixes the input to (1, Cin, 128, 128).
    x = jax.random.normal(k_x, (1, in_channels, 128, 128), jnp.float32)
    torch_params = init_torch_params(k_p, in_channels)
    params = prepare_params(torch_params, in_channels)   # one-time, outside the hot path

    fwd = jax.jit(cnn_plus_fc_forward)
    out = jax.block_until_ready(fwd(x, params))

    assert out.shape == (256,) and out.dtype == jnp.float32
    assert bool(jnp.all(out >= 0.0))                     # final ReLU

    ref = jax.block_until_ready(jax.jit(reference_forward)(x, torch_params))
    err = float(jnp.max(jnp.abs(out - ref)))
    assert err < 5e-2, f"mismatch vs XLA reference (max abs err {err})"
    print("KERNEL_OK")
</pallas_src>

<mosaic_0001>
module attributes {stable_mosaic.version = 11 : i64} {
  func.func @_conv_gemm_kernel(%arg0: i32, %arg1: memref<1024x36xbf16, #tpu.memory_space<vmem>>, %arg2: memref<36x128xbf16, #tpu.memory_space<vmem>>, %arg3: memref<1x128xf32, #tpu.memory_space<vmem>>, %arg4: memref<1024x128xbf16, #tpu.memory_space<vmem>>) attributes {dimension_semantics = [#tpu.dimension_semantics<parallel>], iteration_bounds = array<i64: 4>, scalar_prefetch = 0 : i64, scratch_operands = 0 : i64, tpu.core_type = #tpu.core_type<tc>, window_params = [{transform_indices = @transform_0, window_bounds = array<i64: 1024, 36>}, {pipeline_mode = #tpu.pipeline_mode<synchronous>, transform_indices = @transform_1, window_bounds = array<i64: 36, 128>}, {pipeline_mode = #tpu.pipeline_mode<synchronous>, transform_indices = @transform_2, window_bounds = array<i64: 1, 128>}, {transform_indices = @transform_3, window_bounds = array<i64: 1024, 128>}]} {
    %c0 = arith.constant 0 : index
    %c0_0 = arith.constant 0 : index
    %0 = vector.load %arg1[%c0, %c0_0] : memref<1024x36xbf16, #tpu.memory_space<vmem>>, vector<1024x36xbf16>
    %c0_1 = arith.constant 0 : index
    %c0_2 = arith.constant 0 : index
    %1 = vector.load %arg2[%c0_1, %c0_2] : memref<36x128xbf16, #tpu.memory_space<vmem>>, vector<36x128xbf16>
    %cst = arith.constant dense<0.000000e+00> : vector<1024x128xf32>
    %2 = tpu.matmul %0, %1, %cst {dimension_numbers = #tpu.dot_dimension_numbers<[1], [0], [0], [1], [0, 0, 1, 1], [], []>} : vector<1024x36xbf16>, vector<36x128xbf16>, vector<1024x128xf32> -> vector<1024x128xf32>
    %c0_3 = arith.constant 0 : index
    %c0_4 = arith.constant 0 : index
    %3 = vector.load %arg3[%c0_3, %c0_4] : memref<1x128xf32, #tpu.memory_space<vmem>>, vector<1x128xf32>
    %4 = vector.broadcast %3 : vector<1x128xf32> to vector<1024x128xf32>
    %5 = arith.addf %2, %4 : vector<1024x128xf32>
    %cst_5 = arith.constant 0.000000e+00 : f32
    %6 = vector.broadcast %cst_5 : f32 to vector<1024x128xf32>
    %7 = arith.maximumf %5, %6 : vector<1024x128xf32>
    %8 = arith.truncf %7 : vector<1024x128xf32> to vector<1024x128xbf16>
    %c0_6 = arith.constant 0 : index
    %c0_7 = arith.constant 0 : index
    %9 = vector.load %arg4[%c0_6, %c0_7] : memref<1024x128xbf16, #tpu.memory_space<vmem>>, vector<1024x128xbf16>
    tpu.vector_store %arg4[%c0_6, %c0_7], %8 {strides = array<i32>} : memref<1024x128xbf16, #tpu.memory_space<vmem>>, vector<1024x128xbf16>,
    return
  }
  func.func @transform_0(%arg0: i32) -> (i32, i32) {
    %c0_i32 = arith.constant 0 : i32
    %c0_i32_0 = arith.constant 0 : i32
    return %arg0, %c0_i32 : i32, i32
  }
  func.func @transform_1(%arg0: i32) -> (i32, i32) {
    %c0_i32 = arith.constant 0 : i32
    %c0_i32_0 = arith.constant 0 : i32
    %c0_i32_1 = arith.constant 0 : i32
    return %c0_i32, %c0_i32_0 : i32, i32
  }
  func.func @transform_2(%arg0: i32) -> (i32, i32) {
    %c0_i32 = arith.constant 0 : i32
    %c0_i32_0 = arith.constant 0 : i32
    %c0_i32_1 = arith.constant 0 : i32
    return %c0_i32, %c0_i32_0 : i32, i32
  }
  func.func @transform_3(%arg0: i32) -> (i32, i32) {
    %c0_i32 = arith.constant 0 : i32
    %c0_i32_0 = arith.constant 0 : i32
    return %arg0, %c0_i32 : i32, i32
  }
}

module attributes {stable_mosaic.version = 11 : i64} {
  func.func @_conv_gemm_kernel(%arg0: i32, %arg1: memref<1024x1152xbf16, #tpu.memory_space<vmem>>, %arg2: memref<1152x128xbf16, #tpu.memory_space<vmem>>, %arg3: memref<1x128xf32, #tpu.memory_space<vmem>>, %arg4: memref<1024x128xbf16, #tpu.memory_space<vmem>>) attributes {dimension_semantics = [#tpu.dimension_semantics<parallel>], iteration_bounds = array<i64: 1>, scalar_prefetch = 0 : i64, scratch_operands = 0 : i64, tpu.core_type = #tpu.core_type<tc>, window_params = [{transform_indices = @transform_0, window_bounds = array<i64: 1024, 1152>}, {pipeline_mode = #tpu.pipeline_mode<synchronous>, transform_indices = @transform_1, window_bounds = array<i64: 1152, 128>}, {pipeline_mode = #tpu.pipeline_mode<synchronous>, transform_indices = @transform_2, window_bounds = array<i64: 1, 128>}, {transform_indices = @transform_3, window_bounds = array<i64: 1024, 128>}]} {
    %c0 = arith.constant 0 : index
    %c0_0 = arith.constant 0 : index
    %0 = vector.load %arg1[%c0, %c0_0] : memref<1024x1152xbf16, #tpu.memory_space<vmem>>, vector<1024x1152xbf16>
    %c0_1 = arith.constant 0 : index
    %c0_2 = arith.constant 0 : index
    %1 = vector.load %arg2[%c0_1, %c0_2] : memref<1152x128xbf16, #tpu.memory_space<vmem>>, vector<1152x128xbf16>
    %cst = arith.constant dense<0.000000e+00> : vector<1024x128xf32>
    %2 = tpu.matmul %0, %1, %cst {dimension_numbers = #tpu.dot_dimension_numbers<[1], [0], [0], [1], [0, 0, 1, 1], [], []>} : vector<1024x1152xbf16>, vector<1152x128xbf16>, vector<1024x128xf32> -> vector<1024x128xf32>
    %c0_3 = arith.constant 0 : index
    %c0_4 = arith.constant 0 : index
    %3 = vector.load %arg3[%c0_3, %c0_4] : memref<1x128xf32, #tpu.memory_space<vmem>>, vector<1x128xf32>
    %4 = vector.broadcast %3 : vector<1x128xf32> to vector<1024x128xf32>
    %5 = arith.addf %2, %4 : vector<1024x128xf32>
    %cst_5 = arith.constant 0.000000e+00 : f32
    %6 = vector.broadcast %cst_5 : f32 to vector<1024x128xf32>
    %7 = arith.maximumf %5, %6 : vector<1024x128xf32>
    %8 = arith.truncf %7 : vector<1024x128xf32> to vector<1024x128xbf16>
    %c0_6 = arith.constant 0 : index
    %c0_7 = arith.constant 0 : index
    %9 = vector.load %arg4[%c0_6, %c0_7] : memref<1024x128xbf16, #tpu.memory_space<vmem>>, vector<1024x128xbf16>
    tpu.vector_store %arg4[%c0_6, %c0_7], %8 {strides = array<i32>} : memref<1024x128xbf16, #tpu.memory_space<vmem>>, vector<1024x128xbf16>,
    return
  }
  func.func @transform_0(%arg0: i32) -> (i32, i32) {
    %c0_i32 = arith.constant 0 : i32
    %c0_i32_0 = arith.constant 0 : i32
    return %arg0, %c0_i32 : i32, i32
  }
  func.func @transform_1(%arg0: i32) -> (i32, i32) {
    %c0_i32 = arith.constant 0 : i32
    %c0_i32_0 = arith.constant 0 : i32
    %c0_i32_1 = arith.constant 0 : i32
    return %c0_i32, %c0_i32_0 : i32, i32
  }
  func.func @transform_2(%arg0: i32) -> (i32, i32) {
    %c0_i32 = arith.constant 0 : i32
    %c0_i32_0 = arith.constant 0 : i32
    %c0_i32_1 = arith.constant 0 : i32
    return %c0_i32, %c0_i32_0 : i32, i32
  }
  func.func @transform_3(%arg0: i32) -> (i32, i32) {
    %c0_i32 = arith.constant 0 : i32
    %c0_i32_0 = arith.constant 0 : i32
    return %arg0, %c0_i32 : i32, i32
  }
}

module attributes {stable_mosaic.version = 11 : i64} {
  func.func @_conv_gemm_kernel(%arg0: i32, %arg1: memref<256x1152xbf16, #tpu.memory_space<vmem>>, %arg2: memref<1152x128xbf16, #tpu.memory_space<vmem>>, %arg3: memref<1x128xf32, #tpu.memory_space<vmem>>, %arg4: memref<256x128xbf16, #tpu.memory_space<vmem>>) attributes {dimension_semantics = [#tpu.dimension_semantics<parallel>], iteration_bounds = array<i64: 1>, scalar_prefetch = 0 : i64, scratch_operands = 0 : i64, tpu.core_type = #tpu.core_type<tc>, window_params = [{transform_indices = @transform_0, window_bounds = array<i64: 256, 1152>}, {pipeline_mode = #tpu.pipeline_mode<synchronous>, transform_indices = @transform_1, window_bounds = array<i64: 1152, 128>}, {pipeline_mode = #tpu.pipeline_mode<synchronous>, transform_indices = @transform_2, window_bounds = array<i64: 1, 128>}, {transform_indices = @transform_3, window_bounds = array<i64: 256, 128>}]} {
    %c0 = arith.constant 0 : index
    %c0_0 = arith.constant 0 : index
    %0 = vector.load %arg1[%c0, %c0_0] : memref<256x1152xbf16, #tpu.memory_space<vmem>>, vector<256x1152xbf16>
    %c0_1 = arith.constant 0 : index
    %c0_2 = arith.constant 0 : index
    %1 = vector.load %arg2[%c0_1, %c0_2] : memref<1152x128xbf16, #tpu.memory_space<vmem>>, vector<1152x128xbf16>
    %cst = arith.constant dense<0.000000e+00> : vector<256x128xf32>
    %2 = tpu.matmul %0, %1, %cst {dimension_numbers = #tpu.dot_dimension_numbers<[1], [0], [0], [1], [0, 0, 1, 1], [], []>} : vector<256x1152xbf16>, vector<1152x128xbf16>, vector<256x128xf32> -> vector<256x128xf32>
    %c0_3 = arith.constant 0 : index
    %c0_4 = arith.constant 0 : index
    %3 = vector.load %arg3[%c0_3, %c0_4] : memref<1x128xf32, #tpu.memory_space<vmem>>, vector<1x128xf32>
    %4 = vector.broadcast %3 : vector<1x128xf32> to vector<256x128xf32>
    %5 = arith.addf %2, %4 : vector<256x128xf32>
    %cst_5 = arith.constant 0.000000e+00 : f32
    %6 = vector.broadcast %cst_5 : f32 to vector<256x128xf32>
    %7 = arith.maximumf %5, %6 : vector<256x128xf32>
    %8 = arith.truncf %7 : vector<256x128xf32> to vector<256x128xbf16>
    %c0_6 = arith.constant 0 : index
    %c0_7 = arith.constant 0 : index
    %9 = vector.load %arg4[%c0_6, %c0_7] : memref<256x128xbf16, #tpu.memory_space<vmem>>, vector<256x128xbf16>
    tpu.vector_store %arg4[%c0_6, %c0_7], %8 {strides = array<i32>} : memref<256x128xbf16, #tpu.memory_space<vmem>>, vector<256x128xbf16>,
    return
  }
  func.func @transform_0(%arg0: i32) -> (i32, i32) {
    %c0_i32 = arith.constant 0 : i32
    %c0_i32_0 = arith.constant 0 : i32
    return %arg0, %c0_i32 : i32, i32
  }
  func.func @transform_1(%arg0: i32) -> (i32, i32) {
    %c0_i32 = arith.constant 0 : i32
    %c0_i32_0 = arith.constant 0 : i32
    %c0_i32_1 = arith.constant 0 : i32
    return %c0_i32, %c0_i32_0 : i32, i32
  }
  func.func @transform_2(%arg0: i32) -> (i32, i32) {
    %c0_i32 = arith.constant 0 : i32
    %c0_i32_0 = arith.constant 0 : i32
    %c0_i32_1 = arith.constant 0 : i32
    return %c0_i32, %c0_i32_0 : i32, i32
  }
  func.func @transform_3(%arg0: i32) -> (i32, i32) {
    %c0_i32 = arith.constant 0 : i32
    %c0_i32_0 = arith.constant 0 : i32
    return %arg0, %c0_i32 : i32, i32
  }
}

module attributes {stable_mosaic.version = 11 : i64} {
  func.func @_conv_gemm_kernel(%arg0: i32, %arg1: memref<64x1152xbf16, #tpu.memory_space<vmem>>, %arg2: memref<1152x256xbf16, #tpu.memory_space<vmem>>, %arg3: memref<1x256xf32, #tpu.memory_space<vmem>>, %arg4: memref<64x256xbf16, #tpu.memory_space<vmem>>) attributes {dimension_semantics = [#tpu.dimension_semantics<parallel>], iteration_bounds = array<i64: 1>, scalar_prefetch = 0 : i64, scratch_operands = 0 : i64, tpu.core_type = #tpu.core_type<tc>, window_params = [{transform_indices = @transform_0, window_bounds = array<i64: 64, 1152>}, {pipeline_mode = #tpu.pipeline_mode<synchronous>, transform_indices = @transform_1, window_bounds = array<i64: 1152, 256>}, {pipeline_mode = #tpu.pipeline_mode<synchronous>, transform_indices = @transform_2, window_bounds = array<i64: 1, 256>}, {transform_indices = @transform_3, window_bounds = array<i64: 64, 256>}]} {
    %c0 = arith.constant 0 : index
    %c0_0 = arith.constant 0 : index
    %0 = vector.load %arg1[%c0, %c0_0] : memref<64x1152xbf16, #tpu.memory_space<vmem>>, vector<64x1152xbf16>
    %c0_1 = arith.constant 0 : index
    %c0_2 = arith.constant 0 : index
    %1 = vector.load %arg2[%c0_1, %c0_2] : memref<1152x256xbf16, #tpu.memory_space<vmem>>, vector<1152x256xbf16>
    %cst = arith.constant dense<0.000000e+00> : vector<64x256xf32>
    %2 = tpu.matmul %0, %1, %cst {dimension_numbers = #tpu.dot_dimension_numbers<[1], [0], [0], [1], [0, 0, 1, 1], [], []>} : vector<64x1152xbf16>, vector<1152x256xbf16>, vector<64x256xf32> -> vector<64x256xf32>
    %c0_3 = arith.constant 0 : index
    %c0_4 = arith.constant 0 : index
    %3 = vector.load %arg3[%c0_3, %c0_4] : memref<1x256xf32, #tpu.memory_space<vmem>>, vector<1x256xf32>
    %4 = vector.broadcast %3 : vector<1x256xf32> to vector<64x256xf32>
    %5 = arith.addf %2, %4 : vector<64x256xf32>
    %cst_5 = arith.constant 0.000000e+00 : f32
    %6 = vector.broadcast %cst_5 : f32 to vector<64x256xf32>
    %7 = arith.maximumf %5, %6 : vector<64x256xf32>
    %8 = arith.truncf %7 : vector<64x256xf32> to vector<64x256xbf16>
    %c0_6 = arith.constant 0 : index
    %c0_7 = arith.constant 0 : index
    %9 = vector.load %arg4[%c0_6, %c0_7] : memref<64x256xbf16, #tpu.memory_space<vmem>>, vector<64x256xbf16>
    tpu.vector_store %arg4[%c0_6, %c0_7], %8 {strides = array<i32>} : memref<64x256xbf16, #tpu.memory_space<vmem>>, vector<64x256xbf16>,
    return
  }
  func.func @transform_0(%arg0: i32) -> (i32, i32) {
    %c0_i32 = arith.constant 0 : i32
    %c0_i32_0 = arith.constant 0 : i32
    return %arg0, %c0_i32 : i32, i32
  }
  func.func @transform_1(%arg0: i32) -> (i32, i32) {
    %c0_i32 = arith.constant 0 : i32
    %c0_i32_0 = arith.constant 0 : i32
    %c0_i32_1 = arith.constant 0 : i32
    return %c0_i32, %c0_i32_0 : i32, i32
  }
  func.func @transform_2(%arg0: i32) -> (i32, i32) {
    %c0_i32 = arith.constant 0 : i32
    %c0_i32_0 = arith.constant 0 : i32
    %c0_i32_1 = arith.constant 0 : i32
    return %c0_i32, %c0_i32_0 : i32, i32
  }
  func.func @transform_3(%arg0: i32) -> (i32, i32) {
    %c0_i32 = arith.constant 0 : i32
    %c0_i32_0 = arith.constant 0 : i32
    return %arg0, %c0_i32 : i32, i32
  }
}

module attributes {stable_mosaic.version = 11 : i64} {
  func.func @_fc_gemm_kernel(%arg0: i32, %arg1: i32, %arg2: memref<1x4096xbf16, #tpu.memory_space<vmem>>, %arg3: memref<4096x128xbf16, #tpu.memory_space<vmem>>, %arg4: memref<1x128xf32, #tpu.memory_space<vmem>>, %arg5: memref<1x128xf32, #tpu.memory_space<vmem>>, %arg6: memref<1x128xf32, #tpu.memory_space<vmem>>) attributes {dimension_semantics = [#tpu.dimension_semantics<parallel>, #tpu.dimension_semantics<arbitrary>], iteration_bounds = array<i64: 2, 4>, scalar_prefetch = 0 : i64, scratch_operands = 1 : i64, tpu.core_type = #tpu.core_type<tc>, window_params = [{transform_indices = @transform_0, window_bounds = array<i64: 1, 4096>}, {transform_indices = @transform_1, window_bounds = array<i64: 4096, 128>}, {transform_indices = @transform_2, window_bounds = array<i64: 1, 128>}, {transform_indices = @transform_3, window_bounds = array<i64: 1, 128>}]} {
    %c0_i32 = arith.constant 0 : i32
    %0 = arith.cmpi eq, %arg1, %c0_i32 : i32
    %1 = arith.extui %0 : i1 to i32
    %c0_i32_0 = arith.constant 0 : i32
    %2 = arith.cmpi ne, %1, %c0_i32_0 : i32
    scf.if %2 {
      %cst_9 = arith.constant 0.000000e+00 : f32
      %12 = vector.broadcast %cst_9 : f32 to vector<1x128xf32>
      %c0_10 = arith.constant 0 : index
      %c0_11 = arith.constant 0 : index
      %13 = vector.load %arg6[%c0_10, %c0_11] : memref<1x128xf32, #tpu.memory_space<vmem>>, vector<1x128xf32>
      tpu.vector_store %arg6[%c0_10, %c0_11], %12 {strides = array<i32>} : memref<1x128xf32, #tpu.memory_space<vmem>>, vector<1x128xf32>,
    } else {
    }
    %c0 = arith.constant 0 : index
    %c0_1 = arith.constant 0 : index
    %3 = vector.load %arg6[%c0, %c0_1] : memref<1x128xf32, #tpu.memory_space<vmem>>, vector<1x128xf32>
    %c0_2 = arith.constant 0 : index
    %c0_3 = arith.constant 0 : index
    %4 = vector.load %arg2[%c0_2, %c0_3] : memref<1x4096xbf16, #tpu.memory_space<vmem>>, vector<1x4096xbf16>
    %c0_4 = arith.constant 0 : index
    %c0_5 = arith.constant 0 : index
    %5 = vector.load %arg3[%c0_4, %c0_5] : memref<4096x128xbf16, #tpu.memory_space<vmem>>, vector<4096x128xbf16>
    %cst = arith.constant dense<0.000000e+00> : vector<1x128xf32>
    %6 = tpu.matmul %4, %5, %cst {dimension_numbers = #tpu.dot_dimension_numbers<[1], [0], [0], [1], [0, 0, 1, 1], [], []>} : vector<1x4096xbf16>, vector<4096x128xbf16>, vector<1x128xf32> -> vector<1x128xf32>
    %7 = arith.addf %3, %6 : vector<1x128xf32>
    %c0_6 = arith.constant 0 : index
    %c0_7 = arith.constant 0 : index
    %8 = vector.load %arg6[%c0_6, %c0_7] : memref<1x128xf32, #tpu.memory_space<vmem>>, vector<1x128xf32>
    tpu.vector_store %arg6[%c0_6, %c0_7], %7 {strides = array<i32>} : memref<1x128xf32, #tpu.memory_space<vmem>>, vector<1x128xf32>,
    %c3_i32 = arith.constant 3 : i32
    %9 = arith.cmpi eq, %arg1, %c3_i32 : i32
    %10 = arith.extui %9 : i1 to i32
    %c0_i32_8 = arith.constant 0 : i32
    %11 = arith.cmpi ne, %10, %c0_i32_8 : i32
    scf.if %11 {
      %c0_9 = arith.constant 0 : index
      %c0_10 = arith.constant 0 : index
      %12 = vector.load %arg6[%c0_9, %c0_10] : memref<1x128xf32, #tpu.memory_space<vmem>>, vector<1x128xf32>
      %c0_11 = arith.constant 0 : index
      %c0_12 = arith.constant 0 : index
      %13 = vector.load %arg4[%c0_11, %c0_12] : memref<1x128xf32, #tpu.memory_space<vmem>>, vector<1x128xf32>
      %14 = arith.addf %12, %13 : vector<1x128xf32>
      %cst_13 = arith.constant 0.000000e+00 : f32
      %15 = vector.broadcast %cst_13 : f32 to vector<1x128xf32>
      %16 = arith.maximumf %14, %15 : vector<1x128xf32>
      %c0_14 = arith.constant 0 : index
      %c0_15 = arith.constant 0 : index
      %17 = vector.load %arg5[%c0_14, %c0_15] : memref<1x128xf32, #tpu.memory_space<vmem>>, vector<1x128xf32>
      tpu.vector_store %arg5[%c0_14, %c0_15], %16 {strides = array<i32>} : memref<1x128xf32, #tpu.memory_space<vmem>>, vector<1x128xf32>,
    } else {
    }
    return
  }
  func.func @transform_0(%arg0: i32, %arg1: i32) -> (i32, i32) {
    %c0_i32 = arith.constant 0 : i32
    %c0_i32_0 = arith.constant 0 : i32
    return %c0_i32, %arg1 : i32, i32
  }
  func.func @transform_1(%arg0: i32, %arg1: i32) -> (i32, i32) {
    %c0_i32 = arith.constant 0 : i32
    return %arg1, %arg0 : i32, i32
  }
  func.func @transform_2(%arg0: i32, %arg1: i32) -> (i32, i32) {
    %c0_i32 = arith.constant 0 : i32
    %c0_i32_0 = arith.constant 0 : i32
    return %c0_i32, %arg0 : i32, i32
  }
  func.func @transform_3(%arg0: i32, %arg1: i32) -> (i32, i32) {
    %c0_i32 = arith.constant 0 : i32
    %c0_i32_0 = arith.constant 0 : i32
    return %c0_i32, %arg0 : i32, i32
  }
}

</mosaic_0001>

<bundles_post_ra>
// kernel: cnn_plus_fc_forward.5
= control target key start
LH: loop header
LB: loop body
LE: loop exit
PB: predicated region body
PF: predicated region fallthrough
CT: control target
= control target key end

     0   :  { %s3310_s12 = smov 0   ;;  %s3672_s0 = inlined_call_operand.vmem [shape: bf16[4096,36], index: 0, kind: input, shape index: {}]   ;;  %s3673_s1 = inlined_call_operand.vmem [shape: bf16[36,128], index: 1, kind: input, shape index: {}]   ;;  %s3674_s2 = inlined_call_operand.vmem [shape: f32[1,128], index: 2, kind: input, shape index: {}]   ;;  %s3675_s3 = inlined_call_operand.vmem [shape: bf16[4096,128], index: 3, kind: output, shape index: {}]  }
   0x1 LB: > { %s2216_s13 = sadd.s32 4294967295, %s3288_s12   ;;  %p2220_p0 = scmp.ge.s32.totalorder %s3288_s12, 1  ;;  %s3288_s12 = sphi %s3310_s12, %s13_s12  }
   0x2   : > { %p138_p1 = scmp.lt.s32.totalorder %s3288_s12, 5 }
   0x4   : > { %p139_p2 = pnand %p2220_p0, %p138_p1 }
   0x5   : > { %v3215_v0 = vld [vmem:[%s3673_s1] sm:$0xff] (!%p139_p2)   ;;  %v3216_v1 = vld [vmem:[%s3673_s1 + $0x8] sm:$0xff] (!%p139_p2)   ;;  %s2221_s18 = sshll.u32 (!%p139_p2), %s2216_s13, 7  ;;  %v3217_v2 = vld [vmem:[%s3673_s1 + $0x10] ss:$0 sps:$4 sm:$0x33] (!%p139_p2)  }
   0x6   : > { %142 = sbr.rel (%p139_p2) target bundleno = 361 (0x169), region = 32  ;;  %3065 = vmatprep.subr.bf16.mxu0 (!%p139_p2), %v3215_v0  ;;  %3199 = vmatprep.subr.bf16.mxu1 (!%p139_p2), %v3215_v0  ;;  %p163_p3 = scmp.lt.s32.totalorder (!%p139_p2), %s2221_s18, 511  ;;  %vm843_vm0 = vcmask (!%p139_p2), 1041408   ;;  %vm650_vm1 = vcmask (!%p139_p2), 293888  }
   0x7   : > { %3066 = vmatpush3.bf16.msra.mxu0 (!%p139_p2), %v3215_v0  ;;  %3202 = vmatpush3.bf16.msra.mxu1 (!%p139_p2), %v3215_v0  ;;  %v845_v3 = vsel (!%p139_p2), %vm843_vm0, %v3217_v2, 0 }
   0x8   : > { %3067 = vmatprep.subr.bf16.mxu0 (!%p139_p2), %v3216_v1  ;;  %3200 = vmatprep.subr.bf16.mxu1 (!%p139_p2), %v3216_v1 }
   0xb   : > { %3068 = vmatpush3.bf16.msra.mxu0 (!%p139_p2), %v3216_v1  ;;  %3203 = vmatpush3.bf16.msra.mxu1 (!%p139_p2), %v3216_v1 }
   0xc   : > { %3205 = vmatprep.subr.msk.bf16.mxu0 (!%p139_p2), %vm843_vm0, %v3217_v2  ;;  %3206 = vmatprep.subr.msk.bf16.mxu1 (!%p139_p2), %vm843_vm0, %v3217_v2 }
   0xd   : > { %s3677_s18 = smov (!%p163_p3, %s2221_s18), 511 }
   0xe   : > { %s2222_s21 = sshll.u32 %s3677_s18, 2 }
   0xf   : > { %s3335_s24 = scalar_lea.vmem %s3672_s0, %s2222_s21  ;;  %3070 = vmatpush3.bf16.msra.mxu0 %v845_v3  ;;  %3204 = vmatpush3.bf16.msra.mxu1 %v845_v3  ;;  %s3483_s29 = scalar_lea.vmem %s3675_s3, %s2222_s21 }
  0x10   : > { %v3218_v4 = vld [vmem:[%s3335_s24] sm:$0xff]   ;;  %v3220_v6 = vld [vmem:[%s3335_s24 + $0x8] sm:$0xff]   ;;  %v3222_v8 = vld [vmem:[%s3335_s24 + $0x10] sm:$0xff]  }
  0x11   : > { %v3219_v5 = vld [vmem:[%s3335_s24 + $0x100] sm:$0xff]   ;;  %3071 = vmatprep.mubr.msk.bf16.mxu0 %vm650_vm1, %v3218_v4  ;;  %v3221_v7 = vld [vmem:[%s3335_s24 + $0x108] sm:$0xff]   ;;  %v3223_v9 = vld [vmem:[%s3335_s24 + $0x110] sm:$0xff]  }
  0x12   : > { %3135 = vmatprep.mubr.msk.bf16.mxu1 %vm650_vm1, %v3219_v5  ;;  %3072 = vmatmul.mubr.msk.bf16.vlgmr.msra.gmra.mrb[0].mxu0 %vm650_vm1, %v3220_v6  ;;  %v3224_v10 = vld [vmem:[%s3335_s24 + $0x18] sm:$0xff]   ;;  %v3226_v12 = vld [vmem:[%s3335_s24 + $0x20] sm:$0xff]   ;;  %v3228_v14 = vld [vmem:[%s3335_s24 + $0x28] sm:$0xff]  }
  0x13   : > { %3136 = vmatmul.mubr.msk.bf16.vlgmr.msra.gmra.mrb[0].mxu1 %vm650_vm1, %v3221_v7  ;;  %3075 = vmatprep.mubr.msk.bf16.mxu0 %vm650_vm1, %v3222_v8  ;;  %v3225_v11 = vld [vmem:[%s3335_s24 + $0x118] sm:$0xff]   ;;  %v3227_v13 = vld [vmem:[%s3335_s24 + $0x120] sm:$0xff]   ;;  %v3229_v15 = vld [vmem:[%s3335_s24 + $0x128] sm:$0xff]  }
  0x14   : > { %3139 = vmatprep.mubr.msk.bf16.mxu1 %vm650_vm1, %v3223_v9  ;;  %v3230_v16 = vld [vmem:[%s3335_s24 + $0x30] sm:$0xff]   ;;  %v3232_v18 = vld [vmem:[%s3335_s24 + $0x38] sm:$0xff]   ;;  %v3234_v20 = vld [vmem:[%s3335_s24 + $0x40] sm:$0xff]  }
  0x15   : > { %v3231_v17 = vld [vmem:[%s3335_s24 + $0x130] sm:$0xff]   ;;  %v3233_v19 = vld [vmem:[%s3335_s24 + $0x138] sm:$0xff]   ;;  %v3235_v21 = vld [vmem:[%s3335_s24 + $0x140] sm:$0xff]  }
  0x16   : > { %v3236_v22 = vld [vmem:[%s3335_s24 + $0x48] sm:$0xff]   ;;  %v3238_v24 = vld [vmem:[%s3335_s24 + $0x50] sm:$0xff]   ;;  %v3240_v26 = vld [vmem:[%s3335_s24 + $0x58] sm:$0xff]  }
  0x17   : > { %v3237_v23 = vld [vmem:[%s3335_s24 + $0x148] sm:$0xff]   ;;  %v3239_v25 = vld [vmem:[%s3335_s24 + $0x150] sm:$0xff]   ;;  %v3241_v27 = vld [vmem:[%s3335_s24 + $0x158] sm:$0xff]  }
  0x18   : > { %v3242_v28 = vld [vmem:[%s3335_s24 + $0x60] sm:$0xff]   ;;  %v3244_v30 = vld [vmem:[%s3335_s24 + $0x68] sm:$0xff]   ;;  %v3246_v32 = vld [vmem:[%s3335_s24 + $0x70] sm:$0xff]  }
  0x19   : > { %v3243_v29 = vld [vmem:[%s3335_s24 + $0x160] sm:$0xff]   ;;  %v3245_v31 = vld [vmem:[%s3335_s24 + $0x168] sm:$0xff]   ;;  %v3247_v33 = vld [vmem:[%s3335_s24 + $0x170] sm:$0xff]  }
  0x1a   : > { %3076 = vmatmul.mubr.msk.bf16.gmra.mrb[4].mxu0 %vm650_vm1, %v3224_v10  ;;  %v3248_v34 = vld [vmem:[%s3335_s24 + $0x78] sm:$0xff]   ;;  %v3250_v36 = vld [vmem:[%s3335_s24 + $0x80] sm:$0xff]   ;;  %v3252_v38 = vld [vmem:[%s3335_s24 + $0x88] sm:$0xff]  }
  0x1b   : > { %3140 = vmatmul.mubr.msk.bf16.gmra.mrb[4].mxu1 %vm650_vm1, %v3225_v11  ;;  %3079 = vmatprep.mubr.msk.bf16.mxu0 %vm650_vm1, %v3226_v12  ;;  %v3249_v35 = vld [vmem:[%s3335_s24 + $0x178] sm:$0xff]   ;;  %v3251_v37 = vld [vmem:[%s3335_s24 + $0x180] sm:$0xff]   ;;  %v3253_v39 = vld [vmem:[%s3335_s24 + $0x188] sm:$0xff]  }
  0x1c   : > { %3143 = vmatprep.mubr.msk.bf16.mxu1 %vm650_vm1, %v3227_v13  ;;  %v3254_v40 = vld [vmem:[%s3335_s24 + $0x90] sm:$0xff]   ;;  %v3256_v42 = vld [vmem:[%s3335_s24 + $0x98] sm:$0xff]   ;;  %v3258_v44 = vld [vmem:[%s3335_s24 + $0xa0] sm:$0xff]  }
  0x1d   : > { %v3255_v41 = vld [vmem:[%s3335_s24 + $0x190] sm:$0xff]   ;;  %v3257_v43 = vld [vmem:[%s3335_s24 + $0x198] sm:$0xff]   ;;  %v3259_v45 = vld [vmem:[%s3335_s24 + $0x1a0] sm:$0xff]  }
  0x1e   : > { %v3260_v46 = vld [vmem:[%s3335_s24 + $0xa8] sm:$0xff]   ;;  %v3262_v48 = vld [vmem:[%s3335_s24 + $0xb0] sm:$0xff]   ;;  %v3264_v50 = vld [vmem:[%s3335_s24 + $0xb8] sm:$0xff]  }
  0x1f   : > { %v3261_v47 = vld [vmem:[%s3335_s24 + $0x1a8] sm:$0xff]   ;;  %v3263_v49 = vld [vmem:[%s3335_s24 + $0x1b0] sm:$0xff]   ;;  %v3265_v51 = vld [vmem:[%s3335_s24 + $0x1b8] sm:$0xff]  }
  0x20   : > { %v3266_v52 = vld [vmem:[%s3335_s24 + $0xc0] sm:$0xff]   ;;  %v3268_v54 = vld [vmem:[%s3335_s24 + $0xc8] sm:$0xff]   ;;  %v3270_v56 = vld [vmem:[%s3335_s24 + $0xd0] sm:$0xff]  }
  0x21   : > { %v3267_v53 = vld [vmem:[%s3335_s24 + $0x1c0] sm:$0xff]   ;;  %v3269_v55 = vld [vmem:[%s3335_s24 + $0x1c8] sm:$0xff]   ;;  %v3271_v57 = vld [vmem:[%s3335_s24 + $0x1d0] sm:$0xff]  }
  0x22   : > { %3080 = vmatmul.mubr.msk.bf16.gmra.mrb[8].mxu0 %vm650_vm1, %v3228_v14  ;;  %v3272_v58 = vld [vmem:[%s3335_s24 + $0xd8] sm:$0xff]   ;;  %v3274_v60 = vld [vmem:[%s3335_s24 + $0xe0] sm:$0xff]   ;;  %v3276_v62 = vld [vmem:[%s3335_s24 + $0xe8] sm:$0xff]  }
  0x23   : > { %3144 = vmatmul.mubr.msk.bf16.gmra.mrb[8].mxu1 %vm650_vm1, %v3229_v15  ;;  %3083 = vmatprep.mubr.msk.bf16.mxu0 %vm650_vm1, %v3230_v16  ;;  %v3273_v59 = vld [vmem:[%s3335_s24 + $0x1d8] sm:$0xff]   ;;  %v3275_v61 = vld [vmem:[%s3335_s24 + $0x1e0] sm:$0xff]   ;;  %v3277_v63 = vld [vmem:[%s3335_s24 + $0x1e8] sm:$0xff]  }
  0x24   : > { %3147 = vmatprep.mubr.msk.bf16.mxu1 %vm650_vm1, %v3231_v17  ;;  %v3278_v0 = vld [vmem:[%s3335_s24 + $0xf0] sm:$0xff]   ;;  %v3280_v2 = vld [vmem:[%s3335_s24 + $0xf8] sm:$0xff]   ;;  %v3468_v4 = vld [vmem:[%s3674_s2] ss:$0 sm:$0xff] }
  0x25   : > { %v3279_v1 = vld [vmem:[%s3335_s24 + $0x1f0] sm:$0xff]   ;;  %v3281_v3 = vld [vmem:[%s3335_s24 + $0x1f8] sm:$0xff]  }
  0x2a   : > { %3084 = vmatmul.mubr.msk.bf16.gmra.mrb[12].mxu0 %vm650_vm1, %v3232_v18 }
  0x2b   : > { %3148 = vmatmul.mubr.msk.bf16.gmra.mrb[12].mxu1 %vm650_vm1, %v3233_v19  ;;  %3087 = vmatprep.mubr.msk.bf16.mxu0 %vm650_vm1, %v3234_v20 }
  0x2c   : > { %3151 = vmatprep.mubr.msk.bf16.mxu1 %vm650_vm1, %v3235_v21 }
  0x32   : > { %3088 = vmatmul.mubr.msk.bf16.gmra.mrb[16].mxu0 %vm650_vm1, %v3236_v22 }
  0x33   : > { %3152 = vmatmul.mubr.msk.bf16.gmra.mrb[16].mxu1 %vm650_vm1, %v3237_v23  ;;  %3091 = vmatprep.mubr.msk.bf16.mxu0 %vm650_vm1, %v3238_v24 }
  0x34   : > { %3155 = vmatprep.mubr.msk.bf16.mxu1 %vm650_vm1, %v3239_v25 }
  0x3a   : > { %3092 = vmatmul.mubr.msk.bf16.gmra.mrb[20].mxu0 %vm650_vm1, %v3240_v26 }
  0x3b   : > { %3156 = vmatmul.mubr.msk.bf16.gmra.mrb[20].mxu1 %vm650_vm1, %v3241_v27  ;;  %3095 = vmatprep.mubr.msk.bf16.mxu0 %vm650_vm1, %v3242_v28 }
  0x3c   : > { %3159 = vmatprep.mubr.msk.bf16.mxu1 %vm650_vm1, %v3243_v29 }
  0x42   : > { %3096 = vmatmul.mubr.msk.bf16.gmra.mrb[24].mxu0 %vm650_vm1, %v3244_v30 }
  0x43   : > { %3160 = vmatmul.mubr.msk.bf16.gmra.mrb[24].mxu1 %vm650_vm1, %v3245_v31  ;;  %3099 = vmatprep.mubr.msk.bf16.mxu0 %vm650_vm1, %v3246_v32 }
  0x44   : > { %3163 = vmatprep.mubr.msk.bf16.mxu1 %vm650_vm1, %v3247_v33 }
  0x4a   : > { %3100 = vmatmul.mubr.msk.bf16.gmra.mrb[28].mxu0 %vm650_vm1, %v3248_v34 }
  0x4b   : > { %3164 = vmatmul.mubr.msk.bf16.gmra.mrb[28].mxu1 %vm650_vm1, %v3249_v35  ;;  %3103 = vmatprep.mubr.msk.bf16.mxu0 %vm650_vm1, %v3250_v36 }
  0x4c   : > { %3167 = vmatprep.mubr.msk.bf16.mxu1 %vm650_vm1, %v3251_v37 }
  0x52   : > { %3104 = vmatmul.mubr.msk.bf16.gmra.mrb[32].mxu0 %vm650_vm1, %v3252_v38 }
  0x53   : > { %3168 = vmatmul.mubr.msk.bf16.gmra.mrb[32].mxu1 %vm650_vm1, %v3253_v39  ;;  %3107 = vmatprep.mubr.msk.bf16.mxu0 %vm650_vm1, %v3254_v40 }
  0x54   : > { %3171 = vmatprep.mubr.msk.bf16.mxu1 %vm650_vm1, %v3255_v41 }
  0x5a   : > { %3108 = vmatmul.mubr.msk.bf16.gmra.mrb[36].mxu0 %vm650_vm1, %v3256_v42 }
  0x5b   : > { %3172 = vmatmul.mubr.msk.bf16.gmra.mrb[36].mxu1 %vm650_vm1, %v3257_v43  ;;  %3111 = vmatprep.mubr.msk.bf16.mxu0 %vm650_vm1, %v3258_v44 }
  0x5c   : > { %3175 = vmatprep.mubr.msk.bf16.mxu1 %vm650_vm1, %v3259_v45 }
  0x62   : > { %3112 = vmatmul.mubr.msk.bf16.gmra.mrb[40].mxu0 %vm650_vm1, %v3260_v46 }
  0x63   : > { %3176 = vmatmul.mubr.msk.bf16.gmra.mrb[40].mxu1 %vm650_vm1, %v3261_v47  ;;  %3115 = vmatprep.mubr.msk.bf16.mxu0 %vm650_vm1, %v3262_v48 }
  0x64   : > { %3179 = vmatprep.mubr.msk.bf16.mxu1 %vm650_vm1, %v3263_v49 }
  0x6a   : > { %3116 = vmatmul.mubr.msk.bf16.gmra.mrb[44].mxu0 %vm650_vm1, %v3264_v50 }
  0x6b   : > { %3180 = vmatmul.mubr.msk.bf16.gmra.mrb[44].mxu1 %vm650_vm1, %v3265_v51  ;;  %3119 = vmatprep.mubr.msk.bf16.mxu0 %vm650_vm1, %v3266_v52 }
  0x6c   : > { %3183 = vmatprep.mubr.msk.bf16.mxu1 %vm650_vm1, %v3267_v53 }
  0x72   : > { %3120 = vmatmul.mubr.msk.bf16.gmra.mrb[48].mxu0 %vm650_vm1, %v3268_v54 }
  0x73   : > { %3184 = vmatmul.mubr.msk.bf16.gmra.mrb[48].mxu1 %vm650_vm1, %v3269_v55  ;;  %3123 = vmatprep.mubr.msk.bf16.mxu0 %vm650_vm1, %v3270_v56 }
  0x74   : > { %3187 = vmatprep.mubr.msk.bf16.mxu1 %vm650_vm1, %v3271_v57 }
  0x7a   : > { %3124 = vmatmul.mubr.msk.bf16.gmra.mrb[52].mxu0 %vm650_vm1, %v3272_v58 }
  0x7b   : > { %3188 = vmatmul.mubr.msk.bf16.gmra.mrb[52].mxu1 %vm650_vm1, %v3273_v59  ;;  %3127 = vmatprep.mubr.msk.bf16.mxu0 %vm650_vm1, %v3274_v60 }
  0x7c   : > { %3191 = vmatprep.mubr.msk.bf16.mxu1 %vm650_vm1, %v3275_v61 }
  0x82   : > { %3128 = vmatmul.mubr.msk.bf16.gmra.mrb[56].mxu0 %vm650_vm1, %v3276_v62 }
  0x83   : > { %3192 = vmatmul.mubr.msk.bf16.gmra.mrb[56].mxu1 %vm650_vm1, %v3277_v63  ;;  %3131 = vmatprep.mubr.msk.bf16.mxu0 %vm650_vm1, %v3278_v0 }
  0x84   : > { %3195 = vmatprep.mubr.msk.bf16.mxu1 %vm650_vm1, %v3279_v1 }
  0x8a   : > { %3132 = vmatmul.mubr.msk.bf16.gmra.mrb[60].mxu0 %vm650_vm1, %v3280_v2 }
  0x8b   : > { %3196 = vmatmul.mubr.msk.bf16.gmra.mrb[60].mxu1 %vm650_vm1, %v3281_v3 }
  0xe5   : > { %v3073_v5 = vpop.f32.mrb[0].mxu0 }
  0xe6   : > { %v3137_v6 = vpop.f32.mrb[0].mxu1  ;;  %v890_v7 = vadd.f32 %v3073_v5, %v3468_v4  ;;  %v881_v9 = vpop.f32.mrb[1].mxu0 }
  0xe7   : > { %v1146_v8 = vadd.f32 %v3137_v6, %v3468_v4  ;;  %v1137_v10 = vpop.f32.mrb[1].mxu1  ;;  %v882_v11 = vadd.f32 %v3468_v4, %v881_v9  ;;  %v3074_v13 = vpop.f32.mrb[2].mxu0 }
  0xe8   : > { %v1138_v12 = vadd.f32 %v3468_v4, %v1137_v10  ;;  %v3138_v14 = vpop.f32.mrb[2].mxu1  ;;  %v893_v15 = vadd.f32 %v3074_v13, %v3468_v4  ;;  %v884_v17 = vpop.f32.mrb[3].mxu0  ;;  %v1394_v21 = vmax.f32 %v890_v7, 0.0 }
  0xe9   : > { %v1149_v16 = vadd.f32 %v3138_v14, %v3468_v4  ;;  %v1140_v18 = vpop.f32.mrb[3].mxu1  ;;  %v885_v19 = vadd.f32 %v3468_v4, %v884_v17  ;;  %v1458_v22 = vmax.f32 %v1146_v8, 0.0  ;;  %v1392_v25 = vmax.f32 %v882_v11, 0.0 }
  0xea   : > { %v1141_v20 = vadd.f32 %v3468_v4, %v1140_v18  ;;  %v1395_v23 = vmax.f32 %v893_v15, 0.0  ;;  %v1456_v26 = vmax.f32 %v1138_v12, 0.0 }
  0xeb   : > { %v1459_v24 = vmax.f32 %v1149_v16, 0.0  ;;  %v1393_v27 = vmax.f32 %v885_v19, 0.0 }
  0xec   : > { %v1457_v28 = vmax.f32 %v1141_v20, 0.0  ;;  %v2623_v29 = vpack.c.bf16 %v1395_v23, %v1394_v21 }
  0xed   : > { %v2783_v30 = vpack.c.bf16 %v1459_v24, %v1458_v22  ;;  %v2618_v31 = vpack.c.bf16 %v1393_v27, %v1392_v25  ;;  %v3077_v33 = vpop.f32.mrb[4].mxu0 }
  0xee   : > { %v2778_v32 = vpack.c.bf16 %v1457_v28, %v1456_v26  ;;  %v3141_v34 = vpop.f32.mrb[4].mxu1  ;;  %2935 = vst [vmem:[%s3483_s29 + $0x8] sm:$0xff] %v2623_v29   ;;  %v906_v35 = vadd.f32 %v3077_v33, %v3468_v4  ;;  %v897_v37 = vpop.f32.mrb[5].mxu0 }
  0xef   : > { %2967 = vst [vmem:[%s3483_s29 + $0x108] sm:$0xff] %v2783_v30   ;;  %v1162_v36 = vadd.f32 %v3141_v34, %v3468_v4  ;;  %v1153_v38 = vpop.f32.mrb[5].mxu1  ;;  %2619 = vst [vmem:[%s3483_s29] sm:$0xff] %v2618_v31   ;;  %v898_v39 = vadd.f32 %v3468_v4, %v897_v37  ;;  %v3078_v41 = vpop.f32.mrb[6].mxu0 }
  0xf0   : > { %2966 = vst [vmem:[%s3483_s29 + $0x100] sm:$0xff] %v2778_v32   ;;  %v1154_v40 = vadd.f32 %v3468_v4, %v1153_v38  ;;  %v3142_v42 = vpop.f32.mrb[6].mxu1  ;;  %v909_v43 = vadd.f32 %v3078_v41, %v3468_v4  ;;  %v900_v45 = vpop.f32.mrb[7].mxu0  ;;  %v1398_v49 = vmax.f32 %v906_v35, 0.0 }
  0xf1   : > { %v1165_v44 = vadd.f32 %v3142_v42, %v3468_v4  ;;  %v1156_v46 = vpop.f32.mrb[7].mxu1  ;;  %v901_v47 = vadd.f32 %v3468_v4, %v900_v45  ;;  %v1462_v50 = vmax.f32 %v1162_v36, 0.0  ;;  %v1396_v53 = vmax.f32 %v898_v39, 0.0 }
  0xf2   : > { %v1157_v48 = vadd.f32 %v3468_v4, %v1156_v46  ;;  %v1399_v51 = vmax.f32 %v909_v43, 0.0  ;;  %v1460_v54 = vmax.f32 %v1154_v40, 0.0 }
  0xf3   : > { %v1463_v52 = vmax.f32 %v1165_v44, 0.0  ;;  %v1397_v55 = vmax.f32 %v901_v47, 0.0 }
  0xf4   : > { %v1461_v56 = vmax.f32 %v1157_v48, 0.0  ;;  %v2633_v57 = vpack.c.bf16 %v1399_v51, %v1398_v49 }
  0xf5   : > { %v2793_v58 = vpack.c.bf16 %v1463_v52, %v1462_v50  ;;  %v2628_v59 = vpack.c.bf16 %v1397_v55, %v1396_v53  ;;  %v3081_v61 = vpop.f32.mrb[8].mxu0 }
  0xf6   : > { %v2788_v60 = vpack.c.bf16 %v1461_v56, %v1460_v54  ;;  %v3145_v62 = vpop.f32.mrb[8].mxu1  ;;  %2937 = vst [vmem:[%s3483_s29 + $0x18] sm:$0xff] %v2633_v57   ;;  %v922_v63 = vadd.f32 %v3081_v61, %v3468_v4  ;;  %v913_v1 = vpop.f32.mrb[9].mxu0 }
  0xf7   : > { %2969 = vst [vmem:[%s3483_s29 + $0x118] sm:$0xff] %v2793_v58   ;;  %v1178_v0 = vadd.f32 %v3145_v62, %v3468_v4  ;;  %v1169_v2 = vpop.f32.mrb[9].mxu1  ;;  %2936 = vst [vmem:[%s3483_s29 + $0x10] sm:$0xff] %v2628_v59   ;;  %v914_v3 = vadd.f32 %v3468_v4, %v913_v1  ;;  %v3082_v6 = vpop.f32.mrb[10].mxu0 }
  0xf8   : > { %2968 = vst [vmem:[%s3483_s29 + $0x110] sm:$0xff] %v2788_v60   ;;  %v1170_v5 = vadd.f32 %v3468_v4, %v1169_v2  ;;  %v3146_v7 = vpop.f32.mrb[10].mxu1  ;;  %v925_v8 = vadd.f32 %v3082_v6, %v3468_v4  ;;  %v916_v10 = vpop.f32.mrb[11].mxu0  ;;  %v1402_v14 = vmax.f32 %v922_v63, 0.0 }
  0xf9   : > { %v1181_v9 = vadd.f32 %v3146_v7, %v3468_v4  ;;  %v1172_v11 = vpop.f32.mrb[11].mxu1  ;;  %v917_v12 = vadd.f32 %v3468_v4, %v916_v10  ;;  %v1466_v15 = vmax.f32 %v1178_v0, 0.0  ;;  %v1400_v18 = vmax.f32 %v914_v3, 0.0 }
  0xfa   : > { %v1173_v13 = vadd.f32 %v3468_v4, %v1172_v11  ;;  %v1403_v16 = vmax.f32 %v925_v8, 0.0  ;;  %v1464_v19 = vmax.f32 %v1170_v5, 0.0 }
  0xfb   : > { %v1467_v17 = vmax.f32 %v1181_v9, 0.0  ;;  %v1401_v20 = vmax.f32 %v917_v12, 0.0 }
  0xfc   : > { %v1465_v21 = vmax.f32 %v1173_v13, 0.0  ;;  %v2643_v22 = vpack.c.bf16 %v1403_v16, %v1402_v14 }
  0xfd   : > { %v2803_v23 = vpack.c.bf16 %v1467_v17, %v1466_v15  ;;  %v2638_v24 = vpack.c.bf16 %v1401_v20, %v1400_v18  ;;  %v3085_v26 = vpop.f32.mrb[12].mxu0 }
  0xfe   : > { %v2798_v25 = vpack.c.bf16 %v1465_v21, %v1464_v19  ;;  %v3149_v27 = vpop.f32.mrb[12].mxu1  ;;  %2939 = vst [vmem:[%s3483_s29 + $0x28] sm:$0xff] %v2643_v22   ;;  %v938_v28 = vadd.f32 %v3085_v26, %v3468_v4  ;;  %v929_v30 = vpop.f32.mrb[13].mxu0 }
  0xff   : > { %2971 = vst [vmem:[%s3483_s29 + $0x128] sm:$0xff] %v2803_v23   ;;  %v1194_v29 = vadd.f32 %v3149_v27, %v3468_v4  ;;  %v1185_v31 = vpop.f32.mrb[13].mxu1  ;;  %2938 = vst [vmem:[%s3483_s29 + $0x20] sm:$0xff] %v2638_v24   ;;  %v930_v32 = vadd.f32 %v3468_v4, %v929_v30  ;;  %v3086_v34 = vpop.f32.mrb[14].mxu0 }
 0x100   : > { %2970 = vst [vmem:[%s3483_s29 + $0x120] sm:$0xff] %v2798_v25   ;;  %v1186_v33 = vadd.f32 %v3468_v4, %v1185_v31  ;;  %v3150_v35 = vpop.f32.mrb[14].mxu1  ;;  %v941_v36 = vadd.f32 %v3086_v34, %v3468_v4  ;;  %v932_v38 = vpop.f32.mrb[15].mxu0  ;;  %v1406_v42 = vmax.f32 %v938_v28, 0.0 }
 0x101   : > { %v1197_v37 = vadd.f32 %v3150_v35, %v3468_v4  ;;  %v1188_v39 = vpop.f32.mrb[15].mxu1  ;;  %v933_v40 = vadd.f32 %v3468_v4, %v932_v38  ;;  %v1470_v43 = vmax.f32 %v1194_v29, 0.0  ;;  %v1404_v46 = vmax.f32 %v930_v32, 0.0 }
 0x102   : > { %v1189_v41 = vadd.f32 %v3468_v4, %v1188_v39  ;;  %v1407_v44 = vmax.f32 %v941_v36, 0.0  ;;  %v1468_v47 = vmax.f32 %v1186_v33, 0.0 }
 0x103   : > { %v1471_v45 = vmax.f32 %v1197_v37, 0.0  ;;  %v1405_v48 = vmax.f32 %v933_v40, 0.0 }
 0x104   : > { %v1469_v49 = vmax.f32 %v1189_v41, 0.0  ;;  %v2653_v50 = vpack.c.bf16 %v1407_v44, %v1406_v42 }
 0x105   : > { %v2813_v51 = vpack.c.bf16 %v1471_v45, %v1470_v43  ;;  %v2648_v52 = vpack.c.bf16 %v1405_v48, %v1404_v46  ;;  %v3089_v54 = vpop.f32.mrb[16].mxu0 }
 0x106   : > { %v2808_v53 = vpack.c.bf16 %v1469_v49, %v1468_v47  ;;  %v3153_v55 = vpop.f32.mrb[16].mxu1  ;;  %2941 = vst [vmem:[%s3483_s29 + $0x38] sm:$0xff] %v2653_v50   ;;  %v954_v56 = vadd.f32 %v3089_v54, %v3468_v4  ;;  %v945_v58 = vpop.f32.mrb[17].mxu0 }
 0x107   : > { %2973 = vst [vmem:[%s3483_s29 + $0x138] sm:$0xff] %v2813_v51   ;;  %v1210_v57 = vadd.f32 %v3153_v55, %v3468_v4  ;;  %v1201_v59 = vpop.f32.mrb[17].mxu1  ;;  %2940 = vst [vmem:[%s3483_s29 + $0x30] sm:$0xff] %v2648_v52   ;;  %v946_v60 = vadd.f32 %v3468_v4, %v945_v58  ;;  %v3090_v62 = vpop.f32.mrb[18].mxu0 }
 0x108   : > { %2972 = vst [vmem:[%s3483_s29 + $0x130] sm:$0xff] %v2808_v53   ;;  %v1202_v61 = vadd.f32 %v3468_v4, %v1201_v59  ;;  %v3154_v63 = vpop.f32.mrb[18].mxu1  ;;  %v957_v0 = vadd.f32 %v3090_v62, %v3468_v4  ;;  %v948_v2 = vpop.f32.mrb[19].mxu0  ;;  %v1410_v7 = vmax.f32 %v954_v56, 0.0 }
 0x109   : > { %v1213_v1 = vadd.f32 %v3154_v63, %v3468_v4  ;;  %v1204_v3 = vpop.f32.mrb[19].mxu1  ;;  %v949_v5 = vadd.f32 %v3468_v4, %v948_v2  ;;  %v1474_v8 = vmax.f32 %v1210_v57, 0.0  ;;  %v1408_v11 = vmax.f32 %v946_v60, 0.0 }
 0x10a   : > { %v1205_v6 = vadd.f32 %v3468_v4, %v1204_v3  ;;  %v1411_v9 = vmax.f32 %v957_v0, 0.0  ;;  %v1472_v12 = vmax.f32 %v1202_v61, 0.0 }
 0x10b   : > { %v1475_v10 = vmax.f32 %v1213_v1, 0.0  ;;  %v1409_v13 = vmax.f32 %v949_v5, 0.0 }
 0x10c   : > { %v1473_v14 = vmax.f32 %v1205_v6, 0.0  ;;  %v2663_v15 = vpack.c.bf16 %v1411_v9, %v1410_v7 }
 0x10d   : > { %v2823_v16 = vpack.c.bf16 %v1475_v10, %v1474_v8  ;;  %v2658_v17 = vpack.c.bf16 %v1409_v13, %v1408_v11  ;;  %v3093_v19 = vpop.f32.mrb[20].mxu0 }
 0x10e   : > { %v2818_v18 = vpack.c.bf16 %v1473_v14, %v1472_v12  ;;  %v3157_v20 = vpop.f32.mrb[20].mxu1  ;;  %2943 = vst [vmem:[%s3483_s29 + $0x48] sm:$0xff] %v2663_v15   ;;  %v970_v21 = vadd.f32 %v3093_v19, %v3468_v4  ;;  %v961_v23 = vpop.f32.mrb[21].mxu0 }
 0x10f   : > { %2975 = vst [vmem:[%s3483_s29 + $0x148] sm:$0xff] %v2823_v16   ;;  %v1226_v22 = vadd.f32 %v3157_v20, %v3468_v4  ;;  %v1217_v24 = vpop.f32.mrb[21].mxu1  ;;  %2942 = vst [vmem:[%s3483_s29 + $0x40] sm:$0xff] %v2658_v17   ;;  %v962_v25 = vadd.f32 %v3468_v4, %v961_v23  ;;  %v3094_v27 = vpop.f32.mrb[22].mxu0 }
 0x110   : > { %2974 = vst [vmem:[%s3483_s29 + $0x140] sm:$0xff] %v2818_v18   ;;  %v1218_v26 = vadd.f32 %v3468_v4, %v1217_v24  ;;  %v3158_v28 = vpop.f32.mrb[22].mxu1  ;;  %v973_v29 = vadd.f32 %v3094_v27, %v3468_v4  ;;  %v964_v31 = vpop.f32.mrb[23].mxu0  ;;  %v1414_v35 = vmax.f32 %v970_v21, 0.0 }
 0x111   : > { %v1229_v30 = vadd.f32 %v3158_v28, %v3468_v4  ;;  %v1220_v32 = vpop.f32.mrb[23].mxu1  ;;  %v965_v33 = vadd.f32 %v3468_v4, %v964_v31  ;;  %v1478_v36 = vmax.f32 %v1226_v22, 0.0  ;;  %v1412_v39 = vmax.f32 %v962_v25, 0.0 }
 0x112   : > { %v1221_v34 = vadd.f32 %v3468_v4, %v1220_v32  ;;  %v1415_v37 = vmax.f32 %v973_v29, 0.0  ;;  %v1476_v40 = vmax.f32 %v1218_v26, 0.0 }
 0x113   : > { %v1479_v38 = vmax.f32 %v1229_v30, 0.0  ;;  %v1413_v41 = vmax.f32 %v965_v33, 0.0 }
 0x114   : > { %v1477_v42 = vmax.f32 %v1221_v34, 0.0  ;;  %v2673_v43 = vpack.c.bf16 %v1415_v37, %v1414_v35 }
 0x115   : > { %v2833_v44 = vpack.c.bf16 %v1479_v38, %v1478_v36  ;;  %v2668_v45 = vpack.c.bf16 %v1413_v41, %v1412_v39  ;;  %v3097_v47 = vpop.f32.mrb[24].mxu0 }
 0x116   : > { %v2828_v46 = vpack.c.bf16 %v1477_v42, %v1476_v40  ;;  %v3161_v48 = vpop.f32.mrb[24].mxu1  ;;  %2945 = vst [vmem:[%s3483_s29 + $0x58] sm:$0xff] %v2673_v43   ;;  %v986_v49 = vadd.f32 %v3097_v47, %v3468_v4  ;;  %v977_v51 = vpop.f32.mrb[25].mxu0 }
 0x117   : > { %2977 = vst [vmem:[%s3483_s29 + $0x158] sm:$0xff] %v2833_v44   ;;  %v1242_v50 = vadd.f32 %v3161_v48, %v3468_v4  ;;  %v1233_v52 = vpop.f32.mrb[25].mxu1  ;;  %2944 = vst [vmem:[%s3483_s29 + $0x50] sm:$0xff] %v2668_v45   ;;  %v978_v53 = vadd.f32 %v3468_v4, %v977_v51  ;;  %v3098_v55 = vpop.f32.mrb[26].mxu0 }
 0x118   : > { %2976 = vst [vmem:[%s3483_s29 + $0x150] sm:$0xff] %v2828_v46   ;;  %v1234_v54 = vadd.f32 %v3468_v4, %v1233_v52  ;;  %v3162_v56 = vpop.f32.mrb[26].mxu1  ;;  %v989_v57 = vadd.f32 %v3098_v55, %v3468_v4  ;;  %v980_v59 = vpop.f32.mrb[27].mxu0  ;;  %v1418_v63 = vmax.f32 %v986_v49, 0.0 }
 0x119   : > { %v1245_v58 = vadd.f32 %v3162_v56, %v3468_v4  ;;  %v1236_v60 = vpop.f32.mrb[27].mxu1  ;;  %v981_v61 = vadd.f32 %v3468_v4, %v980_v59  ;;  %v1482_v0 = vmax.f32 %v1242_v50, 0.0  ;;  %v1416_v3 = vmax.f32 %v978_v53, 0.0 }
 0x11a   : > { %v1237_v62 = vadd.f32 %v3468_v4, %v1236_v60  ;;  %v1419_v1 = vmax.f32 %v989_v57, 0.0  ;;  %v1480_v5 = vmax.f32 %v1234_v54, 0.0 }
 0x11b   : > { %v1483_v2 = vmax.f32 %v1245_v58, 0.0  ;;  %v1417_v6 = vmax.f32 %v981_v61, 0.0 }
 0x11c   : > { %v1481_v7 = vmax.f32 %v1237_v62, 0.0  ;;  %v2683_v8 = vpack.c.bf16 %v1419_v1, %v1418_v63 }
 0x11d   : > { %v2843_v9 = vpack.c.bf16 %v1483_v2, %v1482_v0  ;;  %v2678_v10 = vpack.c.bf16 %v1417_v6, %v1416_v3  ;;  %v3101_v12 = vpop.f32.mrb[28].mxu0 }
 0x11e   : > { %v2838_v11 = vpack.c.bf16 %v1481_v7, %v1480_v5  ;;  %v3165_v13 = vpop.f32.mrb[28].mxu1  ;;  %2947 = vst [vmem:[%s3483_s29 + $0x68] sm:$0xff] %v2683_v8   ;;  %v1002_v14 = vadd.f32 %v3101_v12, %v3468_v4  ;;  %v993_v16 = vpop.f32.mrb[29].mxu0 }
 0x11f   : > { %2979 = vst [vmem:[%s3483_s29 + $0x168] sm:$0xff] %v2843_v9   ;;  %v1258_v15 = vadd.f32 %v3165_v13, %v3468_v4  ;;  %v1249_v17 = vpop.f32.mrb[29].mxu1  ;;  %2946 = vst [vmem:[%s3483_s29 + $0x60] sm:$0xff] %v2678_v10   ;;  %v994_v18 = vadd.f32 %v3468_v4, %v993_v16  ;;  %v3102_v20 = vpop.f32.mrb[30].mxu0 }
 0x120   : > { %2978 = vst [vmem:[%s3483_s29 + $0x160] sm:$0xff] %v2838_v11   ;;  %v1250_v19 = vadd.f32 %v3468_v4, %v1249_v17  ;;  %v3166_v21 = vpop.f32.mrb[30].mxu1  ;;  %v1005_v22 = vadd.f32 %v3102_v20, %v3468_v4  ;;  %v996_v24 = vpop.f32.mrb[31].mxu0  ;;  %v1422_v28 = vmax.f32 %v1002_v14, 0.0 }
 0x121   : > { %v1261_v23 = vadd.f32 %v3166_v21, %v3468_v4  ;;  %v1252_v25 = vpop.f32.mrb[31].mxu1  ;;  %v997_v26 = vadd.f32 %v3468_v4, %v996_v24  ;;  %v1486_v29 = vmax.f32 %v1258_v15, 0.0  ;;  %v1420_v32 = vmax.f32 %v994_v18, 0.0 }
 0x122   : > { %v1253_v27 = vadd.f32 %v3468_v4, %v1252_v25  ;;  %v1423_v30 = vmax.f32 %v1005_v22, 0.0  ;;  %v1484_v33 = vmax.f32 %v1250_v19, 0.0 }
 0x123   : > { %v1487_v31 = vmax.f32 %v1261_v23, 0.0  ;;  %v1421_v34 = vmax.f32 %v997_v26, 0.0 }
 0x124   : > { %v1485_v35 = vmax.f32 %v1253_v27, 0.0  ;;  %v2693_v36 = vpack.c.bf16 %v1423_v30, %v1422_v28 }
 0x125   : > { %v2853_v37 = vpack.c.bf16 %v1487_v31, %v1486_v29  ;;  %v2688_v38 = vpack.c.bf16 %v1421_v34, %v1420_v32  ;;  %v3105_v40 = vpop.f32.mrb[32].mxu0 }
 0x126   : > { %v2848_v39 = vpack.c.bf16 %v1485_v35, %v1484_v33  ;;  %v3169_v41 = vpop.f32.mrb[32].mxu1  ;;  %2949 = vst [vmem:[%s3483_s29 + $0x78] sm:$0xff] %v2693_v36   ;;  %v1018_v42 = vadd.f32 %v3105_v40, %v3468_v4  ;;  %v1009_v44 = vpop.f32.mrb[33].mxu0 }
 0x127   : > { %2981 = vst [vmem:[%s3483_s29 + $0x178] sm:$0xff] %v2853_v37   ;;  %v1274_v43 = vadd.f32 %v3169_v41, %v3468_v4  ;;  %v1265_v45 = vpop.f32.mrb[33].mxu1  ;;  %2948 = vst [vmem:[%s3483_s29 + $0x70] sm:$0xff] %v2688_v38   ;;  %v1010_v46 = vadd.f32 %v3468_v4, %v1009_v44  ;;  %v3106_v48 = vpop.f32.mrb[34].mxu0 }
 0x128   : > { %2980 = vst [vmem:[%s3483_s29 + $0x170] sm:$0xff] %v2848_v39   ;;  %v1266_v47 = vadd.f32 %v3468_v4, %v1265_v45  ;;  %v3170_v49 = vpop.f32.mrb[34].mxu1  ;;  %v1021_v50 = vadd.f32 %v3106_v48, %v3468_v4  ;;  %v1012_v52 = vpop.f32.mrb[35].mxu0  ;;  %v1426_v56 = vmax.f32 %v1018_v42, 0.0 }
 0x129   : > { %v1277_v51 = vadd.f32 %v3170_v49, %v3468_v4  ;;  %v1268_v53 = vpop.f32.mrb[35].mxu1  ;;  %v1013_v54 = vadd.f32 %v3468_v4, %v1012_v52  ;;  %v1490_v57 = vmax.f32 %v1274_v43, 0.0  ;;  %v1424_v60 = vmax.f32 %v1010_v46, 0.0 }
 0x12a   : > { %v1269_v55 = vadd.f32 %v3468_v4, %v1268_v53  ;;  %v1427_v58 = vmax.f32 %v1021_v50, 0.0  ;;  %v1488_v61 = vmax.f32 %v1266_v47, 0.0 }
 0x12b   : > { %v1491_v59 = vmax.f32 %v1277_v51, 0.0  ;;  %v1425_v62 = vmax.f32 %v1013_v54, 0.0 }
 0x12c   : > { %v1489_v63 = vmax.f32 %v1269_v55, 0.0  ;;  %v2703_v0 = vpack.c.bf16 %v1427_v58, %v1426_v56 }
 0x12d   : > { %v2863_v1 = vpack.c.bf16 %v1491_v59, %v1490_v57  ;;  %v2698_v2 = vpack.c.bf16 %v1425_v62, %v1424_v60  ;;  %v3109_v5 = vpop.f32.mrb[36].mxu0 }
 0x12e   : > { %v2858_v3 = vpack.c.bf16 %v1489_v63, %v1488_v61  ;;  %v3173_v6 = vpop.f32.mrb[36].mxu1  ;;  %2951 = vst [vmem:[%s3483_s29 + $0x88] sm:$0xff] %v2703_v0   ;;  %v1034_v7 = vadd.f32 %v3109_v5, %v3468_v4  ;;  %v1025_v9 = vpop.f32.mrb[37].mxu0 }
 0x12f   : > { %2983 = vst [vmem:[%s3483_s29 + $0x188] sm:$0xff] %v2863_v1   ;;  %v1290_v8 = vadd.f32 %v3173_v6, %v3468_v4  ;;  %v1281_v10 = vpop.f32.mrb[37].mxu1  ;;  %2950 = vst [vmem:[%s3483_s29 + $0x80] sm:$0xff] %v2698_v2   ;;  %v1026_v11 = vadd.f32 %v3468_v4, %v1025_v9  ;;  %v3110_v13 = vpop.f32.mrb[38].mxu0 }
 0x130   : > { %2982 = vst [vmem:[%s3483_s29 + $0x180] sm:$0xff] %v2858_v3   ;;  %v1282_v12 = vadd.f32 %v3468_v4, %v1281_v10  ;;  %v3174_v14 = vpop.f32.mrb[38].mxu1  ;;  %v1037_v15 = vadd.f32 %v3110_v13, %v3468_v4  ;;  %v1028_v17 = vpop.f32.mrb[39].mxu0  ;;  %v1430_v21 = vmax.f32 %v1034_v7, 0.0 }
 0x131   : > { %v1293_v16 = vadd.f32 %v3174_v14, %v3468_v4  ;;  %v1284_v18 = vpop.f32.mrb[39].mxu1  ;;  %v1029_v19 = vadd.f32 %v3468_v4, %v1028_v17  ;;  %v1494_v22 = vmax.f32 %v1290_v8, 0.0  ;;  %v1428_v25 = vmax.f32 %v1026_v11, 0.0 }
 0x132   : > { %v1285_v20 = vadd.f32 %v3468_v4, %v1284_v18  ;;  %v1431_v23 = vmax.f32 %v1037_v15, 0.0  ;;  %v1492_v26 = vmax.f32 %v1282_v12, 0.0 }
 0x133   : > { %v1495_v24 = vmax.f32 %v1293_v16, 0.0  ;;  %v1429_v27 = vmax.f32 %v1029_v19, 0.0 }
 0x134   : > { %v1493_v28 = vmax.f32 %v1285_v20, 0.0  ;;  %v2713_v29 = vpack.c.bf16 %v1431_v23, %v1430_v21 }
 0x135   : > { %v2873_v30 = vpack.c.bf16 %v1495_v24, %v1494_v22  ;;  %v2708_v31 = vpack.c.bf16 %v1429_v27, %v1428_v25  ;;  %v3113_v33 = vpop.f32.mrb[40].mxu0 }
 0x136   : > { %v2868_v32 = vpack.c.bf16 %v1493_v28, %v1492_v26  ;;  %v3177_v34 = vpop.f32.mrb[40].mxu1  ;;  %2953 = vst [vmem:[%s3483_s29 + $0x98] sm:$0xff] %v2713_v29   ;;  %v1050_v35 = vadd.f32 %v3113_v33, %v3468_v4  ;;  %v1041_v37 = vpop.f32.mrb[41].mxu0 }
 0x137   : > { %2985 = vst [vmem:[%s3483_s29 + $0x198] sm:$0xff] %v2873_v30   ;;  %v1306_v36 = vadd.f32 %v3177_v34, %v3468_v4  ;;  %v1297_v38 = vpop.f32.mrb[41].mxu1  ;;  %2952 = vst [vmem:[%s3483_s29 + $0x90] sm:$0xff] %v2708_v31   ;;  %v1042_v39 = vadd.f32 %v3468_v4, %v1041_v37  ;;  %v3114_v41 = vpop.f32.mrb[42].mxu0 }
 0x138   : > { %2984 = vst [vmem:[%s3483_s29 + $0x190] sm:$0xff] %v2868_v32   ;;  %v1298_v40 = vadd.f32 %v3468_v4, %v1297_v38  ;;  %v3178_v42 = vpop.f32.mrb[42].mxu1  ;;  %v1053_v43 = vadd.f32 %v3114_v41, %v3468_v4  ;;  %v1044_v45 = vpop.f32.mrb[43].mxu0  ;;  %v1434_v49 = vmax.f32 %v1050_v35, 0.0 }
 0x139   : > { %v1309_v44 = vadd.f32 %v3178_v42, %v3468_v4  ;;  %v1300_v46 = vpop.f32.mrb[43].mxu1  ;;  %v1045_v47 = vadd.f32 %v3468_v4, %v1044_v45  ;;  %v1498_v50 = vmax.f32 %v1306_v36, 0.0  ;;  %v1432_v53 = vmax.f32 %v1042_v39, 0.0 }
 0x13a   : > { %v1301_v48 = vadd.f32 %v3468_v4, %v1300_v46  ;;  %v1435_v51 = vmax.f32 %v1053_v43, 0.0  ;;  %v1496_v54 = vmax.f32 %v1298_v40, 0.0 }
 0x13b   : > { %v1499_v52 = vmax.f32 %v1309_v44, 0.0  ;;  %v1433_v55 = vmax.f32 %v1045_v47, 0.0 }
 0x13c   : > { %v1497_v56 = vmax.f32 %v1301_v48, 0.0  ;;  %v2723_v57 = vpack.c.bf16 %v1435_v51, %v1434_v49 }
 0x13d   : > { %v2883_v58 = vpack.c.bf16 %v1499_v52, %v1498_v50  ;;  %v2718_v59 = vpack.c.bf16 %v1433_v55, %v1432_v53  ;;  %v3117_v61 = vpop.f32.mrb[44].mxu0 }
 0x13e   : > { %v2878_v60 = vpack.c.bf16 %v1497_v56, %v1496_v54  ;;  %v3181_v62 = vpop.f32.mrb[44].mxu1  ;;  %2955 = vst [vmem:[%s3483_s29 + $0xa8] sm:$0xff] %v2723_v57   ;;  %v1066_v63 = vadd.f32 %v3117_v61, %v3468_v4  ;;  %v1057_v1 = vpop.f32.mrb[45].mxu0 }
 0x13f   : > { %2987 = vst [vmem:[%s3483_s29 + $0x1a8] sm:$0xff] %v2883_v58   ;;  %v1322_v0 = vadd.f32 %v3181_v62, %v3468_v4  ;;  %v1313_v2 = vpop.f32.mrb[45].mxu1  ;;  %2954 = vst [vmem:[%s3483_s29 + $0xa0] sm:$0xff] %v2718_v59   ;;  %v1058_v3 = vadd.f32 %v3468_v4, %v1057_v1  ;;  %v3118_v6 = vpop.f32.mrb[46].mxu0 }
 0x140   : > { %2986 = vst [vmem:[%s3483_s29 + $0x1a0] sm:$0xff] %v2878_v60   ;;  %v1314_v5 = vadd.f32 %v3468_v4, %v1313_v2  ;;  %v3182_v7 = vpop.f32.mrb[46].mxu1  ;;  %v1069_v8 = vadd.f32 %v3118_v6, %v3468_v4  ;;  %v1060_v10 = vpop.f32.mrb[47].mxu0  ;;  %v1438_v14 = vmax.f32 %v1066_v63, 0.0 }
 0x141   : > { %v1325_v9 = vadd.f32 %v3182_v7, %v3468_v4  ;;  %v1316_v11 = vpop.f32.mrb[47].mxu1  ;;  %v1061_v12 = vadd.f32 %v3468_v4, %v1060_v10  ;;  %v1502_v15 = vmax.f32 %v1322_v0, 0.0  ;;  %v1436_v18 = vmax.f32 %v1058_v3, 0.0 }
 0x142   : > { %v1317_v13 = vadd.f32 %v3468_v4, %v1316_v11  ;;  %v1439_v16 = vmax.f32 %v1069_v8, 0.0  ;;  %v1500_v19 = vmax.f32 %v1314_v5, 0.0 }
 0x143   : > { %v1503_v17 = vmax.f32 %v1325_v9, 0.0  ;;  %v1437_v20 = vmax.f32 %v1061_v12, 0.0 }
 0x144   : > { %v1501_v21 = vmax.f32 %v1317_v13, 0.0  ;;  %v2733_v22 = vpack.c.bf16 %v1439_v16, %v1438_v14 }
 0x145   : > { %v2893_v23 = vpack.c.bf16 %v1503_v17, %v1502_v15  ;;  %v2728_v24 = vpack.c.bf16 %v1437_v20, %v1436_v18  ;;  %v3121_v26 = vpop.f32.mrb[48].mxu0 }
 0x146   : > { %v2888_v25 = vpack.c.bf16 %v1501_v21, %v1500_v19  ;;  %v3185_v27 = vpop.f32.mrb[48].mxu1  ;;  %2957 = vst [vmem:[%s3483_s29 + $0xb8] sm:$0xff] %v2733_v22   ;;  %v1082_v28 = vadd.f32 %v3121_v26, %v3468_v4  ;;  %v1073_v30 = vpop.f32.mrb[49].mxu0 }
 0x147   : > { %2989 = vst [vmem:[%s3483_s29 + $0x1b8] sm:$0xff] %v2893_v23   ;;  %v1338_v29 = vadd.f32 %v3185_v27, %v3468_v4  ;;  %v1329_v31 = vpop.f32.mrb[49].mxu1  ;;  %2956 = vst [vmem:[%s3483_s29 + $0xb0] sm:$0xff] %v2728_v24   ;;  %v1074_v32 = vadd.f32 %v3468_v4, %v1073_v30  ;;  %v3122_v34 = vpop.f32.mrb[50].mxu0 }
 0x148   : > { %2988 = vst [vmem:[%s3483_s29 + $0x1b0] sm:$0xff] %v2888_v25   ;;  %v1330_v33 = vadd.f32 %v3468_v4, %v1329_v31  ;;  %v3186_v35 = vpop.f32.mrb[50].mxu1  ;;  %v1085_v36 = vadd.f32 %v3122_v34, %v3468_v4  ;;  %v1076_v38 = vpop.f32.mrb[51].mxu0  ;;  %v1442_v42 = vmax.f32 %v1082_v28, 0.0 }
 0x149   : > { %v1341_v37 = vadd.f32 %v3186_v35, %v3468_v4  ;;  %v1332_v39 = vpop.f32.mrb[51].mxu1  ;;  %v1077_v40 = vadd.f32 %v3468_v4, %v1076_v38  ;;  %v1506_v43 = vmax.f32 %v1338_v29, 0.0  ;;  %v1440_v46 = vmax.f32 %v1074_v32, 0.0 }
 0x14a   : > { %v1333_v41 = vadd.f32 %v3468_v4, %v1332_v39  ;;  %v1443_v44 = vmax.f32 %v1085_v36, 0.0  ;;  %v1504_v47 = vmax.f32 %v1330_v33, 0.0 }
 0x14b   : > { %v1507_v45 = vmax.f32 %v1341_v37, 0.0  ;;  %v1441_v48 = vmax.f32 %v1077_v40, 0.0 }
 0x14c   : > { %v1505_v49 = vmax.f32 %v1333_v41, 0.0  ;;  %v2743_v50 = vpack.c.bf16 %v1443_v44, %v1442_v42 }
 0x14d   : > { %v2903_v51 = vpack.c.bf16 %v1507_v45, %v1506_v43  ;;  %v2738_v52 = vpack.c.bf16 %v1441_v48, %v1440_v46  ;;  %v3125_v54 = vpop.f32.mrb[52].mxu0 }
 0x14e   : > { %v2898_v53 = vpack.c.bf16 %v1505_v49, %v1504_v47  ;;  %v3189_v55 = vpop.f32.mrb[52].mxu1  ;;  %2959 = vst [vmem:[%s3483_s29 + $0xc8] sm:$0xff] %v2743_v50   ;;  %v1098_v56 = vadd.f32 %v3125_v54, %v3468_v4  ;;  %v1089_v58 = vpop.f32.mrb[53].mxu0 }
 0x14f   : > { %2991 = vst [vmem:[%s3483_s29 + $0x1c8] sm:$0xff] %v2903_v51   ;;  %v1354_v57 = vadd.f32 %v3189_v55, %v3468_v4  ;;  %v1345_v59 = vpop.f32.mrb[53].mxu1  ;;  %2958 = vst [vmem:[%s3483_s29 + $0xc0] sm:$0xff] %v2738_v52   ;;  %v1090_v60 = vadd.f32 %v3468_v4, %v1089_v58  ;;  %v3126_v62 = vpop.f32.mrb[54].mxu0 }
 0x150   : > { %2990 = vst [vmem:[%s3483_s29 + $0x1c0] sm:$0xff] %v2898_v53   ;;  %v1346_v61 = vadd.f32 %v3468_v4, %v1345_v59  ;;  %v3190_v63 = vpop.f32.mrb[54].mxu1  ;;  %v1101_v0 = vadd.f32 %v3126_v62, %v3468_v4  ;;  %v1092_v2 = vpop.f32.mrb[55].mxu0  ;;  %v1446_v7 = vmax.f32 %v1098_v56, 0.0 }
 0x151   : > { %v1357_v1 = vadd.f32 %v3190_v63, %v3468_v4  ;;  %v1348_v3 = vpop.f32.mrb[55].mxu1  ;;  %v1093_v5 = vadd.f32 %v3468_v4, %v1092_v2  ;;  %v1510_v8 = vmax.f32 %v1354_v57, 0.0  ;;  %v1444_v11 = vmax.f32 %v1090_v60, 0.0 }
 0x152   : > { %v1349_v6 = vadd.f32 %v3468_v4, %v1348_v3  ;;  %v1447_v9 = vmax.f32 %v1101_v0, 0.0  ;;  %v1508_v12 = vmax.f32 %v1346_v61, 0.0 }
 0x153   : > { %v1511_v10 = vmax.f32 %v1357_v1, 0.0  ;;  %v1445_v13 = vmax.f32 %v1093_v5, 0.0 }
 0x154   : > { %v1509_v14 = vmax.f32 %v1349_v6, 0.0  ;;  %v2753_v15 = vpack.c.bf16 %v1447_v9, %v1446_v7 }
 0x155   : > { %v2913_v16 = vpack.c.bf16 %v1511_v10, %v1510_v8  ;;  %v2748_v17 = vpack.c.bf16 %v1445_v13, %v1444_v11  ;;  %v3129_v19 = vpop.f32.mrb[56].mxu0 }
 0x156   : > { %v2908_v18 = vpack.c.bf16 %v1509_v14, %v1508_v12  ;;  %v3193_v20 = vpop.f32.mrb[56].mxu1  ;;  %2961 = vst [vmem:[%s3483_s29 + $0xd8] sm:$0xff] %v2753_v15   ;;  %v1114_v21 = vadd.f32 %v3129_v19, %v3468_v4  ;;  %v1105_v23 = vpop.f32.mrb[57].mxu0 }
 0x157   : > { %2993 = vst [vmem:[%s3483_s29 + $0x1d8] sm:$0xff] %v2913_v16   ;;  %v1370_v22 = vadd.f32 %v3193_v20, %v3468_v4  ;;  %v1361_v24 = vpop.f32.mrb[57].mxu1  ;;  %2960 = vst [vmem:[%s3483_s29 + $0xd0] sm:$0xff] %v2748_v17   ;;  %v1106_v25 = vadd.f32 %v3468_v4, %v1105_v23  ;;  %v3130_v27 = vpop.f32.mrb[58].mxu0 }
 0x158   : > { %2992 = vst [vmem:[%s3483_s29 + $0x1d0] sm:$0xff] %v2908_v18   ;;  %v1362_v26 = vadd.f32 %v3468_v4, %v1361_v24  ;;  %v3194_v28 = vpop.f32.mrb[58].mxu1  ;;  %v1117_v29 = vadd.f32 %v3130_v27, %v3468_v4  ;;  %v1108_v31 = vpop.f32.mrb[59].mxu0  ;;  %v1450_v35 = vmax.f32 %v1114_v21, 0.0 }
 0x159   : > { %v1373_v30 = vadd.f32 %v3194_v28, %v3468_v4  ;;  %v1364_v32 = vpop.f32.mrb[59].mxu1  ;;  %v1109_v33 = vadd.f32 %v3468_v4, %v1108_v31  ;;  %v1514_v36 = vmax.f32 %v1370_v22, 0.0  ;;  %v1448_v39 = vmax.f32 %v1106_v25, 0.0 }
 0x15a   : > { %v1365_v34 = vadd.f32 %v3468_v4, %v1364_v32  ;;  %v1451_v37 = vmax.f32 %v1117_v29, 0.0  ;;  %v1512_v40 = vmax.f32 %v1362_v26, 0.0 }
 0x15b   : > { %v1515_v38 = vmax.f32 %v1373_v30, 0.0  ;;  %v1449_v41 = vmax.f32 %v1109_v33, 0.0 }
 0x15c   : > { %v1513_v42 = vmax.f32 %v1365_v34, 0.0  ;;  %v2763_v43 = vpack.c.bf16 %v1451_v37, %v1450_v35 }
 0x15d   : > { %v2923_v44 = vpack.c.bf16 %v1515_v38, %v1514_v36  ;;  %v2758_v45 = vpack.c.bf16 %v1449_v41, %v1448_v39  ;;  %v3133_v47 = vpop.f32.mrb[60].mxu0 }
 0x15e   : > { %v2918_v46 = vpack.c.bf16 %v1513_v42, %v1512_v40  ;;  %v3197_v48 = vpop.f32.mrb[60].mxu1  ;;  %2963 = vst [vmem:[%s3483_s29 + $0xe8] sm:$0xff] %v2763_v43   ;;  %v1130_v49 = vadd.f32 %v3133_v47, %v3468_v4  ;;  %v1121_v51 = vpop.f32.mrb[61].mxu0 }
 0x15f   : > { %2995 = vst [vmem:[%s3483_s29 + $0x1e8] sm:$0xff] %v2923_v44   ;;  %v1386_v50 = vadd.f32 %v3197_v48, %v3468_v4  ;;  %v1377_v52 = vpop.f32.mrb[61].mxu1  ;;  %2962 = vst [vmem:[%s3483_s29 + $0xe0] sm:$0xff] %v2758_v45   ;;  %v1122_v53 = vadd.f32 %v3468_v4, %v1121_v51  ;;  %v3134_v55 = vpop.f32.mrb[62].mxu0 }
 0x160   : > { %2994 = vst [vmem:[%s3483_s29 + $0x1e0] sm:$0xff] %v2918_v46   ;;  %v1378_v54 = vadd.f32 %v3468_v4, %v1377_v52  ;;  %v3198_v56 = vpop.f32.mrb[62].mxu1  ;;  %v1133_v57 = vadd.f32 %v3134_v55, %v3468_v4  ;;  %v1124_v59 = vpop.f32.mrb[63].mxu0  ;;  %v1454_v63 = vmax.f32 %v1130_v49, 0.0 }
 0x161   : > { %v1389_v58 = vadd.f32 %v3198_v56, %v3468_v4  ;;  %v1380_v60 = vpop.f32.mrb[63].mxu1  ;;  %v1125_v61 = vadd.f32 %v3468_v4, %v1124_v59  ;;  %v1518_v0 = vmax.f32 %v1386_v50, 0.0  ;;  %v1452_v3 = vmax.f32 %v1122_v53, 0.0 }
 0x162   : > { %v1381_v62 = vadd.f32 %v3468_v4, %v1380_v60  ;;  %v1455_v1 = vmax.f32 %v1133_v57, 0.0  ;;  %v1516_v5 = vmax.f32 %v1378_v54, 0.0 }
 0x163   : > { %v1519_v2 = vmax.f32 %v1389_v58, 0.0  ;;  %v1453_v6 = vmax.f32 %v1125_v61, 0.0 }
 0x164   : > { %v1517_v7 = vmax.f32 %v1381_v62, 0.0  ;;  %v2773_v8 = vpack.c.bf16 %v1455_v1, %v1454_v63 }
 0x165   : > { %v2933_v9 = vpack.c.bf16 %v1519_v2, %v1518_v0  ;;  %v2768_v10 = vpack.c.bf16 %v1453_v6, %v1452_v3 }
 0x166   : > { %v2928_v11 = vpack.c.bf16 %v1517_v7, %v1516_v5  ;;  %2965 = vst [vmem:[%s3483_s29 + $0xf8] sm:$0xff] %v2773_v8  }
 0x167   : > { %2997 = vst [vmem:[%s3483_s29 + $0x1f8] sm:$0xff] %v2933_v9   ;;  %2964 = vst [vmem:[%s3483_s29 + $0xf0] sm:$0xff] %v2768_v10  }
 0x168   : > { %2996 = vst [vmem:[%s3483_s29 + $0x1f0] sm:$0xff] %v2928_v11  }
 0x169 PF: > { %s13_s12 = sadd.s32 1, %s3288_s12  }
 0x16a   : > { %p10_p4 = scmp.ge.s32.totalorder %s13_s12, 6  }
 0x16c   :  { %12 = sbr.rel (!%p10_p4) target bundleno = 1 (0x1), region = 62 }

// kernel: cnn_plus_fc_forward.7
= control target key start
LH: loop header
LB: loop body
LE: loop exit
PB: predicated region body
PF: predicated region fallthrough
CT: control target
= control target key end

     0   :  { %s4782_s1 = inlined_call_operand.vmem [shape: bf16[1152,128], index: 1, kind: input, shape index: {}]   ;;  %s4783_s0 = inlined_call_operand.vmem [shape: bf16[256,1152], index: 0, kind: input, shape index: {}]   ;;  %s4784_s2 = inlined_call_operand.vmem [shape: f32[1,128], index: 2, kind: input, shape index: {}]   ;;  %s4785_s3 = inlined_call_operand.vmem [shape: bf16[256,128], index: 3, kind: output, shape index: {}]  }
   0x1   :  { %v3407_v0 = vld [vmem:[%s4782_s1 + $0x40] sm:$0xff]   ;;  %v3409_v2 = vld [vmem:[%s4782_s1 + $0x48] sm:$0xff]   ;;  %v3411_v4 = vld [vmem:[%s4782_s1 + $0x50] sm:$0xff]  }
   0x2   :  { %v3408_v1 = vld [vmem:[%s4782_s1] sm:$0xff]   ;;  %2871 = vmatprep.subr.bf16.mxu0 %v3407_v0  ;;  %3391 = vmatprep.subr.bf16.mxu1 %v3407_v0  ;;  %v3410_v3 = vld [vmem:[%s4782_s1 + $0x8] sm:$0xff]   ;;  %v3412_v5 = vld [vmem:[%s4782_s1 + $0x10] sm:$0xff]  }
   0x3   :  { %2872 = vmatpush3.bf16.msra.mxu0 %v3408_v1  ;;  %3399 = vmatpush3.bf16.msra.mxu1 %v3408_v1  ;;  %v3413_v6 = vld [vmem:[%s4782_s1 + $0x58] sm:$0xff]   ;;  %v3415_v8 = vld [vmem:[%s4782_s1 + $0x60] sm:$0xff]   ;;  %v3417_v10 = vld [vmem:[%s4782_s1 + $0x68] sm:$0xff]  }
   0x4   :  { %2873 = vmatprep.subr.bf16.mxu0 %v3409_v2  ;;  %3392 = vmatprep.subr.bf16.mxu1 %v3409_v2  ;;  %v3414_v7 = vld [vmem:[%s4782_s1 + $0x18] sm:$0xff]   ;;  %v3416_v9 = vld [vmem:[%s4782_s1 + $0x20] sm:$0xff]   ;;  %v3418_v13 = vld [vmem:[%s4782_s1 + $0x28] sm:$0xff]  }
   0x5   :  { %v3425_v11 = vld [vmem:[%s4783_s0 + $0x4] ss:$36 sps:$4 sm:$0xff]   ;;  %v3419_v14 = vld [vmem:[%s4782_s1 + $0x70] sm:$0xff]   ;;  %v3421_v16 = vld [vmem:[%s4782_s1 + $0x78] sm:$0xff]  }
   0x6   :  { %v3428_v12 = vld [vmem:[%s4783_s0 + $0x364] ss:$36 sps:$4 sm:$0xff]   ;;  %1526 = vmatprep.mubr.bf16.mxu0 %v3425_v11  ;;  %v3420_v15 = vld [vmem:[%s4782_s1 + $0x30] sm:$0xff]   ;;  %v3422_v17 = vld [vmem:[%s4782_s1 + $0x38] sm:$0xff]  }
   0x7   :  { %2874 = vmatpush3.bf16.msra.mxu0 %v3410_v3  ;;  %3400 = vmatpush3.bf16.msra.mxu1 %v3410_v3  ;;  %v3429_v18 = vld [vmem:[%s4782_s1 + $0xc0] sm:$0xff]   ;;  %v3431_v23 = vld [vmem:[%s4782_s1 + $0xc8] sm:$0xff]   ;;  %v3441_v31 = vld [vmem:[%s4782_s1 + $0xd0] sm:$0xff]  }
   0x8   :  { %2875 = vmatprep.subr.bf16.mxu0 %v3411_v4  ;;  %3393 = vmatprep.subr.bf16.mxu1 %v3411_v4  ;;  %v3423_v19 = vld [vmem:[%s4783_s0] ss:$36 sps:$4 sm:$0xff]   ;;  %v3435_v25 = vld [vmem:[%s4783_s0 + $0x4c] ss:$36 sps:$4 sm:$0xff]   ;;  %v3443_v34 = vld [vmem:[%s4782_s1 + $0xd8] sm:$0xff]  }
   0x9   :  { %1622 = vmatprep.mubr.bf16.mxu1 %v3428_v12  ;;  %v3426_v20 = vld [vmem:[%s4783_s0 + $0x360] ss:$36 sps:$4 sm:$0xff]   ;;  %v3437_v26 = vld [vmem:[%s4783_s0 + $0x3ac] ss:$36 sps:$4 sm:$0xff]   ;;  %v3445_v35 = vld [vmem:[%s4783_s0 + $0x94] ss:$36 sps:$4 sm:$0xff]  }
   0xa   :  { %v3432_v21 = vld [vmem:[%s4782_s1 + $0x140] sm:$0xff]   ;;  %v3433_v27 = vld [vmem:[%s4782_s1 + $0x88] sm:$0xff]   ;;  %v3442_v32 = vld [vmem:[%s4782_s1 + $0x90] sm:$0xff]  }
   0xb   :  { %2876 = vmatpush3.bf16.msra.mxu0 %v3412_v5  ;;  %3401 = vmatpush3.bf16.msra.mxu1 %v3412_v5  ;;  %v3430_v22 = vld [vmem:[%s4782_s1 + $0x80] sm:$0xff]   ;;  %v3452_v28 = vld [vmem:[%s4782_s1 + $0x148] sm:$0xff]   ;;  %v3447_v36 = vld [vmem:[%s4783_s0 + $0x3f4] ss:$36 sps:$4 sm:$0xff]  }
   0xc   :  { %2877 = vmatprep.subr.bf16.mxu0 %v3413_v6  ;;  %3394 = vmatprep.subr.bf16.mxu1 %v3413_v6  ;;  %v3434_v24 = vld [vmem:[%s4782_s1 + $0x100] sm:$0xff]   ;;  %v3439_v29 = vld [vmem:[%s4783_s0 + $0x48] ss:$36 sps:$4 sm:$0xff]   ;;  %v3444_v37 = vld [vmem:[%s4782_s1 + $0x98] sm:$0xff]  }
   0xd   :  { %v3440_v30 = vld [vmem:[%s4783_s0 + $0x3a8] ss:$36 sps:$4 sm:$0xff]   ;;  %v3449_v38 = vld [vmem:[%s4783_s0 + $0x90] ss:$36 sps:$4 sm:$0xff]   ;;  %v3451_v40 = vld [vmem:[%s4782_s1 + $0xe0] sm:$0xff]  }
   0xe   :  { %v3454_v33 = vld [vmem:[%s4782_s1 + $0x108] sm:$0xff]   ;;  %v3450_v39 = vld [vmem:[%s4783_s0 + $0x3f0] ss:$36 sps:$4 sm:$0xff]   ;;  %v3453_v41 = vld [vmem:[%s4782_s1 + $0xa0] sm:$0xff]  }
   0xf   :  { %2878 = vmatpush3.bf16.msra.mxu0 %v3414_v7  ;;  %3402 = vmatpush3.bf16.msra.mxu1 %v3414_v7  ;;  %v3455_v42 = vld [vmem:[%s4782_s1 + $0xe8] sm:$0xff]   ;;  %v3466_v43 = vld [vmem:[%s4782_s1 + $0x150] sm:$0xff]   ;;  %v3457_v44 = vld [vmem:[%s4783_s0 + $0xdc] ss:$36 sps:$4 sm:$0xff]  }
  0x10   :  { %2879 = vmatprep.subr.bf16.mxu0 %v3415_v8  ;;  %3395 = vmatprep.subr.bf16.mxu1 %v3415_v8  ;;  %v3459_v45 = vld [vmem:[%s4783_s0 + $0x43c] ss:$36 sps:$4 sm:$0xff]   ;;  %v3468_v46 = vld [vmem:[%s4782_s1 + $0x110] sm:$0xff]   ;;  %v3456_v47 = vld [vmem:[%s4782_s1 + $0xa8] sm:$0xff]  }
  0x11   :  { %v3463_v48 = vld [vmem:[%s4782_s1 + $0xf0] sm:$0xff]   ;;  %v3461_v49 = vld [vmem:[%s4783_s0 + $0xd8] ss:$36 sps:$4 sm:$0xff]   ;;  %v3469_v53 = vld [vmem:[%s4783_s0 + $0x124] ss:$36 sps:$4 sm:$0xff]  }
  0x12   :  { %v3462_v50 = vld [vmem:[%s4783_s0 + $0x438] ss:$36 sps:$4 sm:$0xff]   ;;  %v3464_v51 = vld [vmem:[%s4782_s1 + $0xb0] sm:$0xff]   ;;  %v3471_v58 = vld [vmem:[%s4783_s0 + $0x8] ss:$36 sps:$4 sm:$0xff]  }
  0x13   :  { %2880 = vmatpush3.bf16.msra.mxu0 %v3416_v9  ;;  %3403 = vmatpush3.bf16.msra.mxu1 %v3416_v9  ;;  %v3465_v52 = vld [vmem:[%s4782_s1 + $0xf8] sm:$0xff]   ;;  %v3473_v54 = vld [vmem:[%s4783_s0 + $0xc] ss:$36 sps:$4 sm:$0xff]   ;;  %v3474_v59 = vld [vmem:[%s4783_s0 + $0x120] ss:$36 sps:$4 sm:$0xff]  }
  0x14   :  { %2881 = vmatprep.subr.bf16.mxu0 %v3417_v10  ;;  %3396 = vmatprep.subr.bf16.mxu1 %v3417_v10  ;;  %v3483_v55 = vld [vmem:[%s4782_s1 + $0x158] sm:$0xff]   ;;  %v3475_v60 = vld [vmem:[%s4782_s1 + $0x1c0] sm:$0xff]   ;;  %v3477_v62 = vld [vmem:[%s4783_s0 + $0x16c] ss:$36 sps:$4 sm:$0xff]  }
  0x15   :  { %v3484_v56 = vld [vmem:[%s4782_s1 + $0x118] sm:$0xff]   ;;  %v3476_v61 = vld [vmem:[%s4782_s1 + $0x180] sm:$0xff]   ;;  %v3491_v1 = vld [vmem:[%s4782_s1 + $0x1c8] sm:$0xff]  }
  0x16   :  { %v3467_v57 = vld [vmem:[%s4782_s1 + $0xb8] sm:$0xff]   ;;  %v3493_v0 = vld [vmem:[%s4782_s1 + $0x160] sm:$0xff]   ;;  %v3492_v3 = vld [vmem:[%s4782_s1 + $0x188] sm:$0xff]  }
  0x17   :  { %2882 = vmatpush3.bf16.msra.mxu0 %v3418_v13  ;;  %3404 = vmatpush3.bf16.msra.mxu1 %v3418_v13  ;;  %v3479_v63 = vld [vmem:[%s4783_s0 + $0x54] ss:$36 sps:$4 sm:$0xff]   ;;  %v3494_v2 = vld [vmem:[%s4782_s1 + $0x120] sm:$0xff]   ;;  %v3481_v4 = vld [vmem:[%s4783_s0 + $0x168] ss:$36 sps:$4 sm:$0xff]  }
  0x18   :  { %2883 = vmatprep.subr.bf16.mxu0 %v3419_v14  ;;  %3397 = vmatprep.subr.bf16.mxu1 %v3419_v14  ;;  %v3482_v5 = vld [vmem:[%s4783_s0 + $0x50] ss:$36 sps:$4 sm:$0xff]   ;;  %v3487_v7 = vld [vmem:[%s4783_s0 + $0x9c] ss:$36 sps:$4 sm:$0xff]   ;;  %v3507_v8 = vld [vmem:[%s4782_s1 + $0x168] sm:$0xff]  }
  0x19   :  { %v3485_v6 = vld [vmem:[%s4783_s0 + $0x1b4] ss:$36 sps:$4 sm:$0xff]   ;;  %v3509_v10 = vld [vmem:[%s4782_s1 + $0x128] sm:$0xff]   ;;  %v3495_v14 = vld [vmem:[%s4783_s0 + $0x1fc] ss:$36 sps:$4 sm:$0xff]  }
  0x1a   :  { %v3508_v9 = vld [vmem:[%s4782_s1 + $0x1d0] sm:$0xff]   ;;  %v3490_v13 = vld [vmem:[%s4783_s0 + $0x98] ss:$36 sps:$4 sm:$0xff]  }
  0x1b   :  { %2884 = vmatpush3.bf16.msra.mxu0 %v3420_v15  ;;  %3405 = vmatpush3.bf16.msra.mxu1 %v3420_v15  ;;  %v3510_v11 = vld [vmem:[%s4782_s1 + $0x190] sm:$0xff]  }
  0x1c   :  { %2885 = vmatprep.subr.bf16.mxu0 %v3421_v16  ;;  %3398 = vmatprep.subr.bf16.mxu1 %v3421_v16  ;;  %v3489_v12 = vld [vmem:[%s4783_s0 + $0x1b0] ss:$36 sps:$4 sm:$0xff]  }
  0x1d   :  { %v3517_v15 = vld [vmem:[%s4782_s1 + $0x170] sm:$0xff]  }
  0x1e   :  { %v3518_v16 = vld [vmem:[%s4782_s1 + $0x130] sm:$0xff]  }
  0x1f   :  { %2886 = vmatpush3.bf16.msra.mxu0 %v3422_v17  ;;  %3406 = vmatpush3.bf16.msra.mxu1 %v3422_v17  ;;  %v3497_v17 = vld [vmem:[%s4783_s0 + $0xe4] ss:$36 sps:$4 sm:$0xff]  }
  0x20   :  { %2983 = vmatprep.subr.bf16.mxu1 %v3429_v18  ;;  %3095 = vmatprep.subr.bf16.mxu0 %v3432_v21  ;;  %v3525_v18 = vld [vmem:[%s4782_s1 + $0x1d8] sm:$0xff]   ;;  %v3500_v21 = vld [vmem:[%s4783_s0 + $0xe0] ss:$36 sps:$4 sm:$0xff]  }
  0x22   :  { %1527 = vmatmul.mubr.bf16.vlgmr.msra.gmra.mrb[0].mxu0 %v3423_v19  ;;  %1623 = vmatmul.mubr.bf16.vlgmr.msra.gmra.mrb[0].mxu1 %v3426_v20  ;;  %v3526_v19 = vld [vmem:[%s4782_s1 + $0x198] sm:$0xff]  }
  0x23   :  { %2984 = vmatpush3.bf16.msra.mxu1 %v3430_v22  ;;  %3096 = vmatpush3.bf16.msra.mxu0 %v3434_v24  ;;  %v3499_v20 = vld [vmem:[%s4783_s0 + $0x1f8] ss:$36 sps:$4 sm:$0xff]   ;;  %v3501_v22 = vld [vmem:[%s4783_s0 + $0x244] ss:$36 sps:$4 sm:$0xff]  }
  0x24   :  { %2985 = vmatprep.subr.bf16.mxu1 %v3431_v23  ;;  %1534 = vmatprep.mubr.bf16.mxu0 %v3435_v25  ;;  %v3503_v23 = vld [vmem:[%s4783_s0 + $0x12c] ss:$36 sps:$4 sm:$0xff]   ;;  %v3533_v24 = vld [vmem:[%s4782_s1 + $0x178] sm:$0xff]  }
  0x25   :  { %1630 = vmatprep.mubr.bf16.mxu1 %v3437_v26  ;;  %3097 = vmatprep.subr.bf16.mxu0 %v3452_v28  ;;  %v3534_v25 = vld [vmem:[%s4782_s1 + $0x138] sm:$0xff]   ;;  %v3541_v26 = vld [vmem:[%s4782_s1 + $0x1e0] sm:$0xff]  }
  0x26   :  { %v3542_v28 = vld [vmem:[%s4782_s1 + $0x1a0] sm:$0xff]  }
  0x27   :  { %2986 = vmatpush3.bf16.msra.mxu1 %v3433_v27  ;;  %3098 = vmatpush3.bf16.msra.mxu0 %v3454_v33  ;;  %v3505_v27 = vld [vmem:[%s4783_s0 + $0x240] ss:$36 sps:$4 sm:$0xff]   ;;  %v3556_v33 = vld [vmem:[%s4782_s1 + $0x1e8] sm:$0xff]  }
  0x28   :  { %2987 = vmatprep.subr.bf16.mxu1 %v3441_v31  ;;  %3099 = vmatprep.subr.bf16.mxu0 %v3466_v43  ;;  %v3511_v31 = vld [vmem:[%s4783_s0 + $0x28c] ss:$36 sps:$4 sm:$0xff]   ;;  %v3527_v43 = vld [vmem:[%s4783_s0 + $0x31c] ss:$36 sps:$4 sm:$0xff]  }
  0x2a   :  { %1535 = vmatmul.mubr.bf16.gmra.mrb[4].mxu0 %v3439_v29  ;;  %1631 = vmatmul.mubr.bf16.gmra.mrb[4].mxu1 %v3440_v30  ;;  %v3543_v29 = vld [vmem:[%s4782_s1 + $0x200] sm:$0xff]   ;;  %v3506_v30 = vld [vmem:[%s4783_s0 + $0x128] ss:$36 sps:$4 sm:$0xff]  }
  0x2b   :  { %2988 = vmatpush3.bf16.msra.mxu1 %v3442_v32  ;;  %1542 = vmatprep.mubr.bf16.mxu0 %v3445_v35  ;;  %v3513_v32 = vld [vmem:[%s4783_s0 + $0x174] ss:$36 sps:$4 sm:$0xff]   ;;  %v3557_v35 = vld [vmem:[%s4782_s1 + $0x1a8] sm:$0xff]  }
  0x2c   :  { %2989 = vmatprep.subr.bf16.mxu1 %v3443_v34  ;;  %1638 = vmatprep.mubr.bf16.mxu1 %v3447_v36  ;;  %v3515_v34 = vld [vmem:[%s4783_s0 + $0x288] ss:$36 sps:$4 sm:$0xff]   ;;  %v3516_v36 = vld [vmem:[%s4783_s0 + $0x170] ss:$36 sps:$4 sm:$0xff]  }
  0x2d   :  { %3100 = vmatpush3.bf16.msra.mxu0 %v3468_v46  ;;  %v3532_v46 = vld [vmem:[%s4783_s0 + $0x200] ss:$36 sps:$4 sm:$0xff]  }
  0x2e   :  { %3101 = vmatprep.subr.bf16.mxu0 %v3483_v55  ;;  %v3558_v55 = vld [vmem:[%s4782_s1 + $0x208] sm:$0xff]  }
  0x2f   :  { %2990 = vmatpush3.bf16.msra.mxu1 %v3444_v37  ;;  %v3519_v37 = vld [vmem:[%s4783_s0 + $0x2d4] ss:$36 sps:$4 sm:$0xff]  }
  0x30   :  { %2991 = vmatprep.subr.bf16.mxu1 %v3451_v40  ;;  %v3524_v40 = vld [vmem:[%s4783_s0 + $0x1b8] ss:$36 sps:$4 sm:$0xff]  }
  0x31   :  { %3102 = vmatpush3.bf16.msra.mxu0 %v3484_v56  ;;  %v3573_v56 = vld [vmem:[%s4782_s1 + $0x210] sm:$0xff]  }
  0x32   :  { %1543 = vmatmul.mubr.bf16.gmra.mrb[8].mxu0 %v3449_v38  ;;  %1639 = vmatmul.mubr.bf16.gmra.mrb[8].mxu1 %v3450_v39  ;;  %v3521_v38 = vld [vmem:[%s4783_s0 + $0x1bc] ss:$36 sps:$4 sm:$0xff]   ;;  %v3523_v39 = vld [vmem:[%s4783_s0 + $0x2d0] ss:$36 sps:$4 sm:$0xff]  }
  0x33   :  { %2992 = vmatpush3.bf16.msra.mxu1 %v3453_v41  ;;  %1550 = vmatprep.mubr.bf16.mxu0 %v3457_v44  ;;  %v3571_v41 = vld [vmem:[%s4782_s1 + $0x1f0] sm:$0xff]   ;;  %v3529_v44 = vld [vmem:[%s4783_s0 + $0x204] ss:$36 sps:$4 sm:$0xff]  }
  0x34   :  { %2993 = vmatprep.subr.bf16.mxu1 %v3455_v42  ;;  %1646 = vmatprep.mubr.bf16.mxu1 %v3459_v45  ;;  %v3572_v42 = vld [vmem:[%s4782_s1 + $0x1b0] sm:$0xff]   ;;  %v3531_v45 = vld [vmem:[%s4783_s0 + $0x318] ss:$36 sps:$4 sm:$0xff]  }
  0x35   :  { %3103 = vmatprep.subr.bf16.mxu0 %v3493_v0  ;;  %v3555_v0 = vld [vmem:[%s4783_s0 + $0xa0] ss:$36 sps:$4 sm:$0xff]  }
  0x36   :  { %3104 = vmatpush3.bf16.msra.mxu0 %v3494_v2  ;;  %v3561_v2 = vld [vmem:[%s4783_s0 + $0xec] ss:$36 sps:$4 sm:$0xff]  }
  0x37   :  { %2994 = vmatpush3.bf16.msra.mxu1 %v3456_v47  ;;  %3105 = vmatprep.subr.bf16.mxu0 %v3507_v8  ;;  %v3586_v47 = vld [vmem:[%s4782_s1 + $0x1f8] sm:$0xff]  }
  0x38   :  { %2995 = vmatprep.subr.bf16.mxu1 %v3463_v48  ;;  %v3587_v48 = vld [vmem:[%s4782_s1 + $0x1b8] sm:$0xff]  }
  0x39   :  { %v3567_v8 = vld [vmem:[%s4783_s0 + $0x134] ss:$36 sps:$4 sm:$0xff]  }
  0x3a   :  { %1551 = vmatmul.mubr.bf16.gmra.mrb[12].mxu0 %v3461_v49  ;;  %1647 = vmatmul.mubr.bf16.gmra.mrb[12].mxu1 %v3462_v50  ;;  %v3535_v49 = vld [vmem:[%s4783_s0 + $0x24c] ss:$36 sps:$4 sm:$0xff]   ;;  %v3539_v50 = vld [vmem:[%s4783_s0 + $0x14] ss:$36 sps:$4 sm:$0xff]  }
  0x3b   :  { %2996 = vmatpush3.bf16.msra.mxu1 %v3464_v51  ;;  %1558 = vmatprep.mubr.bf16.mxu0 %v3469_v53  ;;  %v3537_v51 = vld [vmem:[%s4783_s0 + $0x10] ss:$36 sps:$4 sm:$0xff]  }
  0x3c   :  { %2997 = vmatprep.subr.bf16.mxu1 %v3465_v52  ;;  %1687 = vmatprep.mubr.bf16.mxu1 %v3473_v54  ;;  %v3540_v52 = vld [vmem:[%s4783_s0 + $0x248] ss:$36 sps:$4 sm:$0xff]   ;;  %v3544_v53 = vld [vmem:[%s4783_s0 + $0x294] ss:$36 sps:$4 sm:$0xff]   ;;  %v3546_v54 = vld [vmem:[%s4783_s0 + $0x5c] ss:$36 sps:$4 sm:$0xff]  }
  0x3d   :  { %3106 = vmatpush3.bf16.msra.mxu0 %v3509_v10  ;;  %v3569_v10 = vld [vmem:[%s4783_s0 + $0x368] ss:$36 sps:$4 sm:$0xff]  }
  0x3e   :  { %3107 = vmatprep.subr.bf16.mxu0 %v3517_v15  ;;  %v3579_v15 = vld [vmem:[%s4783_s0 + $0x178] ss:$36 sps:$4 sm:$0xff]  }
  0x3f   :  { %2998 = vmatpush3.bf16.msra.mxu1 %v3467_v57  ;;  %v3548_v57 = vld [vmem:[%s4783_s0 + $0x290] ss:$36 sps:$4 sm:$0xff]  }
  0x40   :  { %3207 = vmatprep.subr.bf16.mxu1 %v3475_v60  ;;  %v3552_v60 = vld [vmem:[%s4783_s0 + $0xa4] ss:$36 sps:$4 sm:$0xff]  }
  0x41   :  { %3108 = vmatpush3.bf16.msra.mxu0 %v3518_v16  ;;  %v3580_v16 = vld [vmem:[%s4783_s0 + $0x3fc] ss:$36 sps:$4 sm:$0xff]  }
  0x42   :  { %1559 = vmatmul.mubr.bf16.gmra.mrb[16].mxu0 %v3474_v59  ;;  %1688 = vmatmul.mubr.bf16.vlgmr.msra.gmra.mrb[16].mxu1 %v3471_v58  ;;  %v3549_v58 = vld [vmem:[%s4783_s0 + $0x58] ss:$36 sps:$4 sm:$0xff]  }
  0x43   :  { %3208 = vmatpush3.bf16.msra.mxu1 %v3476_v61  ;;  %1566 = vmatprep.mubr.bf16.mxu0 %v3477_v62  ;;  %v3550_v59 = vld [vmem:[%s4783_s0 + $0x2dc] ss:$36 sps:$4 sm:$0xff]  }
  0x44   :  { %1695 = vmatprep.mubr.bf16.mxu1 %v3479_v63  ;;  %3209 = vmatprep.subr.bf16.mxu1 %v3491_v1  ;;  %v3588_v61 = vld [vmem:[%s4782_s1 + $0x218] sm:$0xff]   ;;  %v3601_v62 = vld [vmem:[%s4782_s1 + $0x220] sm:$0xff]  }
  0x45   :  { %3109 = vmatprep.subr.bf16.mxu0 %v3533_v24  ;;  %v3554_v63 = vld [vmem:[%s4783_s0 + $0x2d8] ss:$36 sps:$4 sm:$0xff]   ;;  %v3559_v1 = vld [vmem:[%s4783_s0 + $0x324] ss:$36 sps:$4 sm:$0xff]  }
  0x46   :  { %3110 = vmatpush3.bf16.msra.mxu0 %v3534_v25  ;;  %v3595_v24 = vld [vmem:[%s4783_s0 + $0x254] ss:$36 sps:$4 sm:$0xff]   ;;  %v3599_v25 = vld [vmem:[%s4783_s0 + $0x1c] ss:$36 sps:$4 sm:$0xff]  }
  0x47   :  { %3210 = vmatpush3.bf16.msra.mxu1 %v3492_v3  ;;  %3343 = vmatprep.subr.bf16.mxu0 %v3543_v29  ;;  %v3614_v3 = vld [vmem:[%s4782_s1 + $0x228] sm:$0xff]  }
  0x48   :  { %3211 = vmatprep.subr.bf16.mxu1 %v3508_v9  ;;  %v3640_v9 = vld [vmem:[%s4782_s1 + $0x238] sm:$0xff]  }
  0x4a   :  { %1567 = vmatmul.mubr.bf16.gmra.mrb[20].mxu0 %v3481_v4  ;;  %1696 = vmatmul.mubr.bf16.gmra.mrb[20].mxu1 %v3482_v5  ;;  %v3563_v4 = vld [vmem:[%s4783_s0 + $0x320] ss:$36 sps:$4 sm:$0xff]   ;;  %v3564_v5 = vld [vmem:[%s4783_s0 + $0xe8] ss:$36 sps:$4 sm:$0xff]  }
  0x4b   :  { %1574 = vmatprep.mubr.bf16.mxu0 %v3485_v6  ;;  %1703 = vmatprep.mubr.bf16.mxu1 %v3487_v7  ;;  %v3627_v6 = vld [vmem:[%s4782_s1 + $0x230] sm:$0xff]  }
  0x4c   :  { %3212 = vmatpush3.bf16.msra.mxu1 %v3510_v11  ;;  %v3565_v7 = vld [vmem:[%s4783_s0 + $0x36c] ss:$36 sps:$4 sm:$0xff]  }
  0x4d   :  { %3213 = vmatprep.subr.bf16.mxu1 %v3525_v18  ;;  %v3570_v11 = vld [vmem:[%s4783_s0 + $0x130] ss:$36 sps:$4 sm:$0xff]   ;;  %v3584_v18 = vld [vmem:[%s4783_s0 + $0x3f8] ss:$36 sps:$4 sm:$0xff]  }
  0x50   :  { %3214 = vmatpush3.bf16.msra.mxu1 %v3526_v19  ;;  %v3585_v19 = vld [vmem:[%s4783_s0 + $0x1c0] ss:$36 sps:$4 sm:$0xff]  }
  0x51   :  { %3215 = vmatprep.subr.bf16.mxu1 %v3541_v26  ;;  %v3597_v26 = vld [vmem:[%s4783_s0 + $0x18] ss:$36 sps:$4 sm:$0xff]  }
  0x52   :  { %1575 = vmatmul.mubr.bf16.gmra.mrb[24].mxu0 %v3489_v12  ;;  %1704 = vmatmul.mubr.bf16.gmra.mrb[24].mxu1 %v3490_v13  ;;  %v3574_v12 = vld [vmem:[%s4783_s0 + $0x3b4] ss:$36 sps:$4 sm:$0xff]   ;;  %v3576_v13 = vld [vmem:[%s4783_s0 + $0x17c] ss:$36 sps:$4 sm:$0xff]  }
  0x53   :  { %1582 = vmatprep.mubr.bf16.mxu0 %v3495_v14  ;;  %1711 = vmatprep.mubr.bf16.mxu1 %v3497_v17  ;;  %v3578_v14 = vld [vmem:[%s4783_s0 + $0x3b0] ss:$36 sps:$4 sm:$0xff]   ;;  %v3582_v17 = vld [vmem:[%s4783_s0 + $0x1c4] ss:$36 sps:$4 sm:$0xff]  }
  0x54   :  { %3216 = vmatpush3.bf16.msra.mxu1 %v3542_v28  ;;  %v3602_v28 = vld [vmem:[%s4783_s0 + $0x29c] ss:$36 sps:$4 sm:$0xff]  }
  0x55   :  { %3217 = vmatprep.subr.bf16.mxu1 %v3556_v33  ;;  %v3610_v33 = vld [vmem:[%s4783_s0 + $0xac] ss:$36 sps:$4 sm:$0xff]  }
  0x58   :  { %3218 = vmatpush3.bf16.msra.mxu1 %v3557_v35  ;;  %v3613_v35 = vld [vmem:[%s4783_s0 + $0xa8] ss:$36 sps:$4 sm:$0xff]  }
  0x59   :  { %3219 = vmatprep.subr.bf16.mxu1 %v3571_v41  ;;  %v3623_v41 = vld [vmem:[%s4783_s0 + $0x13c] ss:$36 sps:$4 sm:$0xff]  }
  0x5a   :  { %1583 = vmatmul.mubr.bf16.gmra.mrb[28].mxu0 %v3499_v20  ;;  %1712 = vmatmul.mubr.bf16.gmra.mrb[28].mxu1 %v3500_v21  ;;  %v3589_v20 = vld [vmem:[%s4783_s0 + $0x444] ss:$36 sps:$4 sm:$0xff]   ;;  %v3591_v21 = vld [vmem:[%s4783_s0 + $0x20c] ss:$36 sps:$4 sm:$0xff]  }
  0x5b   :  { %1590 = vmatprep.mubr.bf16.mxu0 %v3501_v22  ;;  %1719 = vmatprep.mubr.bf16.mxu1 %v3503_v23  ;;  %v3593_v22 = vld [vmem:[%s4783_s0 + $0x440] ss:$36 sps:$4 sm:$0xff]   ;;  %v3594_v23 = vld [vmem:[%s4783_s0 + $0x208] ss:$36 sps:$4 sm:$0xff]  }
  0x5c   :  { %3220 = vmatpush3.bf16.msra.mxu1 %v3572_v42  ;;  %v3625_v42 = vld [vmem:[%s4783_s0 + $0x370] ss:$36 sps:$4 sm:$0xff]  }
  0x5d   :  { %3221 = vmatprep.subr.bf16.mxu1 %v3586_v47  ;;  %v3633_v47 = vld [vmem:[%s4783_s0 + $0x180] ss:$36 sps:$4 sm:$0xff]  }
  0x60   :  { %3222 = vmatpush3.bf16.msra.mxu1 %v3587_v48  ;;  %v3634_v48 = vld [vmem:[%s4783_s0 + $0x404] ss:$36 sps:$4 sm:$0xff]  }
  0x62   :  { %1591 = vmatmul.mubr.bf16.gmra.mrb[32].mxu0 %v3505_v27  ;;  %1720 = vmatmul.mubr.bf16.gmra.mrb[32].mxu1 %v3506_v30  ;;  %v3600_v27 = vld [vmem:[%s4783_s0 + $0x250] ss:$36 sps:$4 sm:$0xff]   ;;  %v3606_v30 = vld [vmem:[%s4783_s0 + $0x298] ss:$36 sps:$4 sm:$0xff]  }
  0x63   :  { %1598 = vmatprep.mubr.bf16.mxu0 %v3511_v31  ;;  %1727 = vmatprep.mubr.bf16.mxu1 %v3513_v32  ;;  %v3607_v31 = vld [vmem:[%s4783_s0 + $0x60] ss:$36 sps:$4 sm:$0xff]  }
  0x64   :  { %v3608_v32 = vld [vmem:[%s4783_s0 + $0x2e4] ss:$36 sps:$4 sm:$0xff]  }
  0x6a   :  { %1599 = vmatmul.mubr.bf16.gmra.mrb[36].mxu0 %v3515_v34  ;;  %1728 = vmatmul.mubr.bf16.gmra.mrb[36].mxu1 %v3516_v36  ;;  %v3612_v34 = vld [vmem:[%s4783_s0 + $0x2e0] ss:$36 sps:$4 sm:$0xff]   ;;  %v3615_v36 = vld [vmem:[%s4783_s0 + $0x32c] ss:$36 sps:$4 sm:$0xff]  }
  0x6b   :  { %1606 = vmatprep.mubr.bf16.mxu0 %v3519_v37  ;;  %1735 = vmatprep.mubr.bf16.mxu1 %v3521_v38  ;;  %v3617_v37 = vld [vmem:[%s4783_s0 + $0xf4] ss:$36 sps:$4 sm:$0xff]   ;;  %v3619_v38 = vld [vmem:[%s4783_s0 + $0x328] ss:$36 sps:$4 sm:$0xff]  }
  0x72   :  { %1607 = vmatmul.mubr.bf16.gmra.mrb[40].mxu0 %v3523_v39  ;;  %1736 = vmatmul.mubr.bf16.gmra.mrb[40].mxu1 %v3524_v40  ;;  %v3620_v39 = vld [vmem:[%s4783_s0 + $0xf0] ss:$36 sps:$4 sm:$0xff]  }
  0x73   :  { %1614 = vmatprep.mubr.bf16.mxu0 %v3527_v43  ;;  %1743 = vmatprep.mubr.bf16.mxu1 %v3529_v44  ;;  %v3621_v40 = vld [vmem:[%s4783_s0 + $0x374] ss:$36 sps:$4 sm:$0xff]   ;;  %v3628_v44 = vld [vmem:[%s4783_s0 + $0x3bc] ss:$36 sps:$4 sm:$0xff]  }
  0x74   :  { %v3626_v43 = vld [vmem:[%s4783_s0 + $0x138] ss:$36 sps:$4 sm:$0xff]  }
  0x7a   :  { %1615 = vmatmul.mubr.bf16.gmra.mrb[44].mxu0 %v3531_v45  ;;  %1744 = vmatmul.mubr.bf16.gmra.mrb[44].mxu1 %v3532_v46  ;;  %v3630_v45 = vld [vmem:[%s4783_s0 + $0x184] ss:$36 sps:$4 sm:$0xff]   ;;  %v3632_v46 = vld [vmem:[%s4783_s0 + $0x3b8] ss:$36 sps:$4 sm:$0xff]  }
  0x7b   :  { %1751 = vmatprep.mubr.bf16.mxu1 %v3535_v49  ;;  %1848 = vmatprep.mubr.bf16.mxu0 %v3539_v50  ;;  %v3636_v49 = vld [vmem:[%s4783_s0 + $0x1cc] ss:$36 sps:$4 sm:$0xff]   ;;  %v3638_v50 = vld [vmem:[%s4783_s0 + $0x400] ss:$36 sps:$4 sm:$0xff]  }
  0x82   :  { %1752 = vmatmul.mubr.bf16.gmra.mrb[48].mxu1 %v3540_v52  ;;  %1849 = vmatmul.mubr.bf16.vlgmr.msra.gmra.mrb[48].mxu0 %v3537_v51  ;;  %v3639_v51 = vld [vmem:[%s4783_s0 + $0x1c8] ss:$36 sps:$4 sm:$0xff]  }
  0x83   :  { %3344 = vmatpush3.bf16.msra.mxu0 %v3543_v29  ;;  %1759 = vmatprep.mubr.bf16.mxu1 %v3544_v53  ;;  %v3604_v29 = vld [vmem:[%s4783_s0 + $0x64] ss:$36 sps:$4 sm:$0xff]   ;;  %v3641_v52 = vld [vmem:[%s4783_s0 + $0x44c] ss:$36 sps:$4 sm:$0xff]   ;;  %v3643_v53 = vld [vmem:[%s4783_s0 + $0x214] ss:$36 sps:$4 sm:$0xff]  }
  0x84   :  { %1856 = vmatprep.mubr.bf16.mxu0 %v3546_v54  ;;  %3345 = vmatprep.subr.bf16.mxu0 %v3558_v55 }
  0x87   :  { %3346 = vmatpush3.bf16.msra.mxu0 %v3558_v55 }
  0x88   :  { %3347 = vmatprep.subr.bf16.mxu0 %v3573_v56 }
  0x8a   :  { %1760 = vmatmul.mubr.bf16.gmra.mrb[52].mxu1 %v3548_v57  ;;  %1857 = vmatmul.mubr.bf16.gmra.mrb[52].mxu0 %v3549_v58  ;;  %v3645_v58 = vld [vmem:[%s4783_s0 + $0x448] ss:$36 sps:$4 sm:$0xff]  }
  0x8b   :  { %1767 = vmatprep.mubr.bf16.mxu1 %v3550_v59  ;;  %1864 = vmatprep.mubr.bf16.mxu0 %v3552_v60  ;;  %v3646_v59 = vld [vmem:[%s4783_s0 + $0x210] ss:$36 sps:$4 sm:$0xff]  }
  0x8c   :  { %3348 = vmatpush3.bf16.msra.mxu0 %v3573_v56 }
  0x8d   :  { %3349 = vmatprep.subr.bf16.mxu0 %v3588_v61 }
  0x90   :  { %3350 = vmatpush3.bf16.msra.mxu0 %v3588_v61 }
  0x91   :  { %3351 = vmatprep.subr.bf16.mxu0 %v3601_v62 }
  0x92   :  { %1768 = vmatmul.mubr.bf16.gmra.mrb[56].mxu1 %v3554_v63  ;;  %1865 = vmatmul.mubr.bf16.gmra.mrb[56].mxu0 %v3555_v0  ;;  %v3647_v0 = vld [vmem:[%s4783_s0 + $0x25c] ss:$36 sps:$4 sm:$0xff]  }
  0x93   :  { %1775 = vmatprep.mubr.bf16.mxu1 %v3559_v1  ;;  %1872 = vmatprep.mubr.bf16.mxu0 %v3561_v2  ;;  %v3649_v1 = vld [vmem:[%s4783_s0 + $0x20] ss:$36 sps:$4 sm:$0xff]  }
  0x94   :  { %3352 = vmatpush3.bf16.msra.mxu0 %v3601_v62 }
  0x95   :  { %3353 = vmatprep.subr.bf16.mxu0 %v3614_v3 }
  0x98   :  { %3354 = vmatpush3.bf16.msra.mxu0 %v3614_v3 }
  0x99   :  { %3355 = vmatprep.subr.bf16.mxu0 %v3627_v6 }
  0x9a   :  { %1776 = vmatmul.mubr.bf16.gmra.mrb[60].mxu1 %v3563_v4  ;;  %1873 = vmatmul.mubr.bf16.gmra.mrb[60].mxu0 %v3564_v5 }
  0x9b   :  { %1783 = vmatprep.mubr.bf16.mxu1 %v3565_v7  ;;  %1880 = vmatprep.mubr.bf16.mxu0 %v3567_v8 }
  0x9c   :  { %3356 = vmatpush3.bf16.msra.mxu0 %v3627_v6 }
  0x9d   :  { %3357 = vmatprep.subr.bf16.mxu0 %v3640_v9 }
  0xa0   :  { %3358 = vmatpush3.bf16.msra.mxu0 %v3640_v9 }
  0xa2   :  { %1784 = vmatmul.mubr.bf16.gmra.mrb[64].mxu1 %v3569_v10  ;;  %1881 = vmatmul.mubr.bf16.gmra.mrb[64].mxu0 %v3570_v11  ;;  %v3650_v10 = vld [vmem:[%s4783_s0 + $0x258] ss:$36 sps:$4 sm:$0xff]   ;;  %v3651_v11 = vld [vmem:[%s4783_s0 + $0x68] ss:$36 sps:$4 sm:$0xff]  }
  0xa3   :  { %1791 = vmatprep.mubr.bf16.mxu1 %v3574_v12  ;;  %1888 = vmatprep.mubr.bf16.mxu0 %v3576_v13 }
  0xaa   :  { %1792 = vmatmul.mubr.bf16.gmra.mrb[68].mxu1 %v3578_v14  ;;  %1889 = vmatmul.mubr.bf16.gmra.mrb[68].mxu0 %v3579_v15 }
  0xab   :  { %1799 = vmatprep.mubr.bf16.mxu1 %v3580_v16  ;;  %1896 = vmatprep.mubr.bf16.mxu0 %v3582_v17  ;;  %v3652_v16 = vld [vmem:[%s4783_s0 + $0x2a4] ss:$36 sps:$4 sm:$0xff]   ;;  %v3654_v17 = vld [vmem:[%s4783_s0 + $0xb0] ss:$36 sps:$4 sm:$0xff]  }
  0xb2   :  { %1800 = vmatmul.mubr.bf16.gmra.mrb[72].mxu1 %v3584_v18  ;;  %1897 = vmatmul.mubr.bf16.gmra.mrb[72].mxu0 %v3585_v19 }
  0xb3   :  { %1807 = vmatprep.mubr.bf16.mxu1 %v3589_v20  ;;  %1904 = vmatprep.mubr.bf16.mxu0 %v3591_v21 }
  0xba   :  { %1808 = vmatmul.mubr.bf16.gmra.mrb[76].mxu1 %v3593_v22  ;;  %1905 = vmatmul.mubr.bf16.gmra.mrb[76].mxu0 %v3594_v23 }
  0xbb   :  { %1912 = vmatprep.mubr.bf16.mxu0 %v3595_v24  ;;  %2009 = vmatprep.mubr.bf16.mxu1 %v3599_v25 }
  0xc2   :  { %1913 = vmatmul.mubr.bf16.gmra.mrb[80].mxu0 %v3600_v27  ;;  %2010 = vmatmul.mubr.bf16.vlgmr.msra.gmra.mrb[80].mxu1 %v3597_v26  ;;  %v3655_v26 = vld [vmem:[%s4783_s0 + $0x2a0] ss:$36 sps:$4 sm:$0xff]   ;;  %v3656_v27 = vld [vmem:[%s4783_s0 + $0xf8] ss:$36 sps:$4 sm:$0xff]  }
  0xc3   :  { %1920 = vmatprep.mubr.bf16.mxu0 %v3602_v28  ;;  %2017 = vmatprep.mubr.bf16.mxu1 %v3604_v29 }
  0xca   :  { %1921 = vmatmul.mubr.bf16.gmra.mrb[84].mxu0 %v3606_v30  ;;  %2018 = vmatmul.mubr.bf16.gmra.mrb[84].mxu1 %v3607_v31 }
  0xcb   :  { %1928 = vmatprep.mubr.bf16.mxu0 %v3608_v32  ;;  %2025 = vmatprep.mubr.bf16.mxu1 %v3610_v33  ;;  %v3657_v32 = vld [vmem:[%s4783_s0 + $0x2ec] ss:$36 sps:$4 sm:$0xff]   ;;  %v3659_v33 = vld [vmem:[%s4783_s0 + $0x140] ss:$36 sps:$4 sm:$0xff]  }
  0xd2   :  { %1929 = vmatmul.mubr.bf16.gmra.mrb[88].mxu0 %v3612_v34  ;;  %2026 = vmatmul.mubr.bf16.gmra.mrb[88].mxu1 %v3613_v35 }
  0xd3   :  { %1936 = vmatprep.mubr.bf16.mxu0 %v3615_v36  ;;  %2033 = vmatprep.mubr.bf16.mxu1 %v3617_v37 }
  0xda   :  { %1937 = vmatmul.mubr.bf16.gmra.mrb[92].mxu0 %v3619_v38  ;;  %2034 = vmatmul.mubr.bf16.gmra.mrb[92].mxu1 %v3620_v39 }
  0xdb   :  { %1944 = vmatprep.mubr.bf16.mxu0 %v3621_v40  ;;  %2041 = vmatprep.mubr.bf16.mxu1 %v3623_v41 }
  0xe2   :  { %1945 = vmatmul.mubr.bf16.gmra.mrb[96].mxu0 %v3625_v42  ;;  %2042 = vmatmul.mubr.bf16.gmra.mrb[96].mxu1 %v3626_v43  ;;  %v3660_v42 = vld [vmem:[%s4783_s0 + $0x2e8] ss:$36 sps:$4 sm:$0xff]  }
  0xe3   :  { %1952 = vmatprep.mubr.bf16.mxu0 %v3628_v44  ;;  %2049 = vmatprep.mubr.bf16.mxu1 %v3630_v45  ;;  %v3661_v43 = vld [vmem:[%s4783_s0 + $0x188] ss:$36 sps:$4 sm:$0xff]  }
  0xea   :  { %1953 = vmatmul.mubr.bf16.gmra.mrb[100].mxu0 %v3632_v46  ;;  %2050 = vmatmul.mubr.bf16.gmra.mrb[100].mxu1 %v3633_v47 }
  0xeb   :  { %1960 = vmatprep.mubr.bf16.mxu0 %v3634_v48  ;;  %2057 = vmatprep.mubr.bf16.mxu1 %v3636_v49  ;;  %v3662_v48 = vld [vmem:[%s4783_s0 + $0x334] ss:$36 sps:$4 sm:$0xff]  }
  0xec   :  { %v3664_v49 = vld [vmem:[%s4783_s0 + $0x1d0] ss:$36 sps:$4 sm:$0xff]  }
  0xf2   :  { %1961 = vmatmul.mubr.bf16.gmra.mrb[104].mxu0 %v3638_v50  ;;  %2058 = vmatmul.mubr.bf16.gmra.mrb[104].mxu1 %v3639_v51 }
  0xf3   :  { %1968 = vmatprep.mubr.bf16.mxu0 %v3641_v52  ;;  %2065 = vmatprep.mubr.bf16.mxu1 %v3643_v53 }
  0xf5   :  { %v2959_v54 = vpop.f32.mrb[0].mxu1  ;;  %v2887_v55 = vpop.f32.mrb[0].mxu0 }
  0xf6   :  { %v2960_v56 = vpop.f32.mrb[1].mxu1  ;;  %v2888_v57 = vpop.f32.mrb[1].mxu0 }
  0xf7   :  { %v4259_v60 = vadd.f32 %v2960_v56, %v2959_v54  ;;  %v2962_v61 = vpop.f32.mrb[2].mxu1  ;;  %v4261_v62 = vadd.f32 %v2888_v57, %v2887_v55  ;;  %v2890_v63 = vpop.f32.mrb[2].mxu0  ;;  %v4336_v54 = vld [vmem:[%s4784_s2] ss:$0 sm:$0xff] }
  0xf8   :  { %v2963_v2 = vpop.f32.mrb[3].mxu1  ;;  %v2891_v3 = vpop.f32.mrb[3].mxu0 }
  0xf9   :  { %v4269_v4 = vadd.f32 %v2963_v2, %v2962_v61  ;;  %v4271_v5 = vadd.f32 %v2891_v3, %v2890_v63  ;;  %v3666_v61 = vld [vmem:[%s4783_s0 + $0x218] ss:$36 sps:$4 sm:$0xff]   ;;  %v1529_v63 = vadd.f32 %v4261_v62, %v4336_v54 }
  0xfa   :  { %1969 = vmatmul.mubr.bf16.gmra.mrb[108].mxu0 %v3645_v58  ;;  %2066 = vmatmul.mubr.bf16.gmra.mrb[108].mxu1 %v3646_v59  ;;  %v3665_v59 = vld [vmem:[%s4783_s0 + $0x330] ss:$36 sps:$4 sm:$0xff]  }
  0xfb   :  { %2073 = vmatprep.mubr.bf16.mxu1 %v3647_v0  ;;  %3359 = vmatprep.mubr.bf16.mxu0 %v3649_v1 }
  0xfd   :  { %v2965_v6 = vpop.f32.mrb[4].mxu1  ;;  %v2893_v7 = vpop.f32.mrb[4].mxu0 }
  0xfe   :  { %v2966_v8 = vpop.f32.mrb[5].mxu1  ;;  %v2894_v9 = vpop.f32.mrb[5].mxu0 }
  0xff   :  { %v4279_v12 = vadd.f32 %v2966_v8, %v2965_v6  ;;  %v2968_v13 = vpop.f32.mrb[6].mxu1  ;;  %v4281_v14 = vadd.f32 %v2894_v9, %v2893_v7  ;;  %v2896_v15 = vpop.f32.mrb[6].mxu0  ;;  %v3667_v6 = vld [vmem:[%s4783_s0 + $0x37c] ss:$36 sps:$4 sm:$0xff]  }
 0x100   :  { %v2969_v18 = vpop.f32.mrb[7].mxu1  ;;  %v2897_v19 = vpop.f32.mrb[7].mxu0  ;;  %v3669_v7 = vld [vmem:[%s4783_s0 + $0x260] ss:$36 sps:$4 sm:$0xff]  }
 0x101   :  { %v4289_v20 = vadd.f32 %v2969_v18, %v2968_v13  ;;  %v4291_v21 = vadd.f32 %v2897_v19, %v2896_v15 }
 0x102   :  { %2074 = vmatmul.mubr.bf16.gmra.mrb[112].mxu1 %v3650_v10  ;;  %3360 = vmatmul.mubr.bf16.vlgmr.msra.gmra.mrb[112].mxu0 %v3651_v11  ;;  %v1532_v10 = vadd.f32 %v4271_v5, %v4336_v54  ;;  %v3671_v5 = vld [vmem:[%s4783_s0 + $0x2a8] ss:$36 sps:$4 sm:$0xff]  }
 0x103   :  { %2081 = vmatprep.mubr.bf16.mxu1 %v3652_v16  ;;  %3363 = vmatprep.mubr.bf16.mxu0 %v3654_v17 }
 0x105   :  { %v2971_v22 = vpop.f32.mrb[8].mxu1  ;;  %v2899_v23 = vpop.f32.mrb[8].mxu0 }
 0x106   :  { %v2972_v24 = vpop.f32.mrb[9].mxu1  ;;  %v2900_v25 = vpop.f32.mrb[9].mxu0 }
 0x107   :  { %v4299_v28 = vadd.f32 %v2972_v24, %v2971_v22  ;;  %v2974_v29 = vpop.f32.mrb[10].mxu1  ;;  %v4301_v30 = vadd.f32 %v2900_v25, %v2899_v23  ;;  %v2902_v31 = vpop.f32.mrb[10].mxu0  ;;  %v3670_v22 = vld [vmem:[%s4783_s0 + $0x378] ss:$36 sps:$4 sm:$0xff]   ;;  %v1537_v23 = vadd.f32 %v4281_v14, %v4336_v54 }
 0x108   :  { %v2975_v34 = vpop.f32.mrb[11].mxu1  ;;  %v2903_v35 = vpop.f32.mrb[11].mxu0 }
 0x109   :  { %v4309_v36 = vadd.f32 %v2975_v34, %v2974_v29  ;;  %v4311_v37 = vadd.f32 %v2903_v35, %v2902_v31  ;;  %v3672_v29 = vld [vmem:[%s4783_s0 + $0x3c4] ss:$36 sps:$4 sm:$0xff]   ;;  %v3674_v31 = vld [vmem:[%s4783_s0 + $0x2f0] ss:$36 sps:$4 sm:$0xff]   ;;  %v1540_v34 = vadd.f32 %v4291_v21, %v4336_v54  ;;  %v3676_v21 = vld [vmem:[%s4783_s0 + $0x338] ss:$36 sps:$4 sm:$0xff]  }
 0x10a   :  { %2082 = vmatmul.mubr.bf16.gmra.mrb[116].mxu1 %v3655_v26  ;;  %3364 = vmatmul.mubr.bf16.gmra.mrb[116].mxu0 %v3656_v27 }
 0x10b   :  { %2089 = vmatprep.mubr.bf16.mxu1 %v3657_v32  ;;  %3367 = vmatprep.mubr.bf16.mxu0 %v3659_v33 }
 0x10d   :  { %v2977_v38 = vpop.f32.mrb[12].mxu1  ;;  %v2905_v39 = vpop.f32.mrb[12].mxu0 }
 0x10e   :  { %v2978_v40 = vpop.f32.mrb[13].mxu1  ;;  %v2906_v41 = vpop.f32.mrb[13].mxu0 }
 0x10f   :  { %v4319_v44 = vadd.f32 %v2978_v40, %v2977_v38  ;;  %v2980_v45 = vpop.f32.mrb[14].mxu1  ;;  %v4321_v46 = vadd.f32 %v2906_v41, %v2905_v39  ;;  %v2908_v47 = vpop.f32.mrb[14].mxu0 }
 0x110   :  { %v2981_v50 = vpop.f32.mrb[15].mxu1  ;;  %v2909_v51 = vpop.f32.mrb[15].mxu0 }
 0x111   :  { %v4329_v52 = vadd.f32 %v2981_v50, %v2980_v45  ;;  %v4331_v53 = vadd.f32 %v2909_v51, %v2908_v47  ;;  %v3675_v45 = vld [vmem:[%s4783_s0 + $0x3c0] ss:$36 sps:$4 sm:$0xff]   ;;  %v1545_v47 = vadd.f32 %v4301_v30, %v4336_v54 }
 0x112   :  { %2090 = vmatmul.mubr.bf16.gmra.mrb[120].mxu1 %v3660_v42  ;;  %3368 = vmatmul.mubr.bf16.gmra.mrb[120].mxu0 %v3661_v43 }
 0x113   :  { %2097 = vmatprep.mubr.bf16.mxu1 %v3662_v48  ;;  %3371 = vmatprep.mubr.bf16.mxu0 %v3664_v49 }
 0x115   :  { %v2999_v55 = vpop.f32.mrb[16].mxu1  ;;  %v2911_v56 = vpop.f32.mrb[16].mxu0 }
 0x116   :  { %v3000_v57 = vpop.f32.mrb[17].mxu1  ;;  %v2912_v58 = vpop.f32.mrb[17].mxu0 }
 0x117   :  { %v3001_v0 = vadd.f32 %v3000_v57, %v2999_v55  ;;  %v3002_v1 = vpop.f32.mrb[18].mxu1  ;;  %v4346_v2 = vadd.f32 %v2912_v58, %v2911_v56  ;;  %v2914_v3 = vpop.f32.mrb[18].mxu0  ;;  %v3677_v55 = vld [vmem:[%s4783_s0 + $0x40c] ss:$36 sps:$4 sm:$0xff]   ;;  %v3679_v56 = vld [vmem:[%s4783_s0 + $0x380] ss:$36 sps:$4 sm:$0xff]  }
 0x118   :  { %v3003_v8 = vpop.f32.mrb[19].mxu1  ;;  %v2915_v9 = vpop.f32.mrb[19].mxu0 }
 0x119   :  { %v4356_v11 = vadd.f32 %v3001_v0, %v1529_v63  ;;  %v3004_v62 = vadd.f32 %v3003_v8, %v3002_v1  ;;  %v4358_v13 = vadd.f32 %v2915_v9, %v2914_v3  ;;  %v3680_v8 = vld [vmem:[%s4783_s0 + $0x408] ss:$36 sps:$4 sm:$0xff]   ;;  %v1553_v9 = vadd.f32 %v4321_v46, %v4336_v54 }
 0x11a   :  { %2098 = vmatmul.mubr.bf16.gmra.mrb[124].mxu1 %v3665_v59  ;;  %3372 = vmatmul.mubr.bf16.gmra.mrb[124].mxu0 %v3666_v61  ;;  %v1548_v59 = vadd.f32 %v4311_v37, %v4336_v54  ;;  %v3681_v37 = vld [vmem:[%s4783_s0 + $0x3c8] ss:$36 sps:$4 sm:$0xff]  }
 0x11b   :  { %v4360_v15 = vadd.f32 %v3004_v62, %v1532_v10  ;;  %2105 = vmatprep.mubr.bf16.mxu1 %v3667_v6  ;;  %3375 = vmatprep.mubr.bf16.mxu0 %v3669_v7 }
 0x11d   :  { %v3005_v16 = vpop.f32.mrb[20].mxu1  ;;  %v2917_v17 = vpop.f32.mrb[20].mxu0 }
 0x11e   :  { %v3006_v18 = vpop.f32.mrb[21].mxu1  ;;  %v2918_v19 = vpop.f32.mrb[21].mxu0 }
 0x11f   :  { %v3007_v24 = vadd.f32 %v3006_v18, %v3005_v16  ;;  %v3008_v25 = vpop.f32.mrb[22].mxu1  ;;  %v4370_v26 = vadd.f32 %v2918_v19, %v2917_v17  ;;  %v2920_v27 = vpop.f32.mrb[22].mxu0  ;;  %v3682_v18 = vld [vmem:[%s4783_s0 + $0x454] ss:$36 sps:$4 sm:$0xff]  }
 0x120   :  { %v3009_v32 = vpop.f32.mrb[23].mxu1  ;;  %v2921_v33 = vpop.f32.mrb[23].mxu0  ;;  %v3684_v19 = vld [vmem:[%s4783_s0 + $0x410] ss:$36 sps:$4 sm:$0xff]  }
 0x121   :  { %v4380_v35 = vadd.f32 %v3007_v24, %v1537_v23  ;;  %v3010_v14 = vadd.f32 %v3009_v32, %v3008_v25  ;;  %v4382_v38 = vadd.f32 %v2921_v33, %v2920_v27  ;;  %v1556_v23 = vadd.f32 %v4331_v53, %v4336_v54  ;;  %v3686_v53 = vld [vmem:[%s4783_s0 + $0x458] ss:$36 sps:$4 sm:$0xff]  }
 0x122   :  { %2106 = vmatmul.mubr.bf16.gmra.mrb[128].mxu1 %v3670_v22  ;;  %3376 = vmatmul.mubr.bf16.gmra.mrb[128].mxu0 %v3671_v5 }
 0x123   :  { %v4384_v39 = vadd.f32 %v3010_v14, %v1540_v34  ;;  %2113 = vmatprep.mubr.bf16.mxu1 %v3672_v29  ;;  %3379 = vmatprep.mubr.bf16.mxu0 %v3674_v31  ;;  %v3685_v34 = vld [vmem:[%s4783_s0 + $0x450] ss:$36 sps:$4 sm:$0xff]   ;;  %v1561_v14 = vadd.f32 %v4346_v2, %v4336_v54 }
 0x125   :  { %v3011_v40 = vpop.f32.mrb[24].mxu1  ;;  %v2923_v41 = vpop.f32.mrb[24].mxu0 }
 0x126   :  { %v3012_v42 = vpop.f32.mrb[25].mxu1  ;;  %v2924_v43 = vpop.f32.mrb[25].mxu0 }
 0x127   :  { %v3013_v48 = vadd.f32 %v3012_v42, %v3011_v40  ;;  %v3014_v49 = vpop.f32.mrb[26].mxu1  ;;  %v4394_v50 = vadd.f32 %v2924_v43, %v2923_v41  ;;  %v2926_v51 = vpop.f32.mrb[26].mxu0 }
 0x128   :  { %v3015_v57 = vpop.f32.mrb[27].mxu1  ;;  %v2927_v58 = vpop.f32.mrb[27].mxu0 }
 0x129   :  { %v4404_v61 = vadd.f32 %v3013_v48, %v1545_v47  ;;  %v3016_v30 = vadd.f32 %v3015_v57, %v3014_v49  ;;  %v4406_v63 = vadd.f32 %v2927_v58, %v2926_v51  ;;  %v1564_v47 = vadd.f32 %v4358_v13, %v4336_v54 }
 0x12a   :  { %2114 = vmatmul.mubr.bf16.gmra.mrb[132].mxu1 %v3675_v45  ;;  %3380 = vmatmul.mubr.bf16.gmra.mrb[132].mxu0 %v3676_v21 }
 0x12b   :  { %v4408_v0 = vadd.f32 %v3016_v30, %v1548_v59  ;;  %2121 = vmatprep.mubr.bf16.mxu1 %v3677_v55  ;;  %3383 = vmatprep.mubr.bf16.mxu0 %v3679_v56  ;;  %v1569_v59 = vadd.f32 %v4370_v26, %v4336_v54 }
 0x12d   :  { %v3017_v1 = vpop.f32.mrb[28].mxu1  ;;  %v2929_v3 = vpop.f32.mrb[28].mxu0 }
 0x12e   :  { %v3018_v6 = vpop.f32.mrb[29].mxu1  ;;  %v2930_v7 = vpop.f32.mrb[29].mxu0 }
 0x12f   :  { %v3019_v10 = vadd.f32 %v3018_v6, %v3017_v1  ;;  %v3020_v62 = vpop.f32.mrb[30].mxu1  ;;  %v4418_v16 = vadd.f32 %v2930_v7, %v2929_v3  ;;  %v2932_v17 = vpop.f32.mrb[30].mxu0 }
 0x130   :  { %v3021_v22 = vpop.f32.mrb[31].mxu1  ;;  %v2933_v5 = vpop.f32.mrb[31].mxu0 }
 0x131   :  { %v4428_v24 = vadd.f32 %v3019_v10, %v1553_v9  ;;  %v3022_v46 = vadd.f32 %v3021_v22, %v3020_v62  ;;  %v4430_v25 = vadd.f32 %v2933_v5, %v2932_v17  ;;  %v1577_v22 = vadd.f32 %v4394_v50, %v4336_v54 }
 0x132   :  { %2122 = vmatmul.mubr.bf16.gmra.mrb[136].mxu1 %v3680_v8  ;;  %3384 = vmatmul.mubr.bf16.gmra.mrb[136].mxu0 %v3681_v37  ;;  %v1572_v8 = vadd.f32 %v4382_v38, %v4336_v54 }
 0x133   :  { %v4432_v27 = vadd.f32 %v3022_v46, %v1556_v23  ;;  %2129 = vmatprep.mubr.bf16.mxu1 %v3682_v18  ;;  %3387 = vmatprep.mubr.bf16.mxu0 %v3684_v19 }
 0x135   :  { %v3023_v29 = vpop.f32.mrb[32].mxu1  ;;  %v2935_v31 = vpop.f32.mrb[32].mxu0 }
 0x136   :  { %v3024_v32 = vpop.f32.mrb[33].mxu1  ;;  %v2936_v33 = vpop.f32.mrb[33].mxu0 }
 0x137   :  { %v3025_v40 = vadd.f32 %v3024_v32, %v3023_v29  ;;  %v3026_v41 = vpop.f32.mrb[34].mxu1  ;;  %v4442_v42 = vadd.f32 %v2936_v33, %v2935_v31  ;;  %v2938_v43 = vpop.f32.mrb[34].mxu0  ;;  %v1580_v32 = vadd.f32 %v4406_v63, %v4336_v54 }
 0x138   :  { %v3027_v45 = vpop.f32.mrb[35].mxu1  ;;  %v2939_v21 = vpop.f32.mrb[35].mxu0 }
 0x139   :  { %v4446_v48 = vadd.f32 %v3025_v40, %v1561_v14  ;;  %v3028_v49 = vadd.f32 %v3027_v45, %v3026_v41  ;;  %v2940_v51 = vadd.f32 %v2939_v21, %v2938_v43  ;;  %v1585_v45 = vadd.f32 %v4418_v16, %v4336_v54 }
 0x13a   :  { %2130 = vmatmul.mubr.bf16.gmra.mrb[140].mxu1 %v3685_v34  ;;  %3388 = vmatmul.mubr.bf16.gmra.mrb[140].mxu0 %v3686_v53 }
 0x13b   :  { %v4448_v55 = vadd.f32 %v3028_v49, %v1564_v47 }
 0x13d   :  { %v3029_v56 = vpop.f32.mrb[36].mxu1  ;;  %v2941_v2 = vpop.f32.mrb[36].mxu0 }
 0x13e   :  { %v3030_v57 = vpop.f32.mrb[37].mxu1  ;;  %v2942_v58 = vpop.f32.mrb[37].mxu0 }
 0x13f   :  { %v3031_v30 = vadd.f32 %v3030_v57, %v3029_v56  ;;  %v3032_v1 = vpop.f32.mrb[38].mxu1  ;;  %v4452_v3 = vadd.f32 %v2942_v58, %v2941_v2  ;;  %v2944_v13 = vpop.f32.mrb[38].mxu0  ;;  %v1588_v57 = vadd.f32 %v4430_v25, %v4336_v54  ;;  %v1596_v25 = vadd.f32 %v2940_v51, %v4336_v54 }
 0x140   :  { %v3033_v6 = vpop.f32.mrb[39].mxu1  ;;  %v2945_v7 = vpop.f32.mrb[39].mxu0 }
 0x141   :  { %v4456_v37 = vadd.f32 %v3031_v30, %v1569_v59  ;;  %v3034_v9 = vadd.f32 %v3033_v6, %v3032_v1  ;;  %v2946_v10 = vadd.f32 %v2945_v7, %v2944_v13  ;;  %v1601_v51 = vadd.f32 %v4452_v3, %v4336_v54 }
 0x143   :  { %v4458_v62 = vadd.f32 %v3034_v9, %v1572_v8  ;;  %v1593_v8 = vadd.f32 %v4442_v42, %v4336_v54 }
 0x145   :  { %v3035_v17 = vpop.f32.mrb[40].mxu1  ;;  %v2947_v18 = vpop.f32.mrb[40].mxu0 }
 0x146   :  { %v3036_v19 = vpop.f32.mrb[41].mxu1  ;;  %v2948_v26 = vpop.f32.mrb[41].mxu0 }
 0x147   :  { %v3037_v5 = vadd.f32 %v3036_v19, %v3035_v17  ;;  %v3038_v23 = vpop.f32.mrb[42].mxu1  ;;  %v4462_v46 = vadd.f32 %v2948_v26, %v2947_v18  ;;  %v2950_v29 = vpop.f32.mrb[42].mxu0 }
 0x148   :  { %v3039_v31 = vpop.f32.mrb[43].mxu1  ;;  %v2951_v38 = vpop.f32.mrb[43].mxu0 }
 0x149   :  { %v4466_v33 = vadd.f32 %v3037_v5, %v1577_v22  ;;  %v3040_v34 = vadd.f32 %v3039_v31, %v3038_v23  ;;  %v4468_v53 = vadd.f32 %v2951_v38, %v2950_v29 }
 0x14b   :  { %v4470_v14 = vadd.f32 %v3040_v34, %v1580_v32 }
 0x14d   :  { %v3041_v40 = vpop.f32.mrb[44].mxu1  ;;  %v2953_v41 = vpop.f32.mrb[44].mxu0 }
 0x14e   :  { %v3042_v50 = vpop.f32.mrb[45].mxu1  ;;  %v2954_v43 = vpop.f32.mrb[45].mxu0 }
 0x14f   :  { %v3043_v21 = vadd.f32 %v3042_v50, %v3041_v40  ;;  %v3044_v47 = vpop.f32.mrb[46].mxu1  ;;  %v4474_v49 = vadd.f32 %v2954_v43, %v2953_v41  ;;  %v2956_v56 = vpop.f32.mrb[46].mxu0 }
 0x150   :  { %v3045_v63 = vpop.f32.mrb[47].mxu1  ;;  %v2957_v2 = vpop.f32.mrb[47].mxu0 }
 0x151   :  { %v4478_v58 = vadd.f32 %v3043_v21, %v1585_v45  ;;  %v3046_v59 = vadd.f32 %v3045_v63, %v3044_v47  ;;  %v4480_v30 = vadd.f32 %v2957_v2, %v2956_v56 }
 0x153   :  { %v4482_v1 = vadd.f32 %v3046_v59, %v1588_v57 }
 0x155   :  { %v3047_v13 = vpop.f32.mrb[48].mxu1  ;;  %v3111_v6 = vpop.f32.mrb[48].mxu0 }
 0x156   :  { %v3048_v16 = vpop.f32.mrb[49].mxu1  ;;  %v3112_v7 = vpop.f32.mrb[49].mxu0 }
 0x157   :  { %v3049_v9 = vadd.f32 %v3048_v16, %v3047_v13  ;;  %v3113_v17 = vadd.f32 %v3112_v7, %v3111_v6  ;;  %v3050_v18 = vpop.f32.mrb[50].mxu1  ;;  %v3114_v19 = vpop.f32.mrb[50].mxu0 }
 0x158   :  { %v3051_v26 = vpop.f32.mrb[51].mxu1  ;;  %v3115_v22 = vpop.f32.mrb[51].mxu0 }
 0x159   :  { %v4487_v5 = vadd.f32 %v3049_v9, %v1593_v8  ;;  %v4490_v23 = vadd.f32 %v3113_v17, %v4356_v11  ;;  %v3052_v29 = vadd.f32 %v3051_v26, %v3050_v18  ;;  %v3116_v31 = vadd.f32 %v3115_v22, %v3114_v19 }
 0x15a   :  { %v1604_v11 = vadd.f32 %v2946_v10, %v4336_v54  ;;  %v1609_v10 = vadd.f32 %v4462_v46, %v4336_v54 }
 0x15b   :  { %v4492_v38 = vadd.f32 %v3052_v29, %v1596_v25  ;;  %v4495_v32 = vadd.f32 %v3116_v31, %v4360_v15 }
 0x15d   :  { %v3053_v42 = vpop.f32.mrb[52].mxu1  ;;  %v3117_v34 = vpop.f32.mrb[52].mxu0 }
 0x15e   :  { %v3054_v40 = vpop.f32.mrb[53].mxu1  ;;  %v3118_v41 = vpop.f32.mrb[53].mxu0 }
 0x15f   :  { %v3055_v50 = vadd.f32 %v3054_v40, %v3053_v42  ;;  %v3119_v43 = vadd.f32 %v3118_v41, %v3117_v34  ;;  %v3056_v45 = vpop.f32.mrb[54].mxu1  ;;  %v3120_v21 = vpop.f32.mrb[54].mxu0 }
 0x160   :  { %v3057_v47 = vpop.f32.mrb[55].mxu1  ;;  %v3121_v56 = vpop.f32.mrb[55].mxu0 }
 0x161   :  { %v4500_v63 = vadd.f32 %v3055_v50, %v1601_v51  ;;  %v4503_v15 = vadd.f32 %v3119_v43, %v4380_v35  ;;  %v3058_v2 = vadd.f32 %v3057_v47, %v3056_v45  ;;  %v3122_v57 = vadd.f32 %v3121_v56, %v3120_v21 }
 0x162   :  { %v1612_v35 = vadd.f32 %v4468_v53, %v4336_v54  ;;  %v1617_v53 = vadd.f32 %v4474_v49, %v4336_v54 }
 0x163   :  { %v4505_v59 = vadd.f32 %v3058_v2, %v1604_v11  ;;  %v4508_v13 = vadd.f32 %v3122_v57, %v4384_v39 }
 0x165   :  { %v3059_v3 = vpop.f32.mrb[56].mxu1  ;;  %v3123_v6 = vpop.f32.mrb[56].mxu0 }
 0x166   :  { %v3060_v16 = vpop.f32.mrb[57].mxu1  ;;  %v3124_v7 = vpop.f32.mrb[57].mxu0 }
 0x167   :  { %v3061_v8 = vadd.f32 %v3060_v16, %v3059_v3  ;;  %v3125_v9 = vadd.f32 %v3124_v7, %v3123_v6  ;;  %v3062_v17 = vpop.f32.mrb[58].mxu1  ;;  %v3126_v18 = vpop.f32.mrb[58].mxu0 }
 0x168   :  { %v3063_v19 = vpop.f32.mrb[59].mxu1  ;;  %v3127_v25 = vpop.f32.mrb[59].mxu0 }
 0x169   :  { %v4514_v26 = vadd.f32 %v3061_v8, %v1609_v10  ;;  %v4517_v39 = vadd.f32 %v3125_v9, %v4404_v61  ;;  %v3064_v22 = vadd.f32 %v3063_v19, %v3062_v17  ;;  %v3128_v29 = vadd.f32 %v3127_v25, %v3126_v18 }
 0x16a   :  { %v1620_v61 = vadd.f32 %v4480_v30, %v4336_v54  ;;  %v1625_v30 = vadd.f32 %v4259_v60, %v4336_v54 }
 0x16b   :  { %v4519_v31 = vadd.f32 %v3064_v22, %v1612_v35  ;;  %v4522_v46 = vadd.f32 %v3128_v29, %v4408_v0 }
 0x16d   :  { %v3065_v42 = vpop.f32.mrb[60].mxu1  ;;  %v3129_v34 = vpop.f32.mrb[60].mxu0 }
 0x16e   :  { %v3066_v40 = vpop.f32.mrb[61].mxu1  ;;  %v3130_v41 = vpop.f32.mrb[61].mxu0 }
 0x16f   :  { %v3067_v51 = vadd.f32 %v3066_v40, %v3065_v42  ;;  %v3131_v50 = vadd.f32 %v3130_v41, %v3129_v34  ;;  %v3068_v43 = vpop.f32.mrb[62].mxu1  ;;  %v3132_v45 = vpop.f32.mrb[62].mxu0 }
 0x170   :  { %v3069_v21 = vpop.f32.mrb[63].mxu1  ;;  %v3133_v11 = vpop.f32.mrb[63].mxu0 }
 0x171   :  { %v4528_v47 = vadd.f32 %v3067_v51, %v1617_v53  ;;  %v4531_v0 = vadd.f32 %v3131_v50, %v4428_v24  ;;  %v3070_v56 = vadd.f32 %v3069_v21, %v3068_v43  ;;  %v3134_v2 = vadd.f32 %v3133_v11, %v3132_v45 }
 0x172   :  { %v1628_v24 = vadd.f32 %v4269_v4, %v4336_v54  ;;  %v1633_v4 = vadd.f32 %v4279_v12, %v4336_v54 }
 0x173   :  { %v4533_v57 = vadd.f32 %v3070_v56, %v1620_v61  ;;  %v4536_v49 = vadd.f32 %v3134_v2, %v4432_v27 }
 0x175   :  { %v3071_v3 = vpop.f32.mrb[64].mxu1  ;;  %v3135_v6 = vpop.f32.mrb[64].mxu0 }
 0x176   :  { %v3072_v16 = vpop.f32.mrb[65].mxu1  ;;  %v3136_v7 = vpop.f32.mrb[65].mxu0 }
 0x177   :  { %v3073_v10 = vadd.f32 %v3072_v16, %v3071_v3  ;;  %v3137_v8 = vadd.f32 %v3136_v7, %v3135_v6  ;;  %v3074_v9 = vpop.f32.mrb[66].mxu1  ;;  %v3138_v17 = vpop.f32.mrb[66].mxu0 }
 0x178   :  { %v3075_v18 = vpop.f32.mrb[67].mxu1  ;;  %v3139_v35 = vpop.f32.mrb[67].mxu0 }
 0x179   :  { %v4542_v19 = vadd.f32 %v3073_v10, %v1625_v30  ;;  %v4545_v27 = vadd.f32 %v3137_v8, %v4446_v48  ;;  %v3076_v25 = vadd.f32 %v3075_v18, %v3074_v9  ;;  %v3140_v22 = vadd.f32 %v3139_v35, %v3138_v17 }
 0x17a   :  { %v1636_v48 = vadd.f32 %v4289_v20, %v4336_v54  ;;  %v1641_v20 = vadd.f32 %v4299_v28, %v4336_v54 }
 0x17b   :  { %v4547_v29 = vadd.f32 %v3076_v25, %v1628_v24  ;;  %v4550_v60 = vadd.f32 %v3140_v22, %v4448_v55 }
 0x17d   :  { %v3077_v42 = vpop.f32.mrb[68].mxu1  ;;  %v3141_v34 = vpop.f32.mrb[68].mxu0 }
 0x17e   :  { %v3078_v40 = vpop.f32.mrb[69].mxu1  ;;  %v3142_v41 = vpop.f32.mrb[69].mxu0 }
 0x17f   :  { %v3079_v53 = vadd.f32 %v3078_v40, %v3077_v42  ;;  %v3143_v51 = vadd.f32 %v3142_v41, %v3141_v34  ;;  %v3080_v50 = vpop.f32.mrb[70].mxu1  ;;  %v3144_v43 = vpop.f32.mrb[70].mxu0 }
 0x180   :  { %v3081_v45 = vpop.f32.mrb[71].mxu1  ;;  %v3145_v61 = vpop.f32.mrb[71].mxu0 }
 0x181   :  { %v4556_v21 = vadd.f32 %v3079_v53, %v1633_v4  ;;  %v4559_v55 = vadd.f32 %v3143_v51, %v4456_v37  ;;  %v3082_v11 = vadd.f32 %v3081_v45, %v3080_v50  ;;  %v3146_v56 = vadd.f32 %v3145_v61, %v3144_v43 }
 0x182   :  { %v1644_v37 = vadd.f32 %v4309_v36, %v4336_v54  ;;  %v1649_v36 = vadd.f32 %v4319_v44, %v4336_v54 }
 0x183   :  { %v4561_v2 = vadd.f32 %v3082_v11, %v1636_v48  ;;  %v4564_v12 = vadd.f32 %v3146_v56, %v4458_v62 }
 0x185   :  { %v3083_v3 = vpop.f32.mrb[72].mxu1  ;;  %v3147_v6 = vpop.f32.mrb[72].mxu0 }
 0x186   :  { %v3084_v16 = vpop.f32.mrb[73].mxu1  ;;  %v3148_v7 = vpop.f32.mrb[73].mxu0 }
 0x187   :  { %v3085_v30 = vadd.f32 %v3084_v16, %v3083_v3  ;;  %v3149_v10 = vadd.f32 %v3148_v7, %v3147_v6  ;;  %v3086_v8 = vpop.f32.mrb[74].mxu1  ;;  %v3150_v9 = vpop.f32.mrb[74].mxu0 }
 0x188   :  { %v3087_v17 = vpop.f32.mrb[75].mxu1  ;;  %v3151_v24 = vpop.f32.mrb[75].mxu0 }
 0x189   :  { %v4570_v18 = vadd.f32 %v3085_v30, %v1641_v20  ;;  %v4573_v62 = vadd.f32 %v3149_v10, %v4466_v33  ;;  %v3088_v35 = vadd.f32 %v3087_v17, %v3086_v8  ;;  %v3152_v25 = vadd.f32 %v3151_v24, %v3150_v9 }
 0x18a   :  { %v1652_v33 = vadd.f32 %v4329_v52, %v4336_v54 }
 0x18b   :  { %v4575_v22 = vadd.f32 %v3088_v35, %v1644_v37  ;;  %v4578_v28 = vadd.f32 %v3152_v25, %v4470_v14 }
 0x18d   :  { %v3089_v42 = vpop.f32.mrb[76].mxu1  ;;  %v3153_v34 = vpop.f32.mrb[76].mxu0 }
 0x18e   :  { %v3090_v40 = vpop.f32.mrb[77].mxu1  ;;  %v3154_v41 = vpop.f32.mrb[77].mxu0 }
 0x18f   :  { %v3091_v4 = vadd.f32 %v3090_v40, %v3089_v42  ;;  %v3155_v53 = vadd.f32 %v3154_v41, %v3153_v34  ;;  %v3092_v51 = vpop.f32.mrb[78].mxu1  ;;  %v3156_v50 = vpop.f32.mrb[78].mxu0 }
 0x190   :  { %v3093_v43 = vpop.f32.mrb[79].mxu1  ;;  %v3157_v48 = vpop.f32.mrb[79].mxu0 }
 0x191   :  { %v4584_v45 = vadd.f32 %v3091_v4, %v1649_v36  ;;  %v4587_v14 = vadd.f32 %v3155_v53, %v4478_v58  ;;  %v3094_v61 = vadd.f32 %v3093_v43, %v3092_v51  ;;  %v3158_v11 = vadd.f32 %v3157_v48, %v3156_v50 }
 0x193   :  { %v4589_v56 = vadd.f32 %v3094_v61, %v1652_v33  ;;  %v4592_v44 = vadd.f32 %v3158_v11, %v4482_v1 }
 0x195   :  { %v3159_v3 = vpop.f32.mrb[80].mxu0  ;;  %v3223_v6 = vpop.f32.mrb[80].mxu1 }
 0x196   :  { %v3160_v16 = vpop.f32.mrb[81].mxu0  ;;  %v3224_v7 = vpop.f32.mrb[81].mxu1 }
 0x197   :  { %v3161_v20 = vadd.f32 %v3160_v16, %v3159_v3  ;;  %v3225_v52 = vadd.f32 %v3224_v7, %v3223_v6  ;;  %v3162_v54 = vpop.f32.mrb[82].mxu0  ;;  %v3226_v30 = vpop.f32.mrb[82].mxu1 }
 0x198   :  { %v3163_v10 = vpop.f32.mrb[83].mxu0  ;;  %v3227_v8 = vpop.f32.mrb[83].mxu1 }
 0x199   :  { %v4595_v58 = vadd.f32 %v3161_v20, %v4487_v5  ;;  %v3164_v9 = vadd.f32 %v3163_v10, %v3162_v54  ;;  %v3228_v37 = vadd.f32 %v3227_v8, %v3226_v30  ;;  %v4598_v17 = vadd.f32 %v3225_v52, %v4490_v23 }
 0x19b   :  { %v4601_v1 = vadd.f32 %v3164_v9, %v4492_v38  ;;  %v4604_v24 = vadd.f32 %v3228_v37, %v4495_v32 }
 0x19d   :  { %v3165_v35 = vpop.f32.mrb[84].mxu0  ;;  %v3229_v25 = vpop.f32.mrb[84].mxu1 }
 0x19e   :  { %v3166_v42 = vpop.f32.mrb[85].mxu0  ;;  %v3230_v34 = vpop.f32.mrb[85].mxu1 }
 0x19f   :  { %v3167_v40 = vadd.f32 %v3166_v42, %v3165_v35  ;;  %v3231_v41 = vadd.f32 %v3230_v34, %v3229_v25  ;;  %v3168_v36 = vpop.f32.mrb[86].mxu0  ;;  %v3232_v5 = vpop.f32.mrb[86].mxu1 }
 0x1a0   :  { %v3169_v4 = vpop.f32.mrb[87].mxu0  ;;  %v3233_v53 = vpop.f32.mrb[87].mxu1 }
 0x1a1   :  { %v4607_v51 = vadd.f32 %v3167_v40, %v4500_v63  ;;  %v3170_v23 = vadd.f32 %v3169_v4, %v3168_v36  ;;  %v3234_v50 = vadd.f32 %v3233_v53, %v3232_v5  ;;  %v4610_v38 = vadd.f32 %v3231_v41, %v4503_v15 }
 0x1a3   :  { %v4613_v32 = vadd.f32 %v3170_v23, %v4505_v59  ;;  %v4616_v33 = vadd.f32 %v3234_v50, %v4508_v13 }
 0x1a5   :  { %v3171_v43 = vpop.f32.mrb[88].mxu0  ;;  %v3235_v48 = vpop.f32.mrb[88].mxu1 }
 0x1a6   :  { %v3172_v61 = vpop.f32.mrb[89].mxu0  ;;  %v3236_v11 = vpop.f32.mrb[89].mxu1 }
 0x1a7   :  { %v3173_v3 = vadd.f32 %v3172_v61, %v3171_v43  ;;  %v3237_v6 = vadd.f32 %v3236_v11, %v3235_v48  ;;  %v3174_v16 = vpop.f32.mrb[90].mxu0  ;;  %v3238_v63 = vpop.f32.mrb[90].mxu1 }
 0x1a8   :  { %v3175_v7 = vpop.f32.mrb[91].mxu0  ;;  %v3239_v20 = vpop.f32.mrb[91].mxu1 }
 0x1a9   :  { %v4619_v52 = vadd.f32 %v3173_v3, %v4514_v26  ;;  %v3176_v15 = vadd.f32 %v3175_v7, %v3174_v16  ;;  %v3240_v54 = vadd.f32 %v3239_v20, %v3238_v63  ;;  %v4622_v59 = vadd.f32 %v3237_v6, %v4517_v39 }
 0x1ab   :  { %v4625_v13 = vadd.f32 %v3176_v15, %v4519_v31  ;;  %v4628_v30 = vadd.f32 %v3240_v54, %v4522_v46 }
 0x1ad   :  { %v3177_v10 = vpop.f32.mrb[92].mxu0  ;;  %v3241_v8 = vpop.f32.mrb[92].mxu1 }
 0x1ae   :  { %v3178_v9 = vpop.f32.mrb[93].mxu0  ;;  %v3242_v37 = vpop.f32.mrb[93].mxu1 }
 0x1af   :  { %v3179_v35 = vadd.f32 %v3178_v9, %v3177_v10  ;;  %v3243_v25 = vadd.f32 %v3242_v37, %v3241_v8  ;;  %v3180_v42 = vpop.f32.mrb[94].mxu0  ;;  %v3244_v26 = vpop.f32.mrb[94].mxu1 }
 0x1b0   :  { %v3181_v34 = vpop.f32.mrb[95].mxu0  ;;  %v3245_v40 = vpop.f32.mrb[95].mxu1 }
 0x1b1   :  { %v4631_v41 = vadd.f32 %v3179_v35, %v4528_v47  ;;  %v3182_v39 = vadd.f32 %v3181_v34, %v3180_v42  ;;  %v3246_v36 = vadd.f32 %v3245_v40, %v3244_v26  ;;  %v4634_v31 = vadd.f32 %v3243_v25, %v4531_v0 }
 0x1b3   :  { %v4637_v46 = vadd.f32 %v3182_v39, %v4533_v57  ;;  %v4640_v5 = vadd.f32 %v3246_v36, %v4536_v49 }
 0x1b5   :  { %v3183_v4 = vpop.f32.mrb[96].mxu0  ;;  %v3247_v53 = vpop.f32.mrb[96].mxu1 }
 0x1b6   :  { %v3184_v23 = vpop.f32.mrb[97].mxu0  ;;  %v3248_v50 = vpop.f32.mrb[97].mxu1 }
 0x1b7   :  { %v3185_v43 = vadd.f32 %v3184_v23, %v3183_v4  ;;  %v3249_v48 = vadd.f32 %v3248_v50, %v3247_v53  ;;  %v3186_v61 = vpop.f32.mrb[98].mxu0  ;;  %v3250_v47 = vpop.f32.mrb[98].mxu1 }
 0x1b8   :  { %v3187_v11 = vpop.f32.mrb[99].mxu0  ;;  %v3251_v3 = vpop.f32.mrb[99].mxu1 }
 0x1b9   :  { %v4643_v6 = vadd.f32 %v3185_v43, %v4542_v19  ;;  %v3188_v0 = vadd.f32 %v3187_v11, %v3186_v61  ;;  %v3252_v16 = vadd.f32 %v3251_v3, %v3250_v47  ;;  %v4646_v57 = vadd.f32 %v3249_v48, %v4545_v27 }
 0x1bb   :  { %v4649_v49 = vadd.f32 %v3188_v0, %v4547_v29  ;;  %v4652_v63 = vadd.f32 %v3252_v16, %v4550_v60 }
 0x1bd   :  { %v3189_v7 = vpop.f32.mrb[100].mxu0  ;;  %v3253_v20 = vpop.f32.mrb[100].mxu1 }
 0x1be   :  { %v3190_v15 = vpop.f32.mrb[101].mxu0  ;;  %v3254_v54 = vpop.f32.mrb[101].mxu1 }
 0x1bf   :  { %v3191_v10 = vadd.f32 %v3190_v15, %v3189_v7  ;;  %v3255_v8 = vadd.f32 %v3254_v54, %v3253_v20  ;;  %v3192_v9 = vpop.f32.mrb[102].mxu0  ;;  %v3256_v19 = vpop.f32.mrb[102].mxu1 }
 0x1c0   :  { %v3193_v37 = vpop.f32.mrb[103].mxu0  ;;  %v3257_v35 = vpop.f32.mrb[103].mxu1 }
 0x1c1   :  { %v4655_v25 = vadd.f32 %v3191_v10, %v4556_v21  ;;  %v3194_v27 = vadd.f32 %v3193_v37, %v3192_v9  ;;  %v3258_v42 = vadd.f32 %v3257_v35, %v3256_v19  ;;  %v4658_v29 = vadd.f32 %v3255_v8, %v4559_v55 }
 0x1c3   :  { %v4661_v60 = vadd.f32 %v3194_v27, %v4561_v2  ;;  %v4664_v26 = vadd.f32 %v3258_v42, %v4564_v12 }
 0x1c5   :  { %v3195_v34 = vpop.f32.mrb[104].mxu0  ;;  %v3259_v40 = vpop.f32.mrb[104].mxu1 }
 0x1c6   :  { %v3196_v39 = vpop.f32.mrb[105].mxu0  ;;  %v3260_v36 = vpop.f32.mrb[105].mxu1 }
 0x1c7   :  { %v3197_v4 = vadd.f32 %v3196_v39, %v3195_v34  ;;  %v3261_v53 = vadd.f32 %v3260_v36, %v3259_v40  ;;  %v3198_v23 = vpop.f32.mrb[106].mxu0  ;;  %v3262_v21 = vpop.f32.mrb[106].mxu1 }
 0x1c8   :  { %v3199_v50 = vpop.f32.mrb[107].mxu0  ;;  %v3263_v43 = vpop.f32.mrb[107].mxu1 }
 0x1c9   :  { %v4667_v48 = vadd.f32 %v3197_v4, %v4570_v18  ;;  %v3200_v55 = vadd.f32 %v3199_v50, %v3198_v23  ;;  %v3264_v61 = vadd.f32 %v3263_v43, %v3262_v21  ;;  %v4670_v2 = vadd.f32 %v3261_v53, %v4573_v62 }
 0x1cb   :  { %v4673_v12 = vadd.f32 %v3200_v55, %v4575_v22  ;;  %v4676_v47 = vadd.f32 %v3264_v61, %v4578_v28 }
 0x1cd   :  { %v3201_v11 = vpop.f32.mrb[108].mxu0  ;;  %v3265_v3 = vpop.f32.mrb[108].mxu1 }
 0x1ce   :  { %v3202_v0 = vpop.f32.mrb[109].mxu0  ;;  %v3266_v16 = vpop.f32.mrb[109].mxu1 }
 0x1cf   :  { %v3203_v7 = vadd.f32 %v3202_v0, %v3201_v11  ;;  %v3267_v20 = vadd.f32 %v3266_v16, %v3265_v3  ;;  %v3204_v15 = vpop.f32.mrb[110].mxu0  ;;  %v3268_v18 = vpop.f32.mrb[110].mxu1 }
 0x1d0   :  { %v3205_v54 = vpop.f32.mrb[111].mxu0  ;;  %v3269_v10 = vpop.f32.mrb[111].mxu1 }
 0x1d1   :  { %v4679_v8 = vadd.f32 %v3203_v7, %v4584_v45  ;;  %v3206_v62 = vadd.f32 %v3205_v54, %v3204_v15  ;;  %v3270_v9 = vadd.f32 %v3269_v10, %v3268_v18  ;;  %v4682_v22 = vadd.f32 %v3267_v20, %v4587_v14 }
 0x1d3   :  { %v4685_v28 = vadd.f32 %v3206_v62, %v4589_v56  ;;  %v4688_v19 = vadd.f32 %v3270_v9, %v4592_v44 }
 0x1d5   :  { %v3271_v37 = vpop.f32.mrb[112].mxu1  ;;  %v3361_v35 = vpop.f32.mrb[112].mxu0 }
 0x1d6   :  { %v2181_v27 = vadd.f32 %v3361_v35, %v4610_v38  ;;  %v3272_v42 = vpop.f32.mrb[113].mxu1  ;;  %v2172_v34 = vpop.f32.mrb[113].mxu0 }
 0x1d7   :  { %v3273_v40 = vadd.f32 %v3272_v42, %v3271_v37  ;;  %v2173_v45 = vadd.f32 %v2172_v34, %v4598_v17  ;;  %v3274_v39 = vpop.f32.mrb[114].mxu1  ;;  %v3362_v36 = vpop.f32.mrb[114].mxu0 }
 0x1d8   :  { %v2184_v14 = vadd.f32 %v3362_v36, %v4616_v33  ;;  %v3275_v4 = vpop.f32.mrb[115].mxu1  ;;  %v2175_v53 = vpop.f32.mrb[115].mxu0  ;;  %v2301_v21 = vmax.f32 %v2181_v27, 0.0 }
 0x1d9   :  { %v3276_v56 = vadd.f32 %v3275_v4, %v3274_v39  ;;  %v2176_v23 = vadd.f32 %v2175_v53, %v4604_v24  ;;  %v4695_v44 = vadd.f32 %v3273_v40, %v4595_v58  ;;  %v2299_v38 = vmax.f32 %v2173_v45, 0.0 }
 0x1da   :  { %v2302_v50 = vmax.f32 %v2184_v14, 0.0 }
 0x1db   :  { %v2300_v43 = vmax.f32 %v2176_v23, 0.0  ;;  %v4698_v55 = vadd.f32 %v3276_v56, %v4601_v1 }
 0x1dc   :  { %v2784_v17 = vpack.c.bf16 %v2302_v50, %v2301_v21 }
 0x1dd   :  { %v2779_v61 = vpack.c.bf16 %v2300_v43, %v2299_v38  ;;  %v3277_v11 = vpop.f32.mrb[116].mxu1  ;;  %v3365_v3 = vpop.f32.mrb[116].mxu0 }
 0x1de   :  { %2856 = vst [vmem:[%s4785_s3 + $0x8] sm:$0xff] %v2784_v17   ;;  %v2197_v24 = vadd.f32 %v3365_v3, %v4634_v31  ;;  %v3278_v33 = vpop.f32.mrb[117].mxu1  ;;  %v2188_v58 = vpop.f32.mrb[117].mxu0 }
 0x1df   :  { %2780 = vst [vmem:[%s4785_s3] sm:$0xff] %v2779_v61   ;;  %v3279_v0 = vadd.f32 %v3278_v33, %v3277_v11  ;;  %v2189_v1 = vadd.f32 %v2188_v58, %v4622_v59  ;;  %v3280_v16 = vpop.f32.mrb[118].mxu1  ;;  %v3366_v7 = vpop.f32.mrb[118].mxu0 }
 0x1e0   :  { %v2200_v20 = vadd.f32 %v3366_v7, %v4640_v5  ;;  %v3281_v15 = vpop.f32.mrb[119].mxu1  ;;  %v2191_v18 = vpop.f32.mrb[119].mxu0  ;;  %v2305_v62 = vmax.f32 %v2197_v24, 0.0 }
 0x1e1   :  { %v3282_v54 = vadd.f32 %v3281_v15, %v3280_v16  ;;  %v2192_v10 = vadd.f32 %v2191_v18, %v4628_v30  ;;  %v2084_v31 = vadd.f32 %v3279_v0, %v4607_v51  ;;  %v2303_v37 = vmax.f32 %v2189_v1, 0.0 }
 0x1e2   :  { %v2306_v9 = vmax.f32 %v2200_v20, 0.0 }
 0x1e3   :  { %v2304_v35 = vmax.f32 %v2192_v10, 0.0  ;;  %v2087_v27 = vadd.f32 %v3282_v54, %v4613_v32 }
 0x1e4   :  { %v2794_v42 = vpack.c.bf16 %v2306_v9, %v2305_v62 }
 0x1e5   :  { %v2789_v34 = vpack.c.bf16 %v2304_v35, %v2303_v37  ;;  %v3283_v59 = vpop.f32.mrb[120].mxu1  ;;  %v3369_v40 = vpop.f32.mrb[120].mxu0 }
 0x1e6   :  { %2858 = vst [vmem:[%s4785_s3 + $0x18] sm:$0xff] %v2794_v42   ;;  %v2213_v5 = vadd.f32 %v3369_v40, %v4658_v29  ;;  %v3284_v45 = vpop.f32.mrb[121].mxu1  ;;  %v2204_v30 = vpop.f32.mrb[121].mxu0 }
 0x1e7   :  { %2857 = vst [vmem:[%s4785_s3 + $0x10] sm:$0xff] %v2789_v34   ;;  %v3285_v51 = vadd.f32 %v3284_v45, %v3283_v59  ;;  %v2205_v39 = vadd.f32 %v2204_v30, %v4646_v57  ;;  %v3286_v32 = vpop.f32.mrb[122].mxu1  ;;  %v3370_v36 = vpop.f32.mrb[122].mxu0 }
 0x1e8   :  { %v2216_v14 = vadd.f32 %v3370_v36, %v4664_v26  ;;  %v3287_v4 = vpop.f32.mrb[123].mxu1  ;;  %v2207_v53 = vpop.f32.mrb[123].mxu0  ;;  %v2309_v21 = vmax.f32 %v2213_v5, 0.0 }
 0x1e9   :  { %v3288_v56 = vadd.f32 %v3287_v4, %v3286_v32  ;;  %v2208_v23 = vadd.f32 %v2207_v53, %v4652_v63  ;;  %v4723_v29 = vadd.f32 %v3285_v51, %v4619_v52  ;;  %v2307_v38 = vmax.f32 %v2205_v39, 0.0 }
 0x1ea   :  { %v2310_v50 = vmax.f32 %v2216_v14, 0.0 }
 0x1eb   :  { %v2308_v43 = vmax.f32 %v2208_v23, 0.0  ;;  %v4726_v17 = vadd.f32 %v3288_v56, %v4625_v13 }
 0x1ec   :  { %v2804_v57 = vpack.c.bf16 %v2310_v50, %v2309_v21 }
 0x1ed   :  { %v2799_v61 = vpack.c.bf16 %v2308_v43, %v2307_v38  ;;  %v3289_v11 = vpop.f32.mrb[124].mxu1  ;;  %v3373_v3 = vpop.f32.mrb[124].mxu0 }
 0x1ee   :  { %2860 = vst [vmem:[%s4785_s3 + $0x28] sm:$0xff] %v2804_v57   ;;  %v2229_v63 = vadd.f32 %v3373_v3, %v4682_v22  ;;  %v3290_v26 = vpop.f32.mrb[125].mxu1  ;;  %v2220_v52 = vpop.f32.mrb[125].mxu0 }
 0x1ef   :  { %2859 = vst [vmem:[%s4785_s3 + $0x20] sm:$0xff] %v2799_v61   ;;  %v3291_v24 = vadd.f32 %v3290_v26, %v3289_v11  ;;  %v2221_v13 = vadd.f32 %v2220_v52, %v4670_v2  ;;  %v3292_v33 = vpop.f32.mrb[126].mxu1  ;;  %v3374_v58 = vpop.f32.mrb[126].mxu0 }
 0x1f0   :  { %v2232_v0 = vadd.f32 %v3374_v58, %v4688_v19  ;;  %v3293_v1 = vpop.f32.mrb[127].mxu1  ;;  %v2223_v16 = vpop.f32.mrb[127].mxu0  ;;  %v2313_v15 = vmax.f32 %v2229_v63, 0.0 }
 0x1f1   :  { %v3294_v7 = vadd.f32 %v3293_v1, %v3292_v33  ;;  %v2224_v20 = vadd.f32 %v2223_v16, %v4676_v47  ;;  %v2100_v22 = vadd.f32 %v3291_v24, %v4631_v41  ;;  %v2311_v54 = vmax.f32 %v2221_v13, 0.0 }
 0x1f2   :  { %v2314_v18 = vmax.f32 %v2232_v0, 0.0 }
 0x1f3   :  { %v2312_v10 = vmax.f32 %v2224_v20, 0.0  ;;  %v2103_v62 = vadd.f32 %v3294_v7, %v4637_v46 }
 0x1f4   :  { %v2814_v9 = vpack.c.bf16 %v2314_v18, %v2313_v15 }
 0x1f5   :  { %v2809_v37 = vpack.c.bf16 %v2312_v10, %v2311_v54  ;;  %v3295_v2 = vpop.f32.mrb[128].mxu1  ;;  %v3377_v35 = vpop.f32.mrb[128].mxu0 }
 0x1f6   :  { %2862 = vst [vmem:[%s4785_s3 + $0x38] sm:$0xff] %v2814_v9   ;;  %v2245_v19 = vadd.f32 %v3377_v35, %v2084_v31  ;;  %v3296_v42 = vpop.f32.mrb[129].mxu1  ;;  %v2236_v34 = vpop.f32.mrb[129].mxu0 }
 0x1f7   :  { %2861 = vst [vmem:[%s4785_s3 + $0x30] sm:$0xff] %v2809_v37   ;;  %v3297_v41 = vadd.f32 %v3296_v42, %v3295_v2  ;;  %v2237_v47 = vadd.f32 %v2236_v34, %v4695_v44  ;;  %v3298_v59 = vpop.f32.mrb[130].mxu1  ;;  %v3378_v46 = vpop.f32.mrb[130].mxu0 }
 0x1f8   :  { %v2248_v40 = vadd.f32 %v3378_v46, %v2087_v27  ;;  %v3299_v5 = vpop.f32.mrb[131].mxu1  ;;  %v2239_v45 = vpop.f32.mrb[131].mxu0  ;;  %v2317_v31 = vmax.f32 %v2245_v19, 0.0 }
 0x1f9   :  { %v3300_v30 = vadd.f32 %v3299_v5, %v3298_v59  ;;  %v2240_v51 = vadd.f32 %v2239_v45, %v4698_v55  ;;  %v2108_v39 = vadd.f32 %v3297_v41, %v4643_v6  ;;  %v2315_v36 = vmax.f32 %v2237_v47, 0.0 }
 0x1fa   :  { %v2318_v32 = vmax.f32 %v2248_v40, 0.0 }
 0x1fb   :  { %v2316_v14 = vmax.f32 %v2240_v51, 0.0  ;;  %v2111_v4 = vadd.f32 %v3300_v30, %v4649_v49 }
 0x1fc   :  { %v2824_v53 = vpack.c.bf16 %v2318_v32, %v2317_v31 }
 0x1fd   :  { %v2819_v56 = vpack.c.bf16 %v2316_v14, %v2315_v36  ;;  %v3301_v23 = vpop.f32.mrb[132].mxu1  ;;  %v3381_v44 = vpop.f32.mrb[132].mxu0 }
 0x1fe   :  { %2864 = vst [vmem:[%s4785_s3 + $0x48] sm:$0xff] %v2824_v53   ;;  %v2261_v27 = vadd.f32 %v3381_v44, %v2100_v22  ;;  %v3302_v21 = vpop.f32.mrb[133].mxu1  ;;  %v2252_v50 = vpop.f32.mrb[133].mxu0 }
 0x1ff   :  { %2863 = vst [vmem:[%s4785_s3 + $0x40] sm:$0xff] %v2819_v56   ;;  %v3303_v6 = vadd.f32 %v3302_v21, %v3301_v23  ;;  %v2253_v55 = vadd.f32 %v2252_v50, %v4723_v29  ;;  %v3304_v38 = vpop.f32.mrb[134].mxu1  ;;  %v3382_v49 = vpop.f32.mrb[134].mxu0 }
 0x200   :  { %v2264_v43 = vadd.f32 %v3382_v49, %v2103_v62  ;;  %v3305_v57 = vpop.f32.mrb[135].mxu1  ;;  %v2255_v61 = vpop.f32.mrb[135].mxu0  ;;  %v2321_v26 = vmax.f32 %v2261_v27, 0.0 }
 0x201   :  { %v3306_v11 = vadd.f32 %v3305_v57, %v3304_v38  ;;  %v2256_v3 = vadd.f32 %v2255_v61, %v4726_v17  ;;  %v2116_v63 = vadd.f32 %v3303_v6, %v4655_v25  ;;  %v2319_v24 = vmax.f32 %v2253_v55, 0.0 }
 0x202   :  { %v2322_v52 = vmax.f32 %v2264_v43, 0.0 }
 0x203   :  { %v2320_v13 = vmax.f32 %v2256_v3, 0.0  ;;  %v2119_v33 = vadd.f32 %v3306_v11, %v4661_v60 }
 0x204   :  { %v2834_v58 = vpack.c.bf16 %v2322_v52, %v2321_v26 }
 0x205   :  { %v2829_v0 = vpack.c.bf16 %v2320_v13, %v2319_v24  ;;  %v3307_v1 = vpop.f32.mrb[136].mxu1  ;;  %v3385_v29 = vpop.f32.mrb[136].mxu0 }
 0x206   :  { %2866 = vst [vmem:[%s4785_s3 + $0x58] sm:$0xff] %v2834_v58   ;;  %v2277_v16 = vadd.f32 %v3385_v29, %v2116_v63  ;;  %v3308_v7 = vpop.f32.mrb[137].mxu1  ;;  %v2268_v20 = vpop.f32.mrb[137].mxu0 }
 0x207   :  { %2865 = vst [vmem:[%s4785_s3 + $0x50] sm:$0xff] %v2829_v0   ;;  %v3309_v25 = vadd.f32 %v3308_v7, %v3307_v1  ;;  %v2269_v17 = vadd.f32 %v2268_v20, %v2108_v39  ;;  %v3310_v22 = vpop.f32.mrb[138].mxu1  ;;  %v3386_v15 = vpop.f32.mrb[138].mxu0 }
 0x208   :  { %v2280_v60 = vadd.f32 %v3386_v15, %v2119_v33  ;;  %v3311_v18 = vpop.f32.mrb[139].mxu1  ;;  %v2271_v54 = vpop.f32.mrb[139].mxu0  ;;  %v2325_v37 = vmax.f32 %v2277_v16, 0.0 }
 0x209   :  { %v3312_v10 = vadd.f32 %v3311_v18, %v3310_v22  ;;  %v2272_v62 = vadd.f32 %v2271_v54, %v2111_v4  ;;  %v2124_v9 = vadd.f32 %v3309_v25, %v4667_v48  ;;  %v2323_v35 = vmax.f32 %v2269_v17, 0.0 }
 0x20a   :  { %v2326_v2 = vmax.f32 %v2280_v60, 0.0 }
 0x20b   :  { %v2324_v19 = vmax.f32 %v2272_v62, 0.0  ;;  %v2127_v42 = vadd.f32 %v3312_v10, %v4673_v12 }
 0x20c   :  { %v2844_v34 = vpack.c.bf16 %v2326_v2, %v2325_v37 }
 0x20d   :  { %v2839_v41 = vpack.c.bf16 %v2324_v19, %v2323_v35  ;;  %v3313_v47 = vpop.f32.mrb[140].mxu1  ;;  %v3389_v59 = vpop.f32.mrb[140].mxu0 }
 0x20e   :  { %2868 = vst [vmem:[%s4785_s3 + $0x68] sm:$0xff] %v2844_v34   ;;  %v3314_v46 = vpop.f32.mrb[141].mxu1  ;;  %v2284_v40 = vpop.f32.mrb[141].mxu0 }
 0x20f   :  { %2867 = vst [vmem:[%s4785_s3 + $0x60] sm:$0xff] %v2839_v41   ;;  %v3315_v48 = vadd.f32 %v3314_v46, %v3313_v47  ;;  %v2285_v5 = vadd.f32 %v2284_v40, %v2124_v9  ;;  %v3316_v45 = vpop.f32.mrb[142].mxu1  ;;  %v3390_v30 = vpop.f32.mrb[142].mxu0 }
 0x210   :  { %v3317_v51 = vpop.f32.mrb[143].mxu1  ;;  %v2287_v12 = vpop.f32.mrb[143].mxu0 }
 0x211   :  { %v2132_v39 = vadd.f32 %v3315_v48, %v4679_v8  ;;  %v3318_v31 = vadd.f32 %v3317_v51, %v3316_v45  ;;  %v2288_v32 = vadd.f32 %v2287_v12, %v2127_v42  ;;  %v2327_v14 = vmax.f32 %v2285_v5, 0.0 }
 0x213   :  { %v2293_v36 = vadd.f32 %v3389_v59, %v2132_v39  ;;  %v2135_v4 = vadd.f32 %v3318_v31, %v4685_v28  ;;  %v2328_v53 = vmax.f32 %v2288_v32, 0.0 }
 0x215   :  { %v2296_v56 = vadd.f32 %v3390_v30, %v2135_v4  ;;  %v2849_v23 = vpack.c.bf16 %v2328_v53, %v2327_v14  ;;  %v2329_v44 = vmax.f32 %v2293_v36, 0.0 }
 0x217   :  { %v2330_v27 = vmax.f32 %v2296_v56, 0.0  ;;  %2869 = vst [vmem:[%s4785_s3 + $0x70] sm:$0xff] %v2849_v23  }
 0x219   :  { %v2854_v21 = vpack.c.bf16 %v2330_v27, %v2329_v44 }
 0x21b   :  { %2870 = vst [vmem:[%s4785_s3 + $0x78] sm:$0xff] %v2854_v21  }

// kernel: cnn_plus_fc_forward.6
= control target key start
LH: loop header
LB: loop body
LE: loop exit
PB: predicated region body
PF: predicated region fallthrough
CT: control target
= control target key end

     0   :  { %v10890_v0 = vmov 0   ;;  %s14076_s1 = inlined_call_operand.vmem [shape: bf16[1152,128], index: 1, kind: input, shape index: {}]   ;;  %s14077_s0 = inlined_call_operand.vmem [shape: bf16[1024,1152], index: 0, kind: input, shape index: {}]   ;;  %s14078_s2 = inlined_call_operand.vmem [shape: f32[1,128], index: 2, kind: input, shape index: {}]   ;;  %s14079_s3 = inlined_call_operand.vmem [shape: bf16[1024,128], index: 3, kind: output, shape index: {}]  }
   0x1   :  { %4182 = vmatprep.subr.bf16.mxu1 %v10890_v0  ;;  %4727 = vmatprep.subr.bf16.mxu0 %v10890_v0  ;;  %v9984_v1 = vld [vmem:[%s14076_s1] sm:$0xff]   ;;  %v9986_v3 = vld [vmem:[%s14076_s1 + $0x8] sm:$0xff]   ;;  %v9988_v5 = vld [vmem:[%s14076_s1 + $0x10] sm:$0xff]  }
   0x2   :  { %v10919_v2 = vld [vmem:[%s14076_s1 + $0x80] sm:$0xff]   ;;  %4183 = vmatpush1.bf16.msra.mxu1 %v9984_v1  ;;  %v10929_v4 = vld [vmem:[%s14076_s1 + $0x88] sm:$0xff]   ;;  %v10940_v6 = vld [vmem:[%s14076_s1 + $0x90] sm:$0xff]  }
   0x3   :  { %4728 = vmatpush1.bf16.msra.mxu0 %v10919_v2  ;;  %4184 = vmatprep.subr.bf16.mxu1 %v10890_v0  ;;  %v9990_v7 = vld [vmem:[%s14076_s1 + $0x18] sm:$0xff]   ;;  %v9992_v9 = vld [vmem:[%s14076_s1 + $0x20] sm:$0xff]   ;;  %v9994_v11 = vld [vmem:[%s14076_s1 + $0x28] sm:$0xff]  }
   0x4   :  { %4729 = vmatprep.subr.bf16.mxu0 %v10890_v0  ;;  %v10951_v8 = vld [vmem:[%s14076_s1 + $0x98] sm:$0xff]   ;;  %v10962_v10 = vld [vmem:[%s14076_s1 + $0xa0] sm:$0xff]   ;;  %v10973_v12 = vld [vmem:[%s14076_s1 + $0xa8] sm:$0xff]  }
   0x5   :  { %v9996_v13 = vld [vmem:[%s14076_s1 + $0x30] sm:$0xff]   ;;  %v9998_v15 = vld [vmem:[%s14076_s1 + $0x38] sm:$0xff]   ;;  %v10000_v17 = vld [vmem:[%s14076_s1 + $0x40] sm:$0xff]  }
   0x6   :  { %4185 = vmatpush1.bf16.msra.mxu1 %v9986_v3  ;;  %v10984_v14 = vld [vmem:[%s14076_s1 + $0xb0] sm:$0xff]   ;;  %v10995_v16 = vld [vmem:[%s14076_s1 + $0xb8] sm:$0xff]   ;;  %v11006_v18 = vld [vmem:[%s14076_s1 + $0xc0] sm:$0xff]  }
   0x7   :  { %4730 = vmatpush1.bf16.msra.mxu0 %v10929_v4  ;;  %4186 = vmatprep.subr.bf16.mxu1 %v10890_v0  ;;  %v10018_v19 = vld [vmem:[%s14077_s0 + $0x4] ss:$36 sps:$4 sm:$0xff]   ;;  %v10021_v21 = vld [vmem:[%s14077_s0 + $0xc] ss:$36 sps:$4 sm:$0xff]   ;;  %v10006_v25 = vld [vmem:[%s14076_s1 + $0x58] sm:$0xff]  }
   0x8   :  { %4731 = vmatprep.subr.bf16.mxu0 %v10890_v0  ;;  %v10002_v20 = vld [vmem:[%s14076_s1 + $0x48] sm:$0xff]   ;;  %4214 = vmatprep.mubr.bf16.mxu1 %v10018_v19  ;;  %v10004_v23 = vld [vmem:[%s14076_s1 + $0x50] sm:$0xff]   ;;  %v11045_v26 = vld [vmem:[%s14076_s1 + $0xd8] sm:$0xff]  }
   0x9   :  { %v11023_v22 = vld [vmem:[%s14076_s1 + $0xc8] sm:$0xff]   ;;  %4759 = vmatprep.mubr.bf16.mxu0 %v10021_v21  ;;  %v11034_v24 = vld [vmem:[%s14076_s1 + $0xd0] sm:$0xff]   ;;  %v10008_v27 = vld [vmem:[%s14076_s1 + $0x60] sm:$0xff]  }
   0xa   :  { %4187 = vmatpush1.bf16.msra.mxu1 %v9988_v5  ;;  %v11056_v28 = vld [vmem:[%s14076_s1 + $0xe0] sm:$0xff]   ;;  %v10010_v29 = vld [vmem:[%s14076_s1 + $0x68] sm:$0xff]   ;;  %v10012_v31 = vld [vmem:[%s14076_s1 + $0x70] sm:$0xff]  }
   0xb   :  { %4732 = vmatpush1.bf16.msra.mxu0 %v10940_v6  ;;  %4188 = vmatprep.subr.bf16.mxu1 %v10890_v0  ;;  %v11067_v30 = vld [vmem:[%s14076_s1 + $0xe8] sm:$0xff]   ;;  %v11078_v32 = vld [vmem:[%s14076_s1 + $0xf0] sm:$0xff]   ;;  %v10014_v33 = vld [vmem:[%s14076_s1 + $0x78] sm:$0xff]  }
   0xc   :  { %4733 = vmatprep.subr.bf16.mxu0 %v10890_v0  ;;  %v11089_v34 = vld [vmem:[%s14076_s1 + $0xf8] sm:$0xff]   ;;  %v10016_v35 = vld [vmem:[%s14077_s0] ss:$36 sps:$4 sm:$0xff]   ;;  %v10019_v36 = vld [vmem:[%s14077_s0 + $0x8] ss:$36 sps:$4 sm:$0xff]  }
   0xd   :  { %v10022_v37 = vld [vmem:[%s14076_s1 + $0x100] sm:$0xff]   ;;  %v10023_v38 = vld [vmem:[%s14077_s0 + $0x4c] ss:$36 sps:$4 sm:$0xff]   ;;  %v10025_v39 = vld [vmem:[%s14077_s0 + $0x54] ss:$36 sps:$4 sm:$0xff]  }
   0xe   :  { %4189 = vmatpush1.bf16.msra.mxu1 %v9990_v7  ;;  %v10029_v40 = vld [vmem:[%s14076_s1 + $0x108] sm:$0xff]   ;;  %v10028_v42 = vld [vmem:[%s14077_s0 + $0x50] ss:$36 sps:$4 sm:$0xff]   ;;  %v10032_v44 = vld [vmem:[%s14077_s0 + $0x9c] ss:$36 sps:$4 sm:$0xff]  }
   0xf   :  { %4734 = vmatpush1.bf16.msra.mxu0 %v10951_v8  ;;  %4190 = vmatprep.subr.bf16.mxu1 %v10890_v0  ;;  %v10027_v41 = vld [vmem:[%s14077_s0 + $0x48] ss:$36 sps:$4 sm:$0xff]   ;;  %v10030_v43 = vld [vmem:[%s14077_s0 + $0x94] ss:$36 sps:$4 sm:$0xff]   ;;  %v10037_v49 = vld [vmem:[%s14077_s0 + $0xdc] ss:$36 sps:$4 sm:$0xff]  }
  0x10   :  { %4735 = vmatprep.subr.bf16.mxu0 %v10890_v0  ;;  %v10036_v45 = vld [vmem:[%s14076_s1 + $0x110] sm:$0xff]   ;;  %v10043_v46 = vld [vmem:[%s14076_s1 + $0x118] sm:$0xff]   ;;  %v10039_v50 = vld [vmem:[%s14077_s0 + $0xe4] ss:$36 sps:$4 sm:$0xff]  }
  0x11   :  { %v10034_v47 = vld [vmem:[%s14077_s0 + $0x90] ss:$36 sps:$4 sm:$0xff]   ;;  %v10035_v48 = vld [vmem:[%s14077_s0 + $0x98] ss:$36 sps:$4 sm:$0xff]   ;;  %v10050_v51 = vld [vmem:[%s14076_s1 + $0x120] sm:$0xff]  }
  0x12   :  { %4191 = vmatpush1.bf16.msra.mxu1 %v9992_v9  ;;  %v10057_v52 = vld [vmem:[%s14076_s1 + $0x128] sm:$0xff]   ;;  %v10041_v53 = vld [vmem:[%s14077_s0 + $0xd8] ss:$36 sps:$4 sm:$0xff]   ;;  %v10042_v54 = vld [vmem:[%s14077_s0 + $0xe0] ss:$36 sps:$4 sm:$0xff]  }
  0x13   :  { %4736 = vmatpush1.bf16.msra.mxu0 %v10962_v10  ;;  %4192 = vmatprep.subr.bf16.mxu1 %v10890_v0  ;;  %v10044_v55 = vld [vmem:[%s14077_s0 + $0x124] ss:$36 sps:$4 sm:$0xff]   ;;  %v10046_v56 = vld [vmem:[%s14077_s0 + $0x12c] ss:$36 sps:$4 sm:$0xff]   ;;  %v10071_v58 = vld [vmem:[%s14076_s1 + $0x138] sm:$0xff]  }
  0x14   :  { %4737 = vmatprep.subr.bf16.mxu0 %v10890_v0  ;;  %v10064_v57 = vld [vmem:[%s14076_s1 + $0x130] sm:$0xff]   ;;  %v10048_v59 = vld [vmem:[%s14077_s0 + $0x120] ss:$36 sps:$4 sm:$0xff]   ;;  %v10049_v60 = vld [vmem:[%s14077_s0 + $0x128] ss:$36 sps:$4 sm:$0xff]  }
  0x15   :  { %v10051_v61 = vld [vmem:[%s14077_s0 + $0x16c] ss:$36 sps:$4 sm:$0xff]   ;;  %v10053_v62 = vld [vmem:[%s14077_s0 + $0x174] ss:$36 sps:$4 sm:$0xff]   ;;  %v10078_v63 = vld [vmem:[%s14076_s1 + $0x140] sm:$0xff]  }
  0x16   :  { %4193 = vmatpush1.bf16.msra.mxu1 %v9994_v11  ;;  %v10085_v1 = vld [vmem:[%s14076_s1 + $0x148] sm:$0xff]   ;;  %v10056_v3 = vld [vmem:[%s14077_s0 + $0x170] ss:$36 sps:$4 sm:$0xff]   ;;  %v10060_v5 = vld [vmem:[%s14077_s0 + $0x1bc] ss:$36 sps:$4 sm:$0xff]  }
  0x17   :  { %4738 = vmatpush1.bf16.msra.mxu0 %v10973_v12  ;;  %4194 = vmatprep.subr.bf16.mxu1 %v10890_v0  ;;  %v10099_v7 = vld [vmem:[%s14076_s1 + $0x158] sm:$0xff]   ;;  %v10067_v11 = vld [vmem:[%s14077_s0 + $0x204] ss:$36 sps:$4 sm:$0xff]  }
  0x18   :  { %4739 = vmatprep.subr.bf16.mxu0 %v10890_v0  ;;  %v10063_v9 = vld [vmem:[%s14077_s0 + $0x1b8] ss:$36 sps:$4 sm:$0xff]   ;;  %v10076_v19 = vld [vmem:[%s14077_s0 + $0x240] ss:$36 sps:$4 sm:$0xff]   ;;  %v10077_v21 = vld [vmem:[%s14077_s0 + $0x248] ss:$36 sps:$4 sm:$0xff]  }
  0x1a   :  { %4195 = vmatpush1.bf16.msra.mxu1 %v9996_v13  ;;  %v10069_v13 = vld [vmem:[%s14077_s0 + $0x1f8] ss:$36 sps:$4 sm:$0xff]  }
  0x1b   :  { %4740 = vmatpush1.bf16.msra.mxu0 %v10984_v14  ;;  %4196 = vmatprep.subr.bf16.mxu1 %v10890_v0 }
  0x1c   :  { %4741 = vmatprep.subr.bf16.mxu0 %v10890_v0 }
  0x1e   :  { %4197 = vmatpush1.bf16.msra.mxu1 %v9998_v15  ;;  %v10070_v15 = vld [vmem:[%s14077_s0 + $0x200] ss:$36 sps:$4 sm:$0xff]  }
  0x1f   :  { %4742 = vmatpush1.bf16.msra.mxu0 %v10995_v16  ;;  %4198 = vmatprep.subr.bf16.mxu1 %v10890_v0 }
  0x20   :  { %4743 = vmatprep.subr.bf16.mxu0 %v10890_v0 }
  0x22   :  { %4199 = vmatpush1.bf16.msra.mxu1 %v10000_v17  ;;  %v10074_v17 = vld [vmem:[%s14077_s0 + $0x24c] ss:$36 sps:$4 sm:$0xff]  }
  0x23   :  { %4744 = vmatpush1.bf16.msra.mxu0 %v11006_v18  ;;  %4200 = vmatprep.subr.bf16.mxu1 %v10890_v0 }
  0x24   :  { %4745 = vmatprep.subr.bf16.mxu0 %v10890_v0 }
  0x26   :  { %4201 = vmatpush1.bf16.msra.mxu1 %v10002_v20  ;;  %v10127_v20 = vld [vmem:[%s14076_s1 + $0x178] sm:$0xff]  }
  0x27   :  { %4746 = vmatpush1.bf16.msra.mxu0 %v11023_v22  ;;  %4202 = vmatprep.subr.bf16.mxu1 %v10890_v0 }
  0x28   :  { %4747 = vmatprep.subr.bf16.mxu0 %v10890_v0 }
  0x2a   :  { %4203 = vmatpush1.bf16.msra.mxu1 %v10004_v23  ;;  %v10081_v23 = vld [vmem:[%s14077_s0 + $0x294] ss:$36 sps:$4 sm:$0xff]  }
  0x2b   :  { %4748 = vmatpush1.bf16.msra.mxu0 %v11034_v24  ;;  %4204 = vmatprep.subr.bf16.mxu1 %v10890_v0 }
  0x2c   :  { %4749 = vmatprep.subr.bf16.mxu0 %v10890_v0 }
  0x2e   :  { %4205 = vmatpush1.bf16.msra.mxu1 %v10006_v25  ;;  %v10084_v25 = vld [vmem:[%s14077_s0 + $0x290] ss:$36 sps:$4 sm:$0xff]  }
  0x2f   :  { %4750 = vmatpush1.bf16.msra.mxu0 %v11045_v26  ;;  %4206 = vmatprep.subr.bf16.mxu1 %v10890_v0 }
  0x30   :  { %4751 = vmatprep.subr.bf16.mxu0 %v10890_v0 }
  0x32   :  { %4207 = vmatpush1.bf16.msra.mxu1 %v10008_v27  ;;  %v10088_v27 = vld [vmem:[%s14077_s0 + $0x2dc] ss:$36 sps:$4 sm:$0xff]  }
  0x33   :  { %4752 = vmatpush1.bf16.msra.mxu0 %v11056_v28  ;;  %4208 = vmatprep.subr.bf16.mxu1 %v10890_v0 }
  0x34   :  { %4753 = vmatprep.subr.bf16.mxu0 %v10890_v0 }
  0x36   :  { %4209 = vmatpush1.bf16.msra.mxu1 %v10010_v29  ;;  %v10091_v29 = vld [vmem:[%s14077_s0 + $0x2d8] ss:$36 sps:$4 sm:$0xff]  }
  0x37   :  { %4754 = vmatpush1.bf16.msra.mxu0 %v11067_v30  ;;  %4210 = vmatprep.subr.bf16.mxu1 %v10890_v0 }
  0x38   :  { %4755 = vmatprep.subr.bf16.mxu0 %v10890_v0 }
  0x3a   :  { %4211 = vmatpush1.bf16.msra.mxu1 %v10012_v31  ;;  %v10095_v31 = vld [vmem:[%s14077_s0 + $0x324] ss:$36 sps:$4 sm:$0xff]  }
  0x3b   :  { %4756 = vmatpush1.bf16.msra.mxu0 %v11078_v32  ;;  %4212 = vmatprep.subr.bf16.mxu1 %v10890_v0 }
  0x3c   :  { %4757 = vmatprep.subr.bf16.mxu0 %v10890_v0 }
  0x3e   :  { %4213 = vmatpush1.bf16.msra.mxu1 %v10014_v33  ;;  %v10098_v33 = vld [vmem:[%s14077_s0 + $0x320] ss:$36 sps:$4 sm:$0xff]  }
  0x3f   :  { %4758 = vmatpush1.bf16.msra.mxu0 %v11089_v34  ;;  %9183 = vmatprep.subr.bf16.mxu1 %v10890_v0 }
  0x40   :  { %5272 = vmatprep.subr.bf16.mxu0 %v10890_v0 }
  0x41   :  { %4215 = vmatmul.mubr.bf16.vlgmr.msra.gmra.mrb[0].mxu1 %v10016_v35  ;;  %v10102_v35 = vld [vmem:[%s14077_s0 + $0x36c] ss:$36 sps:$4 sm:$0xff]  }
  0x42   :  { %4760 = vmatmul.mubr.bf16.vlgmr.msra.gmra.mrb[0].mxu0 %v10019_v36  ;;  %9199 = vmatpush1.bf16.msra.mxu1 %v10919_v2  ;;  %v10055_v2 = vld [vmem:[%s14077_s0 + $0x168] ss:$36 sps:$4 sm:$0xff]   ;;  %v10104_v36 = vld [vmem:[%s14077_s0 + $0x360] ss:$36 sps:$4 sm:$0xff]  }
  0x43   :  { %5273 = vmatpush1.bf16.msra.mxu0 %v10022_v37  ;;  %4222 = vmatprep.mubr.bf16.mxu1 %v10023_v38  ;;  %v10105_v37 = vld [vmem:[%s14077_s0 + $0x368] ss:$36 sps:$4 sm:$0xff]  }
  0x44   :  { %4767 = vmatprep.mubr.bf16.mxu0 %v10025_v39  ;;  %5274 = vmatprep.subr.bf16.mxu0 %v10890_v0  ;;  %v10107_v38 = vld [vmem:[%s14077_s0 + $0x3ac] ss:$36 sps:$4 sm:$0xff]   ;;  %v10109_v39 = vld [vmem:[%s14077_s0 + $0x3b4] ss:$36 sps:$4 sm:$0xff]  }
  0x45   :  { %9184 = vmatprep.subr.bf16.mxu1 %v10890_v0 }
  0x46   :  { %9200 = vmatpush1.bf16.msra.mxu1 %v10929_v4  ;;  %v10058_v4 = vld [vmem:[%s14077_s0 + $0x1b4] ss:$36 sps:$4 sm:$0xff]  }
  0x47   :  { %5275 = vmatpush1.bf16.msra.mxu0 %v10029_v40  ;;  %9185 = vmatprep.subr.bf16.mxu1 %v10890_v0  ;;  %v10111_v40 = vld [vmem:[%s14077_s0 + $0x3a8] ss:$36 sps:$4 sm:$0xff]  }
  0x48   :  { %5276 = vmatprep.subr.bf16.mxu0 %v10890_v0 }
  0x49   :  { %4223 = vmatmul.mubr.bf16.gmra.mrb[4].mxu1 %v10027_v41  ;;  %v10112_v41 = vld [vmem:[%s14077_s0 + $0x3b0] ss:$36 sps:$4 sm:$0xff]  }
  0x4a   :  { %4768 = vmatmul.mubr.bf16.gmra.mrb[4].mxu0 %v10028_v42  ;;  %4230 = vmatprep.mubr.bf16.mxu1 %v10030_v43  ;;  %v10114_v42 = vld [vmem:[%s14077_s0 + $0x3f4] ss:$36 sps:$4 sm:$0xff]   ;;  %v10116_v43 = vld [vmem:[%s14077_s0 + $0x3fc] ss:$36 sps:$4 sm:$0xff]  }
  0x4b   :  { %4775 = vmatprep.mubr.bf16.mxu0 %v10032_v44  ;;  %5277 = vmatpush1.bf16.msra.mxu0 %v10036_v45  ;;  %v10118_v44 = vld [vmem:[%s14077_s0 + $0x3f0] ss:$36 sps:$4 sm:$0xff]   ;;  %v10119_v45 = vld [vmem:[%s14077_s0 + $0x3f8] ss:$36 sps:$4 sm:$0xff]  }
  0x4c   :  { %5278 = vmatprep.subr.bf16.mxu0 %v10890_v0  ;;  %9201 = vmatpush1.bf16.msra.mxu1 %v10940_v6  ;;  %v10092_v6 = vld [vmem:[%s14076_s1 + $0x150] sm:$0xff]  }
  0x4d   :  { %9186 = vmatprep.subr.bf16.mxu1 %v10890_v0 }
  0x4f   :  { %5279 = vmatpush1.bf16.msra.mxu0 %v10043_v46  ;;  %v10121_v46 = vld [vmem:[%s14077_s0 + $0x43c] ss:$36 sps:$4 sm:$0xff]  }
  0x50   :  { %5280 = vmatprep.subr.bf16.mxu0 %v10890_v0  ;;  %9202 = vmatpush1.bf16.msra.mxu1 %v10951_v8  ;;  %v10062_v8 = vld [vmem:[%s14077_s0 + $0x1b0] ss:$36 sps:$4 sm:$0xff]  }
  0x51   :  { %4231 = vmatmul.mubr.bf16.gmra.mrb[8].mxu1 %v10034_v47  ;;  %9187 = vmatprep.subr.bf16.mxu1 %v10890_v0  ;;  %v10123_v47 = vld [vmem:[%s14077_s0 + $0x444] ss:$36 sps:$4 sm:$0xff]  }
  0x52   :  { %4776 = vmatmul.mubr.bf16.gmra.mrb[8].mxu0 %v10035_v48  ;;  %4238 = vmatprep.mubr.bf16.mxu1 %v10037_v49  ;;  %v10125_v48 = vld [vmem:[%s14077_s0 + $0x438] ss:$36 sps:$4 sm:$0xff]   ;;  %v10126_v49 = vld [vmem:[%s14077_s0 + $0x440] ss:$36 sps:$4 sm:$0xff]  }
  0x53   :  { %4783 = vmatprep.mubr.bf16.mxu0 %v10039_v50  ;;  %5281 = vmatpush1.bf16.msra.mxu0 %v10050_v51  ;;  %v10128_v50 = vld [vmem:[%s14077_s0 + $0x484] ss:$36 sps:$4 sm:$0xff]   ;;  %v10132_v51 = vld [vmem:[%s14077_s0 + $0x14] ss:$36 sps:$4 sm:$0xff]  }
  0x54   :  { %5282 = vmatprep.subr.bf16.mxu0 %v10890_v0  ;;  %9203 = vmatpush1.bf16.msra.mxu1 %v10962_v10  ;;  %v10065_v10 = vld [vmem:[%s14077_s0 + $0x1fc] ss:$36 sps:$4 sm:$0xff]  }
  0x55   :  { %9188 = vmatprep.subr.bf16.mxu1 %v10890_v0 }
  0x57   :  { %5283 = vmatpush1.bf16.msra.mxu0 %v10057_v52  ;;  %v10133_v52 = vld [vmem:[%s14077_s0 + $0x480] ss:$36 sps:$4 sm:$0xff]  }
  0x58   :  { %5284 = vmatprep.subr.bf16.mxu0 %v10890_v0  ;;  %9204 = vmatpush1.bf16.msra.mxu1 %v10973_v12  ;;  %v10106_v12 = vld [vmem:[%s14076_s1 + $0x160] sm:$0xff]  }
  0x59   :  { %4239 = vmatmul.mubr.bf16.gmra.mrb[12].mxu1 %v10041_v53  ;;  %9189 = vmatprep.subr.bf16.mxu1 %v10890_v0  ;;  %v10130_v53 = vld [vmem:[%s14077_s0 + $0x10] ss:$36 sps:$4 sm:$0xff]  }
  0x5a   :  { %4784 = vmatmul.mubr.bf16.gmra.mrb[12].mxu0 %v10042_v54  ;;  %4246 = vmatprep.mubr.bf16.mxu1 %v10044_v55  ;;  %v10135_v54 = vld [vmem:[%s14077_s0 + $0x4cc] ss:$36 sps:$4 sm:$0xff]   ;;  %v10134_v55 = vld [vmem:[%s14076_s1 + $0x180] sm:$0xff]  }
  0x5b   :  { %4791 = vmatprep.mubr.bf16.mxu0 %v10046_v56  ;;  %5285 = vmatpush1.bf16.msra.mxu0 %v10064_v57  ;;  %v10137_v56 = vld [vmem:[%s14077_s0 + $0x5c] ss:$36 sps:$4 sm:$0xff]   ;;  %v10159_v57 = vld [vmem:[%s14076_s1 + $0x188] sm:$0xff]  }
  0x5c   :  { %5286 = vmatprep.subr.bf16.mxu0 %v10890_v0  ;;  %9205 = vmatpush1.bf16.msra.mxu1 %v10984_v14  ;;  %v10113_v14 = vld [vmem:[%s14076_s1 + $0x168] sm:$0xff]  }
  0x5d   :  { %9190 = vmatprep.subr.bf16.mxu1 %v10890_v0 }
  0x5f   :  { %5287 = vmatpush1.bf16.msra.mxu0 %v10071_v58  ;;  %v10139_v58 = vld [vmem:[%s14077_s0 + $0x4c8] ss:$36 sps:$4 sm:$0xff]  }
  0x60   :  { %5288 = vmatprep.subr.bf16.mxu0 %v10890_v0  ;;  %9206 = vmatpush1.bf16.msra.mxu1 %v10995_v16  ;;  %v10072_v16 = vld [vmem:[%s14077_s0 + $0x244] ss:$36 sps:$4 sm:$0xff]  }
  0x61   :  { %4247 = vmatmul.mubr.bf16.gmra.mrb[16].mxu1 %v10048_v59  ;;  %9191 = vmatprep.subr.bf16.mxu1 %v10890_v0  ;;  %v10140_v59 = vld [vmem:[%s14077_s0 + $0x58] ss:$36 sps:$4 sm:$0xff]  }
  0x62   :  { %4792 = vmatmul.mubr.bf16.gmra.mrb[16].mxu0 %v10049_v60  ;;  %4254 = vmatprep.mubr.bf16.mxu1 %v10051_v61  ;;  %v10141_v60 = vld [vmem:[%s14077_s0 + $0x514] ss:$36 sps:$4 sm:$0xff]   ;;  %v10143_v61 = vld [vmem:[%s14077_s0 + $0xa4] ss:$36 sps:$4 sm:$0xff]  }
  0x63   :  { %4799 = vmatprep.mubr.bf16.mxu0 %v10053_v62  ;;  %5289 = vmatpush1.bf16.msra.mxu0 %v10078_v63  ;;  %v10184_v62 = vld [vmem:[%s14076_s1 + $0x190] sm:$0xff]   ;;  %v10209_v63 = vld [vmem:[%s14076_s1 + $0x198] sm:$0xff]  }
  0x64   :  { %5290 = vmatprep.subr.bf16.mxu0 %v10890_v0  ;;  %9207 = vmatpush1.bf16.msra.mxu1 %v11006_v18  ;;  %v10120_v18 = vld [vmem:[%s14076_s1 + $0x170] sm:$0xff]  }
  0x65   :  { %9192 = vmatprep.subr.bf16.mxu1 %v10890_v0 }
  0x67   :  { %5291 = vmatpush1.bf16.msra.mxu0 %v10085_v1  ;;  %v10145_v1 = vld [vmem:[%s14077_s0 + $0x510] ss:$36 sps:$4 sm:$0xff]  }
  0x68   :  { %5292 = vmatprep.subr.bf16.mxu0 %v10890_v0  ;;  %9208 = vmatpush1.bf16.msra.mxu1 %v11023_v22  ;;  %v10079_v22 = vld [vmem:[%s14077_s0 + $0x28c] ss:$36 sps:$4 sm:$0xff]  }
  0x69   :  { %4255 = vmatmul.mubr.bf16.gmra.mrb[20].mxu1 %v10055_v2  ;;  %9193 = vmatprep.subr.bf16.mxu1 %v10890_v0  ;;  %v10146_v2 = vld [vmem:[%s14077_s0 + $0xa0] ss:$36 sps:$4 sm:$0xff]  }
  0x6a   :  { %4800 = vmatmul.mubr.bf16.gmra.mrb[20].mxu0 %v10056_v3  ;;  %4262 = vmatprep.mubr.bf16.mxu1 %v10058_v4  ;;  %v10147_v3 = vld [vmem:[%s14077_s0 + $0x55c] ss:$36 sps:$4 sm:$0xff]   ;;  %v10149_v4 = vld [vmem:[%s14077_s0 + $0xec] ss:$36 sps:$4 sm:$0xff]  }
  0x6b   :  { %4807 = vmatprep.mubr.bf16.mxu0 %v10060_v5  ;;  %5293 = vmatpush1.bf16.msra.mxu0 %v10092_v6  ;;  %v10234_v5 = vld [vmem:[%s14076_s1 + $0x1a0] sm:$0xff]   ;;  %v10151_v6 = vld [vmem:[%s14077_s0 + $0x558] ss:$36 sps:$4 sm:$0xff]  }
  0x6c   :  { %5294 = vmatprep.subr.bf16.mxu0 %v10890_v0  ;;  %9209 = vmatpush1.bf16.msra.mxu1 %v11034_v24  ;;  %v10083_v24 = vld [vmem:[%s14077_s0 + $0x288] ss:$36 sps:$4 sm:$0xff]  }
  0x6d   :  { %9194 = vmatprep.subr.bf16.mxu1 %v10890_v0 }
  0x6f   :  { %5295 = vmatpush1.bf16.msra.mxu0 %v10099_v7  ;;  %v10152_v7 = vld [vmem:[%s14077_s0 + $0xe8] ss:$36 sps:$4 sm:$0xff]  }
  0x70   :  { %5296 = vmatprep.subr.bf16.mxu0 %v10890_v0  ;;  %9210 = vmatpush1.bf16.msra.mxu1 %v11045_v26  ;;  %v10086_v26 = vld [vmem:[%s14077_s0 + $0x2d4] ss:$36 sps:$4 sm:$0xff]  }
  0x71   :  { %4263 = vmatmul.mubr.bf16.gmra.mrb[24].mxu1 %v10062_v8  ;;  %9195 = vmatprep.subr.bf16.mxu1 %v10890_v0  ;;  %v10153_v8 = vld [vmem:[%s14077_s0 + $0x5a4] ss:$36 sps:$4 sm:$0xff]  }
  0x72   :  { %4808 = vmatmul.mubr.bf16.gmra.mrb[24].mxu0 %v10063_v9  ;;  %4270 = vmatprep.mubr.bf16.mxu1 %v10065_v10  ;;  %v10155_v9 = vld [vmem:[%s14077_s0 + $0x134] ss:$36 sps:$4 sm:$0xff]   ;;  %v10157_v10 = vld [vmem:[%s14077_s0 + $0x5a0] ss:$36 sps:$4 sm:$0xff]  }
  0x73   :  { %4815 = vmatprep.mubr.bf16.mxu0 %v10067_v11  ;;  %5297 = vmatpush1.bf16.msra.mxu0 %v10106_v12  ;;  %v10158_v11 = vld [vmem:[%s14077_s0 + $0x130] ss:$36 sps:$4 sm:$0xff]  }
  0x74   :  { %5298 = vmatprep.subr.bf16.mxu0 %v10890_v0  ;;  %9211 = vmatpush1.bf16.msra.mxu1 %v11056_v28  ;;  %v10090_v28 = vld [vmem:[%s14077_s0 + $0x2d0] ss:$36 sps:$4 sm:$0xff]  }
  0x75   :  { %9196 = vmatprep.subr.bf16.mxu1 %v10890_v0  ;;  %v10160_v12 = vld [vmem:[%s14077_s0 + $0x5ec] ss:$36 sps:$4 sm:$0xff]  }
  0x77   :  { %5299 = vmatpush1.bf16.msra.mxu0 %v10113_v14  ;;  %v10259_v14 = vld [vmem:[%s14076_s1 + $0x1a8] sm:$0xff]  }
  0x78   :  { %5300 = vmatprep.subr.bf16.mxu0 %v10890_v0  ;;  %9212 = vmatpush1.bf16.msra.mxu1 %v11067_v30  ;;  %v10093_v30 = vld [vmem:[%s14077_s0 + $0x31c] ss:$36 sps:$4 sm:$0xff]  }
  0x79   :  { %4271 = vmatmul.mubr.bf16.gmra.mrb[28].mxu1 %v10069_v13  ;;  %9197 = vmatprep.subr.bf16.mxu1 %v10890_v0  ;;  %v10162_v13 = vld [vmem:[%s14077_s0 + $0x17c] ss:$36 sps:$4 sm:$0xff]  }
  0x7a   :  { %4816 = vmatmul.mubr.bf16.gmra.mrb[28].mxu0 %v10070_v15  ;;  %4278 = vmatprep.mubr.bf16.mxu1 %v10072_v16  ;;  %v10164_v15 = vld [vmem:[%s14077_s0 + $0x5e8] ss:$36 sps:$4 sm:$0xff]   ;;  %v10165_v16 = vld [vmem:[%s14077_s0 + $0x178] ss:$36 sps:$4 sm:$0xff]  }
  0x7b   :  { %4823 = vmatprep.mubr.bf16.mxu0 %v10074_v17  ;;  %5301 = vmatpush1.bf16.msra.mxu0 %v10120_v18  ;;  %v10166_v17 = vld [vmem:[%s14077_s0 + $0x634] ss:$36 sps:$4 sm:$0xff]   ;;  %v10168_v18 = vld [vmem:[%s14077_s0 + $0x1c4] ss:$36 sps:$4 sm:$0xff]  }
  0x7c   :  { %5302 = vmatprep.subr.bf16.mxu0 %v10890_v0  ;;  %9213 = vmatpush1.bf16.msra.mxu1 %v11078_v32  ;;  %v10097_v32 = vld [vmem:[%s14077_s0 + $0x318] ss:$36 sps:$4 sm:$0xff]  }
  0x7d   :  { %9198 = vmatprep.subr.bf16.mxu1 %v10890_v0 }
  0x7f   :  { %5303 = vmatpush1.bf16.msra.mxu0 %v10127_v20  ;;  %v10171_v20 = vld [vmem:[%s14077_s0 + $0x1c0] ss:$36 sps:$4 sm:$0xff]  }
  0x80   :  { %5817 = vmatprep.subr.bf16.mxu0 %v10890_v0  ;;  %9214 = vmatpush1.bf16.msra.mxu1 %v11089_v34  ;;  %v10100_v34 = vld [vmem:[%s14077_s0 + $0x364] ss:$36 sps:$4 sm:$0xff]  }
  0x81   :  { %4279 = vmatmul.mubr.bf16.gmra.mrb[32].mxu1 %v10076_v19  ;;  %v10170_v19 = vld [vmem:[%s14077_s0 + $0x630] ss:$36 sps:$4 sm:$0xff]  }
  0x82   :  { %4824 = vmatmul.mubr.bf16.gmra.mrb[32].mxu0 %v10077_v21  ;;  %4286 = vmatprep.mubr.bf16.mxu1 %v10079_v22  ;;  %v10172_v21 = vld [vmem:[%s14077_s0 + $0x67c] ss:$36 sps:$4 sm:$0xff]   ;;  %v10174_v22 = vld [vmem:[%s14077_s0 + $0x20c] ss:$36 sps:$4 sm:$0xff]  }
  0x83   :  { %4831 = vmatprep.mubr.bf16.mxu0 %v10081_v23  ;;  %v10176_v23 = vld [vmem:[%s14077_s0 + $0x678] ss:$36 sps:$4 sm:$0xff]  }
  0x89   :  { %4287 = vmatmul.mubr.bf16.gmra.mrb[36].mxu1 %v10083_v24  ;;  %v10177_v24 = vld [vmem:[%s14077_s0 + $0x208] ss:$36 sps:$4 sm:$0xff]  }
  0x8a   :  { %4832 = vmatmul.mubr.bf16.gmra.mrb[36].mxu0 %v10084_v25  ;;  %4294 = vmatprep.mubr.bf16.mxu1 %v10086_v26  ;;  %v10178_v25 = vld [vmem:[%s14077_s0 + $0x6c4] ss:$36 sps:$4 sm:$0xff]   ;;  %v10180_v26 = vld [vmem:[%s14077_s0 + $0x254] ss:$36 sps:$4 sm:$0xff]  }
  0x8b   :  { %4839 = vmatprep.mubr.bf16.mxu0 %v10088_v27  ;;  %v10182_v27 = vld [vmem:[%s14077_s0 + $0x6c0] ss:$36 sps:$4 sm:$0xff]  }
  0x91   :  { %4295 = vmatmul.mubr.bf16.gmra.mrb[40].mxu1 %v10090_v28  ;;  %v10183_v28 = vld [vmem:[%s14077_s0 + $0x250] ss:$36 sps:$4 sm:$0xff]  }
  0x92   :  { %4840 = vmatmul.mubr.bf16.gmra.mrb[40].mxu0 %v10091_v29  ;;  %4302 = vmatprep.mubr.bf16.mxu1 %v10093_v30  ;;  %v10185_v29 = vld [vmem:[%s14077_s0 + $0x70c] ss:$36 sps:$4 sm:$0xff]   ;;  %v10187_v30 = vld [vmem:[%s14077_s0 + $0x29c] ss:$36 sps:$4 sm:$0xff]  }
  0x93   :  { %4847 = vmatprep.mubr.bf16.mxu0 %v10095_v31  ;;  %v10284_v31 = vld [vmem:[%s14076_s1 + $0x1b0] sm:$0xff]  }
  0x99   :  { %4303 = vmatmul.mubr.bf16.gmra.mrb[44].mxu1 %v10097_v32  ;;  %v10189_v32 = vld [vmem:[%s14077_s0 + $0x708] ss:$36 sps:$4 sm:$0xff]  }
  0x9a   :  { %4848 = vmatmul.mubr.bf16.gmra.mrb[44].mxu0 %v10098_v33  ;;  %4310 = vmatprep.mubr.bf16.mxu1 %v10100_v34  ;;  %v10190_v33 = vld [vmem:[%s14077_s0 + $0x298] ss:$36 sps:$4 sm:$0xff]  }
  0x9b   :  { %4855 = vmatprep.mubr.bf16.mxu0 %v10102_v35  ;;  %v10191_v34 = vld [vmem:[%s14077_s0 + $0x754] ss:$36 sps:$4 sm:$0xff]   ;;  %v10193_v35 = vld [vmem:[%s14077_s0 + $0x2e4] ss:$36 sps:$4 sm:$0xff]  }
  0xa1   :  { %4311 = vmatmul.mubr.bf16.gmra.mrb[48].mxu1 %v10104_v36  ;;  %v10195_v36 = vld [vmem:[%s14077_s0 + $0x750] ss:$36 sps:$4 sm:$0xff]  }
  0xa2   :  { %4856 = vmatmul.mubr.bf16.gmra.mrb[48].mxu0 %v10105_v37  ;;  %4318 = vmatprep.mubr.bf16.mxu1 %v10107_v38  ;;  %v10196_v37 = vld [vmem:[%s14077_s0 + $0x2e0] ss:$36 sps:$4 sm:$0xff]  }
  0xa3   :  { %4863 = vmatprep.mubr.bf16.mxu0 %v10109_v39  ;;  %v10197_v38 = vld [vmem:[%s14077_s0 + $0x79c] ss:$36 sps:$4 sm:$0xff]   ;;  %v10199_v39 = vld [vmem:[%s14077_s0 + $0x32c] ss:$36 sps:$4 sm:$0xff]  }
  0xa9   :  { %4319 = vmatmul.mubr.bf16.gmra.mrb[52].mxu1 %v10111_v40  ;;  %v10201_v40 = vld [vmem:[%s14077_s0 + $0x798] ss:$36 sps:$4 sm:$0xff]  }
  0xaa   :  { %4864 = vmatmul.mubr.bf16.gmra.mrb[52].mxu0 %v10112_v41  ;;  %4326 = vmatprep.mubr.bf16.mxu1 %v10114_v42  ;;  %v10202_v42 = vld [vmem:[%s14077_s0 + $0x328] ss:$36 sps:$4 sm:$0xff]  }
  0xab   :  { %4871 = vmatprep.mubr.bf16.mxu0 %v10116_v43  ;;  %v10203_v43 = vld [vmem:[%s14077_s0 + $0x7e4] ss:$36 sps:$4 sm:$0xff]  }
  0xb1   :  { %4327 = vmatmul.mubr.bf16.gmra.mrb[56].mxu1 %v10118_v44 }
  0xb2   :  { %4872 = vmatmul.mubr.bf16.gmra.mrb[56].mxu0 %v10119_v45  ;;  %4334 = vmatprep.mubr.bf16.mxu1 %v10121_v46  ;;  %v10205_v45 = vld [vmem:[%s14077_s0 + $0x374] ss:$36 sps:$4 sm:$0xff]  }
  0xb3   :  { %4879 = vmatprep.mubr.bf16.mxu0 %v10123_v47 }
  0xb9   :  { %4335 = vmatmul.mubr.bf16.gmra.mrb[60].mxu1 %v10125_v48  ;;  %v10207_v48 = vld [vmem:[%s14077_s0 + $0x7e0] ss:$36 sps:$4 sm:$0xff]  }
  0xba   :  { %4880 = vmatmul.mubr.bf16.gmra.mrb[60].mxu0 %v10126_v49  ;;  %4342 = vmatprep.mubr.bf16.mxu1 %v10128_v50  ;;  %v10208_v50 = vld [vmem:[%s14077_s0 + $0x370] ss:$36 sps:$4 sm:$0xff]  }
  0xbb   :  { %5304 = vmatprep.mubr.bf16.mxu0 %v10132_v51  ;;  %v10210_v51 = vld [vmem:[%s14077_s0 + $0x82c] ss:$36 sps:$4 sm:$0xff]  }
  0xc1   :  { %4343 = vmatmul.mubr.bf16.gmra.mrb[64].mxu1 %v10133_v52 }
  0xc2   :  { %5305 = vmatmul.mubr.bf16.vlgmr.msra.gmra.mrb[0].mxu0 %v10130_v53  ;;  %4350 = vmatprep.mubr.bf16.mxu1 %v10135_v54  ;;  %v10212_v53 = vld [vmem:[%s14077_s0 + $0x3bc] ss:$36 sps:$4 sm:$0xff]  }
  0xc3   :  { %5818 = vmatpush1.bf16.msra.mxu0 %v10134_v55  ;;  %5312 = vmatprep.mubr.bf16.mxu0 %v10137_v56  ;;  %v10309_v56 = vld [vmem:[%s14076_s1 + $0x1b8] sm:$0xff]  }
  0xc4   :  { %5819 = vmatprep.subr.bf16.mxu0 %v10890_v0 }
  0xc7   :  { %5820 = vmatpush1.bf16.msra.mxu0 %v10159_v57  ;;  %v10214_v57 = vld [vmem:[%s14077_s0 + $0x828] ss:$36 sps:$4 sm:$0xff]  }
  0xc8   :  { %5821 = vmatprep.subr.bf16.mxu0 %v10890_v0 }
  0xc9   :  { %4351 = vmatmul.mubr.bf16.gmra.mrb[68].mxu1 %v10139_v58 }
  0xca   :  { %5313 = vmatmul.mubr.bf16.gmra.mrb[4].mxu0 %v10140_v59  ;;  %4358 = vmatprep.mubr.bf16.mxu1 %v10141_v60  ;;  %v10215_v59 = vld [vmem:[%s14077_s0 + $0x3b8] ss:$36 sps:$4 sm:$0xff]  }
  0xcb   :  { %5320 = vmatprep.mubr.bf16.mxu0 %v10143_v61  ;;  %5822 = vmatpush1.bf16.msra.mxu0 %v10184_v62  ;;  %v10216_v60 = vld [vmem:[%s14077_s0 + $0x874] ss:$36 sps:$4 sm:$0xff]   ;;  %v10218_v62 = vld [vmem:[%s14077_s0 + $0x404] ss:$36 sps:$4 sm:$0xff]  }
  0xcc   :  { %5823 = vmatprep.subr.bf16.mxu0 %v10890_v0 }
  0xcf   :  { %5824 = vmatpush1.bf16.msra.mxu0 %v10209_v63 }
  0xd0   :  { %5825 = vmatprep.subr.bf16.mxu0 %v10890_v0 }
  0xd1   :  { %4359 = vmatmul.mubr.bf16.gmra.mrb[72].mxu1 %v10145_v1 }
  0xd2   :  { %5321 = vmatmul.mubr.bf16.gmra.mrb[8].mxu0 %v10146_v2  ;;  %4366 = vmatprep.mubr.bf16.mxu1 %v10147_v3  ;;  %v10220_v2 = vld [vmem:[%s14077_s0 + $0x870] ss:$36 sps:$4 sm:$0xff]  }
  0xd3   :  { %5328 = vmatprep.mubr.bf16.mxu0 %v10149_v4  ;;  %5826 = vmatpush1.bf16.msra.mxu0 %v10234_v5  ;;  %v10221_v4 = vld [vmem:[%s14077_s0 + $0x400] ss:$36 sps:$4 sm:$0xff]  }
  0xd4   :  { %5827 = vmatprep.subr.bf16.mxu0 %v10890_v0  ;;  %v10222_v5 = vld [vmem:[%s14077_s0 + $0x8bc] ss:$36 sps:$4 sm:$0xff]  }
  0xd7   :  { %5828 = vmatpush1.bf16.msra.mxu0 %v10259_v14 }
  0xd8   :  { %5829 = vmatprep.subr.bf16.mxu0 %v10890_v0 }
  0xd9   :  { %4367 = vmatmul.mubr.bf16.gmra.mrb[76].mxu1 %v10151_v6 }
  0xda   :  { %5329 = vmatmul.mubr.bf16.gmra.mrb[12].mxu0 %v10152_v7  ;;  %4374 = vmatprep.mubr.bf16.mxu1 %v10153_v8  ;;  %v10224_v7 = vld [vmem:[%s14077_s0 + $0x44c] ss:$36 sps:$4 sm:$0xff]  }
  0xdb   :  { %5336 = vmatprep.mubr.bf16.mxu0 %v10155_v9  ;;  %5830 = vmatpush1.bf16.msra.mxu0 %v10284_v31 }
  0xdc   :  { %5831 = vmatprep.subr.bf16.mxu0 %v10890_v0 }
  0xdf   :  { %5832 = vmatpush1.bf16.msra.mxu0 %v10309_v56 }
  0xe0   :  { %5833 = vmatprep.subr.bf16.mxu0 %v10890_v0 }
  0xe1   :  { %4375 = vmatmul.mubr.bf16.gmra.mrb[80].mxu1 %v10157_v10  ;;  %v10226_v10 = vld [vmem:[%s14077_s0 + $0x8b8] ss:$36 sps:$4 sm:$0xff]  }
  0xe2   :  { %5337 = vmatmul.mubr.bf16.gmra.mrb[16].mxu0 %v10158_v11  ;;  %4382 = vmatprep.mubr.bf16.mxu1 %v10160_v12  ;;  %v10227_v12 = vld [vmem:[%s14077_s0 + $0x448] ss:$36 sps:$4 sm:$0xff]  }
  0xe3   :  { %5344 = vmatprep.mubr.bf16.mxu0 %v10162_v13  ;;  %v10228_v13 = vld [vmem:[%s14077_s0 + $0x904] ss:$36 sps:$4 sm:$0xff]  }
  0xe9   :  { %4383 = vmatmul.mubr.bf16.gmra.mrb[84].mxu1 %v10164_v15  ;;  %v10230_v15 = vld [vmem:[%s14077_s0 + $0x494] ss:$36 sps:$4 sm:$0xff]  }
  0xea   :  { %5345 = vmatmul.mubr.bf16.gmra.mrb[20].mxu0 %v10165_v16  ;;  %4390 = vmatprep.mubr.bf16.mxu1 %v10166_v17 }
  0xeb   :  { %5352 = vmatprep.mubr.bf16.mxu0 %v10168_v18  ;;  %v10232_v18 = vld [vmem:[%s14077_s0 + $0x900] ss:$36 sps:$4 sm:$0xff]  }
  0xf1   :  { %4391 = vmatmul.mubr.bf16.gmra.mrb[88].mxu1 %v10170_v19 }
  0xf2   :  { %5353 = vmatmul.mubr.bf16.gmra.mrb[24].mxu0 %v10171_v20  ;;  %4398 = vmatprep.mubr.bf16.mxu1 %v10172_v21  ;;  %v10233_v20 = vld [vmem:[%s14077_s0 + $0x490] ss:$36 sps:$4 sm:$0xff]  }
  0xf3   :  { %5360 = vmatprep.mubr.bf16.mxu0 %v10174_v22  ;;  %v10235_v21 = vld [vmem:[%s14077_s0 + $0x94c] ss:$36 sps:$4 sm:$0xff]  }
  0xf9   :  { %4399 = vmatmul.mubr.bf16.gmra.mrb[92].mxu1 %v10176_v23  ;;  %v10237_v23 = vld [vmem:[%s14077_s0 + $0x4dc] ss:$36 sps:$4 sm:$0xff]  }
  0xfa   :  { %5361 = vmatmul.mubr.bf16.gmra.mrb[28].mxu0 %v10177_v24  ;;  %4406 = vmatprep.mubr.bf16.mxu1 %v10178_v25 }
  0xfb   :  { %5368 = vmatprep.mubr.bf16.mxu0 %v10180_v26  ;;  %v10334_v26 = vld [vmem:[%s14076_s1 + $0x1c0] sm:$0xff]  }
  0xfc   :  { %5834 = vmatpush1.bf16.msra.mxu0 %v10334_v26 }
  0xfd   :  { %5835 = vmatprep.subr.bf16.mxu0 %v10890_v0 }
 0x101   :  { %4407 = vmatmul.mubr.bf16.gmra.mrb[96].mxu1 %v10182_v27  ;;  %v10239_v27 = vld [vmem:[%s14077_s0 + $0x948] ss:$36 sps:$4 sm:$0xff]  }
 0x102   :  { %5369 = vmatmul.mubr.bf16.gmra.mrb[32].mxu0 %v10183_v28  ;;  %4414 = vmatprep.mubr.bf16.mxu1 %v10185_v29  ;;  %v10240_v29 = vld [vmem:[%s14077_s0 + $0x4d8] ss:$36 sps:$4 sm:$0xff]  }
 0x103   :  { %5376 = vmatprep.mubr.bf16.mxu0 %v10187_v30  ;;  %v10241_v30 = vld [vmem:[%s14077_s0 + $0x994] ss:$36 sps:$4 sm:$0xff]  }
 0x109   :  { %4415 = vmatmul.mubr.bf16.gmra.mrb[100].mxu1 %v10189_v32  ;;  %v10243_v32 = vld [vmem:[%s14077_s0 + $0x524] ss:$36 sps:$4 sm:$0xff]  }
 0x10a   :  { %5377 = vmatmul.mubr.bf16.gmra.mrb[36].mxu0 %v10190_v33  ;;  %4422 = vmatprep.mubr.bf16.mxu1 %v10191_v34 }
 0x10b   :  { %5384 = vmatprep.mubr.bf16.mxu0 %v10193_v35  ;;  %v10245_v35 = vld [vmem:[%s14077_s0 + $0x990] ss:$36 sps:$4 sm:$0xff]  }
 0x111   :  { %4423 = vmatmul.mubr.bf16.gmra.mrb[104].mxu1 %v10195_v36 }
 0x112   :  { %5385 = vmatmul.mubr.bf16.gmra.mrb[40].mxu0 %v10196_v37  ;;  %4430 = vmatprep.mubr.bf16.mxu1 %v10197_v38  ;;  %v10246_v37 = vld [vmem:[%s14077_s0 + $0x520] ss:$36 sps:$4 sm:$0xff]  }
 0x113   :  { %5392 = vmatprep.mubr.bf16.mxu0 %v10199_v39  ;;  %v10247_v38 = vld [vmem:[%s14077_s0 + $0x9dc] ss:$36 sps:$4 sm:$0xff]  }
 0x114   :  { %v11545_v41 = vpop.f32.mrb[0].mxu1 }
 0x115   :  { %v4218_v44 = vpop.f32.mrb[1].mxu1 }
 0x116   :  { %v11556_v46 = vpop.f32.mrb[2].mxu1  ;;  %v10251_v44 = vld [vmem:[%s14077_s0 + $0x9d8] ss:$36 sps:$4 sm:$0xff]  }
 0x117   :  { %v4221_v47 = vpop.f32.mrb[3].mxu1 }
 0x118   :  { %v10252_v47 = vld [vmem:[%s14077_s0 + $0x568] ss:$36 sps:$4 sm:$0xff]  }
 0x119   :  { %4431 = vmatmul.mubr.bf16.gmra.mrb[108].mxu1 %v10201_v40  ;;  %v10249_v40 = vld [vmem:[%s14077_s0 + $0x56c] ss:$36 sps:$4 sm:$0xff]  }
 0x11a   :  { %5393 = vmatmul.mubr.bf16.gmra.mrb[44].mxu0 %v10202_v42  ;;  %4438 = vmatprep.mubr.bf16.mxu1 %v10203_v43 }
 0x11b   :  { %5400 = vmatprep.mubr.bf16.mxu0 %v10205_v45 }
 0x11c   :  { %v11561_v49 = vpop.f32.mrb[4].mxu1 }
 0x11d   :  { %v4226_v52 = vpop.f32.mrb[5].mxu1 }
 0x11e   :  { %v11572_v54 = vpop.f32.mrb[6].mxu1 }
 0x11f   :  { %v4229_v55 = vpop.f32.mrb[7].mxu1 }
 0x120   :  { %v10257_v55 = vld [vmem:[%s14077_s0 + $0xa20] ss:$36 sps:$4 sm:$0xff]  }
 0x121   :  { %4439 = vmatmul.mubr.bf16.gmra.mrb[112].mxu1 %v10207_v48  ;;  %v10253_v48 = vld [vmem:[%s14077_s0 + $0xa24] ss:$36 sps:$4 sm:$0xff]  }
 0x122   :  { %5401 = vmatmul.mubr.bf16.gmra.mrb[48].mxu0 %v10208_v50  ;;  %4446 = vmatprep.mubr.bf16.mxu1 %v10210_v51  ;;  %v10255_v51 = vld [vmem:[%s14077_s0 + $0x5b4] ss:$36 sps:$4 sm:$0xff]  }
 0x123   :  { %5408 = vmatprep.mubr.bf16.mxu0 %v10212_v53 }
 0x124   :  { %v11580_v58 = vpop.f32.mrb[8].mxu1 }
 0x125   :  { %v4234_v61 = vpop.f32.mrb[9].mxu1 }
 0x126   :  { %v11592_v63 = vpop.f32.mrb[10].mxu1 }
 0x127   :  { %v4237_v1 = vpop.f32.mrb[11].mxu1 }
 0x128   :  { %v10262_v1 = vld [vmem:[%s14077_s0 + $0x5fc] ss:$36 sps:$4 sm:$0xff]  }
 0x129   :  { %4447 = vmatmul.mubr.bf16.gmra.mrb[116].mxu1 %v10214_v57  ;;  %v10258_v57 = vld [vmem:[%s14077_s0 + $0x5b0] ss:$36 sps:$4 sm:$0xff]  }
 0x12a   :  { %5409 = vmatmul.mubr.bf16.gmra.mrb[52].mxu0 %v10215_v59  ;;  %4454 = vmatprep.mubr.bf16.mxu1 %v10216_v60  ;;  %v10260_v59 = vld [vmem:[%s14077_s0 + $0xa6c] ss:$36 sps:$4 sm:$0xff]  }
 0x12b   :  { %5416 = vmatprep.mubr.bf16.mxu0 %v10218_v62 }
 0x12c   :  { %v11597_v3 = vpop.f32.mrb[12].mxu1 }
 0x12d   :  { %v4242_v6 = vpop.f32.mrb[13].mxu1 }
 0x12e   :  { %v11608_v8 = vpop.f32.mrb[14].mxu1  ;;  %v10264_v6 = vld [vmem:[%s14077_s0 + $0xa68] ss:$36 sps:$4 sm:$0xff]  }
 0x12f   :  { %v4245_v9 = vpop.f32.mrb[15].mxu1 }
 0x130   :  { %v10265_v9 = vld [vmem:[%s14077_s0 + $0x5f8] ss:$36 sps:$4 sm:$0xff]  }
 0x131   :  { %4455 = vmatmul.mubr.bf16.gmra.mrb[120].mxu1 %v10220_v2  ;;  %v10359_v2 = vld [vmem:[%s14076_s1 + $0x1c8] sm:$0xff]  }
 0x132   :  { %5417 = vmatmul.mubr.bf16.gmra.mrb[56].mxu0 %v10221_v4  ;;  %4462 = vmatprep.mubr.bf16.mxu1 %v10222_v5 }
 0x133   :  { %5424 = vmatprep.mubr.bf16.mxu0 %v10224_v7  ;;  %5836 = vmatpush1.bf16.msra.mxu0 %v10359_v2 }
 0x134   :  { %v11613_v11 = vpop.f32.mrb[16].mxu1  ;;  %5837 = vmatprep.subr.bf16.mxu0 %v10890_v0 }
 0x135   :  { %v4250_v14 = vpop.f32.mrb[17].mxu1 }
 0x136   :  { %v11624_v16 = vpop.f32.mrb[18].mxu1 }
 0x137   :  { %v4253_v17 = vpop.f32.mrb[19].mxu1 }
 0x138   :  { %v10270_v17 = vld [vmem:[%s14077_s0 + $0xab0] ss:$36 sps:$4 sm:$0xff]  }
 0x139   :  { %4463 = vmatmul.mubr.bf16.gmra.mrb[124].mxu1 %v10226_v10  ;;  %v10266_v10 = vld [vmem:[%s14077_s0 + $0xab4] ss:$36 sps:$4 sm:$0xff]  }
 0x13a   :  { %5425 = vmatmul.mubr.bf16.gmra.mrb[60].mxu0 %v10227_v12  ;;  %4470 = vmatprep.mubr.bf16.mxu1 %v10228_v13  ;;  %v10268_v13 = vld [vmem:[%s14077_s0 + $0x644] ss:$36 sps:$4 sm:$0xff]  }
 0x13b   :  { %5432 = vmatprep.mubr.bf16.mxu0 %v10230_v15 }
 0x13c   :  { %v11629_v19 = vpop.f32.mrb[20].mxu1 }
 0x13d   :  { %v4258_v22 = vpop.f32.mrb[21].mxu1 }
 0x13e   :  { %v11640_v24 = vpop.f32.mrb[22].mxu1 }
 0x13f   :  { %v4261_v25 = vpop.f32.mrb[23].mxu1 }
 0x141   :  { %4471 = vmatmul.mubr.bf16.gmra.mrb[128].mxu1 %v10232_v18 }
 0x142   :  { %5433 = vmatmul.mubr.bf16.gmra.mrb[64].mxu0 %v10233_v20  ;;  %4478 = vmatprep.mubr.bf16.mxu1 %v10235_v21  ;;  %v10271_v20 = vld [vmem:[%s14077_s0 + $0x640] ss:$36 sps:$4 sm:$0xff]  }
 0x143   :  { %5440 = vmatprep.mubr.bf16.mxu0 %v10237_v23  ;;  %v10272_v21 = vld [vmem:[%s14077_s0 + $0xafc] ss:$36 sps:$4 sm:$0xff]   ;;  %v10274_v23 = vld [vmem:[%s14077_s0 + $0x68c] ss:$36 sps:$4 sm:$0xff]  }
 0x144   :  { %v11648_v28 = vpop.f32.mrb[24].mxu1 }
 0x145   :  { %v4266_v31 = vpop.f32.mrb[25].mxu1 }
 0x146   :  { %v11660_v33 = vpop.f32.mrb[26].mxu1  ;;  %v10278_v31 = vld [vmem:[%s14077_s0 + $0xb44] ss:$36 sps:$4 sm:$0xff]  }
 0x147   :  { %v4269_v34 = vpop.f32.mrb[27].mxu1 }
 0x148   :  { %v10280_v34 = vld [vmem:[%s14077_s0 + $0x6d4] ss:$36 sps:$4 sm:$0xff]  }
 0x149   :  { %4479 = vmatmul.mubr.bf16.gmra.mrb[132].mxu1 %v10239_v27  ;;  %v10276_v27 = vld [vmem:[%s14077_s0 + $0xaf8] ss:$36 sps:$4 sm:$0xff]  }
 0x14a   :  { %5441 = vmatmul.mubr.bf16.gmra.mrb[68].mxu0 %v10240_v29  ;;  %4486 = vmatprep.mubr.bf16.mxu1 %v10241_v30  ;;  %v10277_v30 = vld [vmem:[%s14077_s0 + $0x688] ss:$36 sps:$4 sm:$0xff]  }
 0x14b   :  { %5448 = vmatprep.mubr.bf16.mxu0 %v10243_v32 }
 0x14c   :  { %v11665_v36 = vpop.f32.mrb[28].mxu1 }
 0x14d   :  { %v4274_v39 = vpop.f32.mrb[29].mxu1 }
 0x14e   :  { %v11676_v42 = vpop.f32.mrb[30].mxu1 }
 0x14f   :  { %v4277_v43 = vpop.f32.mrb[31].mxu1 }
 0x150   :  { %v10285_v43 = vld [vmem:[%s14077_s0 + $0xb8c] ss:$36 sps:$4 sm:$0xff]  }
 0x151   :  { %4487 = vmatmul.mubr.bf16.gmra.mrb[136].mxu1 %v10245_v35 }
 0x152   :  { %5449 = vmatmul.mubr.bf16.gmra.mrb[72].mxu0 %v10246_v37  ;;  %4494 = vmatprep.mubr.bf16.mxu1 %v10247_v38  ;;  %v10282_v38 = vld [vmem:[%s14077_s0 + $0xb40] ss:$36 sps:$4 sm:$0xff]  }
 0x153   :  { %5456 = vmatprep.mubr.bf16.mxu0 %v10249_v40  ;;  %v10283_v40 = vld [vmem:[%s14077_s0 + $0x6d0] ss:$36 sps:$4 sm:$0xff]  }
 0x154   :  { %v11681_v45 = vpop.f32.mrb[32].mxu1 }
 0x155   :  { %v4282_v50 = vpop.f32.mrb[33].mxu1 }
 0x156   :  { %v11692_v52 = vpop.f32.mrb[34].mxu1 }
 0x157   :  { %v4285_v53 = vpop.f32.mrb[35].mxu1 }
 0x158   :  { %v10289_v53 = vld [vmem:[%s14077_s0 + $0xb88] ss:$36 sps:$4 sm:$0xff]  }
 0x159   :  { %4495 = vmatmul.mubr.bf16.gmra.mrb[140].mxu1 %v10251_v44 }
 0x15a   :  { %5457 = vmatmul.mubr.bf16.gmra.mrb[76].mxu0 %v10252_v47  ;;  %4502 = vmatprep.mubr.bf16.mxu1 %v10253_v48  ;;  %v10287_v47 = vld [vmem:[%s14077_s0 + $0x71c] ss:$36 sps:$4 sm:$0xff]   ;;  %v10384_v48 = vld [vmem:[%s14076_s1 + $0x1d0] sm:$0xff]  }
 0x15b   :  { %5464 = vmatprep.mubr.bf16.mxu0 %v10255_v51  ;;  %5838 = vmatpush1.bf16.msra.mxu0 %v10384_v48  ;;  %v10327_v48 = vld [vmem:[%s14077_s0 + $0x8c8] ss:$36 sps:$4 sm:$0xff]  }
 0x15c   :  { %v11697_v56 = vpop.f32.mrb[36].mxu1  ;;  %5839 = vmatprep.subr.bf16.mxu0 %v10890_v0 }
 0x15d   :  { %v4290_v60 = vpop.f32.mrb[37].mxu1 }
 0x15e   :  { %v11705_v61 = vpop.f32.mrb[38].mxu1 }
 0x15f   :  { %v4293_v62 = vpop.f32.mrb[39].mxu1 }
 0x160   :  { %v10293_v62 = vld [vmem:[%s14077_s0 + $0x764] ss:$36 sps:$4 sm:$0xff]  }
 0x161   :  { %4503 = vmatmul.mubr.bf16.gmra.mrb[144].mxu1 %v10257_v55 }
 0x162   :  { %5465 = vmatmul.mubr.bf16.gmra.mrb[80].mxu0 %v10258_v57  ;;  %4510 = vmatprep.mubr.bf16.mxu1 %v10260_v59  ;;  %v10290_v57 = vld [vmem:[%s14077_s0 + $0x718] ss:$36 sps:$4 sm:$0xff]  }
 0x163   :  { %5472 = vmatprep.mubr.bf16.mxu0 %v10262_v1  ;;  %v10291_v59 = vld [vmem:[%s14077_s0 + $0xbd4] ss:$36 sps:$4 sm:$0xff]  }
 0x164   :  { %v11713_v4 = vpop.f32.mrb[40].mxu1 }
 0x165   :  { %v4298_v5 = vpop.f32.mrb[41].mxu1 }
 0x166   :  { %v11719_v7 = vpop.f32.mrb[42].mxu1  ;;  %v10295_v5 = vld [vmem:[%s14077_s0 + $0xbd0] ss:$36 sps:$4 sm:$0xff]  }
 0x167   :  { %v4301_v12 = vpop.f32.mrb[43].mxu1 }
 0x169   :  { %4511 = vmatmul.mubr.bf16.gmra.mrb[148].mxu1 %v10264_v6 }
 0x16a   :  { %5473 = vmatmul.mubr.bf16.gmra.mrb[84].mxu0 %v10265_v9  ;;  %4518 = vmatprep.mubr.bf16.mxu1 %v10266_v10  ;;  %v10296_v9 = vld [vmem:[%s14077_s0 + $0x760] ss:$36 sps:$4 sm:$0xff]  }
 0x16b   :  { %5480 = vmatprep.mubr.bf16.mxu0 %v10268_v13  ;;  %v10297_v10 = vld [vmem:[%s14077_s0 + $0xc1c] ss:$36 sps:$4 sm:$0xff]   ;;  %v10299_v13 = vld [vmem:[%s14077_s0 + $0x7ac] ss:$36 sps:$4 sm:$0xff]  }
 0x16c   :  { %v11730_v14 = vpop.f32.mrb[44].mxu1 }
 0x16d   :  { %v4306_v15 = vpop.f32.mrb[45].mxu1 }
 0x16e   :  { %v11735_v18 = vpop.f32.mrb[46].mxu1  ;;  %v10301_v15 = vld [vmem:[%s14077_s0 + $0xc18] ss:$36 sps:$4 sm:$0xff]  }
 0x16f   :  { %v4309_v22 = vpop.f32.mrb[47].mxu1 }
 0x170   :  { %v10307_v22 = vld [vmem:[%s14077_s0 + $0xc60] ss:$36 sps:$4 sm:$0xff]  }
 0x171   :  { %4519 = vmatmul.mubr.bf16.gmra.mrb[152].mxu1 %v10270_v17  ;;  %v10302_v17 = vld [vmem:[%s14077_s0 + $0x7a8] ss:$36 sps:$4 sm:$0xff]  }
 0x172   :  { %5481 = vmatmul.mubr.bf16.gmra.mrb[88].mxu0 %v10271_v20  ;;  %4526 = vmatprep.mubr.bf16.mxu1 %v10272_v21  ;;  %v10303_v20 = vld [vmem:[%s14077_s0 + $0xc64] ss:$36 sps:$4 sm:$0xff]   ;;  %v10305_v21 = vld [vmem:[%s14077_s0 + $0x7f4] ss:$36 sps:$4 sm:$0xff]  }
 0x173   :  { %5488 = vmatprep.mubr.bf16.mxu0 %v10274_v23  ;;  %v10308_v23 = vld [vmem:[%s14077_s0 + $0x7f0] ss:$36 sps:$4 sm:$0xff]  }
 0x174   :  { %v11746_v25 = vpop.f32.mrb[48].mxu1 }
 0x175   :  { %v4314_v26 = vpop.f32.mrb[49].mxu1 }
 0x176   :  { %v11751_v29 = vpop.f32.mrb[50].mxu1  ;;  %v10310_v26 = vld [vmem:[%s14077_s0 + $0xcac] ss:$36 sps:$4 sm:$0xff]  }
 0x177   :  { %v4317_v32 = vpop.f32.mrb[51].mxu1 }
 0x178   :  { %v10315_v32 = vld [vmem:[%s14077_s0 + $0x838] ss:$36 sps:$4 sm:$0xff]  }
 0x179   :  { %4527 = vmatmul.mubr.bf16.gmra.mrb[156].mxu1 %v10276_v27  ;;  %v10312_v27 = vld [vmem:[%s14077_s0 + $0x83c] ss:$36 sps:$4 sm:$0xff]  }
 0x17a   :  { %5489 = vmatmul.mubr.bf16.gmra.mrb[92].mxu0 %v10277_v30  ;;  %4534 = vmatprep.mubr.bf16.mxu1 %v10278_v31  ;;  %v10409_v30 = vld [vmem:[%s14076_s1 + $0x1d8] sm:$0xff]   ;;  %v10314_v31 = vld [vmem:[%s14077_s0 + $0xca8] ss:$36 sps:$4 sm:$0xff]  }
 0x17b   :  { %5496 = vmatprep.mubr.bf16.mxu0 %v10280_v34  ;;  %5840 = vmatpush1.bf16.msra.mxu0 %v10409_v30  ;;  %v10316_v34 = vld [vmem:[%s14077_s0 + $0xcf4] ss:$36 sps:$4 sm:$0xff]   ;;  %v10357_v30 = vld [vmem:[%s14077_s0 + $0xea0] ss:$36 sps:$4 sm:$0xff]  }
 0x17c   :  { %v11762_v35 = vpop.f32.mrb[52].mxu1  ;;  %5841 = vmatprep.subr.bf16.mxu0 %v10890_v0 }
 0x17d   :  { %v4322_v37 = vpop.f32.mrb[53].mxu1 }
 0x17e   :  { %v11767_v39 = vpop.f32.mrb[54].mxu1  ;;  %v10318_v37 = vld [vmem:[%s14077_s0 + $0x884] ss:$36 sps:$4 sm:$0xff]  }
 0x17f   :  { %v4325_v44 = vpop.f32.mrb[55].mxu1 }
 0x180   :  { %v10324_v44 = vld [vmem:[%s14077_s0 + $0x8cc] ss:$36 sps:$4 sm:$0xff]  }
 0x181   :  { %4535 = vmatmul.mubr.bf16.gmra.mrb[160].mxu1 %v10282_v38  ;;  %v10320_v38 = vld [vmem:[%s14077_s0 + $0xcf0] ss:$36 sps:$4 sm:$0xff]  }
 0x182   :  { %5497 = vmatmul.mubr.bf16.gmra.mrb[96].mxu0 %v10283_v40  ;;  %4542 = vmatprep.mubr.bf16.mxu1 %v10285_v43  ;;  %v10321_v40 = vld [vmem:[%s14077_s0 + $0x880] ss:$36 sps:$4 sm:$0xff]  }
 0x183   :  { %5504 = vmatprep.mubr.bf16.mxu0 %v10287_v47  ;;  %v10322_v43 = vld [vmem:[%s14077_s0 + $0xd3c] ss:$36 sps:$4 sm:$0xff]  }
 0x184   :  { %v11781_v50 = vpop.f32.mrb[56].mxu1  ;;  %v10326_v47 = vld [vmem:[%s14077_s0 + $0xd38] ss:$36 sps:$4 sm:$0xff]  }
 0x185   :  { %v4330_v51 = vpop.f32.mrb[57].mxu1 }
 0x186   :  { %v11787_v55 = vpop.f32.mrb[58].mxu1  ;;  %v10328_v51 = vld [vmem:[%s14077_s0 + $0xd84] ss:$36 sps:$4 sm:$0xff]  }
 0x187   :  { %v4333_v60 = vpop.f32.mrb[59].mxu1 }
 0x188   :  { %v10335_v60 = vld [vmem:[%s14077_s0 + $0xdcc] ss:$36 sps:$4 sm:$0xff]  }
 0x189   :  { %4543 = vmatmul.mubr.bf16.gmra.mrb[164].mxu1 %v10289_v53  ;;  %v10330_v53 = vld [vmem:[%s14077_s0 + $0x914] ss:$36 sps:$4 sm:$0xff]  }
 0x18a   :  { %5505 = vmatmul.mubr.bf16.gmra.mrb[100].mxu0 %v10290_v57  ;;  %4550 = vmatprep.mubr.bf16.mxu1 %v10291_v59  ;;  %v10332_v57 = vld [vmem:[%s14077_s0 + $0xd80] ss:$36 sps:$4 sm:$0xff]   ;;  %v10333_v59 = vld [vmem:[%s14077_s0 + $0x910] ss:$36 sps:$4 sm:$0xff]  }
 0x18b   :  { %5512 = vmatprep.mubr.bf16.mxu0 %v10293_v62  ;;  %v10337_v62 = vld [vmem:[%s14077_s0 + $0x95c] ss:$36 sps:$4 sm:$0xff]  }
 0x18c   :  { %v11798_v1 = vpop.f32.mrb[60].mxu1 }
 0x18d   :  { %v4338_v2 = vpop.f32.mrb[61].mxu1 }
 0x18e   :  { %v11803_v6 = vpop.f32.mrb[62].mxu1  ;;  %v10434_v2 = vld [vmem:[%s14076_s1 + $0x1e0] sm:$0xff]  }
 0x18f   :  { %v4341_v12 = vpop.f32.mrb[63].mxu1  ;;  %5842 = vmatpush1.bf16.msra.mxu0 %v10434_v2  ;;  %v10382_v2 = vld [vmem:[%s14077_s0 + $0xfc0] ss:$36 sps:$4 sm:$0xff]  }
 0x190   :  { %5843 = vmatprep.subr.bf16.mxu0 %v10890_v0  ;;  %v10341_v12 = vld [vmem:[%s14077_s0 + $0xe14] ss:$36 sps:$4 sm:$0xff]  }
 0x191   :  { %4551 = vmatmul.mubr.bf16.gmra.mrb[168].mxu1 %v10295_v5  ;;  %v11896_v5 = vld [vmem:[%s14076_s1 + $0x200] sm:$0xff]  }
 0x192   :  { %5513 = vmatmul.mubr.bf16.gmra.mrb[104].mxu0 %v10296_v9  ;;  %4558 = vmatprep.mubr.bf16.mxu1 %v10297_v10  ;;  %v10339_v9 = vld [vmem:[%s14077_s0 + $0xdc8] ss:$36 sps:$4 sm:$0xff]   ;;  %v10340_v10 = vld [vmem:[%s14077_s0 + $0x958] ss:$36 sps:$4 sm:$0xff]  }
 0x193   :  { %5520 = vmatprep.mubr.bf16.mxu0 %v10299_v13  ;;  %9039 = vmatprep.subr.bf16.mxu1 %v11896_v5  ;;  %v10343_v13 = vld [vmem:[%s14077_s0 + $0x9a4] ss:$36 sps:$4 sm:$0xff]  }
 0x199   :  { %4559 = vmatmul.mubr.bf16.gmra.mrb[172].mxu1 %v10301_v15  ;;  %v10345_v15 = vld [vmem:[%s14077_s0 + $0xe10] ss:$36 sps:$4 sm:$0xff]  }
 0x19a   :  { %5521 = vmatmul.mubr.bf16.gmra.mrb[108].mxu0 %v10302_v17  ;;  %4566 = vmatprep.mubr.bf16.mxu1 %v10303_v20  ;;  %v10346_v17 = vld [vmem:[%s14077_s0 + $0x9a0] ss:$36 sps:$4 sm:$0xff]  }
 0x19b   :  { %5528 = vmatprep.mubr.bf16.mxu0 %v10305_v21  ;;  %v10347_v20 = vld [vmem:[%s14077_s0 + $0xe5c] ss:$36 sps:$4 sm:$0xff]   ;;  %v10349_v21 = vld [vmem:[%s14077_s0 + $0x9ec] ss:$36 sps:$4 sm:$0xff]  }
 0x1a1   :  { %4567 = vmatmul.mubr.bf16.gmra.mrb[176].mxu1 %v10307_v22  ;;  %v10351_v22 = vld [vmem:[%s14077_s0 + $0xe58] ss:$36 sps:$4 sm:$0xff]  }
 0x1a2   :  { %5529 = vmatmul.mubr.bf16.gmra.mrb[112].mxu0 %v10308_v23  ;;  %4574 = vmatprep.mubr.bf16.mxu1 %v10310_v26  ;;  %v10352_v23 = vld [vmem:[%s14077_s0 + $0x9e8] ss:$36 sps:$4 sm:$0xff]  }
 0x1a3   :  { %5536 = vmatprep.mubr.bf16.mxu0 %v10312_v27  ;;  %v10353_v26 = vld [vmem:[%s14077_s0 + $0xea4] ss:$36 sps:$4 sm:$0xff]   ;;  %v10355_v27 = vld [vmem:[%s14077_s0 + $0xa34] ss:$36 sps:$4 sm:$0xff]  }
 0x1a9   :  { %4575 = vmatmul.mubr.bf16.gmra.mrb[180].mxu1 %v10314_v31  ;;  %v10358_v31 = vld [vmem:[%s14077_s0 + $0xa30] ss:$36 sps:$4 sm:$0xff]  }
 0x1aa   :  { %5537 = vmatmul.mubr.bf16.gmra.mrb[116].mxu0 %v10315_v32  ;;  %4582 = vmatprep.mubr.bf16.mxu1 %v10316_v34  ;;  %v10360_v32 = vld [vmem:[%s14077_s0 + $0xeec] ss:$36 sps:$4 sm:$0xff]   ;;  %v10362_v34 = vld [vmem:[%s14077_s0 + $0xa7c] ss:$36 sps:$4 sm:$0xff]  }
 0x1ab   :  { %5544 = vmatprep.mubr.bf16.mxu0 %v10318_v37  ;;  %v10460_v37 = vld [vmem:[%s14076_s1 + $0x1e8] sm:$0xff]  }
 0x1ac   :  { %5844 = vmatpush1.bf16.msra.mxu0 %v10460_v37  ;;  %v10408_v37 = vld [vmem:[%s14077_s0 + $0xc70] ss:$36 sps:$4 sm:$0xff]  }
 0x1ad   :  { %5845 = vmatprep.subr.bf16.mxu0 %v10890_v0 }
 0x1b1   :  { %4583 = vmatmul.mubr.bf16.gmra.mrb[184].mxu1 %v10320_v38  ;;  %v10364_v38 = vld [vmem:[%s14077_s0 + $0xee8] ss:$36 sps:$4 sm:$0xff]  }
 0x1b2   :  { %5545 = vmatmul.mubr.bf16.gmra.mrb[120].mxu0 %v10321_v40  ;;  %4590 = vmatprep.mubr.bf16.mxu1 %v10322_v43  ;;  %v10365_v40 = vld [vmem:[%s14077_s0 + $0xa78] ss:$36 sps:$4 sm:$0xff]  }
 0x1b3   :  { %5552 = vmatprep.mubr.bf16.mxu0 %v10324_v44  ;;  %v10366_v43 = vld [vmem:[%s14077_s0 + $0xf34] ss:$36 sps:$4 sm:$0xff]   ;;  %v10368_v44 = vld [vmem:[%s14077_s0 + $0xac4] ss:$36 sps:$4 sm:$0xff]  }
 0x1b9   :  { %4591 = vmatmul.mubr.bf16.gmra.mrb[188].mxu1 %v10326_v47  ;;  %v10370_v47 = vld [vmem:[%s14077_s0 + $0xf30] ss:$36 sps:$4 sm:$0xff]  }
 0x1ba   :  { %5553 = vmatmul.mubr.bf16.gmra.mrb[124].mxu0 %v10327_v48  ;;  %4598 = vmatprep.mubr.bf16.mxu1 %v10328_v51  ;;  %v10371_v48 = vld [vmem:[%s14077_s0 + $0xac0] ss:$36 sps:$4 sm:$0xff]  }
 0x1bb   :  { %5560 = vmatprep.mubr.bf16.mxu0 %v10330_v53  ;;  %v10372_v51 = vld [vmem:[%s14077_s0 + $0xf7c] ss:$36 sps:$4 sm:$0xff]   ;;  %v10374_v53 = vld [vmem:[%s14077_s0 + $0xb0c] ss:$36 sps:$4 sm:$0xff]  }
 0x1c1   :  { %4599 = vmatmul.mubr.bf16.gmra.mrb[192].mxu1 %v10332_v57  ;;  %v10376_v57 = vld [vmem:[%s14077_s0 + $0xf78] ss:$36 sps:$4 sm:$0xff]  }
 0x1c2   :  { %5561 = vmatmul.mubr.bf16.gmra.mrb[128].mxu0 %v10333_v59  ;;  %4606 = vmatprep.mubr.bf16.mxu1 %v10335_v60  ;;  %v10377_v59 = vld [vmem:[%s14077_s0 + $0xb08] ss:$36 sps:$4 sm:$0xff]  }
 0x1c3   :  { %5568 = vmatprep.mubr.bf16.mxu0 %v10337_v62  ;;  %v10378_v60 = vld [vmem:[%s14077_s0 + $0xfc4] ss:$36 sps:$4 sm:$0xff]   ;;  %v10380_v62 = vld [vmem:[%s14077_s0 + $0xb54] ss:$36 sps:$4 sm:$0xff]  }
 0x1c9   :  { %4607 = vmatmul.mubr.bf16.gmra.mrb[196].mxu1 %v10339_v9  ;;  %v10383_v9 = vld [vmem:[%s14077_s0 + $0xb50] ss:$36 sps:$4 sm:$0xff]  }
 0x1ca   :  { %5569 = vmatmul.mubr.bf16.gmra.mrb[132].mxu0 %v10340_v10  ;;  %4614 = vmatprep.mubr.bf16.mxu1 %v10341_v12  ;;  %v10385_v10 = vld [vmem:[%s14077_s0 + $0x100c] ss:$36 sps:$4 sm:$0xff]   ;;  %v10387_v12 = vld [vmem:[%s14077_s0 + $0xb9c] ss:$36 sps:$4 sm:$0xff]  }
 0x1cb   :  { %5576 = vmatprep.mubr.bf16.mxu0 %v10343_v13  ;;  %v10486_v13 = vld [vmem:[%s14076_s1 + $0x1f0] sm:$0xff]  }
 0x1cc   :  { %5846 = vmatpush1.bf16.msra.mxu0 %v10486_v13  ;;  %v10433_v13 = vld [vmem:[%s14077_s0 + $0xd90] ss:$36 sps:$4 sm:$0xff]  }
 0x1cd   :  { %5847 = vmatprep.subr.bf16.mxu0 %v10890_v0  ;;  %v10395_v0 = vld [vmem:[%s14077_s0 + $0x1050] ss:$36 sps:$4 sm:$0xff]  }
 0x1d1   :  { %4615 = vmatmul.mubr.bf16.gmra.mrb[200].mxu1 %v10345_v15  ;;  %v10389_v15 = vld [vmem:[%s14077_s0 + $0x1008] ss:$36 sps:$4 sm:$0xff]  }
 0x1d2   :  { %5577 = vmatmul.mubr.bf16.gmra.mrb[136].mxu0 %v10346_v17  ;;  %4622 = vmatprep.mubr.bf16.mxu1 %v10347_v20  ;;  %v10390_v17 = vld [vmem:[%s14077_s0 + $0xb98] ss:$36 sps:$4 sm:$0xff]  }
 0x1d3   :  { %5584 = vmatprep.mubr.bf16.mxu0 %v10349_v21  ;;  %v10391_v20 = vld [vmem:[%s14077_s0 + $0x1054] ss:$36 sps:$4 sm:$0xff]   ;;  %v10393_v21 = vld [vmem:[%s14077_s0 + $0xbe4] ss:$36 sps:$4 sm:$0xff]  }
 0x1d9   :  { %4623 = vmatmul.mubr.bf16.gmra.mrb[204].mxu1 %v10351_v22  ;;  %v10396_v22 = vld [vmem:[%s14077_s0 + $0xbe0] ss:$36 sps:$4 sm:$0xff]  }
 0x1da   :  { %5585 = vmatmul.mubr.bf16.gmra.mrb[140].mxu0 %v10352_v23  ;;  %4630 = vmatprep.mubr.bf16.mxu1 %v10353_v26  ;;  %v10397_v23 = vld [vmem:[%s14077_s0 + $0x109c] ss:$36 sps:$4 sm:$0xff]   ;;  %v10399_v26 = vld [vmem:[%s14077_s0 + $0xc2c] ss:$36 sps:$4 sm:$0xff]  }
 0x1db   :  { %5592 = vmatprep.mubr.bf16.mxu0 %v10355_v27  ;;  %v10401_v27 = vld [vmem:[%s14077_s0 + $0x1098] ss:$36 sps:$4 sm:$0xff]  }
 0x1e1   :  { %4631 = vmatmul.mubr.bf16.gmra.mrb[208].mxu1 %v10357_v30  ;;  %v10402_v30 = vld [vmem:[%s14077_s0 + $0xc28] ss:$36 sps:$4 sm:$0xff]  }
 0x1e2   :  { %5593 = vmatmul.mubr.bf16.gmra.mrb[144].mxu0 %v10358_v31  ;;  %4638 = vmatprep.mubr.bf16.mxu1 %v10360_v32  ;;  %v10403_v31 = vld [vmem:[%s14077_s0 + $0x10e4] ss:$36 sps:$4 sm:$0xff]   ;;  %v10405_v32 = vld [vmem:[%s14077_s0 + $0xc74] ss:$36 sps:$4 sm:$0xff]  }
 0x1e3   :  { %5600 = vmatprep.mubr.bf16.mxu0 %v10362_v34  ;;  %v10407_v34 = vld [vmem:[%s14077_s0 + $0x10e0] ss:$36 sps:$4 sm:$0xff]  }
 0x1e9   :  { %4639 = vmatmul.mubr.bf16.gmra.mrb[212].mxu1 %v10364_v38  ;;  %v10410_v38 = vld [vmem:[%s14077_s0 + $0x112c] ss:$36 sps:$4 sm:$0xff]  }
 0x1ea   :  { %5601 = vmatmul.mubr.bf16.gmra.mrb[148].mxu0 %v10365_v40  ;;  %4646 = vmatprep.mubr.bf16.mxu1 %v10366_v43  ;;  %v10412_v40 = vld [vmem:[%s14077_s0 + $0xcbc] ss:$36 sps:$4 sm:$0xff]  }
 0x1eb   :  { %5608 = vmatprep.mubr.bf16.mxu0 %v10368_v44  ;;  %v10511_v43 = vld [vmem:[%s14076_s1 + $0x1f8] sm:$0xff]   ;;  %v10414_v44 = vld [vmem:[%s14077_s0 + $0x1128] ss:$36 sps:$4 sm:$0xff]  }
 0x1ec   :  { %5848 = vmatpush1.bf16.msra.mxu0 %v10511_v43  ;;  %v10458_v43 = vld [vmem:[%s14077_s0 + $0x5a8] ss:$36 sps:$4 sm:$0xff]  }
 0x1f1   :  { %4647 = vmatmul.mubr.bf16.gmra.mrb[216].mxu1 %v10370_v47  ;;  %v10415_v47 = vld [vmem:[%s14077_s0 + $0xcb8] ss:$36 sps:$4 sm:$0xff]  }
 0x1f2   :  { %5609 = vmatmul.mubr.bf16.gmra.mrb[152].mxu0 %v10371_v48  ;;  %4654 = vmatprep.mubr.bf16.mxu1 %v10372_v51  ;;  %v10416_v48 = vld [vmem:[%s14077_s0 + $0x1174] ss:$36 sps:$4 sm:$0xff]   ;;  %v10418_v51 = vld [vmem:[%s14077_s0 + $0xd04] ss:$36 sps:$4 sm:$0xff]  }
 0x1f3   :  { %5616 = vmatprep.mubr.bf16.mxu0 %v10374_v53  ;;  %v10420_v53 = vld [vmem:[%s14077_s0 + $0x1170] ss:$36 sps:$4 sm:$0xff]  }
 0x1f9   :  { %4655 = vmatmul.mubr.bf16.gmra.mrb[220].mxu1 %v10376_v57  ;;  %v10421_v57 = vld [vmem:[%s14077_s0 + $0xd00] ss:$36 sps:$4 sm:$0xff]  }
 0x1fa   :  { %5617 = vmatmul.mubr.bf16.gmra.mrb[156].mxu0 %v10377_v59  ;;  %4662 = vmatprep.mubr.bf16.mxu1 %v10378_v60  ;;  %v10422_v59 = vld [vmem:[%s14077_s0 + $0x11bc] ss:$36 sps:$4 sm:$0xff]   ;;  %v10424_v60 = vld [vmem:[%s14077_s0 + $0xd4c] ss:$36 sps:$4 sm:$0xff]  }
 0x1fb   :  { %5624 = vmatprep.mubr.bf16.mxu0 %v10380_v62  ;;  %v10426_v62 = vld [vmem:[%s14077_s0 + $0x11b8] ss:$36 sps:$4 sm:$0xff]  }
 0x201   :  { %4663 = vmatmul.mubr.bf16.gmra.mrb[224].mxu1 %v10382_v2  ;;  %v10427_v2 = vld [vmem:[%s14077_s0 + $0xd48] ss:$36 sps:$4 sm:$0xff]  }
 0x202   :  { %5625 = vmatmul.mubr.bf16.gmra.mrb[160].mxu0 %v10383_v9  ;;  %4670 = vmatprep.mubr.bf16.mxu1 %v10385_v10  ;;  %v10430_v9 = vld [vmem:[%s14077_s0 + $0x48c] ss:$36 sps:$4 sm:$0xff]   ;;  %v10431_v10 = vld [vmem:[%s14077_s0 + $0xd94] ss:$36 sps:$4 sm:$0xff]  }
 0x203   :  { %5632 = vmatprep.mubr.bf16.mxu0 %v10387_v12  ;;  %v10428_v12 = vld [vmem:[%s14077_s0 + $0x488] ss:$36 sps:$4 sm:$0xff]  }
 0x209   :  { %4671 = vmatmul.mubr.bf16.gmra.mrb[228].mxu1 %v10389_v15  ;;  %v10436_v15 = vld [vmem:[%s14077_s0 + $0x4d4] ss:$36 sps:$4 sm:$0xff]  }
 0x20a   :  { %5633 = vmatmul.mubr.bf16.gmra.mrb[164].mxu0 %v10390_v17  ;;  %4678 = vmatprep.mubr.bf16.mxu1 %v10391_v20  ;;  %v10438_v17 = vld [vmem:[%s14077_s0 + $0xddc] ss:$36 sps:$4 sm:$0xff]   ;;  %v10473_v20 = vld [vmem:[%s14076_s1 + $0x208] sm:$0xff]  }
 0x20b   :  { %5640 = vmatprep.mubr.bf16.mxu0 %v10393_v21  ;;  %v10512_v21 = vld [vmem:[%s14076_s1 + $0x210] sm:$0xff]  }
 0x211   :  { %4679 = vmatmul.mubr.bf16.gmra.mrb[232].mxu1 %v10395_v0  ;;  %v10440_v0 = vld [vmem:[%s14077_s0 + $0x4d0] ss:$36 sps:$4 sm:$0xff]  }
 0x212   :  { %5641 = vmatmul.mubr.bf16.gmra.mrb[168].mxu0 %v10396_v22  ;;  %4686 = vmatprep.mubr.bf16.mxu1 %v10397_v23  ;;  %v10441_v22 = vld [vmem:[%s14077_s0 + $0xdd8] ss:$36 sps:$4 sm:$0xff]  }
 0x213   :  { %5648 = vmatprep.mubr.bf16.mxu0 %v10399_v26  ;;  %v10442_v23 = vld [vmem:[%s14077_s0 + $0x51c] ss:$36 sps:$4 sm:$0xff]  }
 0x214   :  { %v10446_v26 = vld [vmem:[%s14077_s0 + $0x518] ss:$36 sps:$4 sm:$0xff]  }
 0x219   :  { %4687 = vmatmul.mubr.bf16.gmra.mrb[236].mxu1 %v10401_v27  ;;  %v10447_v27 = vld [vmem:[%s14077_s0 + $0xe20] ss:$36 sps:$4 sm:$0xff]  }
 0x21a   :  { %5649 = vmatmul.mubr.bf16.gmra.mrb[172].mxu0 %v10402_v30  ;;  %4694 = vmatprep.mubr.bf16.mxu1 %v10403_v31  ;;  %v10448_v30 = vld [vmem:[%s14077_s0 + $0x564] ss:$36 sps:$4 sm:$0xff]   ;;  %v10450_v31 = vld [vmem:[%s14077_s0 + $0xe6c] ss:$36 sps:$4 sm:$0xff]  }
 0x21b   :  { %5656 = vmatprep.mubr.bf16.mxu0 %v10405_v32  ;;  %v10549_v32 = vld [vmem:[%s14076_s1 + $0x218] sm:$0xff]  }
 0x221   :  { %4695 = vmatmul.mubr.bf16.gmra.mrb[240].mxu1 %v10407_v34  ;;  %v10452_v34 = vld [vmem:[%s14077_s0 + $0x560] ss:$36 sps:$4 sm:$0xff]  }
 0x222   :  { %5657 = vmatmul.mubr.bf16.gmra.mrb[176].mxu0 %v10408_v37  ;;  %4702 = vmatprep.mubr.bf16.mxu1 %v10410_v38  ;;  %v10453_v37 = vld [vmem:[%s14077_s0 + $0xe68] ss:$36 sps:$4 sm:$0xff]  }
 0x223   :  { %5664 = vmatprep.mubr.bf16.mxu0 %v10412_v40  ;;  %v10454_v38 = vld [vmem:[%s14077_s0 + $0x5ac] ss:$36 sps:$4 sm:$0xff]   ;;  %v10456_v40 = vld [vmem:[%s14077_s0 + $0xeb4] ss:$36 sps:$4 sm:$0xff]  }
 0x229   :  { %4703 = vmatmul.mubr.bf16.gmra.mrb[244].mxu1 %v10414_v44  ;;  %v10459_v44 = vld [vmem:[%s14077_s0 + $0xeb0] ss:$36 sps:$4 sm:$0xff]  }
 0x22a   :  { %5665 = vmatmul.mubr.bf16.gmra.mrb[180].mxu0 %v10415_v47  ;;  %4710 = vmatprep.mubr.bf16.mxu1 %v10416_v48  ;;  %v10461_v47 = vld [vmem:[%s14077_s0 + $0x5f4] ss:$36 sps:$4 sm:$0xff]   ;;  %v10463_v48 = vld [vmem:[%s14077_s0 + $0xefc] ss:$36 sps:$4 sm:$0xff]  }
 0x22b   :  { %5672 = vmatprep.mubr.bf16.mxu0 %v10418_v51  ;;  %v10465_v51 = vld [vmem:[%s14077_s0 + $0x5f0] ss:$36 sps:$4 sm:$0xff]  }
 0x231   :  { %4711 = vmatmul.mubr.bf16.gmra.mrb[248].mxu1 %v10420_v53  ;;  %v10466_v53 = vld [vmem:[%s14077_s0 + $0xef8] ss:$36 sps:$4 sm:$0xff]  }
 0x232   :  { %5673 = vmatmul.mubr.bf16.gmra.mrb[184].mxu0 %v10421_v57  ;;  %4718 = vmatprep.mubr.bf16.mxu1 %v10422_v59  ;;  %v10467_v57 = vld [vmem:[%s14077_s0 + $0x63c] ss:$36 sps:$4 sm:$0xff]   ;;  %v10469_v59 = vld [vmem:[%s14077_s0 + $0xf44] ss:$36 sps:$4 sm:$0xff]  }
 0x233   :  { %5680 = vmatprep.mubr.bf16.mxu0 %v10424_v60  ;;  %v10471_v60 = vld [vmem:[%s14077_s0 + $0x638] ss:$36 sps:$4 sm:$0xff]  }
 0x239   :  { %4719 = vmatmul.mubr.bf16.gmra.mrb[252].mxu1 %v10426_v62  ;;  %v10472_v62 = vld [vmem:[%s14077_s0 + $0xf40] ss:$36 sps:$4 sm:$0xff]  }
 0x23a   :  { %5681 = vmatmul.mubr.bf16.gmra.mrb[188].mxu0 %v10427_v2  ;;  %4887 = vmatprep.mubr.bf16.mxu1 %v10430_v9  ;;  %v10474_v2 = vld [vmem:[%s14077_s0 + $0x684] ss:$36 sps:$4 sm:$0xff]   ;;  %v10476_v9 = vld [vmem:[%s14077_s0 + $0xf8c] ss:$36 sps:$4 sm:$0xff]  }
 0x23b   :  { %5688 = vmatprep.mubr.bf16.mxu0 %v10431_v10  ;;  %v10478_v10 = vld [vmem:[%s14077_s0 + $0x680] ss:$36 sps:$4 sm:$0xff]  }
 0x241   :  { %4888 = vmatmul.mubr.bf16.vlgmr.msra.gmra.mrb[64].mxu1 %v10428_v12  ;;  %v10479_v12 = vld [vmem:[%s14077_s0 + $0xf88] ss:$36 sps:$4 sm:$0xff]  }
 0x242   :  { %5689 = vmatmul.mubr.bf16.gmra.mrb[192].mxu0 %v10433_v13  ;;  %9040 = vmatpush3.bf16.msra.mxu1 %v11896_v5  ;;  %v10444_v5 = vld [vmem:[%s14077_s0 + $0xe24] ss:$36 sps:$4 sm:$0xff]   ;;  %v10480_v13 = vld [vmem:[%s14077_s0 + $0x6cc] ss:$36 sps:$4 sm:$0xff]  }
 0x243   :  { %4895 = vmatprep.mubr.bf16.mxu1 %v10436_v15  ;;  %5696 = vmatprep.mubr.bf16.mxu0 %v10438_v17  ;;  %v10482_v15 = vld [vmem:[%s14077_s0 + $0xfd4] ss:$36 sps:$4 sm:$0xff]   ;;  %v10484_v17 = vld [vmem:[%s14077_s0 + $0x6c8] ss:$36 sps:$4 sm:$0xff]  }
 0x244   :  { %9041 = vmatprep.subr.bf16.mxu1 %v10473_v20 }
 0x246   :  { %9042 = vmatpush3.bf16.msra.mxu1 %v10473_v20  ;;  %v10485_v20 = vld [vmem:[%s14077_s0 + $0xfd0] ss:$36 sps:$4 sm:$0xff]  }
 0x247   :  { %9043 = vmatprep.subr.bf16.mxu1 %v10512_v21 }
 0x249   :  { %4896 = vmatmul.mubr.bf16.gmra.mrb[68].mxu1 %v10440_v0  ;;  %v10489_v0 = vld [vmem:[%s14077_s0 + $0x101c] ss:$36 sps:$4 sm:$0xff]  }
 0x24a   :  { %5697 = vmatmul.mubr.bf16.gmra.mrb[196].mxu0 %v10441_v22  ;;  %4903 = vmatprep.mubr.bf16.mxu1 %v10442_v23  ;;  %v10586_v22 = vld [vmem:[%s14076_s1 + $0x220] sm:$0xff]   ;;  %v10491_v23 = vld [vmem:[%s14077_s0 + $0x710] ss:$36 sps:$4 sm:$0xff]  }
 0x24b   :  { %5704 = vmatprep.mubr.bf16.mxu0 %v10444_v5  ;;  %9044 = vmatpush3.bf16.msra.mxu1 %v10512_v21  ;;  %v10487_v21 = vld [vmem:[%s14077_s0 + $0x714] ss:$36 sps:$4 sm:$0xff]  }
 0x24c   :  { %9045 = vmatprep.subr.bf16.mxu1 %v10549_v32  ;;  %v10492_v5 = vld [vmem:[%s14077_s0 + $0x1018] ss:$36 sps:$4 sm:$0xff]  }
 0x24f   :  { %9046 = vmatpush3.bf16.msra.mxu1 %v10549_v32  ;;  %v10499_v32 = vld [vmem:[%s14077_s0 + $0x7a4] ss:$36 sps:$4 sm:$0xff]  }
 0x250   :  { %9047 = vmatprep.subr.bf16.mxu1 %v10586_v22 }
 0x251   :  { %4904 = vmatmul.mubr.bf16.gmra.mrb[72].mxu1 %v10446_v26  ;;  %v10493_v26 = vld [vmem:[%s14077_s0 + $0x75c] ss:$36 sps:$4 sm:$0xff]  }
 0x252   :  { %5705 = vmatmul.mubr.bf16.gmra.mrb[200].mxu0 %v10447_v27  ;;  %4911 = vmatprep.mubr.bf16.mxu1 %v10448_v30  ;;  %v10495_v27 = vld [vmem:[%s14077_s0 + $0x1064] ss:$36 sps:$4 sm:$0xff]   ;;  %v10497_v30 = vld [vmem:[%s14077_s0 + $0x758] ss:$36 sps:$4 sm:$0xff]  }
 0x253   :  { %5712 = vmatprep.mubr.bf16.mxu0 %v10450_v31  ;;  %9048 = vmatpush3.bf16.msra.mxu1 %v10586_v22  ;;  %v10498_v31 = vld [vmem:[%s14077_s0 + $0x1060] ss:$36 sps:$4 sm:$0xff]   ;;  %v10537_v22 = vld [vmem:[%s14077_s0 + $0x954] ss:$36 sps:$4 sm:$0xff]  }
 0x259   :  { %4912 = vmatmul.mubr.bf16.gmra.mrb[76].mxu1 %v10452_v34  ;;  %v10501_v34 = vld [vmem:[%s14077_s0 + $0x10ac] ss:$36 sps:$4 sm:$0xff]  }
 0x25a   :  { %5713 = vmatmul.mubr.bf16.gmra.mrb[204].mxu0 %v10453_v37  ;;  %4919 = vmatprep.mubr.bf16.mxu1 %v10454_v38  ;;  %v10503_v37 = vld [vmem:[%s14077_s0 + $0x7a0] ss:$36 sps:$4 sm:$0xff]   ;;  %v10504_v38 = vld [vmem:[%s14077_s0 + $0x10a8] ss:$36 sps:$4 sm:$0xff]  }
 0x25b   :  { %5720 = vmatprep.mubr.bf16.mxu0 %v10456_v40  ;;  %v10505_v40 = vld [vmem:[%s14077_s0 + $0x7ec] ss:$36 sps:$4 sm:$0xff]  }
 0x261   :  { %4920 = vmatmul.mubr.bf16.gmra.mrb[80].mxu1 %v10458_v43  ;;  %v10507_v43 = vld [vmem:[%s14077_s0 + $0x10f4] ss:$36 sps:$4 sm:$0xff]  }
 0x262   :  { %5721 = vmatmul.mubr.bf16.gmra.mrb[208].mxu0 %v10459_v44  ;;  %4927 = vmatprep.mubr.bf16.mxu1 %v10461_v47  ;;  %v10509_v44 = vld [vmem:[%s14077_s0 + $0x7e8] ss:$36 sps:$4 sm:$0xff]   ;;  %v10510_v47 = vld [vmem:[%s14077_s0 + $0x10f0] ss:$36 sps:$4 sm:$0xff]  }
 0x263   :  { %5728 = vmatprep.mubr.bf16.mxu0 %v10463_v48  ;;  %v10513_v48 = vld [vmem:[%s14077_s0 + $0x834] ss:$36 sps:$4 sm:$0xff]  }
 0x269   :  { %4928 = vmatmul.mubr.bf16.gmra.mrb[84].mxu1 %v10465_v51  ;;  %v10515_v51 = vld [vmem:[%s14077_s0 + $0x113c] ss:$36 sps:$4 sm:$0xff]  }
 0x26a   :  { %5729 = vmatmul.mubr.bf16.gmra.mrb[212].mxu0 %v10466_v53  ;;  %4935 = vmatprep.mubr.bf16.mxu1 %v10467_v57  ;;  %v10517_v53 = vld [vmem:[%s14077_s0 + $0x830] ss:$36 sps:$4 sm:$0xff]   ;;  %v10518_v57 = vld [vmem:[%s14077_s0 + $0x1138] ss:$36 sps:$4 sm:$0xff]  }
 0x26b   :  { %5736 = vmatprep.mubr.bf16.mxu0 %v10469_v59  ;;  %v10519_v59 = vld [vmem:[%s14077_s0 + $0x87c] ss:$36 sps:$4 sm:$0xff]  }
 0x271   :  { %4936 = vmatmul.mubr.bf16.gmra.mrb[88].mxu1 %v10471_v60  ;;  %v10521_v60 = vld [vmem:[%s14077_s0 + $0x1184] ss:$36 sps:$4 sm:$0xff]  }
 0x272   :  { %5737 = vmatmul.mubr.bf16.gmra.mrb[216].mxu0 %v10472_v62  ;;  %4943 = vmatprep.mubr.bf16.mxu1 %v10474_v2  ;;  %v10523_v62 = vld [vmem:[%s14077_s0 + $0x878] ss:$36 sps:$4 sm:$0xff]   ;;  %v10524_v2 = vld [vmem:[%s14077_s0 + $0x1180] ss:$36 sps:$4 sm:$0xff]  }
 0x273   :  { %5744 = vmatprep.mubr.bf16.mxu0 %v10476_v9  ;;  %v10525_v9 = vld [vmem:[%s14077_s0 + $0x8c4] ss:$36 sps:$4 sm:$0xff]  }
 0x279   :  { %4944 = vmatmul.mubr.bf16.gmra.mrb[92].mxu1 %v10478_v10  ;;  %v10527_v10 = vld [vmem:[%s14077_s0 + $0x11cc] ss:$36 sps:$4 sm:$0xff]  }
 0x27a   :  { %5745 = vmatmul.mubr.bf16.gmra.mrb[220].mxu0 %v10479_v12  ;;  %4951 = vmatprep.mubr.bf16.mxu1 %v10480_v13  ;;  %v10623_v12 = vld [vmem:[%s14076_s1 + $0x228] sm:$0xff]   ;;  %v10529_v13 = vld [vmem:[%s14077_s0 + $0x8c0] ss:$36 sps:$4 sm:$0xff]  }
 0x27b   :  { %5752 = vmatprep.mubr.bf16.mxu0 %v10482_v15  ;;  %9049 = vmatprep.subr.bf16.mxu1 %v10623_v12  ;;  %v10530_v15 = vld [vmem:[%s14077_s0 + $0x11c8] ss:$36 sps:$4 sm:$0xff]  }
 0x27c   :  { %9050 = vmatpush3.bf16.msra.mxu1 %v10623_v12  ;;  %v10574_v12 = vld [vmem:[%s14077_s0 + $0xb04] ss:$36 sps:$4 sm:$0xff]  }
 0x281   :  { %4952 = vmatmul.mubr.bf16.gmra.mrb[96].mxu1 %v10484_v17  ;;  %v10531_v17 = vld [vmem:[%s14077_s0 + $0x90c] ss:$36 sps:$4 sm:$0xff]  }
 0x282   :  { %5753 = vmatmul.mubr.bf16.gmra.mrb[224].mxu0 %v10485_v20  ;;  %4959 = vmatprep.mubr.bf16.mxu1 %v10487_v21  ;;  %v10535_v20 = vld [vmem:[%s14077_s0 + $0x1c] ss:$36 sps:$4 sm:$0xff]   ;;  %v10536_v21 = vld [vmem:[%s14077_s0 + $0x908] ss:$36 sps:$4 sm:$0xff]  }
 0x283   :  { %5760 = vmatprep.mubr.bf16.mxu0 %v10489_v0  ;;  %v10533_v0 = vld [vmem:[%s14077_s0 + $0x18] ss:$36 sps:$4 sm:$0xff]  }
 0x289   :  { %4960 = vmatmul.mubr.bf16.gmra.mrb[100].mxu1 %v10491_v23  ;;  %v10539_v23 = vld [vmem:[%s14077_s0 + $0x64] ss:$36 sps:$4 sm:$0xff]  }
 0x28a   :  { %5761 = vmatmul.mubr.bf16.gmra.mrb[228].mxu0 %v10492_v5  ;;  %4967 = vmatprep.mubr.bf16.mxu1 %v10493_v26  ;;  %v10541_v5 = vld [vmem:[%s14077_s0 + $0x950] ss:$36 sps:$4 sm:$0xff]   ;;  %v10542_v26 = vld [vmem:[%s14077_s0 + $0x60] ss:$36 sps:$4 sm:$0xff]  }
 0x28b   :  { %5768 = vmatprep.mubr.bf16.mxu0 %v10495_v27  ;;  %v10543_v27 = vld [vmem:[%s14077_s0 + $0x99c] ss:$36 sps:$4 sm:$0xff]  }
 0x291   :  { %4968 = vmatmul.mubr.bf16.gmra.mrb[104].mxu1 %v10497_v30  ;;  %v10545_v30 = vld [vmem:[%s14077_s0 + $0xac] ss:$36 sps:$4 sm:$0xff]  }
 0x292   :  { %5769 = vmatmul.mubr.bf16.gmra.mrb[232].mxu0 %v10498_v31  ;;  %4975 = vmatprep.mubr.bf16.mxu1 %v10499_v32  ;;  %v10547_v31 = vld [vmem:[%s14077_s0 + $0x998] ss:$36 sps:$4 sm:$0xff]   ;;  %v10548_v32 = vld [vmem:[%s14077_s0 + $0xa8] ss:$36 sps:$4 sm:$0xff]  }
 0x293   :  { %5776 = vmatprep.mubr.bf16.mxu0 %v10501_v34  ;;  %v10550_v34 = vld [vmem:[%s14077_s0 + $0x9e4] ss:$36 sps:$4 sm:$0xff]  }
 0x299   :  { %4976 = vmatmul.mubr.bf16.gmra.mrb[108].mxu1 %v10503_v37  ;;  %v10552_v37 = vld [vmem:[%s14077_s0 + $0xf4] ss:$36 sps:$4 sm:$0xff]  }
 0x29a   :  { %5777 = vmatmul.mubr.bf16.gmra.mrb[236].mxu0 %v10504_v38  ;;  %4983 = vmatprep.mubr.bf16.mxu1 %v10505_v40  ;;  %v10554_v38 = vld [vmem:[%s14077_s0 + $0x9e0] ss:$36 sps:$4 sm:$0xff]   ;;  %v10555_v40 = vld [vmem:[%s14077_s0 + $0xf0] ss:$36 sps:$4 sm:$0xff]  }
 0x29b   :  { %5784 = vmatprep.mubr.bf16.mxu0 %v10507_v43  ;;  %v10556_v43 = vld [vmem:[%s14077_s0 + $0xa2c] ss:$36 sps:$4 sm:$0xff]  }
 0x2a1   :  { %4984 = vmatmul.mubr.bf16.gmra.mrb[112].mxu1 %v10509_v44  ;;  %v10558_v44 = vld [vmem:[%s14077_s0 + $0x13c] ss:$36 sps:$4 sm:$0xff]  }
 0x2a2   :  { %5785 = vmatmul.mubr.bf16.gmra.mrb[240].mxu0 %v10510_v47  ;;  %4991 = vmatprep.mubr.bf16.mxu1 %v10513_v48  ;;  %v10560_v47 = vld [vmem:[%s14077_s0 + $0xa28] ss:$36 sps:$4 sm:$0xff]   ;;  %v10561_v48 = vld [vmem:[%s14077_s0 + $0x138] ss:$36 sps:$4 sm:$0xff]  }
 0x2a3   :  { %5792 = vmatprep.mubr.bf16.mxu0 %v10515_v51  ;;  %v10562_v51 = vld [vmem:[%s14077_s0 + $0xa74] ss:$36 sps:$4 sm:$0xff]  }
 0x2a9   :  { %4992 = vmatmul.mubr.bf16.gmra.mrb[116].mxu1 %v10517_v53  ;;  %v10564_v53 = vld [vmem:[%s14077_s0 + $0x184] ss:$36 sps:$4 sm:$0xff]  }
 0x2aa   :  { %5793 = vmatmul.mubr.bf16.gmra.mrb[244].mxu0 %v10518_v57  ;;  %4999 = vmatprep.mubr.bf16.mxu1 %v10519_v59  ;;  %v10660_v57 = vld [vmem:[%s14076_s1 + $0x230] sm:$0xff]  }
 0x2ab   :  { %5800 = vmatprep.mubr.bf16.mxu0 %v10521_v60  ;;  %9051 = vmatprep.subr.bf16.mxu1 %v10660_v57  ;;  %v10566_v59 = vld [vmem:[%s14077_s0 + $0xa70] ss:$36 sps:$4 sm:$0xff]   ;;  %v10567_v60 = vld [vmem:[%s14077_s0 + $0x180] ss:$36 sps:$4 sm:$0xff]  }
 0x2ac   :  { %9052 = vmatpush3.bf16.msra.mxu1 %v10660_v57 }
 0x2b1   :  { %5000 = vmatmul.mubr.bf16.gmra.mrb[120].mxu1 %v10523_v62  ;;  %v10568_v62 = vld [vmem:[%s14077_s0 + $0xabc] ss:$36 sps:$4 sm:$0xff]  }
 0x2b2   :  { %5801 = vmatmul.mubr.bf16.gmra.mrb[248].mxu0 %v10524_v2  ;;  %5007 = vmatprep.mubr.bf16.mxu1 %v10525_v9  ;;  %v10570_v2 = vld [vmem:[%s14077_s0 + $0x1cc] ss:$36 sps:$4 sm:$0xff]   ;;  %v10572_v9 = vld [vmem:[%s14077_s0 + $0xab8] ss:$36 sps:$4 sm:$0xff]  }
 0x2b3   :  { %5808 = vmatprep.mubr.bf16.mxu0 %v10527_v10  ;;  %v10573_v10 = vld [vmem:[%s14077_s0 + $0x1c8] ss:$36 sps:$4 sm:$0xff]  }
 0x2b9   :  { %5008 = vmatmul.mubr.bf16.gmra.mrb[124].mxu1 %v10529_v13  ;;  %v10576_v13 = vld [vmem:[%s14077_s0 + $0x214] ss:$36 sps:$4 sm:$0xff]  }
 0x2ba   :  { %5809 = vmatmul.mubr.bf16.gmra.mrb[252].mxu0 %v10530_v15  ;;  %5015 = vmatprep.mubr.bf16.mxu1 %v10531_v17  ;;  %v10578_v15 = vld [vmem:[%s14077_s0 + $0xb00] ss:$36 sps:$4 sm:$0xff]   ;;  %v10579_v17 = vld [vmem:[%s14077_s0 + $0x210] ss:$36 sps:$4 sm:$0xff]  }
 0x2bb   :  { %5849 = vmatprep.mubr.bf16.mxu0 %v10535_v20  ;;  %v10580_v20 = vld [vmem:[%s14077_s0 + $0xb4c] ss:$36 sps:$4 sm:$0xff]  }
 0x2c1   :  { %5016 = vmatmul.mubr.bf16.gmra.mrb[128].mxu1 %v10536_v21  ;;  %v10582_v21 = vld [vmem:[%s14077_s0 + $0x25c] ss:$36 sps:$4 sm:$0xff]  }
 0x2c2   :  { %5850 = vmatmul.mubr.bf16.vlgmr.msra.gmra.mrb[0].mxu0 %v10533_v0  ;;  %5023 = vmatprep.mubr.bf16.mxu1 %v10537_v22  ;;  %v10584_v0 = vld [vmem:[%s14077_s0 + $0xb48] ss:$36 sps:$4 sm:$0xff]   ;;  %v10585_v22 = vld [vmem:[%s14077_s0 + $0x258] ss:$36 sps:$4 sm:$0xff]  }
 0x2c3   :  { %5857 = vmatprep.mubr.bf16.mxu0 %v10539_v23  ;;  %v10587_v23 = vld [vmem:[%s14077_s0 + $0xb94] ss:$36 sps:$4 sm:$0xff]  }
 0x2c9   :  { %5024 = vmatmul.mubr.bf16.gmra.mrb[132].mxu1 %v10541_v5  ;;  %v10589_v5 = vld [vmem:[%s14077_s0 + $0x2a4] ss:$36 sps:$4 sm:$0xff]  }
 0x2ca   :  { %5858 = vmatmul.mubr.bf16.gmra.mrb[4].mxu0 %v10542_v26  ;;  %5031 = vmatprep.mubr.bf16.mxu1 %v10543_v27  ;;  %v10591_v26 = vld [vmem:[%s14077_s0 + $0xb90] ss:$36 sps:$4 sm:$0xff]   ;;  %v10592_v27 = vld [vmem:[%s14077_s0 + $0x2a0] ss:$36 sps:$4 sm:$0xff]  }
 0x2cb   :  { %5865 = vmatprep.mubr.bf16.mxu0 %v10545_v30  ;;  %v10593_v30 = vld [vmem:[%s14077_s0 + $0xbdc] ss:$36 sps:$4 sm:$0xff]  }
 0x2d1   :  { %5032 = vmatmul.mubr.bf16.gmra.mrb[136].mxu1 %v10547_v31  ;;  %v10595_v31 = vld [vmem:[%s14077_s0 + $0x2ec] ss:$36 sps:$4 sm:$0xff]  }
 0x2d2   :  { %5866 = vmatmul.mubr.bf16.gmra.mrb[8].mxu0 %v10548_v32  ;;  %5039 = vmatprep.mubr.bf16.mxu1 %v10550_v34  ;;  %v10597_v32 = vld [vmem:[%s14077_s0 + $0xbd8] ss:$36 sps:$4 sm:$0xff]   ;;  %v10598_v34 = vld [vmem:[%s14077_s0 + $0x2e8] ss:$36 sps:$4 sm:$0xff]  }
 0x2d3   :  { %5873 = vmatprep.mubr.bf16.mxu0 %v10552_v37  ;;  %v10599_v37 = vld [vmem:[%s14077_s0 + $0xc24] ss:$36 sps:$4 sm:$0xff]  }
 0x2d9   :  { %5040 = vmatmul.mubr.bf16.gmra.mrb[140].mxu1 %v10554_v38  ;;  %v10601_v38 = vld [vmem:[%s14077_s0 + $0x334] ss:$36 sps:$4 sm:$0xff]  }
 0x2da   :  { %5874 = vmatmul.mubr.bf16.gmra.mrb[12].mxu0 %v10555_v40  ;;  %5047 = vmatprep.mubr.bf16.mxu1 %v10556_v43  ;;  %v10697_v40 = vld [vmem:[%s14076_s1 + $0x238] sm:$0xff]  }
 0x2db   :  { %5881 = vmatprep.mubr.bf16.mxu0 %v10558_v44  ;;  %9053 = vmatprep.subr.bf16.mxu1 %v10697_v40 }
 0x2dc   :  { %9054 = vmatpush3.bf16.msra.mxu1 %v10697_v40  ;;  %v10626_v40 = vld [vmem:[%s14077_s0 + $0x454] ss:$36 sps:$4 sm:$0xff]  }
 0x2e1   :  { %5048 = vmatmul.mubr.bf16.gmra.mrb[144].mxu1 %v10560_v47  ;;  %v10603_v47 = vld [vmem:[%s14077_s0 + $0xc20] ss:$36 sps:$4 sm:$0xff]  }
 0x2e2   :  { %5882 = vmatmul.mubr.bf16.gmra.mrb[16].mxu0 %v10561_v48  ;;  %5055 = vmatprep.mubr.bf16.mxu1 %v10562_v51  ;;  %v10604_v51 = vld [vmem:[%s14077_s0 + $0x330] ss:$36 sps:$4 sm:$0xff]  }
 0x2e3   :  { %5889 = vmatprep.mubr.bf16.mxu0 %v10564_v53  ;;  %v10605_v53 = vld [vmem:[%s14077_s0 + $0xc6c] ss:$36 sps:$4 sm:$0xff]  }
 0x2e9   :  { %5056 = vmatmul.mubr.bf16.gmra.mrb[148].mxu1 %v10566_v59  ;;  %v10607_v59 = vld [vmem:[%s14077_s0 + $0x37c] ss:$36 sps:$4 sm:$0xff]  }
 0x2ea   :  { %5890 = vmatmul.mubr.bf16.gmra.mrb[20].mxu0 %v10567_v60  ;;  %5063 = vmatprep.mubr.bf16.mxu1 %v10568_v62 }
 0x2eb   :  { %5897 = vmatprep.mubr.bf16.mxu0 %v10570_v2  ;;  %v10609_v2 = vld [vmem:[%s14077_s0 + $0xc68] ss:$36 sps:$4 sm:$0xff]  }
 0x2f1   :  { %5064 = vmatmul.mubr.bf16.gmra.mrb[152].mxu1 %v10572_v9 }
 0x2f2   :  { %5898 = vmatmul.mubr.bf16.gmra.mrb[24].mxu0 %v10573_v10  ;;  %5071 = vmatprep.mubr.bf16.mxu1 %v10574_v12  ;;  %v10610_v10 = vld [vmem:[%s14077_s0 + $0x378] ss:$36 sps:$4 sm:$0xff]  }
 0x2f3   :  { %5905 = vmatprep.mubr.bf16.mxu0 %v10576_v13  ;;  %v10611_v12 = vld [vmem:[%s14077_s0 + $0xcb4] ss:$36 sps:$4 sm:$0xff]  }
 0x2f9   :  { %5072 = vmatmul.mubr.bf16.gmra.mrb[156].mxu1 %v10578_v15  ;;  %v10613_v15 = vld [vmem:[%s14077_s0 + $0x3c4] ss:$36 sps:$4 sm:$0xff]  }
 0x2fa   :  { %5906 = vmatmul.mubr.bf16.gmra.mrb[28].mxu0 %v10579_v17  ;;  %5079 = vmatprep.mubr.bf16.mxu1 %v10580_v20 }
 0x2fb   :  { %5913 = vmatprep.mubr.bf16.mxu0 %v10582_v21  ;;  %v10615_v21 = vld [vmem:[%s14077_s0 + $0xcb0] ss:$36 sps:$4 sm:$0xff]  }
 0x301   :  { %5080 = vmatmul.mubr.bf16.gmra.mrb[160].mxu1 %v10584_v0 }
 0x302   :  { %5914 = vmatmul.mubr.bf16.gmra.mrb[32].mxu0 %v10585_v22  ;;  %5087 = vmatprep.mubr.bf16.mxu1 %v10587_v23  ;;  %v10616_v22 = vld [vmem:[%s14077_s0 + $0x3c0] ss:$36 sps:$4 sm:$0xff]  }
 0x303   :  { %5921 = vmatprep.mubr.bf16.mxu0 %v10589_v5  ;;  %v10617_v23 = vld [vmem:[%s14077_s0 + $0xcfc] ss:$36 sps:$4 sm:$0xff]  }
 0x309   :  { %5088 = vmatmul.mubr.bf16.gmra.mrb[164].mxu1 %v10591_v26  ;;  %v10619_v26 = vld [vmem:[%s14077_s0 + $0x40c] ss:$36 sps:$4 sm:$0xff]  }
 0x30a   :  { %5922 = vmatmul.mubr.bf16.gmra.mrb[36].mxu0 %v10592_v27  ;;  %5095 = vmatprep.mubr.bf16.mxu1 %v10593_v30 }
 0x30b   :  { %5929 = vmatprep.mubr.bf16.mxu0 %v10595_v31  ;;  %v10621_v31 = vld [vmem:[%s14077_s0 + $0xcf8] ss:$36 sps:$4 sm:$0xff]  }
 0x311   :  { %5096 = vmatmul.mubr.bf16.gmra.mrb[168].mxu1 %v10597_v32 }
 0x312   :  { %5930 = vmatmul.mubr.bf16.gmra.mrb[40].mxu0 %v10598_v34  ;;  %5103 = vmatprep.mubr.bf16.mxu1 %v10599_v37  ;;  %v10622_v34 = vld [vmem:[%s14077_s0 + $0x408] ss:$36 sps:$4 sm:$0xff]  }
 0x313   :  { %5937 = vmatprep.mubr.bf16.mxu0 %v10601_v38  ;;  %v10624_v37 = vld [vmem:[%s14077_s0 + $0xd44] ss:$36 sps:$4 sm:$0xff]  }
 0x314   :  { %v12437_v43 = vpop.f32.mrb[64].mxu1 }
 0x315   :  { %v4891_v44 = vpop.f32.mrb[65].mxu1 }
 0x316   :  { %v12442_v48 = vpop.f32.mrb[66].mxu1 }
 0x317   :  { %v4894_v57 = vpop.f32.mrb[67].mxu1 }
 0x318   :  { %v10629_v57 = vld [vmem:[%s14077_s0 + $0x450] ss:$36 sps:$4 sm:$0xff]  }
 0x319   :  { %5104 = vmatmul.mubr.bf16.gmra.mrb[172].mxu1 %v10603_v47 }
 0x31a   :  { %5938 = vmatmul.mubr.bf16.gmra.mrb[44].mxu0 %v10604_v51  ;;  %5111 = vmatprep.mubr.bf16.mxu1 %v10605_v53  ;;  %v10628_v51 = vld [vmem:[%s14077_s0 + $0xd40] ss:$36 sps:$4 sm:$0xff]  }
 0x31b   :  { %5945 = vmatprep.mubr.bf16.mxu0 %v10607_v59  ;;  %v10630_v59 = vld [vmem:[%s14077_s0 + $0xd8c] ss:$36 sps:$4 sm:$0xff]  }
 0x31c   :  { %v12453_v60 = vpop.f32.mrb[68].mxu1 }
 0x31d   :  { %v4899_v62 = vpop.f32.mrb[69].mxu1 }
 0x31e   :  { %v12458_v9 = vpop.f32.mrb[70].mxu1 }
 0x31f   :  { %v4902_v13 = vpop.f32.mrb[71].mxu1 }
 0x320   :  { %v10634_v13 = vld [vmem:[%s14077_s0 + $0xd88] ss:$36 sps:$4 sm:$0xff]  }
 0x321   :  { %5112 = vmatmul.mubr.bf16.gmra.mrb[176].mxu1 %v10609_v2  ;;  %v10632_v2 = vld [vmem:[%s14077_s0 + $0x49c] ss:$36 sps:$4 sm:$0xff]  }
 0x322   :  { %5946 = vmatmul.mubr.bf16.gmra.mrb[48].mxu0 %v10610_v10  ;;  %5119 = vmatprep.mubr.bf16.mxu1 %v10611_v12 }
 0x323   :  { %5953 = vmatprep.mubr.bf16.mxu0 %v10613_v15 }
 0x324   :  { %v12469_v17 = vpop.f32.mrb[72].mxu1 }
 0x325   :  { %v4907_v20 = vpop.f32.mrb[73].mxu1 }
 0x326   :  { %v12474_v0 = vpop.f32.mrb[74].mxu1  ;;  %v10635_v20 = vld [vmem:[%s14077_s0 + $0x498] ss:$36 sps:$4 sm:$0xff]  }
 0x327   :  { %v4910_v5 = vpop.f32.mrb[75].mxu1 }
 0x329   :  { %5120 = vmatmul.mubr.bf16.gmra.mrb[180].mxu1 %v10615_v21  ;;  %v10636_v21 = vld [vmem:[%s14077_s0 + $0xdd4] ss:$36 sps:$4 sm:$0xff]  }
 0x32a   :  { %5954 = vmatmul.mubr.bf16.gmra.mrb[52].mxu0 %v10616_v22  ;;  %5127 = vmatprep.mubr.bf16.mxu1 %v10617_v23  ;;  %v10638_v23 = vld [vmem:[%s14077_s0 + $0x4e4] ss:$36 sps:$4 sm:$0xff]  }
 0x32b   :  { %5961 = vmatprep.mubr.bf16.mxu0 %v10619_v26 }
 0x32c   :  { %v12485_v27 = vpop.f32.mrb[76].mxu1 }
 0x32d   :  { %v4915_v30 = vpop.f32.mrb[77].mxu1 }
 0x32e   :  { %v12490_v32 = vpop.f32.mrb[78].mxu1  ;;  %v10640_v30 = vld [vmem:[%s14077_s0 + $0xdd0] ss:$36 sps:$4 sm:$0xff]  }
 0x32f   :  { %v4918_v38 = vpop.f32.mrb[79].mxu1 }
 0x331   :  { %5128 = vmatmul.mubr.bf16.gmra.mrb[184].mxu1 %v10621_v31 }
 0x332   :  { %5962 = vmatmul.mubr.bf16.gmra.mrb[56].mxu0 %v10622_v34  ;;  %5135 = vmatprep.mubr.bf16.mxu1 %v10624_v37  ;;  %v10641_v34 = vld [vmem:[%s14077_s0 + $0x4e0] ss:$36 sps:$4 sm:$0xff]  }
 0x333   :  { %5969 = vmatprep.mubr.bf16.mxu0 %v10626_v40  ;;  %v10642_v37 = vld [vmem:[%s14077_s0 + $0xe1c] ss:$36 sps:$4 sm:$0xff]   ;;  %v10644_v40 = vld [vmem:[%s14077_s0 + $0x52c] ss:$36 sps:$4 sm:$0xff]  }
 0x334   :  { %v12501_v44 = vpop.f32.mrb[80].mxu1 }
 0x335   :  { %v4923_v47 = vpop.f32.mrb[81].mxu1 }
 0x336   :  { %v12506_v53 = vpop.f32.mrb[82].mxu1 }
 0x337   :  { %v4926_v62 = vpop.f32.mrb[83].mxu1 }
 0x338   :  { %v10647_v62 = vld [vmem:[%s14077_s0 + $0x528] ss:$36 sps:$4 sm:$0xff]  }
 0x339   :  { %5136 = vmatmul.mubr.bf16.gmra.mrb[188].mxu1 %v10628_v51 }
 0x33a   :  { %5970 = vmatmul.mubr.bf16.gmra.mrb[60].mxu0 %v10629_v57  ;;  %5143 = vmatprep.mubr.bf16.mxu1 %v10630_v59  ;;  %v10646_v57 = vld [vmem:[%s14077_s0 + $0xe18] ss:$36 sps:$4 sm:$0xff]  }
 0x33b   :  { %5977 = vmatprep.mubr.bf16.mxu0 %v10632_v2  ;;  %v10648_v2 = vld [vmem:[%s14077_s0 + $0xe64] ss:$36 sps:$4 sm:$0xff]  }
 0x33c   :  { %v12517_v10 = vpop.f32.mrb[84].mxu1 }
 0x33d   :  { %v4931_v12 = vpop.f32.mrb[85].mxu1 }
 0x33e   :  { %v12522_v15 = vpop.f32.mrb[86].mxu1 }
 0x33f   :  { %v4934_v22 = vpop.f32.mrb[87].mxu1 }
 0x340   :  { %v10652_v22 = vld [vmem:[%s14077_s0 + $0xe60] ss:$36 sps:$4 sm:$0xff]  }
 0x341   :  { %5144 = vmatmul.mubr.bf16.gmra.mrb[192].mxu1 %v10634_v13  ;;  %v10650_v13 = vld [vmem:[%s14077_s0 + $0x574] ss:$36 sps:$4 sm:$0xff]  }
 0x342   :  { %5978 = vmatmul.mubr.bf16.gmra.mrb[64].mxu0 %v10635_v20  ;;  %5151 = vmatprep.mubr.bf16.mxu1 %v10636_v21 }
 0x343   :  { %5985 = vmatprep.mubr.bf16.mxu0 %v10638_v23 }
 0x344   :  { %v12533_v5 = vpop.f32.mrb[88].mxu1 }
 0x345   :  { %v4939_v26 = vpop.f32.mrb[89].mxu1 }
 0x346   :  { %v12538_v31 = vpop.f32.mrb[90].mxu1  ;;  %v10653_v26 = vld [vmem:[%s14077_s0 + $0x570] ss:$36 sps:$4 sm:$0xff]  }
 0x347   :  { %v4942_v38 = vpop.f32.mrb[91].mxu1 }
 0x349   :  { %5152 = vmatmul.mubr.bf16.gmra.mrb[196].mxu1 %v10640_v30  ;;  %v10654_v30 = vld [vmem:[%s14077_s0 + $0xeac] ss:$36 sps:$4 sm:$0xff]  }
 0x34a   :  { %5986 = vmatmul.mubr.bf16.gmra.mrb[68].mxu0 %v10641_v34  ;;  %5159 = vmatprep.mubr.bf16.mxu1 %v10642_v37  ;;  %v10656_v37 = vld [vmem:[%s14077_s0 + $0x5bc] ss:$36 sps:$4 sm:$0xff]  }
 0x34b   :  { %5993 = vmatprep.mubr.bf16.mxu0 %v10644_v40 }
 0x34c   :  { %v12549_v47 = vpop.f32.mrb[92].mxu1 }
 0x34d   :  { %v4947_v51 = vpop.f32.mrb[93].mxu1 }
 0x34e   :  { %v12554_v59 = vpop.f32.mrb[94].mxu1  ;;  %v10658_v51 = vld [vmem:[%s14077_s0 + $0xea8] ss:$36 sps:$4 sm:$0xff]  }
 0x34f   :  { %v4950_v12 = vpop.f32.mrb[95].mxu1 }
 0x351   :  { %5160 = vmatmul.mubr.bf16.gmra.mrb[200].mxu1 %v10646_v57 }
 0x352   :  { %5994 = vmatmul.mubr.bf16.gmra.mrb[72].mxu0 %v10647_v62  ;;  %5167 = vmatprep.mubr.bf16.mxu1 %v10648_v2  ;;  %v10659_v62 = vld [vmem:[%s14077_s0 + $0x5b8] ss:$36 sps:$4 sm:$0xff]  }
 0x353   :  { %6001 = vmatprep.mubr.bf16.mxu0 %v10650_v13  ;;  %v10661_v2 = vld [vmem:[%s14077_s0 + $0xef4] ss:$36 sps:$4 sm:$0xff]   ;;  %v10663_v13 = vld [vmem:[%s14077_s0 + $0x604] ss:$36 sps:$4 sm:$0xff]  }
 0x354   :  { %v12565_v20 = vpop.f32.mrb[96].mxu1 }
 0x355   :  { %v4955_v21 = vpop.f32.mrb[97].mxu1 }
 0x356   :  { %v12570_v23 = vpop.f32.mrb[98].mxu1 }
 0x357   :  { %v4958_v34 = vpop.f32.mrb[99].mxu1 }
 0x358   :  { %v10666_v34 = vld [vmem:[%s14077_s0 + $0x600] ss:$36 sps:$4 sm:$0xff]  }
 0x359   :  { %5168 = vmatmul.mubr.bf16.gmra.mrb[204].mxu1 %v10652_v22 }
 0x35a   :  { %6002 = vmatmul.mubr.bf16.gmra.mrb[76].mxu0 %v10653_v26  ;;  %5175 = vmatprep.mubr.bf16.mxu1 %v10654_v30  ;;  %v10665_v26 = vld [vmem:[%s14077_s0 + $0xef0] ss:$36 sps:$4 sm:$0xff]  }
 0x35b   :  { %6009 = vmatprep.mubr.bf16.mxu0 %v10656_v37  ;;  %v10667_v37 = vld [vmem:[%s14077_s0 + $0xf3c] ss:$36 sps:$4 sm:$0xff]  }
 0x35c   :  { %v12581_v38 = vpop.f32.mrb[100].mxu1 }
 0x35d   :  { %v4963_v40 = vpop.f32.mrb[101].mxu1 }
 0x35e   :  { %v12586_v57 = vpop.f32.mrb[102].mxu1 }
 0x35f   :  { %14080 = vst [vmem:[#allocation2_spill] sm:$0xff] %v12586_v57  ;;  %v4966_v12 = vpop.f32.mrb[103].mxu1 }
 0x360   :  { %v10671_v12 = vld [vmem:[%s14077_s0 + $0xf38] ss:$36 sps:$4 sm:$0xff]  }
 0x361   :  { %5176 = vmatmul.mubr.bf16.gmra.mrb[208].mxu1 %v10658_v51  ;;  %v10669_v51 = vld [vmem:[%s14077_s0 + $0x64c] ss:$36 sps:$4 sm:$0xff]  }
 0x362   :  { %6010 = vmatmul.mubr.bf16.gmra.mrb[80].mxu0 %v10659_v62  ;;  %5183 = vmatprep.mubr.bf16.mxu1 %v10661_v2 }
 0x363   :  { %6017 = vmatprep.mubr.bf16.mxu0 %v10663_v13 }
 0x364   :  { %v12597_v21 = vpop.f32.mrb[104].mxu1 }
 0x365   :  { %14081 = vst [vmem:[#allocation3_spill] sm:$0xff] %v12597_v21  ;;  %v4971_v22 = vpop.f32.mrb[105].mxu1 }
 0x366   :  { %v12602_v30 = vpop.f32.mrb[106].mxu1  ;;  %v10672_v22 = vld [vmem:[%s14077_s0 + $0x648] ss:$36 sps:$4 sm:$0xff]  }
 0x367   :  { %14082 = vst [vmem:[#allocation4_spill] sm:$0xff] %v12602_v30  ;;  %v4974_v40 = vpop.f32.mrb[107].mxu1 }
 0x369   :  { %5184 = vmatmul.mubr.bf16.gmra.mrb[212].mxu1 %v10665_v26  ;;  %v10673_v26 = vld [vmem:[%s14077_s0 + $0xf84] ss:$36 sps:$4 sm:$0xff]  }
 0x36a   :  { %6018 = vmatmul.mubr.bf16.gmra.mrb[84].mxu0 %v10666_v34  ;;  %5191 = vmatprep.mubr.bf16.mxu1 %v10667_v37  ;;  %v10675_v37 = vld [vmem:[%s14077_s0 + $0x694] ss:$36 sps:$4 sm:$0xff]  }
 0x36b   :  { %6025 = vmatprep.mubr.bf16.mxu0 %v10669_v51 }
 0x36c   :  { %v12613_v62 = vpop.f32.mrb[108].mxu1 }
 0x36d   :  { %14083 = vst [vmem:[#allocation5_spill] sm:$0xff] %v12613_v62  ;;  %v4979_v2 = vpop.f32.mrb[109].mxu1  ;;  %v10702_v62 = vld [vmem:[%s14077_s0 + $0x10a0] ss:$36 sps:$4 sm:$0xff]  }
 0x36e   :  { %v12618_v13 = vpop.f32.mrb[110].mxu1  ;;  %v10677_v2 = vld [vmem:[%s14077_s0 + $0xf80] ss:$36 sps:$4 sm:$0xff]  }
 0x36f   :  { %14084 = vst [vmem:[#allocation6_spill] sm:$0xff] %v12618_v13  ;;  %v4982_v34 = vpop.f32.mrb[111].mxu1 }
 0x370   :  { %v10678_v34 = vld [vmem:[%s14077_s0 + $0x690] ss:$36 sps:$4 sm:$0xff]  }
 0x371   :  { %5192 = vmatmul.mubr.bf16.gmra.mrb[216].mxu1 %v10671_v12  ;;  %v10679_v12 = vld [vmem:[%s14077_s0 + $0xfcc] ss:$36 sps:$4 sm:$0xff]  }
 0x372   :  { %6026 = vmatmul.mubr.bf16.gmra.mrb[88].mxu0 %v10672_v22  ;;  %5199 = vmatprep.mubr.bf16.mxu1 %v10673_v26  ;;  %v10681_v26 = vld [vmem:[%s14077_s0 + $0x6dc] ss:$36 sps:$4 sm:$0xff]  }
 0x373   :  { %6033 = vmatprep.mubr.bf16.mxu0 %v10675_v37 }
 0x374   :  { %v12629_v40 = vpop.f32.mrb[112].mxu1 }
 0x375   :  { %14085 = vst [vmem:[#allocation7_spill] sm:$0xff] %v12629_v40  ;;  %v4987_v51 = vpop.f32.mrb[113].mxu1 }
 0x376   :  { %v12634_v13 = vpop.f32.mrb[114].mxu1 }
 0x377   :  { %14086 = vst [vmem:[#allocation8_spill] sm:$0xff] %v12634_v13  ;;  %v4990_v22 = vpop.f32.mrb[115].mxu1  ;;  %v10683_v13 = vld [vmem:[%s14077_s0 + $0xfc8] ss:$36 sps:$4 sm:$0xff]  }
 0x378   :  { %v10684_v22 = vld [vmem:[%s14077_s0 + $0x6d8] ss:$36 sps:$4 sm:$0xff]  }
 0x379   :  { %5200 = vmatmul.mubr.bf16.gmra.mrb[220].mxu1 %v10677_v2  ;;  %v10685_v2 = vld [vmem:[%s14077_s0 + $0x1014] ss:$36 sps:$4 sm:$0xff]  }
 0x37a   :  { %6034 = vmatmul.mubr.bf16.gmra.mrb[92].mxu0 %v10678_v34  ;;  %5207 = vmatprep.mubr.bf16.mxu1 %v10679_v12  ;;  %v10687_v12 = vld [vmem:[%s14077_s0 + $0x724] ss:$36 sps:$4 sm:$0xff]  }
 0x37b   :  { %6041 = vmatprep.mubr.bf16.mxu0 %v10681_v26 }
 0x37c   :  { %v12645_v37 = vpop.f32.mrb[116].mxu1 }
 0x37d   :  { %14087 = vst [vmem:[#allocation9_spill] sm:$0xff] %v12645_v37  ;;  %v4995_v51 = vpop.f32.mrb[117].mxu1 }
 0x37e   :  { %v12650_v40 = vpop.f32.mrb[118].mxu1 }
 0x37f   :  { %14088 = vst [vmem:[#allocation10_spill] sm:$0xff] %v12650_v40  ;;  %v4998_v34 = vpop.f32.mrb[119].mxu1  ;;  %v10689_v40 = vld [vmem:[%s14077_s0 + $0x1010] ss:$36 sps:$4 sm:$0xff]  }
 0x380   :  { %v10690_v34 = vld [vmem:[%s14077_s0 + $0x720] ss:$36 sps:$4 sm:$0xff]  }
 0x381   :  { %5208 = vmatmul.mubr.bf16.gmra.mrb[224].mxu1 %v10683_v13  ;;  %v10691_v13 = vld [vmem:[%s14077_s0 + $0x105c] ss:$36 sps:$4 sm:$0xff]  }
 0x382   :  { %6042 = vmatmul.mubr.bf16.gmra.mrb[96].mxu0 %v10684_v22  ;;  %5215 = vmatprep.mubr.bf16.mxu1 %v10685_v2  ;;  %v10693_v2 = vld [vmem:[%s14077_s0 + $0x76c] ss:$36 sps:$4 sm:$0xff]  }
 0x383   :  { %6049 = vmatprep.mubr.bf16.mxu0 %v10687_v12 }
 0x384   :  { %v12661_v26 = vpop.f32.mrb[120].mxu1 }
 0x385   :  { %14089 = vst [vmem:[#allocation11_spill] sm:$0xff] %v12661_v26  ;;  %v5003_v51 = vpop.f32.mrb[121].mxu1 }
 0x386   :  { %v12666_v37 = vpop.f32.mrb[122].mxu1 }
 0x387   :  { %14090 = vst [vmem:[#allocation12_spill] sm:$0xff] %v12666_v37  ;;  %v5006_v22 = vpop.f32.mrb[123].mxu1  ;;  %v10695_v37 = vld [vmem:[%s14077_s0 + $0x1058] ss:$36 sps:$4 sm:$0xff]  }
 0x388   :  { %v10696_v22 = vld [vmem:[%s14077_s0 + $0x768] ss:$36 sps:$4 sm:$0xff]  }
 0x389   :  { %5216 = vmatmul.mubr.bf16.gmra.mrb[228].mxu1 %v10689_v40  ;;  %v10698_v40 = vld [vmem:[%s14077_s0 + $0x10a4] ss:$36 sps:$4 sm:$0xff]  }
 0x38a   :  { %6050 = vmatmul.mubr.bf16.gmra.mrb[100].mxu0 %v10690_v34  ;;  %5223 = vmatprep.mubr.bf16.mxu1 %v10691_v13  ;;  %v10700_v13 = vld [vmem:[%s14077_s0 + $0x7b4] ss:$36 sps:$4 sm:$0xff]  }
 0x38b   :  { %6057 = vmatprep.mubr.bf16.mxu0 %v10693_v2  ;;  %v12696_v2 = vld [vmem:[%s14078_s2] ss:$0 sm:$0xff] }
 0x38c   :  { %v12677_v12 = vpop.f32.mrb[124].mxu1 }
 0x38d   :  { %14091 = vst [vmem:[#allocation13_spill] sm:$0xff] %v12677_v12  ;;  %v5011_v51 = vpop.f32.mrb[125].mxu1 }
 0x38e   :  { %v12682_v26 = vpop.f32.mrb[126].mxu1 }
 0x38f   :  { %14092 = vst [vmem:[#allocation14_spill] sm:$0xff] %v12682_v26  ;;  %v5014_v34 = vpop.f32.mrb[127].mxu1  ;;  %v4217_v26 = vadd.f32 %v12696_v2, %v11545_v41  ;;  %v10704_v41 = vld [vmem:[%s14077_s0 + $0x10ec] ss:$36 sps:$4 sm:$0xff]  }
 0x391   :  { %5224 = vmatmul.mubr.bf16.gmra.mrb[232].mxu1 %v10695_v37 }
 0x392   :  { %6058 = vmatmul.mubr.bf16.gmra.mrb[104].mxu0 %v10696_v22  ;;  %5231 = vmatprep.mubr.bf16.mxu1 %v10698_v40  ;;  %v4220_v22 = vadd.f32 %v12696_v2, %v11556_v46  ;;  %v10703_v40 = vld [vmem:[%s14077_s0 + $0x7b0] ss:$36 sps:$4 sm:$0xff]  }
 0x393   :  { %6065 = vmatprep.mubr.bf16.mxu0 %v10700_v13 }
 0x394   :  { %v12698_v51 = vpop.f32.mrb[128].mxu1 }
 0x395   :  { %14093 = vst [vmem:[#allocation15_spill] sm:$0xff] %v12698_v51  ;;  %v5851_v12 = vpop.f32.mrb[0].mxu0  ;;  %v5019_v34 = vpop.f32.mrb[129].mxu1 }
 0x396   :  { %v12705_v37 = vadd.f32 %v5851_v12, %v4217_v26  ;;  %v5853_v30 = vpop.f32.mrb[1].mxu0  ;;  %v12707_v21 = vpop.f32.mrb[130].mxu1  ;;  %v10706_v26 = vld [vmem:[%s14077_s0 + $0x7fc] ss:$36 sps:$4 sm:$0xff]  }
 0x397   :  { %14095 = vst [vmem:[#allocation17_spill] sm:$0xff] %v12707_v21  ;;  %v5854_v13 = vpop.f32.mrb[2].mxu0  ;;  %v5022_v34 = vpop.f32.mrb[131].mxu1 }
 0x398   :  { %14094 = vst [vmem:[#allocation16_spill] sm:$0xff] %v12705_v37  ;;  %v12720_v30 = vadd.f32 %v5854_v13, %v4220_v22  ;;  %v5856_v12 = vpop.f32.mrb[3].mxu0  ;;  %v4225_v37 = vadd.f32 %v12696_v2, %v11561_v49  ;;  %v10708_v34 = vld [vmem:[%s14077_s0 + $0x10e8] ss:$36 sps:$4 sm:$0xff]   ;;  %v10710_v49 = vld [vmem:[%s14077_s0 + $0x1134] ss:$36 sps:$4 sm:$0xff]  }
 0x399   :  { %5232 = vmatmul.mubr.bf16.gmra.mrb[236].mxu1 %v10702_v62  ;;  %v4228_v62 = vadd.f32 %v12696_v2, %v11572_v54  ;;  %v4233_v12 = vadd.f32 %v12696_v2, %v11580_v58  ;;  %v10716_v58 = vld [vmem:[%s14077_s0 + $0x117c] ss:$36 sps:$4 sm:$0xff]  }
 0x39a   :  { %6066 = vmatmul.mubr.bf16.gmra.mrb[108].mxu0 %v10703_v40  ;;  %5239 = vmatprep.mubr.bf16.mxu1 %v10704_v41  ;;  %v10709_v40 = vld [vmem:[%s14077_s0 + $0x7f8] ss:$36 sps:$4 sm:$0xff]  }
 0x39b   :  { %6073 = vmatprep.mubr.bf16.mxu0 %v10706_v26 }
 0x39c   :  { %v12722_v46 = vpop.f32.mrb[132].mxu1 }
 0x39d   :  { %14096 = vst [vmem:[#allocation18_spill] sm:$0xff] %v12722_v46  ;;  %v5859_v21 = vpop.f32.mrb[4].mxu0  ;;  %v5027_v51 = vpop.f32.mrb[133].mxu1 }
 0x39e   :  { %v12729_v57 = vadd.f32 %v5859_v21, %v4225_v37  ;;  %v5861_v22 = vpop.f32.mrb[5].mxu0  ;;  %v12731_v13 = vpop.f32.mrb[134].mxu1  ;;  %v10712_v21 = vld [vmem:[%s14077_s0 + $0x844] ss:$36 sps:$4 sm:$0xff]  }
 0x39f   :  { %14097 = vst [vmem:[#allocation19_spill] sm:$0xff] %v12731_v13  ;;  %v5862_v51 = vpop.f32.mrb[6].mxu0  ;;  %v5030_v41 = vpop.f32.mrb[135].mxu1 }
 0x3a0   :  { %v12744_v37 = vadd.f32 %v5862_v51, %v4228_v62  ;;  %v5864_v26 = vpop.f32.mrb[7].mxu0  ;;  %v10714_v41 = vld [vmem:[%s14077_s0 + $0x1130] ss:$36 sps:$4 sm:$0xff]  }
 0x3a1   :  { %5240 = vmatmul.mubr.bf16.gmra.mrb[240].mxu1 %v10708_v34  ;;  %v4236_v34 = vadd.f32 %v12696_v2, %v11592_v63 }
 0x3a2   :  { %6074 = vmatmul.mubr.bf16.gmra.mrb[112].mxu0 %v10709_v40  ;;  %5247 = vmatprep.mubr.bf16.mxu1 %v10710_v49  ;;  %v10715_v40 = vld [vmem:[%s14077_s0 + $0x840] ss:$36 sps:$4 sm:$0xff]  }
 0x3a3   :  { %6081 = vmatprep.mubr.bf16.mxu0 %v10712_v21  ;;  %v10718_v21 = vld [vmem:[%s14077_s0 + $0x88c] ss:$36 sps:$4 sm:$0xff]  }
 0x3a4   :  { %v12746_v54 = vpop.f32.mrb[136].mxu1 }
 0x3a5   :  { %14098 = vst [vmem:[#allocation20_spill] sm:$0xff] %v12746_v54  ;;  %v5867_v22 = vpop.f32.mrb[8].mxu0  ;;  %v5035_v13 = vpop.f32.mrb[137].mxu1 }
 0x3a6   :  { %v12753_v46 = vadd.f32 %v5867_v22, %v4233_v12  ;;  %v5869_v62 = vpop.f32.mrb[9].mxu0  ;;  %v12755_v51 = vpop.f32.mrb[138].mxu1  ;;  %v4241_v22 = vadd.f32 %v12696_v2, %v11597_v3  ;;  %v10722_v3 = vld [vmem:[%s14077_s0 + $0x11c4] ss:$36 sps:$4 sm:$0xff]  }
 0x3a7   :  { %14099 = vst [vmem:[#allocation21_spill] sm:$0xff] %v12755_v51  ;;  %v5870_v13 = vpop.f32.mrb[10].mxu0  ;;  %v5038_v49 = vpop.f32.mrb[139].mxu1 }
 0x3a8   :  { %v12768_v26 = vadd.f32 %v5870_v13, %v4236_v34  ;;  %v5872_v12 = vpop.f32.mrb[11].mxu0  ;;  %v10720_v49 = vld [vmem:[%s14077_s0 + $0x1178] ss:$36 sps:$4 sm:$0xff]  }
 0x3a9   :  { %5248 = vmatmul.mubr.bf16.gmra.mrb[244].mxu1 %v10714_v41  ;;  %v4244_v41 = vadd.f32 %v12696_v2, %v11608_v8 }
 0x3aa   :  { %6082 = vmatmul.mubr.bf16.gmra.mrb[116].mxu0 %v10715_v40  ;;  %5255 = vmatprep.mubr.bf16.mxu1 %v10716_v58  ;;  %v10721_v40 = vld [vmem:[%s14077_s0 + $0x888] ss:$36 sps:$4 sm:$0xff]  }
 0x3ab   :  { %6089 = vmatprep.mubr.bf16.mxu0 %v10718_v21  ;;  %v10724_v21 = vld [vmem:[%s14077_s0 + $0x8d4] ss:$36 sps:$4 sm:$0xff]  }
 0x3ac   :  { %v12770_v63 = vpop.f32.mrb[140].mxu1 }
 0x3ad   :  { %14100 = vst [vmem:[#allocation22_spill] sm:$0xff] %v12770_v63  ;;  %v5875_v62 = vpop.f32.mrb[12].mxu0  ;;  %v5043_v51 = vpop.f32.mrb[141].mxu1 }
 0x3ae   :  { %v12777_v54 = vadd.f32 %v5875_v62, %v4241_v22  ;;  %v5877_v34 = vpop.f32.mrb[13].mxu0  ;;  %v12779_v13 = vpop.f32.mrb[142].mxu1  ;;  %v4249_v62 = vadd.f32 %v12696_v2, %v11613_v11  ;;  %v10730_v11 = vld [vmem:[%s14077_s0 + $0x20] ss:$36 sps:$4 sm:$0xff]  }
 0x3af   :  { %14101 = vst [vmem:[#allocation23_spill] sm:$0xff] %v12779_v13  ;;  %v5878_v51 = vpop.f32.mrb[14].mxu0  ;;  %v5046_v58 = vpop.f32.mrb[143].mxu1 }
 0x3b0   :  { %v12792_v12 = vadd.f32 %v5878_v51, %v4244_v41  ;;  %v5880_v22 = vpop.f32.mrb[15].mxu0  ;;  %v10726_v58 = vld [vmem:[%s14077_s0 + $0x11c0] ss:$36 sps:$4 sm:$0xff]  }
 0x3b1   :  { %5256 = vmatmul.mubr.bf16.gmra.mrb[248].mxu1 %v10720_v49  ;;  %v4252_v49 = vadd.f32 %v12696_v2, %v11624_v16 }
 0x3b2   :  { %6090 = vmatmul.mubr.bf16.gmra.mrb[120].mxu0 %v10721_v40  ;;  %5263 = vmatprep.mubr.bf16.mxu1 %v10722_v3  ;;  %v10727_v40 = vld [vmem:[%s14077_s0 + $0x8d0] ss:$36 sps:$4 sm:$0xff]  }
 0x3b3   :  { %6097 = vmatprep.mubr.bf16.mxu0 %v10724_v21  ;;  %v10728_v21 = vld [vmem:[%s14077_s0 + $0x91c] ss:$36 sps:$4 sm:$0xff]  }
 0x3b4   :  { %v12794_v8 = vpop.f32.mrb[144].mxu1 }
 0x3b5   :  { %14102 = vst [vmem:[#allocation24_spill] sm:$0xff] %v12794_v8  ;;  %v5883_v34 = vpop.f32.mrb[16].mxu0  ;;  %v5051_v13 = vpop.f32.mrb[145].mxu1 }
 0x3b6   :  { %v12801_v63 = vadd.f32 %v5883_v34, %v4249_v62  ;;  %v5885_v41 = vpop.f32.mrb[17].mxu0  ;;  %v12803_v51 = vpop.f32.mrb[146].mxu1  ;;  %v4257_v34 = vadd.f32 %v12696_v2, %v11629_v19  ;;  %v10735_v19 = vld [vmem:[%s14077_s0 + $0xb0] ss:$36 sps:$4 sm:$0xff]  }
 0x3b7   :  { %14103 = vst [vmem:[#allocation25_spill] sm:$0xff] %v12803_v51  ;;  %v5886_v13 = vpop.f32.mrb[18].mxu0  ;;  %v5054_v3 = vpop.f32.mrb[147].mxu1 }
 0x3b8   :  { %v12816_v22 = vadd.f32 %v5886_v13, %v4252_v49  ;;  %v5888_v62 = vpop.f32.mrb[19].mxu0  ;;  %v10732_v3 = vld [vmem:[%s14077_s0 + $0x68] ss:$36 sps:$4 sm:$0xff]  }
 0x3b9   :  { %5264 = vmatmul.mubr.bf16.gmra.mrb[252].mxu1 %v10726_v58  ;;  %v4260_v58 = vadd.f32 %v12696_v2, %v11640_v24 }
 0x3ba   :  { %6098 = vmatmul.mubr.bf16.gmra.mrb[124].mxu0 %v10727_v40  ;;  %9055 = vmatprep.mubr.bf16.mxu1 %v10730_v11  ;;  %v10731_v40 = vld [vmem:[%s14077_s0 + $0x918] ss:$36 sps:$4 sm:$0xff]  }
 0x3bb   :  { %6105 = vmatprep.mubr.bf16.mxu0 %v10728_v21  ;;  %v10733_v21 = vld [vmem:[%s14077_s0 + $0x964] ss:$36 sps:$4 sm:$0xff]  }
 0x3bc   :  { %v12818_v16 = vpop.f32.mrb[148].mxu1 }
 0x3bd   :  { %14104 = vst [vmem:[#allocation26_spill] sm:$0xff] %v12818_v16  ;;  %v5891_v41 = vpop.f32.mrb[20].mxu0  ;;  %v5059_v51 = vpop.f32.mrb[149].mxu1 }
 0x3be   :  { %v12825_v8 = vadd.f32 %v5891_v41, %v4257_v34  ;;  %v5893_v49 = vpop.f32.mrb[21].mxu0  ;;  %v12827_v13 = vpop.f32.mrb[150].mxu1  ;;  %v4265_v41 = vadd.f32 %v12696_v2, %v11648_v28  ;;  %v10740_v28 = vld [vmem:[%s14077_s0 + $0x140] ss:$36 sps:$4 sm:$0xff]  }
 0x3bf   :  { %14105 = vst [vmem:[#allocation27_spill] sm:$0xff] %v12827_v13  ;;  %v5894_v51 = vpop.f32.mrb[22].mxu0  ;;  %v5062_v11 = vpop.f32.mrb[151].mxu1 }
 0x3c0   :  { %v12840_v62 = vadd.f32 %v5894_v51, %v4260_v58  ;;  %v5896_v34 = vpop.f32.mrb[23].mxu0  ;;  %v10737_v11 = vld [vmem:[%s14077_s0 + $0xf8] ss:$36 sps:$4 sm:$0xff]  }
 0x3c1   :  { %9056 = vmatmul.mubr.bf16.vlgmr.msra.gmra.mrb[0].mxu1 %v10732_v3  ;;  %v4268_v3 = vadd.f32 %v12696_v2, %v11660_v33 }
 0x3c2   :  { %6106 = vmatmul.mubr.bf16.gmra.mrb[128].mxu0 %v10731_v40  ;;  %9059 = vmatprep.mubr.bf16.mxu1 %v10735_v19  ;;  %v10736_v40 = vld [vmem:[%s14077_s0 + $0x960] ss:$36 sps:$4 sm:$0xff]  }
 0x3c3   :  { %6113 = vmatprep.mubr.bf16.mxu0 %v10733_v21  ;;  %v10738_v21 = vld [vmem:[%s14077_s0 + $0x9ac] ss:$36 sps:$4 sm:$0xff]  }
 0x3c4   :  { %v12842_v24 = vpop.f32.mrb[152].mxu1 }
 0x3c5   :  { %14106 = vst [vmem:[#allocation28_spill] sm:$0xff] %v12842_v24  ;;  %v5899_v49 = vpop.f32.mrb[24].mxu0  ;;  %v5067_v13 = vpop.f32.mrb[153].mxu1 }
 0x3c6   :  { %v12849_v16 = vadd.f32 %v5899_v49, %v4265_v41  ;;  %v5901_v58 = vpop.f32.mrb[25].mxu0  ;;  %v12851_v51 = vpop.f32.mrb[154].mxu1  ;;  %v4273_v49 = vadd.f32 %v12696_v2, %v11665_v36  ;;  %v10745_v36 = vld [vmem:[%s14077_s0 + $0x1d0] ss:$36 sps:$4 sm:$0xff]  }
 0x3c7   :  { %14107 = vst [vmem:[#allocation29_spill] sm:$0xff] %v12851_v51  ;;  %v5902_v13 = vpop.f32.mrb[26].mxu0  ;;  %v5070_v19 = vpop.f32.mrb[155].mxu1 }
 0x3c8   :  { %v12864_v34 = vadd.f32 %v5902_v13, %v4268_v3  ;;  %v5904_v41 = vpop.f32.mrb[27].mxu0  ;;  %v10742_v19 = vld [vmem:[%s14077_s0 + $0x188] ss:$36 sps:$4 sm:$0xff]  }
 0x3c9   :  { %9060 = vmatmul.mubr.bf16.gmra.mrb[4].mxu1 %v10737_v11  ;;  %v4276_v11 = vadd.f32 %v12696_v2, %v11676_v42 }
 0x3ca   :  { %6114 = vmatmul.mubr.bf16.gmra.mrb[132].mxu0 %v10736_v40  ;;  %9063 = vmatprep.mubr.bf16.mxu1 %v10740_v28  ;;  %v10741_v40 = vld [vmem:[%s14077_s0 + $0x9a8] ss:$36 sps:$4 sm:$0xff]  }
 0x3cb   :  { %6121 = vmatprep.mubr.bf16.mxu0 %v10738_v21  ;;  %v10743_v21 = vld [vmem:[%s14077_s0 + $0x9f4] ss:$36 sps:$4 sm:$0xff]  }
 0x3cc   :  { %v12866_v33 = vpop.f32.mrb[156].mxu1 }
 0x3cd   :  { %14108 = vst [vmem:[#allocation30_spill] sm:$0xff] %v12866_v33  ;;  %v5907_v58 = vpop.f32.mrb[28].mxu0  ;;  %v5075_v51 = vpop.f32.mrb[157].mxu1 }
 0x3ce   :  { %v12873_v24 = vadd.f32 %v5907_v58, %v4273_v49  ;;  %v5909_v3 = vpop.f32.mrb[29].mxu0  ;;  %v12875_v13 = vpop.f32.mrb[158].mxu1  ;;  %v4281_v58 = vadd.f32 %v12696_v2, %v11681_v45  ;;  %v10750_v45 = vld [vmem:[%s14077_s0 + $0x260] ss:$36 sps:$4 sm:$0xff]  }
 0x3cf   :  { %14109 = vst [vmem:[#allocation31_spill] sm:$0xff] %v12875_v13  ;;  %v5910_v51 = vpop.f32.mrb[30].mxu0  ;;  %v5078_v28 = vpop.f32.mrb[159].mxu1 }
 0x3d0   :  { %v12888_v41 = vadd.f32 %v5910_v51, %v4276_v11  ;;  %v5912_v49 = vpop.f32.mrb[31].mxu0  ;;  %v10747_v28 = vld [vmem:[%s14077_s0 + $0x218] ss:$36 sps:$4 sm:$0xff]  }
 0x3d1   :  { %9064 = vmatmul.mubr.bf16.gmra.mrb[8].mxu1 %v10742_v19  ;;  %v4284_v19 = vadd.f32 %v12696_v2, %v11692_v52 }
 0x3d2   :  { %6122 = vmatmul.mubr.bf16.gmra.mrb[136].mxu0 %v10741_v40  ;;  %9067 = vmatprep.mubr.bf16.mxu1 %v10745_v36  ;;  %v10746_v40 = vld [vmem:[%s14077_s0 + $0x9f0] ss:$36 sps:$4 sm:$0xff]  }
 0x3d3   :  { %6129 = vmatprep.mubr.bf16.mxu0 %v10743_v21  ;;  %v10748_v21 = vld [vmem:[%s14077_s0 + $0xa3c] ss:$36 sps:$4 sm:$0xff]  }
 0x3d4   :  { %v12890_v42 = vpop.f32.mrb[160].mxu1 }
 0x3d5   :  { %14110 = vst [vmem:[#allocation32_spill] sm:$0xff] %v12890_v42  ;;  %v5915_v3 = vpop.f32.mrb[32].mxu0  ;;  %v5083_v13 = vpop.f32.mrb[161].mxu1 }
 0x3d6   :  { %v12897_v33 = vadd.f32 %v5915_v3, %v4281_v58  ;;  %v5917_v11 = vpop.f32.mrb[33].mxu0  ;;  %v12899_v51 = vpop.f32.mrb[162].mxu1  ;;  %v4289_v3 = vadd.f32 %v12696_v2, %v11697_v56  ;;  %v10755_v56 = vld [vmem:[%s14077_s0 + $0x2f0] ss:$36 sps:$4 sm:$0xff]  }
 0x3d7   :  { %14111 = vst [vmem:[#allocation33_spill] sm:$0xff] %v12899_v51  ;;  %v5918_v13 = vpop.f32.mrb[34].mxu0  ;;  %v5086_v36 = vpop.f32.mrb[163].mxu1 }
 0x3d8   :  { %v12912_v49 = vadd.f32 %v5918_v13, %v4284_v19  ;;  %v5920_v58 = vpop.f32.mrb[35].mxu0  ;;  %v10752_v36 = vld [vmem:[%s14077_s0 + $0x2a8] ss:$36 sps:$4 sm:$0xff]  }
 0x3d9   :  { %9068 = vmatmul.mubr.bf16.gmra.mrb[12].mxu1 %v10747_v28  ;;  %v4292_v28 = vadd.f32 %v12696_v2, %v11705_v61 }
 0x3da   :  { %6130 = vmatmul.mubr.bf16.gmra.mrb[140].mxu0 %v10746_v40  ;;  %9071 = vmatprep.mubr.bf16.mxu1 %v10750_v45  ;;  %v10751_v40 = vld [vmem:[%s14077_s0 + $0xa38] ss:$36 sps:$4 sm:$0xff]  }
 0x3db   :  { %6137 = vmatprep.mubr.bf16.mxu0 %v10748_v21  ;;  %v10753_v21 = vld [vmem:[%s14077_s0 + $0xa84] ss:$36 sps:$4 sm:$0xff]  }
 0x3dc   :  { %v12914_v52 = vpop.f32.mrb[164].mxu1 }
 0x3dd   :  { %14112 = vst [vmem:[#allocation34_spill] sm:$0xff] %v12914_v52  ;;  %v5923_v11 = vpop.f32.mrb[36].mxu0  ;;  %v5091_v51 = vpop.f32.mrb[165].mxu1 }
 0x3de   :  { %v12921_v42 = vadd.f32 %v5923_v11, %v4289_v3  ;;  %v5925_v19 = vpop.f32.mrb[37].mxu0  ;;  %v12923_v13 = vpop.f32.mrb[166].mxu1  ;;  %v4297_v11 = vadd.f32 %v12696_v2, %v11713_v4  ;;  %v10760_v4 = vld [vmem:[%s14077_s0 + $0x380] ss:$36 sps:$4 sm:$0xff]  }
 0x3df   :  { %14113 = vst [vmem:[#allocation35_spill] sm:$0xff] %v12923_v13  ;;  %v5926_v51 = vpop.f32.mrb[38].mxu0  ;;  %v5094_v45 = vpop.f32.mrb[167].mxu1 }
 0x3e0   :  { %v12936_v58 = vadd.f32 %v5926_v51, %v4292_v28  ;;  %v5928_v3 = vpop.f32.mrb[39].mxu0  ;;  %v10757_v45 = vld [vmem:[%s14077_s0 + $0x338] ss:$36 sps:$4 sm:$0xff]  }
 0x3e1   :  { %9072 = vmatmul.mubr.bf16.gmra.mrb[16].mxu1 %v10752_v36  ;;  %v4300_v36 = vadd.f32 %v12696_v2, %v11719_v7 }
 0x3e2   :  { %6138 = vmatmul.mubr.bf16.gmra.mrb[144].mxu0 %v10751_v40  ;;  %9075 = vmatprep.mubr.bf16.mxu1 %v10755_v56  ;;  %v10756_v40 = vld [vmem:[%s14077_s0 + $0xa80] ss:$36 sps:$4 sm:$0xff]  }
 0x3e3   :  { %6145 = vmatprep.mubr.bf16.mxu0 %v10753_v21  ;;  %v10758_v21 = vld [vmem:[%s14077_s0 + $0xacc] ss:$36 sps:$4 sm:$0xff]  }
 0x3e4   :  { %v12938_v61 = vpop.f32.mrb[168].mxu1 }
 0x3e5   :  { %14114 = vst [vmem:[#allocation36_spill] sm:$0xff] %v12938_v61  ;;  %v5931_v19 = vpop.f32.mrb[40].mxu0  ;;  %v5099_v13 = vpop.f32.mrb[169].mxu1 }
 0x3e6   :  { %v12945_v52 = vadd.f32 %v5931_v19, %v4297_v11  ;;  %v5933_v28 = vpop.f32.mrb[41].mxu0  ;;  %v12947_v51 = vpop.f32.mrb[170].mxu1  ;;  %v4305_v19 = vadd.f32 %v12696_v2, %v11730_v14  ;;  %v10765_v14 = vld [vmem:[%s14077_s0 + $0x410] ss:$36 sps:$4 sm:$0xff]  }
 0x3e7   :  { %14115 = vst [vmem:[#allocation37_spill] sm:$0xff] %v12947_v51  ;;  %v5934_v13 = vpop.f32.mrb[42].mxu0  ;;  %v5102_v56 = vpop.f32.mrb[171].mxu1 }
 0x3e8   :  { %v12960_v3 = vadd.f32 %v5934_v13, %v4300_v36  ;;  %v5936_v11 = vpop.f32.mrb[43].mxu0  ;;  %v10762_v56 = vld [vmem:[%s14077_s0 + $0x3c8] ss:$36 sps:$4 sm:$0xff]  }
 0x3e9   :  { %9076 = vmatmul.mubr.bf16.gmra.mrb[20].mxu1 %v10757_v45  ;;  %v4308_v45 = vadd.f32 %v12696_v2, %v11735_v18 }
 0x3ea   :  { %6146 = vmatmul.mubr.bf16.gmra.mrb[148].mxu0 %v10756_v40  ;;  %9079 = vmatprep.mubr.bf16.mxu1 %v10760_v4  ;;  %v10761_v40 = vld [vmem:[%s14077_s0 + $0xac8] ss:$36 sps:$4 sm:$0xff]  }
 0x3eb   :  { %6153 = vmatprep.mubr.bf16.mxu0 %v10758_v21  ;;  %v10763_v21 = vld [vmem:[%s14077_s0 + $0xb14] ss:$36 sps:$4 sm:$0xff]  }
 0x3ec   :  { %v12962_v7 = vpop.f32.mrb[172].mxu1 }
 0x3ed   :  { %14116 = vst [vmem:[#allocation38_spill] sm:$0xff] %v12962_v7  ;;  %v5939_v28 = vpop.f32.mrb[44].mxu0  ;;  %v5107_v51 = vpop.f32.mrb[173].mxu1 }
 0x3ee   :  { %v12969_v61 = vadd.f32 %v5939_v28, %v4305_v19  ;;  %v5941_v36 = vpop.f32.mrb[45].mxu0  ;;  %v12971_v13 = vpop.f32.mrb[174].mxu1  ;;  %v4313_v28 = vadd.f32 %v12696_v2, %v11746_v25  ;;  %v10770_v25 = vld [vmem:[%s14077_s0 + $0x4a0] ss:$36 sps:$4 sm:$0xff]  }
 0x3ef   :  { %14117 = vst [vmem:[#allocation39_spill] sm:$0xff] %v12971_v13  ;;  %v5942_v51 = vpop.f32.mrb[46].mxu0  ;;  %v5110_v4 = vpop.f32.mrb[175].mxu1 }
 0x3f0   :  { %v12984_v11 = vadd.f32 %v5942_v51, %v4308_v45  ;;  %v5944_v19 = vpop.f32.mrb[47].mxu0  ;;  %v10767_v4 = vld [vmem:[%s14077_s0 + $0x458] ss:$36 sps:$4 sm:$0xff]  }
 0x3f1   :  { %9080 = vmatmul.mubr.bf16.gmra.mrb[24].mxu1 %v10762_v56  ;;  %v4316_v56 = vadd.f32 %v12696_v2, %v11751_v29 }
 0x3f2   :  { %6154 = vmatmul.mubr.bf16.gmra.mrb[152].mxu0 %v10761_v40  ;;  %9083 = vmatprep.mubr.bf16.mxu1 %v10765_v14  ;;  %v10766_v40 = vld [vmem:[%s14077_s0 + $0xb10] ss:$36 sps:$4 sm:$0xff]  }
 0x3f3   :  { %6161 = vmatprep.mubr.bf16.mxu0 %v10763_v21  ;;  %v10768_v21 = vld [vmem:[%s14077_s0 + $0xb5c] ss:$36 sps:$4 sm:$0xff]  }
 0x3f4   :  { %v12986_v18 = vpop.f32.mrb[176].mxu1 }
 0x3f5   :  { %14118 = vst [vmem:[#allocation40_spill] sm:$0xff] %v12986_v18  ;;  %v5947_v36 = vpop.f32.mrb[48].mxu0  ;;  %v5115_v13 = vpop.f32.mrb[177].mxu1 }
 0x3f6   :  { %v12993_v7 = vadd.f32 %v5947_v36, %v4313_v28  ;;  %v5949_v45 = vpop.f32.mrb[49].mxu0  ;;  %v12995_v51 = vpop.f32.mrb[178].mxu1  ;;  %v4321_v36 = vadd.f32 %v12696_v2, %v11762_v35  ;;  %v10775_v35 = vld [vmem:[%s14077_s0 + $0x530] ss:$36 sps:$4 sm:$0xff]  }
 0x3f7   :  { %14119 = vst [vmem:[#allocation41_spill] sm:$0xff] %v12995_v51  ;;  %v5950_v13 = vpop.f32.mrb[50].mxu0  ;;  %v5118_v14 = vpop.f32.mrb[179].mxu1 }
 0x3f8   :  { %v13008_v19 = vadd.f32 %v5950_v13, %v4316_v56  ;;  %v5952_v28 = vpop.f32.mrb[51].mxu0  ;;  %v10772_v14 = vld [vmem:[%s14077_s0 + $0x4e8] ss:$36 sps:$4 sm:$0xff]  }
 0x3f9   :  { %9084 = vmatmul.mubr.bf16.gmra.mrb[28].mxu1 %v10767_v4  ;;  %v4324_v4 = vadd.f32 %v12696_v2, %v11767_v39 }
 0x3fa   :  { %6162 = vmatmul.mubr.bf16.gmra.mrb[156].mxu0 %v10766_v40  ;;  %9087 = vmatprep.mubr.bf16.mxu1 %v10770_v25  ;;  %v10771_v40 = vld [vmem:[%s14077_s0 + $0xb58] ss:$36 sps:$4 sm:$0xff]  }
 0x3fb   :  { %6169 = vmatprep.mubr.bf16.mxu0 %v10768_v21  ;;  %v10773_v21 = vld [vmem:[%s14077_s0 + $0xba4] ss:$36 sps:$4 sm:$0xff]  }
 0x3fc   :  { %v13010_v29 = vpop.f32.mrb[180].mxu1 }
 0x3fd   :  { %14120 = vst [vmem:[#allocation42_spill] sm:$0xff] %v13010_v29  ;;  %v5955_v45 = vpop.f32.mrb[52].mxu0  ;;  %v5123_v51 = vpop.f32.mrb[181].mxu1 }
 0x3fe   :  { %v13017_v18 = vadd.f32 %v5955_v45, %v4321_v36  ;;  %v5957_v56 = vpop.f32.mrb[53].mxu0  ;;  %v13019_v13 = vpop.f32.mrb[182].mxu1  ;;  %v4329_v45 = vadd.f32 %v12696_v2, %v11781_v50  ;;  %v10780_v50 = vld [vmem:[%s14077_s0 + $0x5c0] ss:$36 sps:$4 sm:$0xff]  }
 0x3ff   :  { %14121 = vst [vmem:[#allocation43_spill] sm:$0xff] %v13019_v13  ;;  %v5958_v51 = vpop.f32.mrb[54].mxu0  ;;  %v5126_v25 = vpop.f32.mrb[183].mxu1 }
 0x400   :  { %v13032_v28 = vadd.f32 %v5958_v51, %v4324_v4  ;;  %v5960_v36 = vpop.f32.mrb[55].mxu0  ;;  %v10777_v25 = vld [vmem:[%s14077_s0 + $0x578] ss:$36 sps:$4 sm:$0xff]  }
 0x401   :  { %9088 = vmatmul.mubr.bf16.gmra.mrb[32].mxu1 %v10772_v14  ;;  %v4332_v14 = vadd.f32 %v12696_v2, %v11787_v55 }
 0x402   :  { %6170 = vmatmul.mubr.bf16.gmra.mrb[160].mxu0 %v10771_v40  ;;  %9091 = vmatprep.mubr.bf16.mxu1 %v10775_v35  ;;  %v10776_v40 = vld [vmem:[%s14077_s0 + $0xba0] ss:$36 sps:$4 sm:$0xff]  }
 0x403   :  { %6177 = vmatprep.mubr.bf16.mxu0 %v10773_v21  ;;  %v10778_v21 = vld [vmem:[%s14077_s0 + $0xbec] ss:$36 sps:$4 sm:$0xff]  }
 0x404   :  { %v13034_v39 = vpop.f32.mrb[184].mxu1 }
 0x405   :  { %14122 = vst [vmem:[#allocation44_spill] sm:$0xff] %v13034_v39  ;;  %v5963_v56 = vpop.f32.mrb[56].mxu0  ;;  %v5131_v13 = vpop.f32.mrb[185].mxu1 }
 0x406   :  { %v13041_v29 = vadd.f32 %v5963_v56, %v4329_v45  ;;  %v5965_v4 = vpop.f32.mrb[57].mxu0  ;;  %v13043_v51 = vpop.f32.mrb[186].mxu1  ;;  %v4337_v56 = vadd.f32 %v12696_v2, %v11798_v1  ;;  %v10785_v1 = vld [vmem:[%s14077_s0 + $0x650] ss:$36 sps:$4 sm:$0xff]  }
 0x407   :  { %14123 = vst [vmem:[#allocation45_spill] sm:$0xff] %v13043_v51  ;;  %v5966_v13 = vpop.f32.mrb[58].mxu0  ;;  %v5134_v35 = vpop.f32.mrb[187].mxu1 }
 0x408   :  { %v13056_v36 = vadd.f32 %v5966_v13, %v4332_v14  ;;  %v5968_v45 = vpop.f32.mrb[59].mxu0  ;;  %v10782_v35 = vld [vmem:[%s14077_s0 + $0x608] ss:$36 sps:$4 sm:$0xff]  }
 0x409   :  { %9092 = vmatmul.mubr.bf16.gmra.mrb[36].mxu1 %v10777_v25  ;;  %v4340_v25 = vadd.f32 %v12696_v2, %v11803_v6 }
 0x40a   :  { %6178 = vmatmul.mubr.bf16.gmra.mrb[164].mxu0 %v10776_v40  ;;  %9095 = vmatprep.mubr.bf16.mxu1 %v10780_v50  ;;  %v10781_v40 = vld [vmem:[%s14077_s0 + $0xbe8] ss:$36 sps:$4 sm:$0xff]  }
 0x40b   :  { %6185 = vmatprep.mubr.bf16.mxu0 %v10778_v21  ;;  %v10783_v21 = vld [vmem:[%s14077_s0 + $0xc34] ss:$36 sps:$4 sm:$0xff]  }
 0x40c   :  { %v13058_v55 = vpop.f32.mrb[188].mxu1 }
 0x40d   :  { %14124 = vst [vmem:[#allocation46_spill] sm:$0xff] %v13058_v55  ;;  %v5971_v4 = vpop.f32.mrb[60].mxu0  ;;  %v5139_v51 = vpop.f32.mrb[189].mxu1 }
 0x40e   :  { %v13065_v39 = vadd.f32 %v5971_v4, %v4337_v56  ;;  %v5973_v14 = vpop.f32.mrb[61].mxu0  ;;  %v13067_v13 = vpop.f32.mrb[190].mxu1  ;;  %v9279_v4 = vadd.f32 %v12696_v2, %v12437_v43  ;;  %v10790_v43 = vld [vmem:[%s14077_s0 + $0x6e0] ss:$36 sps:$4 sm:$0xff]  }
 0x40f   :  { %14125 = vst [vmem:[#allocation47_spill] sm:$0xff] %v13067_v13  ;;  %v5974_v51 = vpop.f32.mrb[62].mxu0  ;;  %v5142_v50 = vpop.f32.mrb[191].mxu1 }
 0x410   :  { %v13080_v45 = vadd.f32 %v5974_v51, %v4340_v25  ;;  %v5976_v56 = vpop.f32.mrb[63].mxu0  ;;  %v10787_v50 = vld [vmem:[%s14077_s0 + $0x698] ss:$36 sps:$4 sm:$0xff]  }
 0x411   :  { %9096 = vmatmul.mubr.bf16.gmra.mrb[40].mxu1 %v10782_v35  ;;  %v9281_v35 = vadd.f32 %v12696_v2, %v12442_v48 }
 0x412   :  { %6186 = vmatmul.mubr.bf16.gmra.mrb[168].mxu0 %v10781_v40  ;;  %9099 = vmatprep.mubr.bf16.mxu1 %v10785_v1  ;;  %v10786_v40 = vld [vmem:[%s14077_s0 + $0xc30] ss:$36 sps:$4 sm:$0xff]  }
 0x413   :  { %6193 = vmatprep.mubr.bf16.mxu0 %v10783_v21  ;;  %v10788_v21 = vld [vmem:[%s14077_s0 + $0xc7c] ss:$36 sps:$4 sm:$0xff]  }
 0x414   :  { %v13082_v6 = vpop.f32.mrb[192].mxu1 }
 0x415   :  { %14126 = vst [vmem:[#allocation48_spill] sm:$0xff] %v13082_v6  ;;  %v5979_v14 = vpop.f32.mrb[64].mxu0  ;;  %v5147_v13 = vpop.f32.mrb[193].mxu1 }
 0x416   :  { %v13089_v55 = vadd.f32 %v9279_v4, %v5979_v14  ;;  %v5981_v25 = vpop.f32.mrb[65].mxu0  ;;  %v13091_v51 = vpop.f32.mrb[194].mxu1  ;;  %v9283_v14 = vadd.f32 %v12696_v2, %v12453_v60  ;;  %v10795_v60 = vld [vmem:[%s14077_s0 + $0x770] ss:$36 sps:$4 sm:$0xff]  }
 0x417   :  { %14127 = vst [vmem:[#allocation49_spill] sm:$0xff] %v13091_v51  ;;  %v5982_v13 = vpop.f32.mrb[66].mxu0  ;;  %v5150_v1 = vpop.f32.mrb[195].mxu1 }
 0x418   :  { %v13104_v56 = vadd.f32 %v9281_v35, %v5982_v13  ;;  %v5984_v4 = vpop.f32.mrb[67].mxu0  ;;  %v10792_v1 = vld [vmem:[%s14077_s0 + $0x728] ss:$36 sps:$4 sm:$0xff]  }
 0x419   :  { %9100 = vmatmul.mubr.bf16.gmra.mrb[44].mxu1 %v10787_v50  ;;  %v9285_v50 = vadd.f32 %v12696_v2, %v12458_v9 }
 0x41a   :  { %6194 = vmatmul.mubr.bf16.gmra.mrb[172].mxu0 %v10786_v40  ;;  %9103 = vmatprep.mubr.bf16.mxu1 %v10790_v43  ;;  %v10791_v40 = vld [vmem:[%s14077_s0 + $0xc78] ss:$36 sps:$4 sm:$0xff]  }
 0x41b   :  { %6201 = vmatprep.mubr.bf16.mxu0 %v10788_v21  ;;  %v10793_v21 = vld [vmem:[%s14077_s0 + $0xcc4] ss:$36 sps:$4 sm:$0xff]  }
 0x41c   :  { %v13106_v48 = vpop.f32.mrb[196].mxu1 }
 0x41d   :  { %14128 = vst [vmem:[#allocation50_spill] sm:$0xff] %v13106_v48  ;;  %v5987_v25 = vpop.f32.mrb[68].mxu0  ;;  %v5155_v51 = vpop.f32.mrb[197].mxu1 }
 0x41e   :  { %v13113_v6 = vadd.f32 %v9283_v14, %v5987_v25  ;;  %v5989_v35 = vpop.f32.mrb[69].mxu0  ;;  %v13115_v13 = vpop.f32.mrb[198].mxu1  ;;  %v9287_v25 = vadd.f32 %v12696_v2, %v12469_v17  ;;  %v10800_v17 = vld [vmem:[%s14077_s0 + $0x800] ss:$36 sps:$4 sm:$0xff]  }
 0x41f   :  { %14129 = vst [vmem:[#allocation51_spill] sm:$0xff] %v13115_v13  ;;  %v5990_v51 = vpop.f32.mrb[70].mxu0  ;;  %v5158_v43 = vpop.f32.mrb[199].mxu1 }
 0x420   :  { %v13128_v4 = vadd.f32 %v9285_v50, %v5990_v51  ;;  %v5992_v14 = vpop.f32.mrb[71].mxu0  ;;  %v10797_v43 = vld [vmem:[%s14077_s0 + $0x7b8] ss:$36 sps:$4 sm:$0xff]  }
 0x421   :  { %9104 = vmatmul.mubr.bf16.gmra.mrb[48].mxu1 %v10792_v1  ;;  %v9289_v1 = vadd.f32 %v12696_v2, %v12474_v0 }
 0x422   :  { %6202 = vmatmul.mubr.bf16.gmra.mrb[176].mxu0 %v10791_v40  ;;  %9107 = vmatprep.mubr.bf16.mxu1 %v10795_v60  ;;  %v10796_v40 = vld [vmem:[%s14077_s0 + $0xcc0] ss:$36 sps:$4 sm:$0xff]  }
 0x423   :  { %6209 = vmatprep.mubr.bf16.mxu0 %v10793_v21  ;;  %v10798_v21 = vld [vmem:[%s14077_s0 + $0xd0c] ss:$36 sps:$4 sm:$0xff]  }
 0x424   :  { %v13130_v9 = vpop.f32.mrb[200].mxu1 }
 0x425   :  { %14130 = vst [vmem:[#allocation52_spill] sm:$0xff] %v13130_v9  ;;  %v5995_v35 = vpop.f32.mrb[72].mxu0  ;;  %v5163_v13 = vpop.f32.mrb[201].mxu1 }
 0x426   :  { %v13137_v48 = vadd.f32 %v9287_v25, %v5995_v35  ;;  %v5997_v50 = vpop.f32.mrb[73].mxu0  ;;  %v13139_v51 = vpop.f32.mrb[202].mxu1  ;;  %v9291_v35 = vadd.f32 %v12696_v2, %v12485_v27  ;;  %v10805_v27 = vld [vmem:[%s14077_s0 + $0x890] ss:$36 sps:$4 sm:$0xff]  }
 0x427   :  { %14131 = vst [vmem:[#allocation53_spill] sm:$0xff] %v13139_v51  ;;  %v5998_v13 = vpop.f32.mrb[74].mxu0  ;;  %v5166_v60 = vpop.f32.mrb[203].mxu1 }
 0x428   :  { %v13152_v14 = vadd.f32 %v9289_v1, %v5998_v13  ;;  %v6000_v25 = vpop.f32.mrb[75].mxu0  ;;  %v10802_v60 = vld [vmem:[%s14077_s0 + $0x848] ss:$36 sps:$4 sm:$0xff]  }
 0x429   :  { %9108 = vmatmul.mubr.bf16.gmra.mrb[52].mxu1 %v10797_v43  ;;  %v9293_v43 = vadd.f32 %v12696_v2, %v12490_v32 }
 0x42a   :  { %6210 = vmatmul.mubr.bf16.gmra.mrb[180].mxu0 %v10796_v40  ;;  %9111 = vmatprep.mubr.bf16.mxu1 %v10800_v17  ;;  %v10801_v40 = vld [vmem:[%s14077_s0 + $0xd08] ss:$36 sps:$4 sm:$0xff]  }
 0x42b   :  { %6217 = vmatprep.mubr.bf16.mxu0 %v10798_v21  ;;  %v10803_v21 = vld [vmem:[%s14077_s0 + $0xd54] ss:$36 sps:$4 sm:$0xff]  }
 0x42c   :  { %v13154_v0 = vpop.f32.mrb[204].mxu1 }
 0x42d   :  { %14132 = vst [vmem:[#allocation54_spill] sm:$0xff] %v13154_v0  ;;  %v6003_v50 = vpop.f32.mrb[76].mxu0  ;;  %v5171_v51 = vpop.f32.mrb[205].mxu1 }
 0x42e   :  { %v13161_v9 = vadd.f32 %v9291_v35, %v6003_v50  ;;  %v6005_v1 = vpop.f32.mrb[77].mxu0  ;;  %v13163_v13 = vpop.f32.mrb[206].mxu1  ;;  %v9295_v50 = vadd.f32 %v12696_v2, %v12501_v44  ;;  %v10810_v44 = vld [vmem:[%s14077_s0 + $0x920] ss:$36 sps:$4 sm:$0xff]  }
 0x42f   :  { %14133 = vst [vmem:[#allocation55_spill] sm:$0xff] %v13163_v13  ;;  %v6006_v51 = vpop.f32.mrb[78].mxu0  ;;  %v5174_v17 = vpop.f32.mrb[207].mxu1 }
 0x430   :  { %v13176_v25 = vadd.f32 %v9293_v43, %v6006_v51  ;;  %v6008_v35 = vpop.f32.mrb[79].mxu0  ;;  %v10807_v17 = vld [vmem:[%s14077_s0 + $0x8d8] ss:$36 sps:$4 sm:$0xff]  }
 0x431   :  { %9112 = vmatmul.mubr.bf16.gmra.mrb[56].mxu1 %v10802_v60  ;;  %v9297_v60 = vadd.f32 %v12696_v2, %v12506_v53 }
 0x432   :  { %6218 = vmatmul.mubr.bf16.gmra.mrb[184].mxu0 %v10801_v40  ;;  %9115 = vmatprep.mubr.bf16.mxu1 %v10805_v27  ;;  %v10806_v40 = vld [vmem:[%s14077_s0 + $0xd50] ss:$36 sps:$4 sm:$0xff]  }
 0x433   :  { %6225 = vmatprep.mubr.bf16.mxu0 %v10803_v21  ;;  %v10808_v21 = vld [vmem:[%s14077_s0 + $0xd9c] ss:$36 sps:$4 sm:$0xff]  }
 0x434   :  { %v13178_v32 = vpop.f32.mrb[208].mxu1 }
 0x435   :  { %14134 = vst [vmem:[#allocation56_spill] sm:$0xff] %v13178_v32  ;;  %v6011_v1 = vpop.f32.mrb[80].mxu0  ;;  %v5179_v13 = vpop.f32.mrb[209].mxu1 }
 0x436   :  { %v13185_v0 = vadd.f32 %v9295_v50, %v6011_v1  ;;  %v6013_v43 = vpop.f32.mrb[81].mxu0  ;;  %v13187_v51 = vpop.f32.mrb[210].mxu1  ;;  %v9299_v1 = vadd.f32 %v12696_v2, %v12517_v10  ;;  %v10815_v10 = vld [vmem:[%s14077_s0 + $0x9b0] ss:$36 sps:$4 sm:$0xff]  }
 0x437   :  { %14135 = vst [vmem:[#allocation57_spill] sm:$0xff] %v13187_v51  ;;  %v6014_v13 = vpop.f32.mrb[82].mxu0  ;;  %v5182_v27 = vpop.f32.mrb[211].mxu1 }
 0x438   :  { %v13200_v35 = vadd.f32 %v9297_v60, %v6014_v13  ;;  %v6016_v50 = vpop.f32.mrb[83].mxu0  ;;  %v10812_v27 = vld [vmem:[%s14077_s0 + $0x968] ss:$36 sps:$4 sm:$0xff]  }
 0x439   :  { %9116 = vmatmul.mubr.bf16.gmra.mrb[60].mxu1 %v10807_v17  ;;  %v9301_v17 = vadd.f32 %v12696_v2, %v12522_v15 }
 0x43a   :  { %6226 = vmatmul.mubr.bf16.gmra.mrb[188].mxu0 %v10806_v40  ;;  %9119 = vmatprep.mubr.bf16.mxu1 %v10810_v44  ;;  %v10811_v40 = vld [vmem:[%s14077_s0 + $0xd98] ss:$36 sps:$4 sm:$0xff]  }
 0x43b   :  { %6233 = vmatprep.mubr.bf16.mxu0 %v10808_v21  ;;  %v10813_v21 = vld [vmem:[%s14077_s0 + $0xde4] ss:$36 sps:$4 sm:$0xff]  }
 0x43c   :  { %v13202_v53 = vpop.f32.mrb[212].mxu1 }
 0x43d   :  { %14136 = vst [vmem:[#allocation58_spill] sm:$0xff] %v13202_v53  ;;  %v6019_v43 = vpop.f32.mrb[84].mxu0  ;;  %v5187_v51 = vpop.f32.mrb[213].mxu1 }
 0x43e   :  { %v13209_v32 = vadd.f32 %v9299_v1, %v6019_v43  ;;  %v6021_v60 = vpop.f32.mrb[85].mxu0  ;;  %v13211_v13 = vpop.f32.mrb[214].mxu1  ;;  %v9303_v43 = vadd.f32 %v12696_v2, %v12533_v5  ;;  %v10820_v5 = vld [vmem:[%s14077_s0 + $0xa40] ss:$36 sps:$4 sm:$0xff]  }
 0x43f   :  { %14137 = vst [vmem:[#allocation59_spill] sm:$0xff] %v13211_v13  ;;  %v6022_v51 = vpop.f32.mrb[86].mxu0  ;;  %v5190_v44 = vpop.f32.mrb[215].mxu1 }
 0x440   :  { %v13224_v50 = vadd.f32 %v9301_v17, %v6022_v51  ;;  %v6024_v1 = vpop.f32.mrb[87].mxu0  ;;  %v10817_v44 = vld [vmem:[%s14077_s0 + $0x9f8] ss:$36 sps:$4 sm:$0xff]  }
 0x441   :  { %9120 = vmatmul.mubr.bf16.gmra.mrb[64].mxu1 %v10812_v27  ;;  %v9305_v27 = vadd.f32 %v12696_v2, %v12538_v31 }
 0x442   :  { %6234 = vmatmul.mubr.bf16.gmra.mrb[192].mxu0 %v10811_v40  ;;  %9123 = vmatprep.mubr.bf16.mxu1 %v10815_v10  ;;  %v10816_v40 = vld [vmem:[%s14077_s0 + $0xde0] ss:$36 sps:$4 sm:$0xff]  }
 0x443   :  { %6241 = vmatprep.mubr.bf16.mxu0 %v10813_v21  ;;  %v10818_v21 = vld [vmem:[%s14077_s0 + $0xe2c] ss:$36 sps:$4 sm:$0xff]  }
 0x444   :  { %v13226_v15 = vpop.f32.mrb[216].mxu1 }
 0x445   :  { %14138 = vst [vmem:[#allocation60_spill] sm:$0xff] %v13226_v15  ;;  %v6027_v60 = vpop.f32.mrb[88].mxu0  ;;  %v5195_v13 = vpop.f32.mrb[217].mxu1 }
 0x446   :  { %v13233_v53 = vadd.f32 %v9303_v43, %v6027_v60  ;;  %v6029_v17 = vpop.f32.mrb[89].mxu0  ;;  %v13235_v51 = vpop.f32.mrb[218].mxu1  ;;  %v9307_v60 = vadd.f32 %v12696_v2, %v12549_v47  ;;  %v10825_v47 = vld [vmem:[%s14077_s0 + $0xad0] ss:$36 sps:$4 sm:$0xff]  }
 0x447   :  { %14140 = vst [vmem:[#allocation62_spill] sm:$0xff] %v13235_v51  ;;  %v6030_v13 = vpop.f32.mrb[90].mxu0  ;;  %v5198_v10 = vpop.f32.mrb[219].mxu1 }
 0x448   :  { %14139 = vst [vmem:[#allocation61_spill] sm:$0xff] %v13233_v53  ;;  %v13248_v1 = vadd.f32 %v9305_v27, %v6030_v13  ;;  %v6032_v43 = vpop.f32.mrb[91].mxu0  ;;  %v10822_v10 = vld [vmem:[%s14077_s0 + $0xa88] ss:$36 sps:$4 sm:$0xff]  }
 0x449   :  { %9124 = vmatmul.mubr.bf16.gmra.mrb[68].mxu1 %v10817_v44  ;;  %v9309_v44 = vadd.f32 %v12696_v2, %v12554_v59 }
 0x44a   :  { %14141 = vst [vmem:[#allocation63_spill] sm:$0xff] %v13248_v1  ;;  %6242 = vmatmul.mubr.bf16.gmra.mrb[196].mxu0 %v10816_v40  ;;  %9127 = vmatprep.mubr.bf16.mxu1 %v10820_v5  ;;  %v10821_v40 = vld [vmem:[%s14077_s0 + $0xe28] ss:$36 sps:$4 sm:$0xff]  }
 0x44b   :  { %6249 = vmatprep.mubr.bf16.mxu0 %v10818_v21  ;;  %v10823_v21 = vld [vmem:[%s14077_s0 + $0xe74] ss:$36 sps:$4 sm:$0xff]  }
 0x44c   :  { %v13250_v31 = vpop.f32.mrb[220].mxu1 }
 0x44d   :  { %14142 = vst [vmem:[#allocation64_spill] sm:$0xff] %v13250_v31  ;;  %v6035_v17 = vpop.f32.mrb[92].mxu0  ;;  %v5203_v51 = vpop.f32.mrb[221].mxu1 }
 0x44e   :  { %v13257_v15 = vadd.f32 %v9307_v60, %v6035_v17  ;;  %v6037_v27 = vpop.f32.mrb[93].mxu0  ;;  %v13259_v13 = vpop.f32.mrb[222].mxu1  ;;  %v9311_v17 = vadd.f32 %v12696_v2, %v12565_v20  ;;  %v10830_v20 = vld [vmem:[%s14077_s0 + $0xb60] ss:$36 sps:$4 sm:$0xff]  }
 0x44f   :  { %14144 = vst [vmem:[#allocation66_spill] sm:$0xff] %v13259_v13  ;;  %v6038_v51 = vpop.f32.mrb[94].mxu0  ;;  %v5206_v5 = vpop.f32.mrb[223].mxu1 }
 0x450   :  { %14143 = vst [vmem:[#allocation65_spill] sm:$0xff] %v13257_v15  ;;  %v13272_v43 = vadd.f32 %v9309_v44, %v6038_v51  ;;  %v6040_v60 = vpop.f32.mrb[95].mxu0  ;;  %v10827_v5 = vld [vmem:[%s14077_s0 + $0xb18] ss:$36 sps:$4 sm:$0xff]  }
 0x451   :  { %9128 = vmatmul.mubr.bf16.gmra.mrb[72].mxu1 %v10822_v10  ;;  %v9313_v10 = vadd.f32 %v12696_v2, %v12570_v23 }
 0x452   :  { %14145 = vst [vmem:[#allocation67_spill] sm:$0xff] %v13272_v43  ;;  %6250 = vmatmul.mubr.bf16.gmra.mrb[200].mxu0 %v10821_v40  ;;  %9131 = vmatprep.mubr.bf16.mxu1 %v10825_v47  ;;  %v10826_v40 = vld [vmem:[%s14077_s0 + $0xe70] ss:$36 sps:$4 sm:$0xff]  }
 0x453   :  { %6257 = vmatprep.mubr.bf16.mxu0 %v10823_v21  ;;  %v10828_v21 = vld [vmem:[%s14077_s0 + $0xebc] ss:$36 sps:$4 sm:$0xff]  }
 0x454   :  { %v13274_v59 = vpop.f32.mrb[224].mxu1 }
 0x455   :  { %14146 = vst [vmem:[#allocation68_spill] sm:$0xff] %v13274_v59  ;;  %v6043_v27 = vpop.f32.mrb[96].mxu0  ;;  %v5211_v13 = vpop.f32.mrb[225].mxu1 }
 0x456   :  { %v13281_v31 = vadd.f32 %v9311_v17, %v6043_v27  ;;  %v6045_v44 = vpop.f32.mrb[97].mxu0  ;;  %v13283_v51 = vpop.f32.mrb[226].mxu1  ;;  %v9315_v27 = vadd.f32 %v12696_v2, %v12581_v38  ;;  %v10831_v38 = vld [vmem:[%s14077_s0 + $0xeb8] ss:$36 sps:$4 sm:$0xff]   ;;  %v10835_v2 = vld [vmem:[%s14077_s0 + $0xbf0] ss:$36 sps:$4 sm:$0xff]  }
 0x457   :  { %14148 = vst [vmem:[#allocation70_spill] sm:$0xff] %v13283_v51  ;;  %v6046_v13 = vpop.f32.mrb[98].mxu0  ;;  %v5214_v47 = vpop.f32.mrb[227].mxu1 }
 0x458   :  { %14147 = vst [vmem:[#allocation69_spill] sm:$0xff] %v13281_v31  ;;  %v13296_v60 = vadd.f32 %v9313_v10, %v6046_v13  ;;  %v6048_v17 = vpop.f32.mrb[99].mxu0  ;;  %v10832_v47 = vld [vmem:[%s14077_s0 + $0xba8] ss:$36 sps:$4 sm:$0xff]  }
 0x459   :  { %9132 = vmatmul.mubr.bf16.gmra.mrb[76].mxu1 %v10827_v5  ;;  %v13312_v5 = vld [vmem:[%s14078_s2] ss:$0 sm:$0xff]  ;;  %v10833_v17 = vld [vmem:[%s14077_s0 + $0xf04] ss:$36 sps:$4 sm:$0xff]  }
 0x45a   :  { %14149 = vst [vmem:[#allocation71_spill] sm:$0xff] %v13296_v60  ;;  %6258 = vmatmul.mubr.bf16.gmra.mrb[204].mxu0 %v10826_v40  ;;  %9135 = vmatprep.mubr.bf16.mxu1 %v10830_v20  ;;  %v14153_v40 = vld [vmem:[#allocation2_spill] sm:$0xff] }
 0x45b   :  { %6265 = vmatprep.mubr.bf16.mxu0 %v10828_v21  ;;  %v9317_v20 = vadd.f32 %v13312_v5, %v14153_v40  ;;  %v14156_v40 = vld [vmem:[#allocation3_spill] sm:$0xff] }
 0x45c   :  { %v13298_v23 = vpop.f32.mrb[228].mxu1 }
 0x45d   :  { %14150 = vst [vmem:[#allocation72_spill] sm:$0xff] %v13298_v23  ;;  %v6051_v44 = vpop.f32.mrb[100].mxu0  ;;  %v5219_v51 = vpop.f32.mrb[229].mxu1 }
 0x45e   :  { %v13305_v59 = vadd.f32 %v9315_v27, %v6051_v44  ;;  %v6053_v10 = vpop.f32.mrb[101].mxu0  ;;  %v13307_v13 = vpop.f32.mrb[230].mxu1 }
 0x45f   :  { %14152 = vst [vmem:[#allocation74_spill] sm:$0xff] %v13307_v13  ;;  %v6054_v51 = vpop.f32.mrb[102].mxu0  ;;  %v5222_v21 = vpop.f32.mrb[231].mxu1  ;;  %v9319_v13 = vadd.f32 %v13312_v5, %v14156_v40 }
 0x460   :  { %14151 = vst [vmem:[#allocation73_spill] sm:$0xff] %v13305_v59  ;;  %v13325_v27 = vadd.f32 %v9317_v20, %v6054_v51  ;;  %v6056_v44 = vpop.f32.mrb[103].mxu0  ;;  %v10837_v21 = vld [vmem:[%s14077_s0 + $0xc38] ss:$36 sps:$4 sm:$0xff]  }
 0x461   :  { %9136 = vmatmul.mubr.bf16.gmra.mrb[80].mxu1 %v10832_v47  ;;  %v14159_v47 = vld [vmem:[#allocation4_spill] sm:$0xff]  ;;  %v14192_v59 = vld [vmem:[#allocation17_spill] sm:$0xff] }
 0x462   :  { %14154 = vst [vmem:[#allocation2_spill] sm:$0xff] %v13325_v27  ;;  %6266 = vmatmul.mubr.bf16.gmra.mrb[208].mxu0 %v10831_v38  ;;  %9139 = vmatprep.mubr.bf16.mxu1 %v10835_v2  ;;  %v9321_v38 = vadd.f32 %v13312_v5, %v14159_v47  ;;  %v10836_v2 = vld [vmem:[%s14077_s0 + $0xf00] ss:$36 sps:$4 sm:$0xff]   ;;  %v14162_v47 = vld [vmem:[#allocation5_spill] sm:$0xff] }
 0x463   :  { %6273 = vmatprep.mubr.bf16.mxu0 %v10833_v17 }
 0x464   :  { %v13327_v10 = vpop.f32.mrb[232].mxu1 }
 0x465   :  { %14155 = vst [vmem:[#allocation75_spill] sm:$0xff] %v13327_v10  ;;  %v6059_v23 = vpop.f32.mrb[104].mxu0  ;;  %v5227_v60 = vpop.f32.mrb[233].mxu1 }
 0x466   :  { %v13334_v31 = vadd.f32 %v9319_v13, %v6059_v23  ;;  %v6061_v20 = vpop.f32.mrb[105].mxu0  ;;  %v13336_v51 = vpop.f32.mrb[234].mxu1  ;;  %v10840_v60 = vld [vmem:[%s14077_s0 + $0xc80] ss:$36 sps:$4 sm:$0xff]   ;;  %v10838_v23 = vld [vmem:[%s14077_s0 + $0xf4c] ss:$36 sps:$4 sm:$0xff]  }
 0x467   :  { %14158 = vst [vmem:[#allocation76_spill] sm:$0xff] %v13336_v51  ;;  %v6062_v17 = vpop.f32.mrb[106].mxu0  ;;  %v5230_v44 = vpop.f32.mrb[235].mxu1  ;;  %v9323_v51 = vadd.f32 %v13312_v5, %v14162_v47 }
 0x468   :  { %14157 = vst [vmem:[#allocation3_spill] sm:$0xff] %v13334_v31  ;;  %v13349_v13 = vadd.f32 %v9321_v38, %v6062_v17  ;;  %v6064_v40 = vpop.f32.mrb[107].mxu0  ;;  %v10842_v44 = vld [vmem:[%s14077_s0 + $0xcc8] ss:$36 sps:$4 sm:$0xff]  }
 0x469   :  { %9140 = vmatmul.mubr.bf16.gmra.mrb[84].mxu1 %v10837_v21  ;;  %v14165_v21 = vld [vmem:[#allocation6_spill] sm:$0xff] }
 0x46a   :  { %14160 = vst [vmem:[#allocation4_spill] sm:$0xff] %v13349_v13  ;;  %6274 = vmatmul.mubr.bf16.gmra.mrb[212].mxu0 %v10836_v2  ;;  %9143 = vmatprep.mubr.bf16.mxu1 %v10840_v60  ;;  %v9325_v2 = vadd.f32 %v13312_v5, %v14165_v21  ;;  %v10841_v60 = vld [vmem:[%s14077_s0 + $0xf48] ss:$36 sps:$4 sm:$0xff]  }
 0x46b   :  { %6281 = vmatprep.mubr.bf16.mxu0 %v10838_v23  ;;  %v14168_v21 = vld [vmem:[#allocation7_spill] sm:$0xff] }
 0x46c   :  { %v13351_v20 = vpop.f32.mrb[236].mxu1 }
 0x46d   :  { %14161 = vst [vmem:[#allocation77_spill] sm:$0xff] %v13351_v20  ;;  %v6067_v10 = vpop.f32.mrb[108].mxu0  ;;  %v5235_v31 = vpop.f32.mrb[237].mxu1 }
 0x46e   :  { %v13358_v27 = vadd.f32 %v9323_v51, %v6067_v10  ;;  %v6069_v38 = vpop.f32.mrb[109].mxu0  ;;  %v13360_v17 = vpop.f32.mrb[238].mxu1  ;;  %v10845_v31 = vld [vmem:[%s14077_s0 + $0xd10] ss:$36 sps:$4 sm:$0xff]  }
 0x46f   :  { %14164 = vst [vmem:[#allocation78_spill] sm:$0xff] %v13360_v17  ;;  %v6070_v23 = vpop.f32.mrb[110].mxu0  ;;  %v5238_v40 = vpop.f32.mrb[239].mxu1  ;;  %v10843_v10 = vld [vmem:[%s14077_s0 + $0xf94] ss:$36 sps:$4 sm:$0xff]   ;;  %v9327_v17 = vadd.f32 %v13312_v5, %v14168_v21 }
 0x470   :  { %14163 = vst [vmem:[#allocation5_spill] sm:$0xff] %v13358_v27  ;;  %v13373_v51 = vadd.f32 %v9325_v2, %v6070_v23  ;;  %v6072_v47 = vpop.f32.mrb[111].mxu0  ;;  %v10847_v40 = vld [vmem:[%s14077_s0 + $0xd58] ss:$36 sps:$4 sm:$0xff]  }
 0x471   :  { %9144 = vmatmul.mubr.bf16.gmra.mrb[88].mxu1 %v10842_v44  ;;  %v14171_v44 = vld [vmem:[#allocation8_spill] sm:$0xff] }
 0x472   :  { %14166 = vst [vmem:[#allocation6_spill] sm:$0xff] %v13373_v51  ;;  %6282 = vmatmul.mubr.bf16.gmra.mrb[216].mxu0 %v10841_v60  ;;  %9147 = vmatprep.mubr.bf16.mxu1 %v10845_v31  ;;  %v9329_v60 = vadd.f32 %v13312_v5, %v14171_v44  ;;  %v10846_v31 = vld [vmem:[%s14077_s0 + $0xf90] ss:$36 sps:$4 sm:$0xff]   ;;  %v14174_v44 = vld [vmem:[#allocation9_spill] sm:$0xff] }
 0x473   :  { %6289 = vmatprep.mubr.bf16.mxu0 %v10843_v10 }
 0x474   :  { %v13375_v38 = vpop.f32.mrb[240].mxu1 }
 0x475   :  { %14167 = vst [vmem:[#allocation79_spill] sm:$0xff] %v13375_v38  ;;  %v6075_v20 = vpop.f32.mrb[112].mxu0  ;;  %v5243_v13 = vpop.f32.mrb[241].mxu1 }
 0x476   :  { %v13382_v27 = vadd.f32 %v9327_v17, %v6075_v20  ;;  %v6077_v2 = vpop.f32.mrb[113].mxu0  ;;  %v13384_v23 = vpop.f32.mrb[242].mxu1  ;;  %v10850_v13 = vld [vmem:[%s14077_s0 + $0xda0] ss:$36 sps:$4 sm:$0xff]  }
 0x477   :  { %14170 = vst [vmem:[#allocation80_spill] sm:$0xff] %v13384_v23  ;;  %v6078_v10 = vpop.f32.mrb[114].mxu0  ;;  %v5246_v47 = vpop.f32.mrb[243].mxu1  ;;  %v10848_v20 = vld [vmem:[%s14077_s0 + $0xfdc] ss:$36 sps:$4 sm:$0xff]   ;;  %v9331_v23 = vadd.f32 %v13312_v5, %v14174_v44 }
 0x478   :  { %14169 = vst [vmem:[#allocation7_spill] sm:$0xff] %v13382_v27  ;;  %v13397_v17 = vadd.f32 %v9329_v60, %v6078_v10  ;;  %v6080_v21 = vpop.f32.mrb[115].mxu0  ;;  %v10852_v47 = vld [vmem:[%s14077_s0 + $0xde8] ss:$36 sps:$4 sm:$0xff]  }
 0x479   :  { %9148 = vmatmul.mubr.bf16.gmra.mrb[92].mxu1 %v10847_v40  ;;  %v14177_v40 = vld [vmem:[#allocation10_spill] sm:$0xff] }
 0x47a   :  { %14172 = vst [vmem:[#allocation8_spill] sm:$0xff] %v13397_v17  ;;  %6290 = vmatmul.mubr.bf16.gmra.mrb[220].mxu0 %v10846_v31  ;;  %9151 = vmatprep.mubr.bf16.mxu1 %v10850_v13  ;;  %v9333_v31 = vadd.f32 %v13312_v5, %v14177_v40  ;;  %v10851_v13 = vld [vmem:[%s14077_s0 + $0xfd8] ss:$36 sps:$4 sm:$0xff]   ;;  %v14180_v40 = vld [vmem:[#allocation11_spill] sm:$0xff] }
 0x47b   :  { %6297 = vmatprep.mubr.bf16.mxu0 %v10848_v20 }
 0x47c   :  { %v13399_v2 = vpop.f32.mrb[244].mxu1 }
 0x47d   :  { %14173 = vst [vmem:[#allocation81_spill] sm:$0xff] %v13399_v2  ;;  %v6083_v38 = vpop.f32.mrb[116].mxu0  ;;  %v5251_v27 = vpop.f32.mrb[245].mxu1 }
 0x47e   :  { %v13406_v51 = vadd.f32 %v9331_v23, %v6083_v38  ;;  %v6085_v60 = vpop.f32.mrb[117].mxu0  ;;  %v13408_v10 = vpop.f32.mrb[246].mxu1  ;;  %v10855_v27 = vld [vmem:[%s14077_s0 + $0xe30] ss:$36 sps:$4 sm:$0xff]   ;;  %v10853_v38 = vld [vmem:[%s14077_s0 + $0x1024] ss:$36 sps:$4 sm:$0xff]  }
 0x47f   :  { %14176 = vst [vmem:[#allocation82_spill] sm:$0xff] %v13408_v10  ;;  %v6086_v20 = vpop.f32.mrb[118].mxu0  ;;  %v5254_v21 = vpop.f32.mrb[247].mxu1  ;;  %v9335_v10 = vadd.f32 %v13312_v5, %v14180_v40 }
 0x480   :  { %14175 = vst [vmem:[#allocation9_spill] sm:$0xff] %v13406_v51  ;;  %v13421_v23 = vadd.f32 %v9333_v31, %v6086_v20  ;;  %v6088_v44 = vpop.f32.mrb[119].mxu0  ;;  %v10857_v21 = vld [vmem:[%s14077_s0 + $0xe78] ss:$36 sps:$4 sm:$0xff]  }
 0x481   :  { %9152 = vmatmul.mubr.bf16.gmra.mrb[96].mxu1 %v10852_v47  ;;  %v14183_v47 = vld [vmem:[#allocation12_spill] sm:$0xff] }
 0x482   :  { %14178 = vst [vmem:[#allocation10_spill] sm:$0xff] %v13421_v23  ;;  %6298 = vmatmul.mubr.bf16.gmra.mrb[224].mxu0 %v10851_v13  ;;  %9155 = vmatprep.mubr.bf16.mxu1 %v10855_v27  ;;  %v9337_v13 = vadd.f32 %v13312_v5, %v14183_v47  ;;  %v10856_v27 = vld [vmem:[%s14077_s0 + $0x1020] ss:$36 sps:$4 sm:$0xff]   ;;  %v14186_v47 = vld [vmem:[#allocation13_spill] sm:$0xff] }
 0x483   :  { %6305 = vmatprep.mubr.bf16.mxu0 %v10853_v38 }
 0x484   :  { %v13423_v60 = vpop.f32.mrb[248].mxu1 }
 0x485   :  { %14179 = vst [vmem:[#allocation83_spill] sm:$0xff] %v13423_v60  ;;  %v6091_v2 = vpop.f32.mrb[120].mxu0  ;;  %v5259_v17 = vpop.f32.mrb[249].mxu1 }
 0x486   :  { %v13430_v51 = vadd.f32 %v9335_v10, %v6091_v2  ;;  %v6093_v31 = vpop.f32.mrb[121].mxu0  ;;  %v13432_v20 = vpop.f32.mrb[250].mxu1  ;;  %v10860_v17 = vld [vmem:[%s14077_s0 + $0xec0] ss:$36 sps:$4 sm:$0xff]   ;;  %v10858_v2 = vld [vmem:[%s14077_s0 + $0x106c] ss:$36 sps:$4 sm:$0xff]  }
 0x487   :  { %14182 = vst [vmem:[#allocation84_spill] sm:$0xff] %v13432_v20  ;;  %v6094_v38 = vpop.f32.mrb[122].mxu0  ;;  %v5262_v44 = vpop.f32.mrb[251].mxu1  ;;  %v9339_v20 = vadd.f32 %v13312_v5, %v14186_v47 }
 0x488   :  { %14181 = vst [vmem:[#allocation11_spill] sm:$0xff] %v13430_v51  ;;  %v13445_v10 = vadd.f32 %v9337_v13, %v6094_v38  ;;  %v6096_v40 = vpop.f32.mrb[123].mxu0  ;;  %v10862_v44 = vld [vmem:[%s14077_s0 + $0xf08] ss:$36 sps:$4 sm:$0xff]  }
 0x489   :  { %9156 = vmatmul.mubr.bf16.gmra.mrb[100].mxu1 %v10857_v21  ;;  %v14189_v21 = vld [vmem:[#allocation14_spill] sm:$0xff] }
 0x48a   :  { %14184 = vst [vmem:[#allocation12_spill] sm:$0xff] %v13445_v10  ;;  %6306 = vmatmul.mubr.bf16.gmra.mrb[228].mxu0 %v10856_v27  ;;  %9159 = vmatprep.mubr.bf16.mxu1 %v10860_v17  ;;  %v9341_v27 = vadd.f32 %v13312_v5, %v14189_v21  ;;  %v10861_v17 = vld [vmem:[%s14077_s0 + $0x1068] ss:$36 sps:$4 sm:$0xff]  }
 0x48b   :  { %6313 = vmatprep.mubr.bf16.mxu0 %v10858_v2 }
 0x48c   :  { %v13447_v31 = vpop.f32.mrb[252].mxu1 }
 0x48d   :  { %14185 = vst [vmem:[#allocation85_spill] sm:$0xff] %v13447_v31  ;;  %v6099_v60 = vpop.f32.mrb[124].mxu0  ;;  %v5267_v51 = vpop.f32.mrb[253].mxu1 }
 0x48e   :  { %v13454_v23 = vadd.f32 %v9339_v20, %v6099_v60  ;;  %v6101_v13 = vpop.f32.mrb[125].mxu0  ;;  %v13456_v38 = vpop.f32.mrb[254].mxu1  ;;  %v10865_v51 = vld [vmem:[%s14077_s0 + $0xf50] ss:$36 sps:$4 sm:$0xff]  }
 0x48f   :  { %14188 = vst [vmem:[#allocation86_spill] sm:$0xff] %v13456_v38  ;;  %v6102_v2 = vpop.f32.mrb[126].mxu0  ;;  %v5270_v40 = vpop.f32.mrb[255].mxu1  ;;  %v10863_v60 = vld [vmem:[%s14077_s0 + $0x10b4] ss:$36 sps:$4 sm:$0xff]   ;;  %v14191_v13 = vld [vmem:[#allocation15_spill] sm:$0xff] }
 0x490   :  { %14187 = vst [vmem:[#allocation13_spill] sm:$0xff] %v13454_v23  ;;  %v13469_v20 = vadd.f32 %v9341_v27, %v6102_v2  ;;  %v6104_v47 = vpop.f32.mrb[127].mxu0  ;;  %v9343_v21 = vadd.f32 %v13312_v5, %v14191_v13  ;;  %v10867_v40 = vld [vmem:[%s14077_s0 + $0xf98] ss:$36 sps:$4 sm:$0xff]   ;;  %v9345_v27 = vadd.f32 %v13312_v5, %v14192_v59 }
 0x491   :  { %9160 = vmatmul.mubr.bf16.gmra.mrb[104].mxu1 %v10862_v44  ;;  %v10866_v47 = vld [vmem:[%s14077_s0 + $0x10b0] ss:$36 sps:$4 sm:$0xff]   ;;  %v10868_v59 = vld [vmem:[%s14077_s0 + $0x10fc] ss:$36 sps:$4 sm:$0xff]  }
 0x492   :  { %14190 = vst [vmem:[#allocation14_spill] sm:$0xff] %v13469_v20  ;;  %6314 = vmatmul.mubr.bf16.gmra.mrb[232].mxu0 %v10861_v17  ;;  %9163 = vmatprep.mubr.bf16.mxu1 %v10865_v51  ;;  %v14194_v17 = vld [vmem:[#allocation16_spill] sm:$0xff] }
 0x493   :  { %6321 = vmatprep.mubr.bf16.mxu0 %v10863_v60 }
 0x494   :  { %v9057_v38 = vpop.f32.mrb[0].mxu1 }
 0x495   :  { %v6107_v31 = vpop.f32.mrb[128].mxu0  ;;  %v6405_v10 = vadd.f32 %v12729_v57, %v9057_v38  ;;  %v6396_v23 = vpop.f32.mrb[1].mxu1  ;;  %v10870_v57 = vld [vmem:[%s14077_s0 + $0xfe0] ss:$36 sps:$4 sm:$0xff]  }
 0x496   :  { %v13479_v2 = vadd.f32 %v9343_v21, %v6107_v31  ;;  %v6109_v44 = vpop.f32.mrb[129].mxu0  ;;  %v6397_v51 = vadd.f32 %v14194_v17, %v6396_v23  ;;  %v9058_v60 = vpop.f32.mrb[2].mxu1 }
 0x497   :  { %v6110_v38 = vpop.f32.mrb[130].mxu0  ;;  %v6408_v13 = vadd.f32 %v12744_v37, %v9058_v60  ;;  %v6399_v20 = vpop.f32.mrb[3].mxu1  ;;  %v6909_v44 = vmax.f32 %v6405_v10, 0.0  ;;  %v14195_v37 = vld [vmem:[#allocation18_spill] sm:$0xff] }
 0x498   :  { %14193 = vst [vmem:[#allocation15_spill] sm:$0xff] %v13479_v2  ;;  %v13492_v31 = vadd.f32 %v9345_v27, %v6110_v38  ;;  %v6112_v23 = vpop.f32.mrb[131].mxu0  ;;  %v6400_v21 = vadd.f32 %v12720_v30, %v6399_v20  ;;  %v6907_v2 = vmax.f32 %v6397_v51, 0.0  ;;  %v9347_v60 = vadd.f32 %v13312_v5, %v14195_v37  ;;  %v10872_v20 = vld [vmem:[%s14077_s0 + $0x1028] ss:$36 sps:$4 sm:$0xff]  }
 0x499   :  { %v6910_v17 = vmax.f32 %v6408_v13, 0.0  ;;  %9164 = vmatmul.mubr.bf16.gmra.mrb[108].mxu1 %v10867_v40  ;;  %v14196_v40 = vld [vmem:[#allocation19_spill] sm:$0xff] }
 0x49a   :  { %v6908_v1 = vmax.f32 %v6400_v21, 0.0  ;;  %6322 = vmatmul.mubr.bf16.gmra.mrb[236].mxu0 %v10866_v47  ;;  %9167 = vmatprep.mubr.bf16.mxu1 %v10870_v57  ;;  %v9349_v51 = vadd.f32 %v13312_v5, %v14196_v40 }
 0x49b   :  { %v8592_v43 = vpack.c.bf16 %v6910_v17, %v6909_v44  ;;  %6329 = vmatprep.mubr.bf16.mxu0 %v10868_v59 }
 0x49c   :  { %v8587_v53 = vpack.c.bf16 %v6908_v1, %v6907_v2  ;;  %v9061_v15 = vpop.f32.mrb[4].mxu1 }
 0x49d   :  { %8904 = vst [vmem:[%s14079_s3 + $0x8] sm:$0xff] %v8592_v43   ;;  %v6115_v27 = vpop.f32.mrb[132].mxu0  ;;  %v6421_v30 = vadd.f32 %v12777_v54, %v9061_v15  ;;  %v6412_v10 = vpop.f32.mrb[5].mxu1  ;;  %v10871_v54 = vld [vmem:[%s14077_s0 + $0x10f8] ss:$36 sps:$4 sm:$0xff]  }
 0x49e   :  { %8588 = vst [vmem:[%s14079_s3] sm:$0xff] %v8587_v53   ;;  %v13509_v1 = vadd.f32 %v9347_v60, %v6115_v27  ;;  %v6117_v2 = vpop.f32.mrb[133].mxu0  ;;  %v6413_v43 = vadd.f32 %v12753_v46, %v6412_v10  ;;  %v9062_v47 = vpop.f32.mrb[6].mxu1  ;;  %v10875_v15 = vld [vmem:[%s14077_s0 + $0x1070] ss:$36 sps:$4 sm:$0xff]   ;;  %v10873_v53 = vld [vmem:[%s14077_s0 + $0x1144] ss:$36 sps:$4 sm:$0xff]  }
 0x49f   :  { %v6118_v57 = vpop.f32.mrb[134].mxu0  ;;  %v6424_v38 = vadd.f32 %v12792_v12, %v9062_v47  ;;  %v6415_v13 = vpop.f32.mrb[7].mxu1  ;;  %v6913_v21 = vmax.f32 %v6421_v30, 0.0  ;;  %v14197_v12 = vld [vmem:[#allocation20_spill] sm:$0xff]  ;;  %v14198_v2 = vld [vmem:[#allocation21_spill] sm:$0xff] }
 0x4a0   :  { %v13522_v59 = vadd.f32 %v9349_v51, %v6118_v57  ;;  %v6120_v46 = vpop.f32.mrb[135].mxu0  ;;  %v6416_v23 = vadd.f32 %v12768_v26, %v6415_v13  ;;  %v6911_v17 = vmax.f32 %v6413_v43, 0.0  ;;  %v9351_v27 = vadd.f32 %v13312_v5, %v14197_v12 }
 0x4a1   :  { %v6914_v44 = vmax.f32 %v6424_v38, 0.0  ;;  %9168 = vmatmul.mubr.bf16.gmra.mrb[112].mxu1 %v10872_v20  ;;  %v10877_v20 = vld [vmem:[%s14077_s0 + $0x10b8] ss:$36 sps:$4 sm:$0xff]   ;;  %v9353_v43 = vadd.f32 %v13312_v5, %v14198_v2  ;;  %v10880_v38 = vld [vmem:[%s14077_s0 + $0x1100] ss:$36 sps:$4 sm:$0xff]   ;;  %v14200_v2 = vld [vmem:[#allocation23_spill] sm:$0xff] }
 0x4a2   :  { %v6912_v37 = vmax.f32 %v6416_v23, 0.0  ;;  %6330 = vmatmul.mubr.bf16.gmra.mrb[240].mxu0 %v10871_v54  ;;  %9171 = vmatprep.mubr.bf16.mxu1 %v10875_v15  ;;  %v10878_v23 = vld [vmem:[%s14077_s0 + $0x118c] ss:$36 sps:$4 sm:$0xff]  }
 0x4a3   :  { %v8602_v60 = vpack.c.bf16 %v6914_v44, %v6913_v21  ;;  %6337 = vmatprep.mubr.bf16.mxu0 %v10873_v53 }
 0x4a4   :  { %v8597_v10 = vpack.c.bf16 %v6912_v37, %v6911_v17  ;;  %v9065_v40 = vpop.f32.mrb[8].mxu1 }
 0x4a5   :  { %8906 = vst [vmem:[%s14079_s3 + $0x18] sm:$0xff] %v8602_v60   ;;  %v6123_v51 = vpop.f32.mrb[136].mxu0  ;;  %v6437_v26 = vadd.f32 %v12825_v8, %v9065_v40  ;;  %v6428_v30 = vpop.f32.mrb[9].mxu1  ;;  %v10876_v8 = vld [vmem:[%s14077_s0 + $0x1140] ss:$36 sps:$4 sm:$0xff]  }
 0x4a6   :  { %8905 = vst [vmem:[%s14079_s3 + $0x10] sm:$0xff] %v8597_v10   ;;  %v13539_v47 = vadd.f32 %v9351_v27, %v6123_v51  ;;  %v6125_v54 = vpop.f32.mrb[137].mxu0  ;;  %v6429_v15 = vadd.f32 %v12801_v63, %v6428_v30  ;;  %v9066_v57 = vpop.f32.mrb[10].mxu1 }
 0x4a7   :  { %v6126_v13 = vpop.f32.mrb[138].mxu0  ;;  %v6440_v53 = vadd.f32 %v12840_v62, %v9066_v57  ;;  %v6431_v46 = vpop.f32.mrb[11].mxu1  ;;  %v6917_v17 = vmax.f32 %v6437_v26, 0.0  ;;  %v14199_v62 = vld [vmem:[#allocation22_spill] sm:$0xff] }
 0x4a8   :  { %v13552_v21 = vadd.f32 %v9353_v43, %v6126_v13  ;;  %v6128_v63 = vpop.f32.mrb[139].mxu0  ;;  %v6432_v44 = vadd.f32 %v12816_v22, %v6431_v46  ;;  %v6915_v60 = vmax.f32 %v6429_v15, 0.0  ;;  %v9355_v10 = vadd.f32 %v13312_v5, %v14199_v62 }
 0x4a9   :  { %v6918_v37 = vmax.f32 %v6440_v53, 0.0  ;;  %9172 = vmatmul.mubr.bf16.gmra.mrb[116].mxu1 %v10877_v20  ;;  %v10882_v20 = vld [vmem:[%s14077_s0 + $0x1148] ss:$36 sps:$4 sm:$0xff]   ;;  %v9357_v43 = vadd.f32 %v13312_v5, %v14200_v2 }
 0x4aa   :  { %v6916_v12 = vmax.f32 %v6432_v44, 0.0  ;;  %6338 = vmatmul.mubr.bf16.gmra.mrb[244].mxu0 %v10876_v8  ;;  %9175 = vmatprep.mubr.bf16.mxu1 %v10880_v38  ;;  %v10885_v38 = vld [vmem:[%s14077_s0 + $0x1190] ss:$36 sps:$4 sm:$0xff]  }
 0x4ab   :  { %v8612_v27 = vpack.c.bf16 %v6918_v37, %v6917_v17  ;;  %6345 = vmatprep.mubr.bf16.mxu0 %v10878_v23  ;;  %v10883_v23 = vld [vmem:[%s14077_s0 + $0x11d4] ss:$36 sps:$4 sm:$0xff]  }
 0x4ac   :  { %v8607_v40 = vpack.c.bf16 %v6916_v12, %v6915_v60  ;;  %v9069_v51 = vpop.f32.mrb[12].mxu1 }
 0x4ad   :  { %8908 = vst [vmem:[%s14079_s3 + $0x28] sm:$0xff] %v8612_v27   ;;  %v6131_v30 = vpop.f32.mrb[140].mxu0  ;;  %v6453_v22 = vadd.f32 %v12873_v24, %v9069_v51  ;;  %v6444_v26 = vpop.f32.mrb[13].mxu1  ;;  %v10881_v24 = vld [vmem:[%s14077_s0 + $0x1188] ss:$36 sps:$4 sm:$0xff]  }
 0x4ae   :  { %8907 = vst [vmem:[%s14079_s3 + $0x20] sm:$0xff] %v8607_v40   ;;  %v13569_v54 = vadd.f32 %v9355_v10, %v6131_v30  ;;  %v6133_v15 = vpop.f32.mrb[141].mxu0  ;;  %v6445_v57 = vadd.f32 %v12849_v16, %v6444_v26  ;;  %v9070_v8 = vpop.f32.mrb[14].mxu1  ;;  %v14202_v26 = vld [vmem:[#allocation25_spill] sm:$0xff] }
 0x4af   :  { %v6134_v13 = vpop.f32.mrb[142].mxu0  ;;  %v6456_v53 = vadd.f32 %v12888_v41, %v9070_v8  ;;  %v6447_v46 = vpop.f32.mrb[15].mxu1  ;;  %v6921_v17 = vmax.f32 %v6453_v22, 0.0  ;;  %v14201_v41 = vld [vmem:[#allocation24_spill] sm:$0xff]  ;;  %v10887_v22 = vld [vmem:[%s14077_s0 + $0x11d8] ss:$36 sps:$4 sm:$0xff]  }
 0x4b0   :  { %v13582_v63 = vadd.f32 %v9357_v43, %v6134_v13  ;;  %v6136_v16 = vpop.f32.mrb[143].mxu0  ;;  %v6448_v44 = vadd.f32 %v12864_v34, %v6447_v46  ;;  %v6919_v60 = vmax.f32 %v6445_v57, 0.0  ;;  %v9359_v62 = vadd.f32 %v13312_v5, %v14201_v41 }
 0x4b1   :  { %v6922_v37 = vmax.f32 %v6456_v53, 0.0  ;;  %9176 = vmatmul.mubr.bf16.gmra.mrb[120].mxu1 %v10882_v20  ;;  %v9361_v20 = vadd.f32 %v13312_v5, %v14202_v26 }
 0x4b2   :  { %v6920_v12 = vmax.f32 %v6448_v44, 0.0  ;;  %6346 = vmatmul.mubr.bf16.gmra.mrb[248].mxu0 %v10881_v24  ;;  %9179 = vmatprep.mubr.bf16.mxu1 %v10885_v38 }
 0x4b3   :  { %v8622_v27 = vpack.c.bf16 %v6922_v37, %v6921_v17  ;;  %6353 = vmatprep.mubr.bf16.mxu0 %v10883_v23  ;;  %v14203_v37 = vld [vmem:[#allocation26_spill] sm:$0xff] }
 0x4b4   :  { %v8617_v10 = vpack.c.bf16 %v6920_v12, %v6919_v60  ;;  %v9073_v40 = vpop.f32.mrb[16].mxu1  ;;  %v9363_v60 = vadd.f32 %v13312_v5, %v14203_v37 }
 0x4b5   :  { %8910 = vst [vmem:[%s14079_s3 + $0x38] sm:$0xff] %v8622_v27   ;;  %v6139_v51 = vpop.f32.mrb[144].mxu0  ;;  %v6469_v34 = vadd.f32 %v12921_v42, %v9073_v40  ;;  %v6460_v30 = vpop.f32.mrb[17].mxu1  ;;  %v10886_v42 = vld [vmem:[%s14077_s0 + $0x11d0] ss:$36 sps:$4 sm:$0xff]  }
 0x4b6   :  { %8909 = vst [vmem:[%s14079_s3 + $0x30] sm:$0xff] %v8617_v10   ;;  %v13599_v2 = vadd.f32 %v9359_v62, %v6139_v51  ;;  %v6141_v43 = vpop.f32.mrb[145].mxu0  ;;  %v6461_v15 = vadd.f32 %v12897_v33, %v6460_v30  ;;  %v9074_v57 = vpop.f32.mrb[18].mxu1  ;;  %v14204_v62 = vld [vmem:[#allocation27_spill] sm:$0xff] }
 0x4b7   :  { %v6142_v8 = vpop.f32.mrb[146].mxu0  ;;  %v6472_v24 = vadd.f32 %v12936_v58, %v9074_v57  ;;  %v6463_v38 = vpop.f32.mrb[19].mxu1  ;;  %v6925_v23 = vmax.f32 %v6469_v34, 0.0  ;;  %v9365_v10 = vadd.f32 %v13312_v5, %v14204_v62 }
 0x4b8   :  { %v13606_v13 = vadd.f32 %v9361_v20, %v6142_v8  ;;  %v6144_v53 = vpop.f32.mrb[147].mxu0  ;;  %v6464_v46 = vadd.f32 %v12912_v49, %v6463_v38  ;;  %v6923_v44 = vmax.f32 %v6461_v15, 0.0 }
 0x4b9   :  { %v6926_v16 = vmax.f32 %v6472_v24, 0.0  ;;  %9180 = vmatmul.mubr.bf16.gmra.mrb[124].mxu1 %v10887_v22  ;;  %v14205_v53 = vld [vmem:[#allocation28_spill] sm:$0xff] }
 0x4ba   :  { %v6924_v17 = vmax.f32 %v6464_v46, 0.0  ;;  %6354 = vmatmul.mubr.bf16.gmra.mrb[252].mxu0 %v10886_v42  ;;  %v9367_v46 = vadd.f32 %v13312_v5, %v14205_v53 }
 0x4bb   :  { %v8632_v33 = vpack.c.bf16 %v6926_v16, %v6925_v23 }
 0x4bc   :  { %v8627_v12 = vpack.c.bf16 %v6924_v17, %v6923_v44  ;;  %v9077_v27 = vpop.f32.mrb[20].mxu1  ;;  %v14206_v17 = vld [vmem:[#allocation29_spill] sm:$0xff] }
 0x4bd   :  { %8912 = vst [vmem:[%s14079_s3 + $0x48] sm:$0xff] %v8632_v33   ;;  %v6147_v58 = vpop.f32.mrb[148].mxu0  ;;  %v6485_v41 = vadd.f32 %v12969_v61, %v9077_v27  ;;  %v6476_v49 = vpop.f32.mrb[21].mxu1 }
 0x4be   :  { %8911 = vst [vmem:[%s14079_s3 + $0x40] sm:$0xff] %v8627_v12   ;;  %v13620_v40 = vadd.f32 %v9363_v60, %v6147_v58  ;;  %v6149_v51 = vpop.f32.mrb[149].mxu0  ;;  %v6477_v34 = vadd.f32 %v12945_v52, %v6476_v49  ;;  %v9078_v30 = vpop.f32.mrb[22].mxu1 }
 0x4bf   :  { %v6150_v22 = vpop.f32.mrb[150].mxu0  ;;  %v6488_v26 = vadd.f32 %v12984_v11, %v9078_v30  ;;  %v6479_v20 = vpop.f32.mrb[23].mxu1  ;;  %v6929_v57 = vmax.f32 %v6485_v41, 0.0 }
 0x4c0   :  { %v13624_v43 = vadd.f32 %v9365_v10, %v6150_v22  ;;  %v6152_v61 = vpop.f32.mrb[151].mxu0  ;;  %v6480_v15 = vadd.f32 %v12960_v3, %v6479_v20  ;;  %v6927_v8 = vmax.f32 %v6477_v34, 0.0  ;;  %v9369_v3 = vadd.f32 %v13312_v5, %v14206_v17 }
 0x4c1   :  { %v6930_v42 = vmax.f32 %v6488_v26, 0.0  ;;  %v14207_v26 = vld [vmem:[#allocation30_spill] sm:$0xff] }
 0x4c2   :  { %v6928_v24 = vmax.f32 %v6480_v15, 0.0  ;;  %v9371_v20 = vadd.f32 %v13312_v5, %v14207_v26 }
 0x4c3   :  { %v8642_v38 = vpack.c.bf16 %v6930_v42, %v6929_v57  ;;  %v14208_v42 = vld [vmem:[#allocation31_spill] sm:$0xff] }
 0x4c4   :  { %v8637_v23 = vpack.c.bf16 %v6928_v24, %v6927_v8  ;;  %v9081_v52 = vpop.f32.mrb[24].mxu1 }
 0x4c5   :  { %8914 = vst [vmem:[%s14079_s3 + $0x58] sm:$0xff] %v8642_v38   ;;  %v6155_v11 = vpop.f32.mrb[152].mxu0  ;;  %v6501_v16 = vadd.f32 %v13017_v18, %v9081_v52  ;;  %v6492_v44 = vpop.f32.mrb[25].mxu1 }
 0x4c6   :  { %8913 = vst [vmem:[%s14079_s3 + $0x50] sm:$0xff] %v8637_v23   ;;  %v13638_v33 = vadd.f32 %v9367_v46, %v6155_v11  ;;  %v6157_v37 = vpop.f32.mrb[153].mxu0  ;;  %v6493_v60 = vadd.f32 %v12993_v7, %v6492_v44  ;;  %v9082_v12 = vpop.f32.mrb[26].mxu1 }
 0x4c7   :  { %v6158_v27 = vpop.f32.mrb[154].mxu0  ;;  %v6504_v58 = vadd.f32 %v13032_v28, %v9082_v12  ;;  %v6495_v41 = vpop.f32.mrb[27].mxu1  ;;  %v6933_v10 = vmax.f32 %v6501_v16, 0.0  ;;  %v14209_v12 = vld [vmem:[#allocation32_spill] sm:$0xff] }
 0x4c8   :  { %v13642_v49 = vadd.f32 %v9369_v3, %v6158_v27  ;;  %v6160_v18 = vpop.f32.mrb[155].mxu0  ;;  %v6496_v62 = vadd.f32 %v13008_v19, %v6495_v41  ;;  %v6931_v34 = vmax.f32 %v6493_v60, 0.0  ;;  %v9373_v19 = vadd.f32 %v13312_v5, %v14208_v42 }
 0x4c9   :  { %v6934_v51 = vmax.f32 %v6504_v58, 0.0  ;;  %v9375_v27 = vadd.f32 %v13312_v5, %v14209_v12 }
 0x4ca   :  { %v6932_v30 = vmax.f32 %v6496_v62, 0.0  ;;  %v14210_v62 = vld [vmem:[#allocation33_spill] sm:$0xff] }
 0x4cb   :  { %v8652_v22 = vpack.c.bf16 %v6934_v51, %v6933_v10 }
 0x4cc   :  { %v8647_v61 = vpack.c.bf16 %v6932_v30, %v6931_v34  ;;  %v9085_v7 = vpop.f32.mrb[28].mxu1 }
 0x4cd   :  { %8916 = vst [vmem:[%s14079_s3 + $0x68] sm:$0xff] %v8652_v22   ;;  %v6163_v28 = vpop.f32.mrb[156].mxu0  ;;  %v6517_v15 = vadd.f32 %v13065_v39, %v9085_v7  ;;  %v6508_v57 = vpop.f32.mrb[29].mxu1 }
 0x4ce   :  { %8915 = vst [vmem:[%s14079_s3 + $0x60] sm:$0xff] %v8647_v61   ;;  %v13656_v8 = vadd.f32 %v9371_v20, %v6163_v28  ;;  %v6165_v24 = vpop.f32.mrb[157].mxu0  ;;  %v6509_v38 = vadd.f32 %v13041_v29, %v6508_v57  ;;  %v9086_v53 = vpop.f32.mrb[30].mxu1 }
 0x4cf   :  { %v6166_v46 = vpop.f32.mrb[158].mxu0  ;;  %v6520_v23 = vadd.f32 %v13080_v45, %v9086_v53  ;;  %v6511_v52 = vpop.f32.mrb[31].mxu1  ;;  %v6937_v44 = vmax.f32 %v6517_v15, 0.0  ;;  %v14211_v24 = vld [vmem:[#allocation34_spill] sm:$0xff] }
 0x4d0   :  { %v13660_v11 = vadd.f32 %v9373_v19, %v6166_v46  ;;  %v6168_v39 = vpop.f32.mrb[159].mxu0  ;;  %v6512_v16 = vadd.f32 %v13056_v36, %v6511_v52  ;;  %v6935_v3 = vmax.f32 %v6509_v38, 0.0  ;;  %v9377_v36 = vadd.f32 %v13312_v5, %v14210_v62  ;;  %v14212_v52 = vld [vmem:[#allocation35_spill] sm:$0xff]  ;;  %v14213_v62 = vld [vmem:[#allocation36_spill] sm:$0xff] }
 0x4d1   :  { %v6938_v17 = vmax.f32 %v6520_v23, 0.0  ;;  %v9379_v38 = vadd.f32 %v13312_v5, %v14211_v24 }
 0x4d2   :  { %v6936_v37 = vmax.f32 %v6512_v16, 0.0 }
 0x4d3   :  { %v8662_v60 = vpack.c.bf16 %v6938_v17, %v6937_v44 }
 0x4d4   :  { %v8657_v58 = vpack.c.bf16 %v6936_v37, %v6935_v3  ;;  %v9089_v29 = vpop.f32.mrb[32].mxu1 }
 0x4d5   :  { %8918 = vst [vmem:[%s14079_s3 + $0x78] sm:$0xff] %v8662_v60   ;;  %v6171_v45 = vpop.f32.mrb[160].mxu0  ;;  %v6533_v41 = vadd.f32 %v13113_v6, %v9089_v29  ;;  %v6524_v18 = vpop.f32.mrb[33].mxu1 }
 0x4d6   :  { %8917 = vst [vmem:[%s14079_s3 + $0x70] sm:$0xff] %v8657_v58   ;;  %v13674_v10 = vadd.f32 %v9375_v27, %v6171_v45  ;;  %v6173_v51 = vpop.f32.mrb[161].mxu0  ;;  %v6525_v34 = vadd.f32 %v13089_v55, %v6524_v18  ;;  %v9090_v30 = vpop.f32.mrb[34].mxu1 }
 0x4d7   :  { %v6174_v22 = vpop.f32.mrb[162].mxu0  ;;  %v6536_v26 = vadd.f32 %v13128_v4, %v9090_v30  ;;  %v6527_v20 = vpop.f32.mrb[35].mxu1  ;;  %v6941_v28 = vmax.f32 %v6533_v41, 0.0 }
 0x4d8   :  { %v13678_v61 = vadd.f32 %v9377_v36, %v6174_v22  ;;  %v6176_v6 = vpop.f32.mrb[163].mxu0  ;;  %v6528_v7 = vadd.f32 %v13104_v56, %v6527_v20  ;;  %v6939_v57 = vmax.f32 %v6525_v34, 0.0  ;;  %v9381_v56 = vadd.f32 %v13312_v5, %v14212_v52  ;;  %v14214_v22 = vld [vmem:[#allocation37_spill] sm:$0xff] }
 0x4d9   :  { %v6942_v15 = vmax.f32 %v6536_v26, 0.0  ;;  %v9383_v36 = vadd.f32 %v13312_v5, %v14213_v62 }
 0x4da   :  { %v6940_v42 = vmax.f32 %v6528_v7, 0.0 }
 0x4db   :  { %v8672_v19 = vpack.c.bf16 %v6942_v15, %v6941_v28 }
 0x4dc   :  { %v8667_v53 = vpack.c.bf16 %v6940_v42, %v6939_v57  ;;  %v9093_v55 = vpop.f32.mrb[36].mxu1 }
 0x4dd   :  { %8920 = vst [vmem:[%s14079_s3 + $0x88] sm:$0xff] %v8672_v19   ;;  %v6179_v4 = vpop.f32.mrb[164].mxu0  ;;  %v6549_v46 = vadd.f32 %v13161_v9, %v9093_v55  ;;  %v6540_v23 = vpop.f32.mrb[37].mxu1 }
 0x4de   :  { %8919 = vst [vmem:[%s14079_s3 + $0x80] sm:$0xff] %v8667_v53   ;;  %v13692_v39 = vadd.f32 %v9379_v38, %v6179_v4  ;;  %v6181_v16 = vpop.f32.mrb[165].mxu0  ;;  %v6541_v44 = vadd.f32 %v13137_v48, %v6540_v23  ;;  %v9094_v17 = vpop.f32.mrb[38].mxu1 }
 0x4df   :  { %v6182_v3 = vpop.f32.mrb[166].mxu0  ;;  %v6552_v37 = vadd.f32 %v13176_v25, %v9094_v17  ;;  %v6543_v60 = vpop.f32.mrb[39].mxu1  ;;  %v6945_v58 = vmax.f32 %v6549_v46, 0.0  ;;  %v14215_v46 = vld [vmem:[#allocation38_spill] sm:$0xff]  ;;  %v14217_v17 = vld [vmem:[#allocation39_spill] sm:$0xff] }
 0x4e0   :  { %v13696_v12 = vadd.f32 %v9381_v56, %v6182_v3  ;;  %v6184_v9 = vpop.f32.mrb[167].mxu0  ;;  %v6544_v27 = vadd.f32 %v13152_v14, %v6543_v60  ;;  %v6943_v45 = vmax.f32 %v6541_v44, 0.0  ;;  %v9385_v14 = vadd.f32 %v13312_v5, %v14214_v22  ;;  %v14216_v56 = vld [vmem:[#allocation65_spill] sm:$0xff] }
 0x4e1   :  { %v6946_v29 = vmax.f32 %v6552_v37, 0.0  ;;  %v9387_v23 = vadd.f32 %v13312_v5, %v14215_v46  ;;  %v14218_v60 = vld [vmem:[#allocation61_spill] sm:$0xff] }
 0x4e2   :  { %v6944_v41 = vmax.f32 %v6544_v27, 0.0 }
 0x4e3   :  { %v8682_v18 = vpack.c.bf16 %v6946_v29, %v6945_v58  ;;  %v14219_v29 = vld [vmem:[#allocation67_spill] sm:$0xff] }
 0x4e4   :  { %v8677_v51 = vpack.c.bf16 %v6944_v41, %v6943_v45  ;;  %v9097_v48 = vpop.f32.mrb[40].mxu1 }
 0x4e5   :  { %8922 = vst [vmem:[%s14079_s3 + $0x98] sm:$0xff] %v8682_v18   ;;  %v6187_v25 = vpop.f32.mrb[168].mxu0  ;;  %v6565_v34 = vadd.f32 %v13209_v32, %v9097_v48  ;;  %v6556_v30 = vpop.f32.mrb[41].mxu1 }
 0x4e6   :  { %8921 = vst [vmem:[%s14079_s3 + $0x90] sm:$0xff] %v8677_v51   ;;  %v13710_v26 = vadd.f32 %v9383_v36, %v6187_v25  ;;  %v6189_v20 = vpop.f32.mrb[169].mxu0  ;;  %v6557_v6 = vadd.f32 %v13185_v0, %v6556_v30  ;;  %v9098_v7 = vpop.f32.mrb[42].mxu1  ;;  %v14220_v36 = vld [vmem:[#allocation63_spill] sm:$0xff] }
 0x4e7   :  { %v6190_v28 = vpop.f32.mrb[170].mxu0  ;;  %v6568_v15 = vadd.f32 %v13224_v50, %v9098_v7  ;;  %v6559_v57 = vpop.f32.mrb[43].mxu1  ;;  %v6949_v24 = vmax.f32 %v6565_v34, 0.0 }
 0x4e8   :  { %v13714_v42 = vadd.f32 %v9385_v14, %v6190_v28  ;;  %v6192_v32 = vpop.f32.mrb[171].mxu0  ;;  %v6560_v19 = vadd.f32 %v13200_v35, %v6559_v57  ;;  %v6947_v53 = vmax.f32 %v6557_v6, 0.0  ;;  %v9389_v35 = vadd.f32 %v13312_v5, %v14217_v17  ;;  %v14221_v14 = vld [vmem:[#allocation40_spill] sm:$0xff] }
 0x4e9   :  { %v6950_v38 = vmax.f32 %v6568_v15, 0.0  ;;  %v9391_v20 = vadd.f32 %v13312_v5, %v14221_v14  ;;  %v14222_v15 = vld [vmem:[#allocation73_spill] sm:$0xff]  ;;  %v14230_v14 = vld [vmem:[#allocation3_spill] sm:$0xff] }
 0x4ea   :  { %v6948_v55 = vmax.f32 %v6560_v19, 0.0  ;;  %v14223_v19 = vld [vmem:[#allocation41_spill] sm:$0xff] }
 0x4eb   :  { %v8692_v4 = vpack.c.bf16 %v6950_v38, %v6949_v24  ;;  %v9393_v24 = vadd.f32 %v13312_v5, %v14223_v19 }
 0x4ec   :  { %v8687_v52 = vpack.c.bf16 %v6948_v55, %v6947_v53  ;;  %v9101_v0 = vpop.f32.mrb[44].mxu1  ;;  %v14224_v55 = vld [vmem:[#allocation69_spill] sm:$0xff] }
 0x4ed   :  { %8924 = vst [vmem:[%s14079_s3 + $0xa8] sm:$0xff] %v8692_v4   ;;  %v6195_v50 = vpop.f32.mrb[172].mxu0  ;;  %v6581_v16 = vadd.f32 %v14216_v56, %v9101_v0  ;;  %v6572_v44 = vpop.f32.mrb[45].mxu1 }
 0x4ee   :  { %8923 = vst [vmem:[%s14079_s3 + $0xa0] sm:$0xff] %v8687_v52   ;;  %v13728_v3 = vadd.f32 %v9387_v23, %v6195_v50  ;;  %v6197_v37 = vpop.f32.mrb[173].mxu0  ;;  %v6573_v9 = vadd.f32 %v14218_v60, %v6572_v44  ;;  %v9102_v27 = vpop.f32.mrb[46].mxu1  ;;  %v14225_v52 = vld [vmem:[#allocation2_spill] sm:$0xff]  ;;  %v14226_v44 = vld [vmem:[#allocation71_spill] sm:$0xff] }
 0x4ef   :  { %v6198_v58 = vpop.f32.mrb[174].mxu0  ;;  %v6584_v45 = vadd.f32 %v14219_v29, %v9102_v27  ;;  %v6575_v41 = vpop.f32.mrb[47].mxu1  ;;  %v6953_v48 = vmax.f32 %v6581_v16, 0.0 }
 0x4f0   :  { %v13732_v18 = vadd.f32 %v9389_v35, %v6198_v58  ;;  %v6200_v62 = vpop.f32.mrb[175].mxu0  ;;  %v6576_v51 = vadd.f32 %v14220_v36, %v6575_v41  ;;  %v6951_v34 = vmax.f32 %v6573_v9, 0.0  ;;  %v14227_v58 = vld [vmem:[#allocation42_spill] sm:$0xff]  ;;  %v14228_v36 = vld [vmem:[#allocation5_spill] sm:$0xff] }
 0x4f1   :  { %v6954_v25 = vmax.f32 %v6584_v45, 0.0  ;;  %v9395_v29 = vadd.f32 %v13312_v5, %v14227_v58 }
 0x4f2   :  { %v6952_v30 = vmax.f32 %v6576_v51, 0.0 }
 0x4f3   :  { %v8702_v22 = vpack.c.bf16 %v6954_v25, %v6953_v48  ;;  %v14229_v25 = vld [vmem:[#allocation43_spill] sm:$0xff] }
 0x4f4   :  { %v8697_v6 = vpack.c.bf16 %v6952_v30, %v6951_v34  ;;  %v9105_v7 = vpop.f32.mrb[48].mxu1  ;;  %v9397_v34 = vadd.f32 %v13312_v5, %v14229_v25 }
 0x4f5   :  { %8926 = vst [vmem:[%s14079_s3 + $0xb8] sm:$0xff] %v8702_v22   ;;  %v6203_v28 = vpop.f32.mrb[176].mxu0  ;;  %v6597_v57 = vadd.f32 %v14222_v15, %v9105_v7  ;;  %v6588_v32 = vpop.f32.mrb[49].mxu1 }
 0x4f6   :  { %8925 = vst [vmem:[%s14079_s3 + $0xb0] sm:$0xff] %v8697_v6   ;;  %v13746_v38 = vadd.f32 %v9391_v20, %v6203_v28  ;;  %v6205_v53 = vpop.f32.mrb[177].mxu0  ;;  %v6589_v4 = vadd.f32 %v14224_v55, %v6588_v32  ;;  %v9106_v46 = vpop.f32.mrb[50].mxu1  ;;  %v14231_v28 = vld [vmem:[#allocation6_spill] sm:$0xff] }
 0x4f7   :  { %v6206_v23 = vpop.f32.mrb[178].mxu0  ;;  %v6600_v0 = vadd.f32 %v14225_v52, %v9106_v46  ;;  %v6591_v50 = vpop.f32.mrb[51].mxu1  ;;  %v6957_v35 = vmax.f32 %v6597_v57, 0.0 }
 0x4f8   :  { %v13750_v56 = vadd.f32 %v9393_v24, %v6206_v23  ;;  %v6208_v16 = vpop.f32.mrb[179].mxu0  ;;  %v6592_v17 = vadd.f32 %v14226_v44, %v6591_v50  ;;  %v6955_v60 = vmax.f32 %v6589_v4, 0.0  ;;  %v14232_v24 = vld [vmem:[#allocation4_spill] sm:$0xff] }
 0x4f9   :  { %v6958_v37 = vmax.f32 %v6600_v0, 0.0  ;;  %v14233_v0 = vld [vmem:[#allocation44_spill] sm:$0xff] }
 0x4fa   :  { %v6956_v9 = vmax.f32 %v6592_v17, 0.0  ;;  %v9399_v50 = vadd.f32 %v13312_v5, %v14233_v0  ;;  %v14241_v0 = vld [vmem:[#allocation47_spill] sm:$0xff] }
 0x4fb   :  { %v8712_v27 = vpack.c.bf16 %v6958_v37, %v6957_v35  ;;  %v14234_v35 = vld [vmem:[#allocation9_spill] sm:$0xff] }
 0x4fc   :  { %v8707_v45 = vpack.c.bf16 %v6956_v9, %v6955_v60  ;;  %v9109_v41 = vpop.f32.mrb[52].mxu1  ;;  %v14235_v9 = vld [vmem:[#allocation45_spill] sm:$0xff] }
 0x4fd   :  { %8928 = vst [vmem:[%s14079_s3 + $0xc8] sm:$0xff] %v8712_v27   ;;  %v6211_v62 = vpop.f32.mrb[180].mxu0  ;;  %v6613_v51 = vadd.f32 %v14228_v36, %v9109_v41  ;;  %v6604_v48 = vpop.f32.mrb[53].mxu1  ;;  %v9401_v27 = vadd.f32 %v13312_v5, %v14235_v9  ;;  %v14243_v9 = vld [vmem:[#allocation14_spill] sm:$0xff] }
 0x4fe   :  { %8927 = vst [vmem:[%s14079_s3 + $0xc0] sm:$0xff] %v8707_v45   ;;  %v13764_v30 = vadd.f32 %v9395_v29, %v6211_v62  ;;  %v6213_v22 = vpop.f32.mrb[181].mxu0  ;;  %v6605_v20 = vadd.f32 %v14230_v14, %v6604_v48  ;;  %v9110_v6 = vpop.f32.mrb[54].mxu1  ;;  %v14236_v45 = vld [vmem:[#allocation7_spill] sm:$0xff]  ;;  %v14238_v14 = vld [vmem:[#allocation8_spill] sm:$0xff] }
 0x4ff   :  { %v6214_v7 = vpop.f32.mrb[182].mxu0  ;;  %v6616_v15 = vadd.f32 %v14231_v28, %v9110_v6  ;;  %v6607_v57 = vpop.f32.mrb[55].mxu1  ;;  %v6961_v55 = vmax.f32 %v6613_v51, 0.0  ;;  %v14237_v51 = vld [vmem:[#allocation10_spill] sm:$0xff] }
 0x500   :  { %v13768_v32 = vadd.f32 %v9397_v34, %v6214_v7  ;;  %v6216_v19 = vpop.f32.mrb[183].mxu0  ;;  %v6608_v53 = vadd.f32 %v14232_v24, %v6607_v57  ;;  %v6959_v46 = vmax.f32 %v6605_v20, 0.0  ;;  %v13792_v57 = vld [vmem:[%s14078_s2] ss:$0 sm:$0xff] }
 0x501   :  { %v6962_v4 = vmax.f32 %v6616_v15, 0.0  ;;  %v14239_v19 = vld [vmem:[#allocation46_spill] sm:$0xff] }
 0x502   :  { %v6960_v23 = vmax.f32 %v6608_v53, 0.0  ;;  %v9403_v24 = vadd.f32 %v13792_v57, %v14239_v19 }
 0x503   :  { %v8722_v52 = vpack.c.bf16 %v6962_v4, %v6961_v55 }
 0x504   :  { %v8717_v16 = vpack.c.bf16 %v6960_v23, %v6959_v46  ;;  %v9113_v44 = vpop.f32.mrb[56].mxu1  ;;  %v14240_v46 = vld [vmem:[#allocation13_spill] sm:$0xff] }
 0x505   :  { %8930 = vst [vmem:[%s14079_s3 + $0xd8] sm:$0xff] %v8722_v52   ;;  %v6219_v17 = vpop.f32.mrb[184].mxu0  ;;  %v6629_v37 = vadd.f32 %v14234_v35, %v9113_v44  ;;  %v6620_v60 = vpop.f32.mrb[57].mxu1 }
 0x506   :  { %8929 = vst [vmem:[%s14079_s3 + $0xd0] sm:$0xff] %v8717_v16   ;;  %v13782_v58 = vadd.f32 %v9399_v50, %v6219_v17  ;;  %v6221_v29 = vpop.f32.mrb[185].mxu0  ;;  %v6621_v41 = vadd.f32 %v14236_v45, %v6620_v60  ;;  %v9114_v62 = vpop.f32.mrb[58].mxu1  ;;  %v9405_v50 = vadd.f32 %v13792_v57, %v14241_v0  ;;  %v14242_v17 = vld [vmem:[#allocation11_spill] sm:$0xff] }
 0x507   :  { %v6222_v36 = vpop.f32.mrb[186].mxu0  ;;  %v6632_v48 = vadd.f32 %v14237_v51, %v9114_v62  ;;  %v6623_v25 = vpop.f32.mrb[59].mxu1  ;;  %v6965_v5 = vmax.f32 %v6629_v37, 0.0  ;;  %v14244_v62 = vld [vmem:[#allocation12_spill] sm:$0xff] }
 0x508   :  { %v13786_v34 = vadd.f32 %v9401_v27, %v6222_v36  ;;  %v6224_v22 = vpop.f32.mrb[187].mxu0  ;;  %v6624_v20 = vadd.f32 %v14238_v14, %v6623_v25  ;;  %v6963_v7 = vmax.f32 %v6621_v41, 0.0 }
 0x509   :  { %v6966_v6 = vmax.f32 %v6632_v48, 0.0 }
 0x50a   :  { %v6964_v28 = vmax.f32 %v6624_v20, 0.0  ;;  %v14245_v20 = vld [vmem:[#allocation48_spill] sm:$0xff] }
 0x50b   :  { %v8732_v15 = vpack.c.bf16 %v6966_v6, %v6965_v5  ;;  %v9407_v5 = vadd.f32 %v13792_v57, %v14245_v20 }
 0x50c   :  { %v8727_v53 = vpack.c.bf16 %v6964_v28, %v6963_v7  ;;  %v9117_v55 = vpop.f32.mrb[60].mxu1 }
 0x50d   :  { %8932 = vst [vmem:[%s14079_s3 + $0xe8] sm:$0xff] %v8732_v15   ;;  %v6227_v4 = vpop.f32.mrb[188].mxu0  ;;  %v6645_v23 = vadd.f32 %v14240_v46, %v9117_v55  ;;  %v6636_v52 = vpop.f32.mrb[61].mxu1  ;;  %v14247_v46 = vld [vmem:[#allocation15_spill] sm:$0xff] }
 0x50e   :  { %8931 = vst [vmem:[%s14079_s3 + $0xe0] sm:$0xff] %v8727_v53   ;;  %v13805_v16 = vadd.f32 %v9403_v24, %v6227_v4  ;;  %v6229_v44 = vpop.f32.mrb[189].mxu0  ;;  %v6637_v35 = vadd.f32 %v14242_v17, %v6636_v52  ;;  %v9118_v37 = vpop.f32.mrb[62].mxu1  ;;  %v14246_v24 = vld [vmem:[#allocation49_spill] sm:$0xff] }
 0x50f   :  { %v6230_v60 = vpop.f32.mrb[190].mxu0  ;;  %v6648_v27 = vadd.f32 %v14243_v9, %v9118_v37  ;;  %v6639_v29 = vpop.f32.mrb[63].mxu1  ;;  %v6969_v51 = vmax.f32 %v6645_v23, 0.0  ;;  %v9409_v53 = vadd.f32 %v13792_v57, %v14246_v24 }
 0x510   :  { %v13809_v45 = vadd.f32 %v9405_v50, %v6230_v60  ;;  %v6232_v41 = vpop.f32.mrb[191].mxu0  ;;  %v6640_v36 = vadd.f32 %v14244_v62, %v6639_v29  ;;  %v6967_v25 = vmax.f32 %v6637_v35, 0.0 }
 0x511   :  { %v6970_v48 = vmax.f32 %v6648_v27, 0.0  ;;  %v14248_v41 = vld [vmem:[#allocation50_spill] sm:$0xff] }
 0x512   :  { %v6968_v22 = vmax.f32 %v6640_v36, 0.0  ;;  %v9411_v62 = vadd.f32 %v13792_v57, %v14248_v41 }
 0x513   :  { %v8742_v14 = vpack.c.bf16 %v6970_v48, %v6969_v51 }
 0x514   :  { %v8737_v6 = vpack.c.bf16 %v6968_v22, %v6967_v25  ;;  %v9121_v7 = vpop.f32.mrb[64].mxu1  ;;  %v14249_v22 = vld [vmem:[#allocation51_spill] sm:$0xff] }
 0x515   :  { %8934 = vst [vmem:[%s14079_s3 + $0xf8] sm:$0xff] %v8742_v14   ;;  %v6235_v28 = vpop.f32.mrb[192].mxu0  ;;  %v6661_v15 = vadd.f32 %v13509_v1, %v9121_v7  ;;  %v6652_v19 = vpop.f32.mrb[65].mxu1 }
 0x516   :  { %8933 = vst [vmem:[%s14079_s3 + $0xf0] sm:$0xff] %v8737_v6   ;;  %v13823_v55 = vadd.f32 %v9407_v5, %v6235_v28  ;;  %v6237_v4 = vpop.f32.mrb[193].mxu0  ;;  %v6653_v23 = vadd.f32 %v14247_v46, %v6652_v19  ;;  %v9122_v52 = vpop.f32.mrb[66].mxu1 }
 0x517   :  { %v6238_v0 = vpop.f32.mrb[194].mxu0  ;;  %v6664_v50 = vadd.f32 %v13522_v59, %v9122_v52  ;;  %v6655_v44 = vpop.f32.mrb[67].mxu1  ;;  %v6973_v37 = vmax.f32 %v6661_v15, 0.0 }
 0x518   :  { %v13827_v17 = vadd.f32 %v9409_v53, %v6238_v0  ;;  %v6240_v1 = vpop.f32.mrb[195].mxu0  ;;  %v6656_v35 = vadd.f32 %v13492_v31, %v6655_v44  ;;  %v6971_v9 = vmax.f32 %v6653_v23, 0.0  ;;  %v9413_v31 = vadd.f32 %v13792_v57, %v14249_v22  ;;  %v14250_v0 = vld [vmem:[#allocation52_spill] sm:$0xff] }
 0x519   :  { %v6974_v60 = vmax.f32 %v6664_v50, 0.0  ;;  %v9415_v50 = vadd.f32 %v13792_v57, %v14250_v0 }
 0x51a   :  { %v6972_v27 = vmax.f32 %v6656_v35, 0.0 }
 0x51b   :  { %v8752_v29 = vpack.c.bf16 %v6974_v60, %v6973_v37  ;;  %v14251_v37 = vld [vmem:[#allocation53_spill] sm:$0xff] }
 0x51c   :  { %v8747_v36 = vpack.c.bf16 %v6972_v27, %v6971_v9  ;;  %v9125_v51 = vpop.f32.mrb[68].mxu1 }
 0x51d   :  { %8936 = vst [vmem:[%s14079_s3 + $0x108] sm:$0xff] %v8752_v29   ;;  %v6243_v59 = vpop.f32.mrb[196].mxu0  ;;  %v6677_v48 = vadd.f32 %v13569_v54, %v9125_v51  ;;  %v6668_v25 = vpop.f32.mrb[69].mxu1 }
 0x51e   :  { %8935 = vst [vmem:[%s14079_s3 + $0x100] sm:$0xff] %v8747_v36   ;;  %v13841_v14 = vadd.f32 %v9411_v62, %v6243_v59  ;;  %v6245_v20 = vpop.f32.mrb[197].mxu0  ;;  %v6669_v5 = vadd.f32 %v13539_v47, %v6668_v25  ;;  %v9126_v6 = vpop.f32.mrb[70].mxu1 }
 0x51f   :  { %v6246_v7 = vpop.f32.mrb[198].mxu0  ;;  %v6680_v28 = vadd.f32 %v13582_v63, %v9126_v6  ;;  %v6671_v15 = vpop.f32.mrb[71].mxu1  ;;  %v6977_v53 = vmax.f32 %v6677_v48, 0.0 }
 0x520   :  { %v13845_v19 = vadd.f32 %v9413_v31, %v6246_v7  ;;  %v6248_v54 = vpop.f32.mrb[199].mxu0  ;;  %v6672_v24 = vadd.f32 %v13552_v21, %v6671_v15  ;;  %v6975_v46 = vmax.f32 %v6669_v5, 0.0  ;;  %v9417_v21 = vadd.f32 %v13792_v57, %v14251_v37  ;;  %v14252_v5 = vld [vmem:[#allocation54_spill] sm:$0xff] }
 0x521   :  { %v6978_v4 = vmax.f32 %v6680_v28, 0.0  ;;  %v9419_v6 = vadd.f32 %v13792_v57, %v14252_v5  ;;  %v14253_v54 = vld [vmem:[#allocation55_spill] sm:$0xff] }
 0x522   :  { %v6976_v23 = vmax.f32 %v6672_v24, 0.0 }
 0x523   :  { %v8762_v52 = vpack.c.bf16 %v6978_v4, %v6977_v53 }
 0x524   :  { %v8757_v44 = vpack.c.bf16 %v6976_v23, %v6975_v46  ;;  %v9129_v47 = vpop.f32.mrb[72].mxu1 }
 0x525   :  { %8938 = vst [vmem:[%s14079_s3 + $0x118] sm:$0xff] %v8762_v52   ;;  %v6251_v63 = vpop.f32.mrb[200].mxu0  ;;  %v6693_v1 = vadd.f32 %v13620_v40, %v9129_v47  ;;  %v6684_v35 = vpop.f32.mrb[73].mxu1 }
 0x526   :  { %8937 = vst [vmem:[%s14079_s3 + $0x110] sm:$0xff] %v8757_v44   ;;  %v13859_v60 = vadd.f32 %v9415_v50, %v6251_v63  ;;  %v6253_v9 = vpop.f32.mrb[201].mxu0  ;;  %v6685_v27 = vadd.f32 %v13599_v2, %v6684_v35  ;;  %v9130_v29 = vpop.f32.mrb[74].mxu1 }
 0x527   :  { %v6254_v41 = vpop.f32.mrb[202].mxu0  ;;  %v6696_v62 = vadd.f32 %v13624_v43, %v9130_v29  ;;  %v6687_v36 = vpop.f32.mrb[75].mxu1  ;;  %v6981_v48 = vmax.f32 %v6693_v1, 0.0 }
 0x528   :  { %v13863_v51 = vadd.f32 %v9417_v21, %v6254_v41  ;;  %v6256_v40 = vpop.f32.mrb[203].mxu0  ;;  %v6688_v59 = vadd.f32 %v13606_v13, %v6687_v36  ;;  %v6979_v22 = vmax.f32 %v6685_v27, 0.0  ;;  %v9421_v13 = vadd.f32 %v13792_v57, %v14253_v54  ;;  %v14254_v21 = vld [vmem:[#allocation56_spill] sm:$0xff] }
 0x529   :  { %v6982_v25 = vmax.f32 %v6696_v62, 0.0  ;;  %v9423_v9 = vadd.f32 %v13792_v57, %v14254_v21  ;;  %v14255_v62 = vld [vmem:[#allocation57_spill] sm:$0xff] }
 0x52a   :  { %v6980_v31 = vmax.f32 %v6688_v59, 0.0 }
 0x52b   :  { %v8772_v20 = vpack.c.bf16 %v6982_v25, %v6981_v48 }
 0x52c   :  { %v8767_v7 = vpack.c.bf16 %v6980_v31, %v6979_v22  ;;  %v9133_v2 = vpop.f32.mrb[76].mxu1 }
 0x52d   :  { %8940 = vst [vmem:[%s14079_s3 + $0x128] sm:$0xff] %v8772_v20   ;;  %v6259_v43 = vpop.f32.mrb[204].mxu0  ;;  %v6709_v28 = vadd.f32 %v13656_v8, %v9133_v2  ;;  %v6700_v15 = vpop.f32.mrb[77].mxu1 }
 0x52e   :  { %8939 = vst [vmem:[%s14079_s3 + $0x120] sm:$0xff] %v8767_v7   ;;  %v13877_v24 = vadd.f32 %v9419_v6, %v6259_v43  ;;  %v6261_v53 = vpop.f32.mrb[205].mxu0  ;;  %v6701_v4 = vadd.f32 %v13638_v33, %v6700_v15  ;;  %v9134_v46 = vpop.f32.mrb[78].mxu1  ;;  %v14256_v15 = vld [vmem:[#allocation58_spill] sm:$0xff] }
 0x52f   :  { %v6262_v23 = vpop.f32.mrb[206].mxu0  ;;  %v6712_v52 = vadd.f32 %v13660_v11, %v9134_v46  ;;  %v6703_v0 = vpop.f32.mrb[79].mxu1  ;;  %v6985_v47 = vmax.f32 %v6709_v28, 0.0  ;;  %v9427_v54 = vadd.f32 %v13792_v57, %v14256_v15  ;;  %v14257_v46 = vld [vmem:[#allocation59_spill] sm:$0xff] }
 0x530   :  { %v13881_v50 = vadd.f32 %v9421_v13, %v6262_v23  ;;  %v6264_v8 = vpop.f32.mrb[207].mxu0  ;;  %v6704_v44 = vadd.f32 %v13642_v49, %v6703_v0  ;;  %v6983_v1 = vmax.f32 %v6701_v4, 0.0  ;;  %v9425_v49 = vadd.f32 %v13792_v57, %v14255_v62 }
 0x531   :  { %v6986_v63 = vmax.f32 %v6712_v52, 0.0 }
 0x532   :  { %v6984_v35 = vmax.f32 %v6704_v44, 0.0 }
 0x533   :  { %v8782_v37 = vpack.c.bf16 %v6986_v63, %v6985_v47 }
 0x534   :  { %v8777_v27 = vpack.c.bf16 %v6984_v35, %v6983_v1  ;;  %v9137_v33 = vpop.f32.mrb[80].mxu1 }
 0x535   :  { %8942 = vst [vmem:[%s14079_s3 + $0x138] sm:$0xff] %v8782_v37   ;;  %v6267_v11 = vpop.f32.mrb[208].mxu0  ;;  %v6725_v29 = vadd.f32 %v13692_v39, %v9137_v33  ;;  %v6716_v41 = vpop.f32.mrb[81].mxu1 }
 0x536   :  { %8941 = vst [vmem:[%s14079_s3 + $0x130] sm:$0xff] %v8777_v27   ;;  %v13895_v36 = vadd.f32 %v9423_v9, %v6267_v11  ;;  %v6269_v40 = vpop.f32.mrb[209].mxu0  ;;  %v6717_v59 = vadd.f32 %v13674_v10, %v6716_v41  ;;  %v9138_v48 = vpop.f32.mrb[82].mxu1  ;;  %v14258_v11 = vld [vmem:[#allocation60_spill] sm:$0xff] }
 0x537   :  { %v6270_v25 = vpop.f32.mrb[210].mxu0  ;;  %v6728_v22 = vadd.f32 %v13696_v12, %v9138_v48  ;;  %v6719_v31 = vpop.f32.mrb[83].mxu1  ;;  %v6989_v6 = vmax.f32 %v6725_v29, 0.0  ;;  %v9431_v29 = vadd.f32 %v13792_v57, %v14258_v11  ;;  %v14259_v40 = vld [vmem:[#allocation62_spill] sm:$0xff]  ;;  %v14262_v11 = vld [vmem:[#allocation68_spill] sm:$0xff] }
 0x538   :  { %v13899_v20 = vadd.f32 %v9425_v49, %v6270_v25  ;;  %v6272_v39 = vpop.f32.mrb[211].mxu0  ;;  %v6720_v5 = vadd.f32 %v13678_v61, %v6719_v31  ;;  %v6987_v2 = vmax.f32 %v6717_v59, 0.0  ;;  %v9429_v61 = vadd.f32 %v13792_v57, %v14257_v46  ;;  %v14261_v46 = vld [vmem:[#allocation66_spill] sm:$0xff] }
 0x539   :  { %v6990_v7 = vmax.f32 %v6728_v22, 0.0 }
 0x53a   :  { %v6988_v43 = vmax.f32 %v6720_v5, 0.0 }
 0x53b   :  { %v8792_v28 = vpack.c.bf16 %v6990_v7, %v6989_v6 }
 0x53c   :  { %v8787_v13 = vpack.c.bf16 %v6988_v43, %v6987_v2  ;;  %v9141_v10 = vpop.f32.mrb[84].mxu1 }
 0x53d   :  { %8944 = vst [vmem:[%s14079_s3 + $0x148] sm:$0xff] %v8792_v28   ;;  %v6275_v12 = vpop.f32.mrb[212].mxu0  ;;  %v6741_v53 = vadd.f32 %v13728_v3, %v9141_v10  ;;  %v6732_v4 = vpop.f32.mrb[85].mxu1 }
 0x53e   :  { %8943 = vst [vmem:[%s14079_s3 + $0x140] sm:$0xff] %v8787_v13   ;;  %v13913_v23 = vadd.f32 %v9427_v54, %v6275_v12  ;;  %v6277_v52 = vpop.f32.mrb[213].mxu0  ;;  %v6733_v0 = vadd.f32 %v13710_v26, %v6732_v4  ;;  %v9142_v8 = vpop.f32.mrb[86].mxu1  ;;  %v14260_v13 = vld [vmem:[#allocation64_spill] sm:$0xff] }
 0x53f   :  { %v6278_v44 = vpop.f32.mrb[214].mxu0  ;;  %v6744_v47 = vadd.f32 %v13732_v18, %v9142_v8  ;;  %v6735_v63 = vpop.f32.mrb[87].mxu1  ;;  %v6993_v37 = vmax.f32 %v6741_v53, 0.0  ;;  %v9435_v10 = vadd.f32 %v13792_v57, %v14260_v13 }
 0x540   :  { %v13917_v1 = vadd.f32 %v9429_v61, %v6278_v44  ;;  %v6280_v3 = vpop.f32.mrb[215].mxu0  ;;  %v6736_v35 = vadd.f32 %v13714_v42, %v6735_v63  ;;  %v6991_v9 = vmax.f32 %v6733_v0, 0.0  ;;  %v9433_v42 = vadd.f32 %v13792_v57, %v14259_v40 }
 0x541   :  { %v6994_v21 = vmax.f32 %v6744_v47, 0.0 }
 0x542   :  { %v6992_v27 = vmax.f32 %v6736_v35, 0.0 }
 0x543   :  { %v8802_v33 = vpack.c.bf16 %v6994_v21, %v6993_v37 }
 0x544   :  { %v8797_v41 = vpack.c.bf16 %v6992_v27, %v6991_v9  ;;  %v9145_v26 = vpop.f32.mrb[88].mxu1 }
 0x545   :  { %8946 = vst [vmem:[%s14079_s3 + $0x158] sm:$0xff] %v8802_v33   ;;  %v6283_v18 = vpop.f32.mrb[216].mxu0  ;;  %v6757_v62 = vadd.f32 %v13764_v30, %v9145_v26  ;;  %v6748_v49 = vpop.f32.mrb[89].mxu1 }
 0x546   :  { %8945 = vst [vmem:[%s14079_s3 + $0x150] sm:$0xff] %v8797_v41   ;;  %v13931_v59 = vadd.f32 %v9431_v29, %v6283_v18  ;;  %v6285_v48 = vpop.f32.mrb[217].mxu0  ;;  %v6749_v25 = vadd.f32 %v13746_v38, %v6748_v49  ;;  %v9146_v22 = vpop.f32.mrb[90].mxu1  ;;  %v9439_v29 = vadd.f32 %v13792_v57, %v14262_v11 }
 0x547   :  { %v6286_v31 = vpop.f32.mrb[218].mxu0  ;;  %v6760_v39 = vadd.f32 %v13768_v32, %v9146_v22  ;;  %v6751_v5 = vpop.f32.mrb[91].mxu1  ;;  %v6997_v2 = vmax.f32 %v6757_v62, 0.0  ;;  %v14263_v62 = vld [vmem:[#allocation70_spill] sm:$0xff] }
 0x548   :  { %v13935_v6 = vadd.f32 %v9433_v42, %v6286_v31  ;;  %v6288_v30 = vpop.f32.mrb[219].mxu0  ;;  %v6752_v7 = vadd.f32 %v13750_v56, %v6751_v5  ;;  %v6995_v28 = vmax.f32 %v6749_v25, 0.0  ;;  %v9437_v56 = vadd.f32 %v13792_v57, %v14261_v46 }
 0x549   :  { %v6998_v43 = vmax.f32 %v6760_v39, 0.0 }
 0x54a   :  { %v6996_v15 = vmax.f32 %v6752_v7, 0.0 }
 0x54b   :  { %v8812_v54 = vpack.c.bf16 %v6998_v43, %v6997_v2 }
 0x54c   :  { %v8807_v12 = vpack.c.bf16 %v6996_v15, %v6995_v28  ;;  %v9149_v38 = vpop.f32.mrb[92].mxu1  ;;  %v14264_v15 = vld [vmem:[#allocation72_spill] sm:$0xff] }
 0x54d   :  { %8948 = vst [vmem:[%s14079_s3 + $0x168] sm:$0xff] %v8812_v54   ;;  %v6291_v32 = vpop.f32.mrb[220].mxu0  ;;  %v6773_v53 = vadd.f32 %v13805_v16, %v9149_v38  ;;  %v6764_v4 = vpop.f32.mrb[93].mxu1  ;;  %v9443_v54 = vadd.f32 %v13792_v57, %v14264_v15  ;;  %v14265_v38 = vld [vmem:[#allocation74_spill] sm:$0xff] }
 0x54e   :  { %8947 = vst [vmem:[%s14079_s3 + $0x160] sm:$0xff] %v8807_v12   ;;  %v13949_v61 = vadd.f32 %v9435_v10, %v6291_v32  ;;  %v6293_v52 = vpop.f32.mrb[221].mxu0  ;;  %v6765_v0 = vadd.f32 %v13782_v58, %v6764_v4  ;;  %v9150_v8 = vpop.f32.mrb[94].mxu1 }
 0x54f   :  { %v6294_v44 = vpop.f32.mrb[222].mxu0  ;;  %v6776_v47 = vadd.f32 %v13809_v45, %v9150_v8  ;;  %v6767_v63 = vpop.f32.mrb[95].mxu1  ;;  %v7001_v37 = vmax.f32 %v6773_v53, 0.0 }
 0x550   :  { %v13953_v3 = vadd.f32 %v9437_v56, %v6294_v44  ;;  %v6296_v16 = vpop.f32.mrb[223].mxu0  ;;  %v6768_v35 = vadd.f32 %v13786_v34, %v6767_v63  ;;  %v6999_v9 = vmax.f32 %v6765_v0, 0.0  ;;  %v9441_v34 = vadd.f32 %v13792_v57, %v14263_v62 }
 0x551   :  { %v7002_v21 = vmax.f32 %v6776_v47, 0.0 }
 0x552   :  { %v7000_v27 = vmax.f32 %v6768_v35, 0.0 }
 0x553   :  { %v8822_v33 = vpack.c.bf16 %v7002_v21, %v7001_v37  ;;  %v14266_v21 = vld [vmem:[#allocation75_spill] sm:$0xff] }
 0x554   :  { %v8817_v41 = vpack.c.bf16 %v7000_v27, %v6999_v9  ;;  %v9153_v58 = vpop.f32.mrb[96].mxu1  ;;  %v9447_v9 = vadd.f32 %v13792_v57, %v14266_v21 }
 0x555   :  { %8950 = vst [vmem:[%s14079_s3 + $0x178] sm:$0xff] %v8822_v33   ;;  %v6299_v45 = vpop.f32.mrb[224].mxu0  ;;  %v6789_v26 = vadd.f32 %v13841_v14, %v9153_v58  ;;  %v6780_v18 = vpop.f32.mrb[97].mxu1 }
 0x556   :  { %8949 = vst [vmem:[%s14079_s3 + $0x170] sm:$0xff] %v8817_v41   ;;  %v13967_v49 = vadd.f32 %v9439_v29, %v6299_v45  ;;  %v6301_v40 = vpop.f32.mrb[225].mxu0  ;;  %v6781_v42 = vadd.f32 %v13823_v55, %v6780_v18  ;;  %v9154_v48 = vpop.f32.mrb[98].mxu1  ;;  %v14267_v29 = vld [vmem:[#allocation76_spill] sm:$0xff] }
 0x557   :  { %v6302_v25 = vpop.f32.mrb[226].mxu0  ;;  %v6792_v22 = vadd.f32 %v13845_v19, %v9154_v48  ;;  %v6783_v31 = vpop.f32.mrb[99].mxu1  ;;  %v7005_v30 = vmax.f32 %v6789_v26, 0.0 }
 0x558   :  { %v13971_v39 = vadd.f32 %v9441_v34, %v6302_v25  ;;  %v6304_v14 = vpop.f32.mrb[227].mxu0  ;;  %v6784_v5 = vadd.f32 %v13827_v17, %v6783_v31  ;;  %v7003_v2 = vmax.f32 %v6781_v42, 0.0  ;;  %v9445_v17 = vadd.f32 %v13792_v57, %v14265_v38 }
 0x559   :  { %v7006_v7 = vmax.f32 %v6792_v22, 0.0 }
 0x55a   :  { %v7004_v43 = vmax.f32 %v6784_v5, 0.0  ;;  %v14268_v5 = vld [vmem:[#allocation77_spill] sm:$0xff] }
 0x55b   :  { %v8832_v28 = vpack.c.bf16 %v7006_v7, %v7005_v30  ;;  %v9451_v30 = vadd.f32 %v13792_v57, %v14268_v5 }
 0x55c   :  { %v8827_v13 = vpack.c.bf16 %v7004_v43, %v7003_v2  ;;  %v9157_v55 = vpop.f32.mrb[100].mxu1 }
 0x55d   :  { %8952 = vst [vmem:[%s14079_s3 + $0x188] sm:$0xff] %v8832_v28   ;;  %v6307_v19 = vpop.f32.mrb[228].mxu0  ;;  %v6805_v10 = vadd.f32 %v13877_v24, %v9157_v55  ;;  %v6796_v12 = vpop.f32.mrb[101].mxu1  ;;  %v14269_v28 = vld [vmem:[#allocation78_spill] sm:$0xff] }
 0x55e   :  { %8951 = vst [vmem:[%s14079_s3 + $0x180] sm:$0xff] %v8827_v13   ;;  %v13985_v32 = vadd.f32 %v9443_v54, %v6307_v19  ;;  %v6309_v53 = vpop.f32.mrb[229].mxu0  ;;  %v6797_v4 = vadd.f32 %v13859_v60, %v6796_v12  ;;  %v9158_v46 = vpop.f32.mrb[102].mxu1 }
 0x55f   :  { %v6310_v56 = vpop.f32.mrb[230].mxu0  ;;  %v6808_v52 = vadd.f32 %v13881_v50, %v9158_v46  ;;  %v6799_v0 = vpop.f32.mrb[103].mxu1  ;;  %v7009_v47 = vmax.f32 %v6805_v10, 0.0 }
 0x560   :  { %v13989_v8 = vadd.f32 %v9445_v17, %v6310_v56  ;;  %v6312_v24 = vpop.f32.mrb[231].mxu0  ;;  %v6800_v44 = vadd.f32 %v13863_v51, %v6799_v0  ;;  %v7007_v16 = vmax.f32 %v6797_v4, 0.0  ;;  %v9449_v51 = vadd.f32 %v13792_v57, %v14267_v29  ;;  %v14270_v0 = vld [vmem:[#allocation79_spill] sm:$0xff] }
 0x561   :  { %v7010_v63 = vmax.f32 %v6808_v52, 0.0  ;;  %v9455_v24 = vadd.f32 %v13792_v57, %v14270_v0 }
 0x562   :  { %v7008_v35 = vmax.f32 %v6800_v44, 0.0 }
 0x563   :  { %v8842_v37 = vpack.c.bf16 %v7010_v63, %v7009_v47 }
 0x564   :  { %v8837_v27 = vpack.c.bf16 %v7008_v35, %v7007_v16  ;;  %v9161_v60 = vpop.f32.mrb[104].mxu1  ;;  %v14271_v16 = vld [vmem:[#allocation80_spill] sm:$0xff] }
 0x565   :  { %8954 = vst [vmem:[%s14079_s3 + $0x198] sm:$0xff] %v8842_v37   ;;  %v6315_v50 = vpop.f32.mrb[232].mxu0  ;;  %v6821_v33 = vadd.f32 %v13913_v23, %v9161_v60  ;;  %v6812_v11 = vpop.f32.mrb[105].mxu1 }
 0x566   :  { %8953 = vst [vmem:[%s14079_s3 + $0x190] sm:$0xff] %v8837_v27   ;;  %v14003_v41 = vadd.f32 %v9447_v9, %v6315_v50  ;;  %v6317_v58 = vpop.f32.mrb[233].mxu0  ;;  %v6813_v45 = vadd.f32 %v13895_v36, %v6812_v11  ;;  %v9162_v26 = vpop.f32.mrb[106].mxu1 }
 0x567   :  { %v6318_v18 = vpop.f32.mrb[234].mxu0  ;;  %v6824_v62 = vadd.f32 %v13917_v1, %v9162_v26  ;;  %v6815_v34 = vpop.f32.mrb[107].mxu1  ;;  %v7013_v48 = vmax.f32 %v6821_v33, 0.0 }
 0x568   :  { %v14007_v40 = vadd.f32 %v9449_v51, %v6318_v18  ;;  %v6320_v23 = vpop.f32.mrb[235].mxu0  ;;  %v6816_v42 = vadd.f32 %v13899_v20, %v6815_v34  ;;  %v7011_v22 = vmax.f32 %v6813_v45, 0.0  ;;  %v9453_v20 = vadd.f32 %v13792_v57, %v14269_v28  ;;  %v14272_v18 = vld [vmem:[#allocation81_spill] sm:$0xff] }
 0x569   :  { %v7014_v25 = vmax.f32 %v6824_v62, 0.0  ;;  %v9459_v62 = vadd.f32 %v13792_v57, %v14272_v18 }
 0x56a   :  { %v7012_v31 = vmax.f32 %v6816_v42, 0.0 }
 0x56b   :  { %v8852_v14 = vpack.c.bf16 %v7014_v25, %v7013_v48  ;;  %v14273_v48 = vld [vmem:[#allocation82_spill] sm:$0xff] }
 0x56c   :  { %v8847_v7 = vpack.c.bf16 %v7012_v31, %v7011_v22  ;;  %v9165_v36 = vpop.f32.mrb[108].mxu1 }
 0x56d   :  { %8956 = vst [vmem:[%s14079_s3 + $0x1a8] sm:$0xff] %v8852_v14   ;;  %v6323_v1 = vpop.f32.mrb[236].mxu0  ;;  %v6837_v2 = vadd.f32 %v13949_v61, %v9165_v36  ;;  %v6828_v43 = vpop.f32.mrb[109].mxu1 }
 0x56e   :  { %8955 = vst [vmem:[%s14079_s3 + $0x1a0] sm:$0xff] %v8847_v7   ;;  %v9452_v15 = vadd.f32 %v9451_v30, %v6323_v1  ;;  %v6325_v54 = vpop.f32.mrb[237].mxu0  ;;  %v6829_v13 = vadd.f32 %v13931_v59, %v6828_v43  ;;  %v9166_v55 = vpop.f32.mrb[110].mxu1 }
 0x56f   :  { %v6326_v19 = vpop.f32.mrb[238].mxu0  ;;  %v6840_v10 = vadd.f32 %v13953_v3, %v9166_v55  ;;  %v6831_v12 = vpop.f32.mrb[111].mxu1  ;;  %v7017_v53 = vmax.f32 %v6837_v2, 0.0 }
 0x570   :  { %v9454_v38 = vadd.f32 %v9453_v20, %v6326_v19  ;;  %v6328_v17 = vpop.f32.mrb[239].mxu0  ;;  %v6832_v61 = vadd.f32 %v13935_v6, %v6831_v12  ;;  %v7015_v46 = vmax.f32 %v6829_v13, 0.0  ;;  %v9457_v6 = vadd.f32 %v13792_v57, %v14271_v16  ;;  %v14274_v13 = vld [vmem:[#allocation83_spill] sm:$0xff] }
 0x571   :  { %v7018_v4 = vmax.f32 %v6840_v10, 0.0  ;;  %v9463_v55 = vadd.f32 %v13792_v57, %v14274_v13  ;;  %v14275_v17 = vld [vmem:[#allocation84_spill] sm:$0xff] }
 0x572   :  { %v7016_v56 = vmax.f32 %v6832_v61, 0.0 }
 0x573   :  { %v8862_v52 = vpack.c.bf16 %v7018_v4, %v7017_v53 }
 0x574   :  { %v8857_v44 = vpack.c.bf16 %v7016_v56, %v7015_v46  ;;  %v9169_v47 = vpop.f32.mrb[112].mxu1 }
 0x575   :  { %8958 = vst [vmem:[%s14079_s3 + $0x1b8] sm:$0xff] %v8862_v52   ;;  %v6331_v59 = vpop.f32.mrb[240].mxu0  ;;  %v6853_v3 = vadd.f32 %v13985_v32, %v9169_v47  ;;  %v6844_v63 = vpop.f32.mrb[113].mxu1 }
 0x576   :  { %8957 = vst [vmem:[%s14079_s3 + $0x1b0] sm:$0xff] %v8857_v44   ;;  %v9456_v35 = vadd.f32 %v9455_v24, %v6331_v59  ;;  %v6333_v37 = vpop.f32.mrb[241].mxu0  ;;  %v6845_v21 = vadd.f32 %v13967_v49, %v6844_v63  ;;  %v9170_v9 = vpop.f32.mrb[114].mxu1 }
 0x577   :  { %v6334_v27 = vpop.f32.mrb[242].mxu0  ;;  %v6856_v60 = vadd.f32 %v13989_v8, %v9170_v9  ;;  %v6847_v50 = vpop.f32.mrb[115].mxu1  ;;  %v7021_v29 = vmax.f32 %v6853_v3, 0.0  ;;  %v14276_v37 = vld [vmem:[#allocation85_spill] sm:$0xff] }
 0x578   :  { %v9458_v33 = vadd.f32 %v9457_v6, %v6334_v27  ;;  %v6336_v11 = vpop.f32.mrb[243].mxu0  ;;  %v6848_v32 = vadd.f32 %v13971_v39, %v6847_v50  ;;  %v7019_v58 = vmax.f32 %v6845_v21, 0.0  ;;  %v9461_v39 = vadd.f32 %v13792_v57, %v14273_v48  ;;  %v14277_v50 = vld [vmem:[#allocation86_spill] sm:$0xff] }
 0x579   :  { %v7022_v51 = vmax.f32 %v6856_v60, 0.0  ;;  %v9467_v21 = vadd.f32 %v13792_v57, %v14276_v37  ;;  %v9469_v11 = vadd.f32 %v13792_v57, %v14277_v50 }
 0x57a   :  { %v7020_v45 = vmax.f32 %v6848_v32, 0.0 }
 0x57b   :  { %v8872_v26 = vpack.c.bf16 %v7022_v51, %v7021_v29 }
 0x57c   :  { %v8867_v34 = vpack.c.bf16 %v7020_v45, %v7019_v58  ;;  %v9173_v23 = vpop.f32.mrb[116].mxu1 }
 0x57d   :  { %8960 = vst [vmem:[%s14079_s3 + $0x1c8] sm:$0xff] %v8872_v26   ;;  %v6339_v49 = vpop.f32.mrb[244].mxu0  ;;  %v6869_v8 = vadd.f32 %v9452_v15, %v9173_v23  ;;  %v6860_v42 = vpop.f32.mrb[117].mxu1 }
 0x57e   :  { %8959 = vst [vmem:[%s14079_s3 + $0x1c0] sm:$0xff] %v8867_v34   ;;  %v9460_v25 = vadd.f32 %v9459_v62, %v6339_v49  ;;  %v6341_v22 = vpop.f32.mrb[245].mxu0  ;;  %v6861_v31 = vadd.f32 %v14003_v41, %v6860_v42  ;;  %v9174_v14 = vpop.f32.mrb[118].mxu1 }
 0x57f   :  { %v6342_v5 = vpop.f32.mrb[246].mxu0  ;;  %v6872_v30 = vadd.f32 %v9454_v38, %v9174_v14  ;;  %v6863_v7 = vpop.f32.mrb[119].mxu1  ;;  %v7025_v43 = vmax.f32 %v6869_v8, 0.0 }
 0x580   :  { %v9462_v36 = vadd.f32 %v9461_v39, %v6342_v5  ;;  %v6344_v1 = vpop.f32.mrb[247].mxu0  ;;  %v6864_v2 = vadd.f32 %v14007_v40, %v6863_v7  ;;  %v7023_v20 = vmax.f32 %v6861_v31, 0.0  ;;  %v9465_v40 = vadd.f32 %v13792_v57, %v14275_v17 }
 0x581   :  { %v7026_v28 = vmax.f32 %v6872_v30, 0.0 }
 0x582   :  { %v7024_v15 = vmax.f32 %v6864_v2, 0.0 }
 0x583   :  { %v8882_v54 = vpack.c.bf16 %v7026_v28, %v7025_v43 }
 0x584   :  { %v8877_v19 = vpack.c.bf16 %v7024_v15, %v7023_v20  ;;  %v9177_v10 = vpop.f32.mrb[120].mxu1 }
 0x585   :  { %8962 = vst [vmem:[%s14079_s3 + $0x1d8] sm:$0xff] %v8882_v54   ;;  %v6347_v41 = vpop.f32.mrb[248].mxu0  ;;  %v6885_v12 = vadd.f32 %v9460_v25, %v9177_v10  ;;  %v6876_v38 = vpop.f32.mrb[121].mxu1 }
 0x586   :  { %8961 = vst [vmem:[%s14079_s3 + $0x1d0] sm:$0xff] %v8877_v19   ;;  %v9464_v61 = vadd.f32 %v9463_v55, %v6347_v41  ;;  %v6349_v53 = vpop.f32.mrb[249].mxu0  ;;  %v6877_v4 = vadd.f32 %v9456_v35, %v6876_v38  ;;  %v9178_v46 = vpop.f32.mrb[122].mxu1 }
 0x587   :  { %v6350_v56 = vpop.f32.mrb[250].mxu0  ;;  %v6888_v52 = vadd.f32 %v9462_v36, %v9178_v46  ;;  %v6879_v0 = vpop.f32.mrb[123].mxu1  ;;  %v7029_v59 = vmax.f32 %v6885_v12, 0.0 }
 0x588   :  { %v9466_v24 = vadd.f32 %v9465_v40, %v6350_v56  ;;  %v6352_v44 = vpop.f32.mrb[251].mxu0  ;;  %v6880_v47 = vadd.f32 %v9458_v33, %v6879_v0  ;;  %v7027_v63 = vmax.f32 %v6877_v4, 0.0 }
 0x589   :  { %v7030_v3 = vmax.f32 %v6888_v52, 0.0 }
 0x58a   :  { %v7028_v16 = vmax.f32 %v6880_v47, 0.0 }
 0x58b   :  { %v8892_v6 = vpack.c.bf16 %v7030_v3, %v7029_v59 }
 0x58c   :  { %v8887_v9 = vpack.c.bf16 %v7028_v16, %v7027_v63  ;;  %v9181_v27 = vpop.f32.mrb[124].mxu1 }
 0x58d   :  { %8964 = vst [vmem:[%s14079_s3 + $0x1e8] sm:$0xff] %v8892_v6   ;;  %v6355_v35 = vpop.f32.mrb[252].mxu0  ;;  %v6892_v60 = vpop.f32.mrb[125].mxu1 }
 0x58e   :  { %8963 = vst [vmem:[%s14079_s3 + $0x1e0] sm:$0xff] %v8887_v9   ;;  %v9468_v33 = vadd.f32 %v9467_v21, %v6355_v35  ;;  %v6357_v32 = vpop.f32.mrb[253].mxu0  ;;  %v6893_v29 = vadd.f32 %v9464_v61, %v6892_v60  ;;  %v9182_v51 = vpop.f32.mrb[126].mxu1 }
 0x58f   :  { %v6358_v58 = vpop.f32.mrb[254].mxu0  ;;  %v6895_v45 = vpop.f32.mrb[127].mxu1 }
 0x590   :  { %v6901_v26 = vadd.f32 %v9468_v33, %v9181_v27  ;;  %v9470_v18 = vadd.f32 %v9469_v11, %v6358_v58  ;;  %v6360_v62 = vpop.f32.mrb[255].mxu0  ;;  %v6896_v34 = vadd.f32 %v9466_v24, %v6895_v45  ;;  %v7031_v23 = vmax.f32 %v6893_v29, 0.0 }
 0x592   :  { %v6904_v49 = vadd.f32 %v9470_v18, %v9182_v51  ;;  %v7032_v8 = vmax.f32 %v6896_v34, 0.0  ;;  %v7033_v42 = vmax.f32 %v6901_v26, 0.0 }
 0x594   :  { %v7034_v48 = vmax.f32 %v6904_v49, 0.0  ;;  %v8897_v57 = vpack.c.bf16 %v7032_v8, %v7031_v23 }
 0x596   :  { %v8902_v39 = vpack.c.bf16 %v7034_v48, %v7033_v42  ;;  %8965 = vst [vmem:[%s14079_s3 + $0x1f0] sm:$0xff] %v8897_v57  }
 0x598   :  { %8966 = vst [vmem:[%s14079_s3 + $0x1f8] sm:$0xff] %v8902_v39  }

// kernel: cnn_plus_fc_forward.8
= control target key start
LH: loop header
LB: loop body
LE: loop exit
PB: predicated region body
PF: predicated region fallthrough
CT: control target
= control target key end

     0   :  { %s2737_s1 = inlined_call_operand.vmem [shape: bf16[1152,256], index: 1, kind: input, shape index: {}]   ;;  %s2738_s0 = inlined_call_operand.vmem [shape: bf16[64,1152], index: 0, kind: input, shape index: {}]   ;;  %s2739_s2 = inlined_call_operand.vmem [shape: f32[1,256], index: 2, kind: input, shape index: {}]   ;;  %s2740_s3 = inlined_call_operand.vmem [shape: bf16[64,256], index: 3, kind: output, shape index: {}]  }
   0x1   :  { %v1849_v0 = vld [vmem:[%s2737_s1 + $0x4] ss:$8 sps:$4 sm:$0xff]   ;;  %v1853_v2 = vld [vmem:[%s2737_s1] ss:$8 sps:$4 sm:$0xff]   ;;  %v1855_v4 = vld [vmem:[%s2737_s1 + $0x14] ss:$8 sps:$4 sm:$0xff]  }
   0x2   :  { %v1851_v1 = vld [vmem:[%s2737_s1 + $0x204] ss:$8 sps:$4 sm:$0xff]   ;;  %1115 = vmatprep.subr.bf16.mxu1 %v1849_v0  ;;  %v1854_v3 = vld [vmem:[%s2737_s1 + $0x200] ss:$8 sps:$4 sm:$0xff]   ;;  %v1857_v5 = vld [vmem:[%s2737_s1 + $0x214] ss:$8 sps:$4 sm:$0xff]  }
   0x3   :  { %1261 = vmatprep.subr.bf16.mxu0 %v1851_v1  ;;  %1116 = vmatpush1.bf16.msra.mxu1 %v1853_v2  ;;  %v1859_v6 = vld [vmem:[%s2737_s1 + $0x10] ss:$8 sps:$4 sm:$0xff]   ;;  %v1861_v8 = vld [vmem:[%s2737_s1 + $0x24] ss:$8 sps:$4 sm:$0xff]   ;;  %v1865_v10 = vld [vmem:[%s2737_s1 + $0x20] ss:$8 sps:$4 sm:$0xff]  }
   0x4   :  { %1262 = vmatpush1.bf16.msra.mxu0 %v1854_v3  ;;  %1117 = vmatprep.subr.bf16.mxu1 %v1855_v4  ;;  %v1860_v7 = vld [vmem:[%s2737_s1 + $0x210] ss:$8 sps:$4 sm:$0xff]   ;;  %v1863_v9 = vld [vmem:[%s2737_s1 + $0x224] ss:$8 sps:$4 sm:$0xff]   ;;  %v1866_v11 = vld [vmem:[%s2737_s1 + $0x220] ss:$8 sps:$4 sm:$0xff]  }
   0x5   :  { %1263 = vmatprep.subr.bf16.mxu0 %v1857_v5  ;;  %v1867_v12 = vld [vmem:[%s2737_s1 + $0x34] ss:$8 sps:$4 sm:$0xff]   ;;  %v1871_v14 = vld [vmem:[%s2737_s1 + $0x30] ss:$8 sps:$4 sm:$0xff]   ;;  %v1873_v16 = vld [vmem:[%s2737_s1 + $0x44] ss:$8 sps:$4 sm:$0xff]  }
   0x6   :  { %v1869_v13 = vld [vmem:[%s2737_s1 + $0x234] ss:$8 sps:$4 sm:$0xff]   ;;  %v1872_v15 = vld [vmem:[%s2737_s1 + $0x230] ss:$8 sps:$4 sm:$0xff]   ;;  %v1875_v17 = vld [vmem:[%s2737_s1 + $0x244] ss:$8 sps:$4 sm:$0xff]  }
   0x7   :  { %1118 = vmatpush1.bf16.msra.mxu1 %v1859_v6  ;;  %v1877_v18 = vld [vmem:[%s2737_s1 + $0x40] ss:$8 sps:$4 sm:$0xff]   ;;  %v1879_v20 = vld [vmem:[%s2737_s1 + $0x54] ss:$8 sps:$4 sm:$0xff]   ;;  %v1883_v22 = vld [vmem:[%s2737_s1 + $0x50] ss:$8 sps:$4 sm:$0xff]  }
   0x8   :  { %1264 = vmatpush1.bf16.msra.mxu0 %v1860_v7  ;;  %1119 = vmatprep.subr.bf16.mxu1 %v1861_v8  ;;  %v1878_v19 = vld [vmem:[%s2737_s1 + $0x240] ss:$8 sps:$4 sm:$0xff]   ;;  %v1881_v21 = vld [vmem:[%s2737_s1 + $0x254] ss:$8 sps:$4 sm:$0xff]   ;;  %v1884_v23 = vld [vmem:[%s2737_s1 + $0x250] ss:$8 sps:$4 sm:$0xff]  }
   0x9   :  { %1265 = vmatprep.subr.bf16.mxu0 %v1863_v9  ;;  %v1885_v24 = vld [vmem:[%s2737_s1 + $0x64] ss:$8 sps:$4 sm:$0xff]   ;;  %v1889_v26 = vld [vmem:[%s2737_s1 + $0x60] ss:$8 sps:$4 sm:$0xff]   ;;  %v1891_v28 = vld [vmem:[%s2737_s1 + $0x74] ss:$8 sps:$4 sm:$0xff]  }
   0xa   :  { %v1887_v25 = vld [vmem:[%s2737_s1 + $0x264] ss:$8 sps:$4 sm:$0xff]   ;;  %v1890_v27 = vld [vmem:[%s2737_s1 + $0x260] ss:$8 sps:$4 sm:$0xff]   ;;  %v1893_v29 = vld [vmem:[%s2737_s1 + $0x274] ss:$8 sps:$4 sm:$0xff]  }
   0xb   :  { %1120 = vmatpush1.bf16.msra.mxu1 %v1865_v10  ;;  %v1895_v30 = vld [vmem:[%s2737_s1 + $0x70] ss:$8 sps:$4 sm:$0xff]   ;;  %v1897_v32 = vld [vmem:[%s2737_s1 + $0x84] ss:$8 sps:$4 sm:$0xff]   ;;  %v1901_v34 = vld [vmem:[%s2737_s1 + $0x80] ss:$8 sps:$4 sm:$0xff]  }
   0xc   :  { %1266 = vmatpush1.bf16.msra.mxu0 %v1866_v11  ;;  %1121 = vmatprep.subr.bf16.mxu1 %v1867_v12  ;;  %v1896_v31 = vld [vmem:[%s2737_s1 + $0x270] ss:$8 sps:$4 sm:$0xff]   ;;  %v1899_v33 = vld [vmem:[%s2737_s1 + $0x284] ss:$8 sps:$4 sm:$0xff]   ;;  %v1902_v35 = vld [vmem:[%s2737_s1 + $0x280] ss:$8 sps:$4 sm:$0xff]  }
   0xd   :  { %1267 = vmatprep.subr.bf16.mxu0 %v1869_v13  ;;  %v1903_v36 = vld [vmem:[%s2737_s1 + $0x94] ss:$8 sps:$4 sm:$0xff]   ;;  %v1907_v38 = vld [vmem:[%s2737_s1 + $0x90] ss:$8 sps:$4 sm:$0xff]   ;;  %v1909_v40 = vld [vmem:[%s2737_s1 + $0xa4] ss:$8 sps:$4 sm:$0xff]  }
   0xe   :  { %v1905_v37 = vld [vmem:[%s2737_s1 + $0x294] ss:$8 sps:$4 sm:$0xff]   ;;  %v1908_v39 = vld [vmem:[%s2737_s1 + $0x290] ss:$8 sps:$4 sm:$0xff]   ;;  %v1911_v41 = vld [vmem:[%s2737_s1 + $0x2a4] ss:$8 sps:$4 sm:$0xff]  }
   0xf   :  { %1122 = vmatpush1.bf16.msra.mxu1 %v1871_v14  ;;  %v1913_v42 = vld [vmem:[%s2737_s1 + $0xa0] ss:$8 sps:$4 sm:$0xff]   ;;  %v1915_v44 = vld [vmem:[%s2737_s1 + $0xb4] ss:$8 sps:$4 sm:$0xff]   ;;  %v1919_v46 = vld [vmem:[%s2737_s1 + $0xb0] ss:$8 sps:$4 sm:$0xff]  }
  0x10   :  { %1268 = vmatpush1.bf16.msra.mxu0 %v1872_v15  ;;  %1123 = vmatprep.subr.bf16.mxu1 %v1873_v16  ;;  %v1914_v43 = vld [vmem:[%s2737_s1 + $0x2a0] ss:$8 sps:$4 sm:$0xff]   ;;  %v1917_v45 = vld [vmem:[%s2737_s1 + $0x2b4] ss:$8 sps:$4 sm:$0xff]   ;;  %v1920_v47 = vld [vmem:[%s2737_s1 + $0x2b0] ss:$8 sps:$4 sm:$0xff]  }
  0x11   :  { %1269 = vmatprep.subr.bf16.mxu0 %v1875_v17  ;;  %v1947_v48 = vld [vmem:[%s2738_s0 + $0x4] ss:$36 sps:$4 sm:$0xff]   ;;  %v1953_v51 = vld [vmem:[%s2738_s0 + $0x14] ss:$36 sps:$4 sm:$0xff]  }
  0x12   :  { %v1921_v49 = vld [vmem:[%s2737_s1 + $0xc4] ss:$8 sps:$4 sm:$0xff]   ;;  %1147 = vmatprep.mubr.bf16.mxu1 %v1947_v48  ;;  %v1925_v52 = vld [vmem:[%s2737_s1 + $0xc0] ss:$8 sps:$4 sm:$0xff]   ;;  %v1927_v54 = vld [vmem:[%s2737_s1 + $0xd4] ss:$8 sps:$4 sm:$0xff]   ;;  %1293 = vmatprep.mubr.bf16.mxu0 %v1953_v51 }
  0x13   :  { %1124 = vmatpush1.bf16.msra.mxu1 %v1877_v18  ;;  %v1923_v50 = vld [vmem:[%s2737_s1 + $0x2c4] ss:$8 sps:$4 sm:$0xff]   ;;  %v1926_v53 = vld [vmem:[%s2737_s1 + $0x2c0] ss:$8 sps:$4 sm:$0xff]   ;;  %v1929_v55 = vld [vmem:[%s2737_s1 + $0x2d4] ss:$8 sps:$4 sm:$0xff]  }
  0x14   :  { %1270 = vmatpush1.bf16.msra.mxu0 %v1878_v19  ;;  %1125 = vmatprep.subr.bf16.mxu1 %v1879_v20  ;;  %v1931_v56 = vld [vmem:[%s2737_s1 + $0xd0] ss:$8 sps:$4 sm:$0xff]   ;;  %v1933_v58 = vld [vmem:[%s2737_s1 + $0xe4] ss:$8 sps:$4 sm:$0xff]   ;;  %v1937_v60 = vld [vmem:[%s2737_s1 + $0xe0] ss:$8 sps:$4 sm:$0xff]  }
  0x15   :  { %1271 = vmatprep.subr.bf16.mxu0 %v1881_v21  ;;  %v1932_v57 = vld [vmem:[%s2737_s1 + $0x2d0] ss:$8 sps:$4 sm:$0xff]   ;;  %v1935_v59 = vld [vmem:[%s2737_s1 + $0x2e4] ss:$8 sps:$4 sm:$0xff]   ;;  %v1938_v61 = vld [vmem:[%s2737_s1 + $0x2e0] ss:$8 sps:$4 sm:$0xff]  }
  0x16   :  { %v1939_v62 = vld [vmem:[%s2737_s1 + $0xf4] ss:$8 sps:$4 sm:$0xff]   ;;  %v1943_v0 = vld [vmem:[%s2737_s1 + $0xf0] ss:$8 sps:$4 sm:$0xff]   ;;  %v1950_v2 = vld [vmem:[%s2737_s1 + $0x104] ss:$8 sps:$4 sm:$0xff]  }
  0x17   :  { %1126 = vmatpush1.bf16.msra.mxu1 %v1883_v22  ;;  %v1941_v63 = vld [vmem:[%s2737_s1 + $0x2f4] ss:$8 sps:$4 sm:$0xff]   ;;  %v1944_v1 = vld [vmem:[%s2737_s1 + $0x2f0] ss:$8 sps:$4 sm:$0xff]   ;;  %v1956_v3 = vld [vmem:[%s2737_s1 + $0x304] ss:$8 sps:$4 sm:$0xff]  }
  0x18   :  { %1272 = vmatpush1.bf16.msra.mxu0 %v1884_v23  ;;  %1127 = vmatprep.subr.bf16.mxu1 %v1885_v24  ;;  %v1945_v4 = vld [vmem:[%s2738_s0] ss:$36 sps:$4 sm:$0xff]   ;;  %v1951_v6 = vld [vmem:[%s2738_s0 + $0x10] ss:$36 sps:$4 sm:$0xff]   ;;  %v2015_v20 = vld [vmem:[%s2738_s0 + $0x48] ss:$36 sps:$4 sm:$0xff]  }
  0x19   :  { %1273 = vmatprep.subr.bf16.mxu0 %v1887_v25  ;;  %v1948_v5 = vld [vmem:[%s2737_s1 + $0x100] ss:$8 sps:$4 sm:$0xff]   ;;  %v1959_v8 = vld [vmem:[%s2737_s1 + $0x114] ss:$8 sps:$4 sm:$0xff]   ;;  %v1957_v10 = vld [vmem:[%s2737_s1 + $0x110] ss:$8 sps:$4 sm:$0xff]  }
  0x1a   :  { %v1954_v7 = vld [vmem:[%s2737_s1 + $0x300] ss:$8 sps:$4 sm:$0xff]   ;;  %v1962_v9 = vld [vmem:[%s2737_s1 + $0x314] ss:$8 sps:$4 sm:$0xff]   ;;  %v1960_v11 = vld [vmem:[%s2737_s1 + $0x310] ss:$8 sps:$4 sm:$0xff]  }
  0x1b   :  { %1128 = vmatpush1.bf16.msra.mxu1 %v1889_v26  ;;  %v1965_v12 = vld [vmem:[%s2737_s1 + $0x124] ss:$8 sps:$4 sm:$0xff]   ;;  %v1963_v14 = vld [vmem:[%s2737_s1 + $0x120] ss:$8 sps:$4 sm:$0xff]   ;;  %v1971_v16 = vld [vmem:[%s2737_s1 + $0x134] ss:$8 sps:$4 sm:$0xff]  }
  0x1c   :  { %1274 = vmatpush1.bf16.msra.mxu0 %v1890_v27  ;;  %1129 = vmatprep.subr.bf16.mxu1 %v1891_v28  ;;  %v1968_v13 = vld [vmem:[%s2737_s1 + $0x324] ss:$8 sps:$4 sm:$0xff]   ;;  %v1966_v15 = vld [vmem:[%s2737_s1 + $0x320] ss:$8 sps:$4 sm:$0xff]   ;;  %v1974_v17 = vld [vmem:[%s2737_s1 + $0x334] ss:$8 sps:$4 sm:$0xff]  }
  0x1d   :  { %1275 = vmatprep.subr.bf16.mxu0 %v1893_v29  ;;  %v2011_v18 = vld [vmem:[%s2738_s0 + $0x4c] ss:$36 sps:$4 sm:$0xff]   ;;  %v2013_v19 = vld [vmem:[%s2738_s0 + $0x5c] ss:$36 sps:$4 sm:$0xff]  }
  0x1e   :  { %v1969_v21 = vld [vmem:[%s2737_s1 + $0x130] ss:$8 sps:$4 sm:$0xff]   ;;  %v1977_v24 = vld [vmem:[%s2737_s1 + $0x144] ss:$8 sps:$4 sm:$0xff]   ;;  %v1975_v26 = vld [vmem:[%s2737_s1 + $0x140] ss:$8 sps:$4 sm:$0xff]  }
  0x1f   :  { %1130 = vmatpush1.bf16.msra.mxu1 %v1895_v30  ;;  %v1972_v22 = vld [vmem:[%s2737_s1 + $0x330] ss:$8 sps:$4 sm:$0xff]   ;;  %v1980_v25 = vld [vmem:[%s2737_s1 + $0x344] ss:$8 sps:$4 sm:$0xff]   ;;  %v1978_v27 = vld [vmem:[%s2737_s1 + $0x340] ss:$8 sps:$4 sm:$0xff]  }
  0x20   :  { %1276 = vmatpush1.bf16.msra.mxu0 %v1896_v31  ;;  %1131 = vmatprep.subr.bf16.mxu1 %v1897_v32  ;;  %v2019_v23 = vld [vmem:[%s2738_s0 + $0x58] ss:$36 sps:$4 sm:$0xff]   ;;  %v2031_v31 = vld [vmem:[%s2738_s0 + $0xa4] ss:$36 sps:$4 sm:$0xff]   ;;  %v2033_v32 = vld [vmem:[%s2738_s0 + $0x90] ss:$36 sps:$4 sm:$0xff]  }
  0x21   :  { %1277 = vmatprep.subr.bf16.mxu0 %v1899_v33  ;;  %v1983_v28 = vld [vmem:[%s2737_s1 + $0x154] ss:$8 sps:$4 sm:$0xff]   ;;  %v1981_v33 = vld [vmem:[%s2737_s1 + $0x150] ss:$8 sps:$4 sm:$0xff]   ;;  %v2001_v48 = vld [vmem:[%s2737_s1 + $0x184] ss:$8 sps:$4 sm:$0xff]  }
  0x22   :  { %v1986_v29 = vld [vmem:[%s2737_s1 + $0x354] ss:$8 sps:$4 sm:$0xff]   ;;  %v2002_v51 = vld [vmem:[%s2737_s1 + $0x380] ss:$8 sps:$4 sm:$0xff]  }
  0x23   :  { %1132 = vmatpush1.bf16.msra.mxu1 %v1901_v34  ;;  %v2029_v30 = vld [vmem:[%s2738_s0 + $0x94] ss:$36 sps:$4 sm:$0xff]  }
  0x24   :  { %1278 = vmatpush1.bf16.msra.mxu0 %v1902_v35  ;;  %1133 = vmatprep.subr.bf16.mxu1 %v1903_v36  ;;  %v1984_v34 = vld [vmem:[%s2737_s1 + $0x350] ss:$8 sps:$4 sm:$0xff]   ;;  %v2037_v35 = vld [vmem:[%s2738_s0 + $0xa0] ss:$36 sps:$4 sm:$0xff]  }
  0x25   :  { %1279 = vmatprep.subr.bf16.mxu0 %v1905_v37  ;;  %v1989_v36 = vld [vmem:[%s2737_s1 + $0x164] ss:$8 sps:$4 sm:$0xff]  }
  0x26   :  { %v1992_v37 = vld [vmem:[%s2737_s1 + $0x364] ss:$8 sps:$4 sm:$0xff]  }
  0x27   :  { %1134 = vmatpush1.bf16.msra.mxu1 %v1907_v38  ;;  %v1987_v38 = vld [vmem:[%s2737_s1 + $0x160] ss:$8 sps:$4 sm:$0xff]  }
  0x28   :  { %1280 = vmatpush1.bf16.msra.mxu0 %v1908_v39  ;;  %1135 = vmatprep.subr.bf16.mxu1 %v1909_v40  ;;  %v1990_v39 = vld [vmem:[%s2737_s1 + $0x360] ss:$8 sps:$4 sm:$0xff]   ;;  %v1995_v40 = vld [vmem:[%s2737_s1 + $0x174] ss:$8 sps:$4 sm:$0xff]  }
  0x29   :  { %1281 = vmatprep.subr.bf16.mxu0 %v1911_v41  ;;  %v1998_v41 = vld [vmem:[%s2737_s1 + $0x374] ss:$8 sps:$4 sm:$0xff]  }
  0x2b   :  { %1136 = vmatpush1.bf16.msra.mxu1 %v1913_v42  ;;  %v2047_v42 = vld [vmem:[%s2738_s0 + $0xdc] ss:$36 sps:$4 sm:$0xff]  }
  0x2c   :  { %1282 = vmatpush1.bf16.msra.mxu0 %v1914_v43  ;;  %1137 = vmatprep.subr.bf16.mxu1 %v1915_v44  ;;  %v2049_v43 = vld [vmem:[%s2738_s0 + $0xec] ss:$36 sps:$4 sm:$0xff]   ;;  %v2051_v44 = vld [vmem:[%s2738_s0 + $0xd8] ss:$36 sps:$4 sm:$0xff]  }
  0x2d   :  { %1283 = vmatprep.subr.bf16.mxu0 %v1917_v45  ;;  %v1993_v45 = vld [vmem:[%s2737_s1 + $0x170] ss:$8 sps:$4 sm:$0xff]  }
  0x2f   :  { %1138 = vmatpush1.bf16.msra.mxu1 %v1919_v46  ;;  %v1996_v46 = vld [vmem:[%s2737_s1 + $0x370] ss:$8 sps:$4 sm:$0xff]  }
  0x30   :  { %1284 = vmatpush1.bf16.msra.mxu0 %v1920_v47  ;;  %1139 = vmatprep.subr.bf16.mxu1 %v1921_v49  ;;  %v2055_v47 = vld [vmem:[%s2738_s0 + $0xe8] ss:$36 sps:$4 sm:$0xff]  }
  0x31   :  { %1285 = vmatprep.subr.bf16.mxu0 %v1923_v50  ;;  %v2004_v49 = vld [vmem:[%s2737_s1 + $0x384] ss:$8 sps:$4 sm:$0xff]   ;;  %v1999_v50 = vld [vmem:[%s2737_s1 + $0x180] ss:$8 sps:$4 sm:$0xff]  }
  0x33   :  { %1140 = vmatpush1.bf16.msra.mxu1 %v1925_v52  ;;  %v2007_v52 = vld [vmem:[%s2737_s1 + $0x194] ss:$8 sps:$4 sm:$0xff]  }
  0x34   :  { %1286 = vmatpush1.bf16.msra.mxu0 %v1926_v53  ;;  %1141 = vmatprep.subr.bf16.mxu1 %v1927_v54  ;;  %v2010_v53 = vld [vmem:[%s2737_s1 + $0x394] ss:$8 sps:$4 sm:$0xff]   ;;  %v2067_v54 = vld [vmem:[%s2738_s0 + $0xc] ss:$36 sps:$4 sm:$0xff]  }
  0x35   :  { %1287 = vmatprep.subr.bf16.mxu0 %v1929_v55  ;;  %v2070_v55 = vld [vmem:[%s2738_s0 + $0x1c] ss:$36 sps:$4 sm:$0xff]  }
  0x37   :  { %1142 = vmatpush1.bf16.msra.mxu1 %v1931_v56  ;;  %v2005_v56 = vld [vmem:[%s2737_s1 + $0x190] ss:$8 sps:$4 sm:$0xff]  }
  0x38   :  { %1288 = vmatpush1.bf16.msra.mxu0 %v1932_v57  ;;  %1143 = vmatprep.subr.bf16.mxu1 %v1933_v58  ;;  %v2008_v57 = vld [vmem:[%s2737_s1 + $0x390] ss:$8 sps:$4 sm:$0xff]   ;;  %v2018_v58 = vld [vmem:[%s2737_s1 + $0x1a4] ss:$8 sps:$4 sm:$0xff]  }
  0x39   :  { %1289 = vmatprep.subr.bf16.mxu0 %v1935_v59  ;;  %v2022_v59 = vld [vmem:[%s2737_s1 + $0x3a4] ss:$8 sps:$4 sm:$0xff]  }
  0x3b   :  { %1144 = vmatpush1.bf16.msra.mxu1 %v1937_v60  ;;  %v2016_v60 = vld [vmem:[%s2737_s1 + $0x1a0] ss:$8 sps:$4 sm:$0xff]  }
  0x3c   :  { %1290 = vmatpush1.bf16.msra.mxu0 %v1938_v61  ;;  %1145 = vmatprep.subr.bf16.mxu1 %v1939_v62  ;;  %v2020_v61 = vld [vmem:[%s2737_s1 + $0x3a0] ss:$8 sps:$4 sm:$0xff]   ;;  %v2025_v62 = vld [vmem:[%s2737_s1 + $0x1b4] ss:$8 sps:$4 sm:$0xff]  }
  0x3d   :  { %1291 = vmatprep.subr.bf16.mxu0 %v1941_v63  ;;  %v2028_v63 = vld [vmem:[%s2737_s1 + $0x3b4] ss:$8 sps:$4 sm:$0xff]  }
  0x3f   :  { %1146 = vmatpush1.bf16.msra.mxu1 %v1943_v0  ;;  %v2023_v0 = vld [vmem:[%s2737_s1 + $0x1b0] ss:$8 sps:$4 sm:$0xff]  }
  0x40   :  { %1292 = vmatpush1.bf16.msra.mxu0 %v1944_v1  ;;  %1188 = vmatprep.subr.bf16.mxu1 %v1950_v2  ;;  %v2026_v1 = vld [vmem:[%s2737_s1 + $0x3b0] ss:$8 sps:$4 sm:$0xff]   ;;  %v2036_v2 = vld [vmem:[%s2737_s1 + $0x1c4] ss:$8 sps:$4 sm:$0xff]  }
  0x41   :  { %1334 = vmatprep.subr.bf16.mxu0 %v1956_v3  ;;  %v2040_v3 = vld [vmem:[%s2737_s1 + $0x3c4] ss:$8 sps:$4 sm:$0xff]  }
  0x42   :  { %1148 = vmatmul.mubr.bf16.vlgmr.msra.gmra.mrb[0].mxu1 %v1945_v4  ;;  %v2034_v4 = vld [vmem:[%s2737_s1 + $0x1c0] ss:$8 sps:$4 sm:$0xff]  }
  0x43   :  { %1294 = vmatmul.mubr.bf16.vlgmr.msra.gmra.mrb[0].mxu0 %v1951_v6  ;;  %1189 = vmatpush1.bf16.msra.mxu1 %v1948_v5  ;;  %v2038_v5 = vld [vmem:[%s2737_s1 + $0x3c0] ss:$8 sps:$4 sm:$0xff]   ;;  %v2043_v6 = vld [vmem:[%s2737_s1 + $0x1d4] ss:$8 sps:$4 sm:$0xff]  }
  0x44   :  { %1335 = vmatpush1.bf16.msra.mxu0 %v1954_v7  ;;  %1190 = vmatprep.subr.bf16.mxu1 %v1959_v8  ;;  %v2046_v7 = vld [vmem:[%s2737_s1 + $0x3d4] ss:$8 sps:$4 sm:$0xff]   ;;  %v2041_v8 = vld [vmem:[%s2737_s1 + $0x1d0] ss:$8 sps:$4 sm:$0xff]  }
  0x45   :  { %1336 = vmatprep.subr.bf16.mxu0 %v1962_v9  ;;  %1157 = vmatprep.mubr.bf16.mxu1 %v2011_v18  ;;  %v2044_v9 = vld [vmem:[%s2737_s1 + $0x3d0] ss:$8 sps:$4 sm:$0xff]   ;;  %v2073_v18 = vld [vmem:[%s2737_s1 + $0x404] ss:$8 sps:$4 sm:$0xff]  }
  0x46   :  { %1303 = vmatprep.mubr.bf16.mxu0 %v2013_v19  ;;  %v2065_v19 = vld [vmem:[%s2738_s0 + $0x8] ss:$36 sps:$4 sm:$0xff]  }
  0x47   :  { %1191 = vmatpush1.bf16.msra.mxu1 %v1957_v10  ;;  %v2054_v10 = vld [vmem:[%s2737_s1 + $0x1e4] ss:$8 sps:$4 sm:$0xff]  }
  0x48   :  { %1337 = vmatpush1.bf16.msra.mxu0 %v1960_v11  ;;  %1192 = vmatprep.subr.bf16.mxu1 %v1965_v12  ;;  %v2058_v11 = vld [vmem:[%s2737_s1 + $0x3e4] ss:$8 sps:$4 sm:$0xff]   ;;  %v2052_v12 = vld [vmem:[%s2737_s1 + $0x1e0] ss:$8 sps:$4 sm:$0xff]  }
  0x49   :  { %1338 = vmatprep.subr.bf16.mxu0 %v1968_v13  ;;  %v2056_v13 = vld [vmem:[%s2737_s1 + $0x3e0] ss:$8 sps:$4 sm:$0xff]  }
  0x4a   :  { %1158 = vmatmul.mubr.bf16.gmra.mrb[4].mxu1 %v2015_v20  ;;  %v2068_v20 = vld [vmem:[%s2738_s0 + $0x18] ss:$36 sps:$4 sm:$0xff]  }
  0x4b   :  { %1193 = vmatpush1.bf16.msra.mxu1 %v1963_v14  ;;  %1304 = vmatmul.mubr.bf16.gmra.mrb[4].mxu0 %v2019_v23  ;;  %v2061_v14 = vld [vmem:[%s2737_s1 + $0x1f4] ss:$8 sps:$4 sm:$0xff]  }
  0x4c   :  { %1339 = vmatpush1.bf16.msra.mxu0 %v1966_v15  ;;  %1194 = vmatprep.subr.bf16.mxu1 %v1971_v16  ;;  %v2064_v15 = vld [vmem:[%s2737_s1 + $0x3f4] ss:$8 sps:$4 sm:$0xff]   ;;  %v2059_v16 = vld [vmem:[%s2737_s1 + $0x1f0] ss:$8 sps:$4 sm:$0xff]  }
  0x4d   :  { %1340 = vmatprep.subr.bf16.mxu0 %v1974_v17  ;;  %1167 = vmatprep.mubr.bf16.mxu1 %v2029_v30  ;;  %v2062_v17 = vld [vmem:[%s2737_s1 + $0x3f0] ss:$8 sps:$4 sm:$0xff]   ;;  %v2088_v30 = vld [vmem:[%s2737_s1 + $0x434] ss:$8 sps:$4 sm:$0xff]  }
  0x4e   :  { %1313 = vmatprep.mubr.bf16.mxu0 %v2031_v31  ;;  %v2077_v23 = vld [vmem:[%s2738_s0 + $0x54] ss:$36 sps:$4 sm:$0xff]   ;;  %v2089_v31 = vld [vmem:[%s2738_s0 + $0x9c] ss:$36 sps:$4 sm:$0xff]  }
  0x4f   :  { %1195 = vmatpush1.bf16.msra.mxu1 %v1969_v21  ;;  %v2071_v21 = vld [vmem:[%s2737_s1 + $0x400] ss:$8 sps:$4 sm:$0xff]  }
  0x50   :  { %1341 = vmatpush1.bf16.msra.mxu0 %v1972_v22  ;;  %1196 = vmatprep.subr.bf16.mxu1 %v1977_v24  ;;  %v2076_v22 = vld [vmem:[%s2737_s1 + $0x414] ss:$8 sps:$4 sm:$0xff]   ;;  %v2079_v24 = vld [vmem:[%s2738_s0 + $0x64] ss:$36 sps:$4 sm:$0xff]  }
  0x51   :  { %1342 = vmatprep.subr.bf16.mxu0 %v1980_v25  ;;  %v2074_v25 = vld [vmem:[%s2737_s1 + $0x410] ss:$8 sps:$4 sm:$0xff]  }
  0x52   :  { %1168 = vmatmul.mubr.bf16.gmra.mrb[8].mxu1 %v2033_v32  ;;  %v2091_v32 = vld [vmem:[%s2738_s0 + $0xac] ss:$36 sps:$4 sm:$0xff]  }
  0x53   :  { %1197 = vmatpush1.bf16.msra.mxu1 %v1975_v26  ;;  %1314 = vmatmul.mubr.bf16.gmra.mrb[8].mxu0 %v2037_v35  ;;  %v2085_v26 = vld [vmem:[%s2737_s1 + $0x424] ss:$8 sps:$4 sm:$0xff]   ;;  %v2093_v35 = vld [vmem:[%s2738_s0 + $0x98] ss:$36 sps:$4 sm:$0xff]  }
  0x54   :  { %1343 = vmatpush1.bf16.msra.mxu0 %v1978_v27  ;;  %1198 = vmatprep.subr.bf16.mxu1 %v1983_v28  ;;  %v2081_v27 = vld [vmem:[%s2738_s0 + $0x50] ss:$36 sps:$4 sm:$0xff]   ;;  %v2082_v28 = vld [vmem:[%s2738_s0 + $0x60] ss:$36 sps:$4 sm:$0xff]  }
  0x55   :  { %1344 = vmatprep.subr.bf16.mxu0 %v1986_v29  ;;  %1177 = vmatprep.mubr.bf16.mxu1 %v2047_v42  ;;  %v2083_v29 = vld [vmem:[%s2737_s1 + $0x420] ss:$8 sps:$4 sm:$0xff]   ;;  %v2109_v42 = vld [vmem:[%s2737_s1 + $0x464] ss:$8 sps:$4 sm:$0xff]  }
  0x56   :  { %1323 = vmatprep.mubr.bf16.mxu0 %v2049_v43  ;;  %v2105_v43 = vld [vmem:[%s2738_s0 + $0xe0] ss:$36 sps:$4 sm:$0xff]  }
  0x57   :  { %1199 = vmatpush1.bf16.msra.mxu1 %v1981_v33  ;;  %v2086_v33 = vld [vmem:[%s2737_s1 + $0x430] ss:$8 sps:$4 sm:$0xff]  }
  0x58   :  { %1345 = vmatpush1.bf16.msra.mxu0 %v1984_v34  ;;  %1200 = vmatprep.subr.bf16.mxu1 %v1989_v36  ;;  %v2097_v34 = vld [vmem:[%s2737_s1 + $0x444] ss:$8 sps:$4 sm:$0xff]  }
  0x59   :  { %1346 = vmatprep.subr.bf16.mxu0 %v1992_v37  ;;  %v2094_v36 = vld [vmem:[%s2738_s0 + $0xa8] ss:$36 sps:$4 sm:$0xff]  }
  0x5a   :  { %1178 = vmatmul.mubr.bf16.gmra.mrb[12].mxu1 %v2051_v44  ;;  %v2095_v37 = vld [vmem:[%s2737_s1 + $0x440] ss:$8 sps:$4 sm:$0xff]   ;;  %v2106_v44 = vld [vmem:[%s2738_s0 + $0xf0] ss:$36 sps:$4 sm:$0xff]  }
  0x5b   :  { %1201 = vmatpush1.bf16.msra.mxu1 %v1987_v38  ;;  %1324 = vmatmul.mubr.bf16.gmra.mrb[12].mxu0 %v2055_v47  ;;  %v2100_v38 = vld [vmem:[%s2737_s1 + $0x454] ss:$8 sps:$4 sm:$0xff]   ;;  %v2110_v47 = vld [vmem:[%s2737_s1 + $0x470] ss:$8 sps:$4 sm:$0xff]  }
  0x5c   :  { %1347 = vmatpush1.bf16.msra.mxu0 %v1990_v39  ;;  %1202 = vmatprep.subr.bf16.mxu1 %v1995_v40  ;;  %v2101_v39 = vld [vmem:[%s2738_s0 + $0xe4] ss:$36 sps:$4 sm:$0xff]   ;;  %v2103_v40 = vld [vmem:[%s2738_s0 + $0xf4] ss:$36 sps:$4 sm:$0xff]  }
  0x5d   :  { %1348 = vmatprep.subr.bf16.mxu0 %v1998_v41  ;;  %1220 = vmatprep.mubr.bf16.mxu1 %v2067_v54  ;;  %v2098_v41 = vld [vmem:[%s2737_s1 + $0x450] ss:$8 sps:$4 sm:$0xff]  }
  0x5e   :  { %1366 = vmatprep.mubr.bf16.mxu0 %v2070_v55 }
  0x5f   :  { %1203 = vmatpush1.bf16.msra.mxu1 %v1993_v45  ;;  %v2107_v45 = vld [vmem:[%s2737_s1 + $0x460] ss:$8 sps:$4 sm:$0xff]  }
  0x60   :  { %1349 = vmatpush1.bf16.msra.mxu0 %v1996_v46  ;;  %1204 = vmatprep.subr.bf16.mxu1 %v2001_v48  ;;  %v2112_v46 = vld [vmem:[%s2737_s1 + $0x474] ss:$8 sps:$4 sm:$0xff]   ;;  %v2117_v48 = vmov 0  }
  0x61   :  { %1350 = vmatprep.subr.bf16.mxu0 %v2004_v49  ;;  %v2113_v49 = vld [vmem:[%s2738_s0 + $0x20] ss:$36 sps:$4 sm:$0xff]  }
  0x63   :  { %1205 = vmatpush1.bf16.msra.mxu1 %v1999_v50  ;;  %v2114_v50 = vld [vmem:[%s2738_s0 + $0xb0] ss:$36 sps:$4 sm:$0xff]  }
  0x64   :  { %1351 = vmatpush1.bf16.msra.mxu0 %v2002_v51  ;;  %1206 = vmatprep.subr.bf16.mxu1 %v2007_v52  ;;  %v2115_v51 = vld [vmem:[%s2738_s0 + $0x68] ss:$36 sps:$4 sm:$0xff]   ;;  %v2116_v52 = vld [vmem:[%s2738_s0 + $0xf8] ss:$36 sps:$4 sm:$0xff]  }
  0x65   :  { %1352 = vmatprep.subr.bf16.mxu0 %v2010_v53 }
  0x67   :  { %1207 = vmatpush1.bf16.msra.mxu1 %v2005_v56  ;;  %v201_v56 = vlaneseq }
  0x68   :  { %1353 = vmatpush1.bf16.msra.mxu0 %v2008_v57  ;;  %1208 = vmatprep.subr.bf16.mxu1 %v2018_v58 }
  0x69   :  { %1354 = vmatprep.subr.bf16.mxu0 %v2022_v59  ;;  %v202_v58 = vshrl.u32 %v201_v56, 7 }
  0x6b   :  { %1209 = vmatpush1.bf16.msra.mxu1 %v2016_v60 }
  0x6c   :  { %1355 = vmatpush1.bf16.msra.mxu0 %v2020_v61  ;;  %1210 = vmatprep.subr.bf16.mxu1 %v2025_v62  ;;  %v203_v62 = vsub.s32 0, %v202_v58 }
  0x6d   :  { %1356 = vmatprep.subr.bf16.mxu0 %v2028_v63 }
  0x6f   :  { %1211 = vmatpush1.bf16.msra.mxu1 %v2023_v0  ;;  %v199_v0 = vld [vmem:[%s2739_s2] sm:$0x3] }
  0x70   :  { %1357 = vmatpush1.bf16.msra.mxu0 %v2026_v1  ;;  %1212 = vmatprep.subr.bf16.mxu1 %v2036_v2  ;;  %v207_v1 = vsub.s32 1, %v202_v58  ;;  %v2689_v2 = vrot.slane %v199_v0, %v203_v62 }
  0x71   :  { %1358 = vmatprep.subr.bf16.mxu0 %v2040_v3 }
  0x72   :  { %v2691_v3 = vrot.slane %v199_v0, %v207_v1 }
  0x73   :  { %1213 = vmatpush1.bf16.msra.mxu1 %v2034_v4 }
  0x74   :  { %1359 = vmatpush1.bf16.msra.mxu0 %v2038_v5  ;;  %1214 = vmatprep.subr.bf16.mxu1 %v2043_v6 }
  0x75   :  { %1360 = vmatprep.subr.bf16.mxu0 %v2046_v7 }
  0x77   :  { %1215 = vmatpush1.bf16.msra.mxu1 %v2041_v8 }
  0x78   :  { %1361 = vmatpush1.bf16.msra.mxu0 %v2044_v9  ;;  %1216 = vmatprep.subr.bf16.mxu1 %v2054_v10 }
  0x79   :  { %1362 = vmatprep.subr.bf16.mxu0 %v2058_v11 }
  0x7b   :  { %1217 = vmatpush1.bf16.msra.mxu1 %v2052_v12 }
  0x7c   :  { %1363 = vmatpush1.bf16.msra.mxu0 %v2056_v13  ;;  %1218 = vmatprep.subr.bf16.mxu1 %v2061_v14 }
  0x7d   :  { %1364 = vmatprep.subr.bf16.mxu0 %v2064_v15 }
  0x7f   :  { %1219 = vmatpush1.bf16.msra.mxu1 %v2059_v16 }
  0x80   :  { %1365 = vmatpush1.bf16.msra.mxu0 %v2062_v17  ;;  %1752 = vmatprep.subr.bf16.mxu1 %v2073_v18 }
  0x81   :  { %1407 = vmatprep.subr.bf16.mxu0 %v2073_v18 }
  0x82   :  { %1221 = vmatmul.mubr.bf16.vlgmr.msra.gmra.mrb[0].mxu1 %v2065_v19 }
  0x83   :  { %1367 = vmatmul.mubr.bf16.vlgmr.msra.gmra.mrb[0].mxu0 %v2068_v20  ;;  %1760 = vmatpush1.bf16.msra.mxu1 %v2071_v21 }
  0x84   :  { %1408 = vmatpush1.bf16.msra.mxu0 %v2071_v21  ;;  %1753 = vmatprep.subr.bf16.mxu1 %v2076_v22 }
  0x85   :  { %1409 = vmatprep.subr.bf16.mxu0 %v2076_v22  ;;  %1230 = vmatprep.mubr.bf16.mxu1 %v2077_v23 }
  0x86   :  { %1376 = vmatprep.mubr.bf16.mxu0 %v2079_v24 }
  0x87   :  { %1761 = vmatpush1.bf16.msra.mxu1 %v2074_v25 }
  0x88   :  { %1410 = vmatpush1.bf16.msra.mxu0 %v2074_v25  ;;  %1754 = vmatprep.subr.bf16.mxu1 %v2085_v26 }
  0x89   :  { %1411 = vmatprep.subr.bf16.mxu0 %v2085_v26 }
  0x8a   :  { %1231 = vmatmul.mubr.bf16.gmra.mrb[4].mxu1 %v2081_v27 }
  0x8b   :  { %1377 = vmatmul.mubr.bf16.gmra.mrb[4].mxu0 %v2082_v28  ;;  %1762 = vmatpush1.bf16.msra.mxu1 %v2083_v29 }
  0x8c   :  { %1412 = vmatpush1.bf16.msra.mxu0 %v2083_v29  ;;  %1755 = vmatprep.subr.bf16.mxu1 %v2088_v30 }
  0x8d   :  { %1413 = vmatprep.subr.bf16.mxu0 %v2088_v30  ;;  %1240 = vmatprep.mubr.bf16.mxu1 %v2089_v31 }
  0x8e   :  { %1386 = vmatprep.mubr.bf16.mxu0 %v2091_v32 }
  0x8f   :  { %1763 = vmatpush1.bf16.msra.mxu1 %v2086_v33 }
  0x90   :  { %1414 = vmatpush1.bf16.msra.mxu0 %v2086_v33  ;;  %1756 = vmatprep.subr.bf16.mxu1 %v2097_v34 }
  0x91   :  { %1415 = vmatprep.subr.bf16.mxu0 %v2097_v34 }
  0x92   :  { %1241 = vmatmul.mubr.bf16.gmra.mrb[8].mxu1 %v2093_v35 }
  0x93   :  { %1387 = vmatmul.mubr.bf16.gmra.mrb[8].mxu0 %v2094_v36  ;;  %1764 = vmatpush1.bf16.msra.mxu1 %v2095_v37 }
  0x94   :  { %1416 = vmatpush1.bf16.msra.mxu0 %v2095_v37  ;;  %1757 = vmatprep.subr.bf16.mxu1 %v2100_v38 }
  0x95   :  { %1417 = vmatprep.subr.bf16.mxu0 %v2100_v38  ;;  %1250 = vmatprep.mubr.bf16.mxu1 %v2101_v39 }
  0x96   :  { %1396 = vmatprep.mubr.bf16.mxu0 %v2103_v40 }
  0x97   :  { %1765 = vmatpush1.bf16.msra.mxu1 %v2098_v41 }
  0x98   :  { %1418 = vmatpush1.bf16.msra.mxu0 %v2098_v41  ;;  %1758 = vmatprep.subr.bf16.mxu1 %v2109_v42 }
  0x99   :  { %1419 = vmatprep.subr.bf16.mxu0 %v2109_v42 }
  0x9a   :  { %1251 = vmatmul.mubr.bf16.gmra.mrb[12].mxu1 %v2105_v43 }
  0x9b   :  { %1397 = vmatmul.mubr.bf16.gmra.mrb[12].mxu0 %v2106_v44  ;;  %1766 = vmatpush1.bf16.msra.mxu1 %v2107_v45 }
  0x9c   :  { %1420 = vmatpush1.bf16.msra.mxu0 %v2107_v45  ;;  %1759 = vmatprep.subr.bf16.mxu1 %v2112_v46 }
  0x9d   :  { %1421 = vmatprep.subr.bf16.mxu0 %v2112_v46  ;;  %1439 = vmatprep.mubr.bf16.mxu0 %v2117_v48 }
  0x9e   :  { %1459 = vmatprep.mubr.bf16.mxu1 %v2117_v48 }
  0x9f   :  { %1767 = vmatpush1.bf16.msra.mxu1 %v2110_v47 }
  0xa0   :  { %1422 = vmatpush1.bf16.msra.mxu0 %v2110_v47 }
  0xa2   :  { %1460 = vmatmul.mubr.bf16.vlgmr.msra.gmra.mrb[16].mxu1 %v2114_v50 }
  0xa3   :  { %1440 = vmatmul.mubr.bf16.vlgmr.msra.gmra.mrb[0].mxu0 %v2113_v49  ;;  %1469 = vmatprep.mubr.bf16.mxu1 %v2117_v48 }
  0xa4   :  { %1449 = vmatprep.mubr.bf16.mxu0 %v2117_v48 }
  0xaa   :  { %1470 = vmatmul.mubr.bf16.gmra.mrb[20].mxu1 %v2116_v52 }
  0xab   :  { %1450 = vmatmul.mubr.bf16.gmra.mrb[4].mxu0 %v2115_v51 }
 0x155   :  { %v1222_v53 = vpop.f32.mrb[0].mxu1 }
 0x156   :  { %v1224_v54 = vpop.f32.mrb[1].mxu1  ;;  %v1768_v36 = vadd.f32 %v1222_v53, %v2689_v2 }
 0x157   :  { %v1226_v55 = vpop.f32.mrb[2].mxu1  ;;  %v1770_v37 = vadd.f32 %v1224_v54, %v2691_v3 }
 0x158   :  { %v1228_v57 = vpop.f32.mrb[3].mxu1  ;;  %v1772_v40 = vadd.f32 %v1226_v55, %v2689_v2 }
 0x159   :  { %v1774_v45 = vadd.f32 %v1228_v57, %v2691_v3 }
 0x15d   :  { %v2678_v59 = vpop.f32.mrb[4].mxu1 }
 0x15e   :  { %v2680_v60 = vpop.f32.mrb[5].mxu1 }
 0x15f   :  { %v2682_v61 = vpop.f32.mrb[6].mxu1 }
 0x160   :  { %v2684_v63 = vpop.f32.mrb[7].mxu1 }
 0x165   :  { %v1242_v4 = vpop.f32.mrb[8].mxu1 }
 0x166   :  { %v1388_v5 = vpop.f32.mrb[8].mxu0  ;;  %v1784_v6 = vadd.f32 %v1242_v4, %v2689_v2  ;;  %v1244_v7 = vpop.f32.mrb[9].mxu1 }
 0x167   :  { %v1390_v8 = vpop.f32.mrb[9].mxu0  ;;  %v1787_v9 = vadd.f32 %v1244_v7, %v2691_v3  ;;  %v1246_v10 = vpop.f32.mrb[10].mxu1 }
 0x168   :  { %v1392_v11 = vpop.f32.mrb[10].mxu0  ;;  %v1785_v12 = vadd.f32 %v1784_v6, %v1388_v5  ;;  %v1790_v13 = vadd.f32 %v1246_v10, %v2689_v2  ;;  %v1248_v14 = vpop.f32.mrb[11].mxu1 }
 0x169   :  { %v1394_v15 = vpop.f32.mrb[11].mxu0  ;;  %v1788_v16 = vadd.f32 %v1787_v9, %v1390_v8  ;;  %v1793_v17 = vadd.f32 %v1248_v14, %v2691_v3  ;;  %v1776_v8 = vadd.f32 %v2678_v59, %v2689_v2  ;;  %v1778_v9 = vadd.f32 %v2680_v60, %v2691_v3 }
 0x16a   :  { %v1791_v18 = vadd.f32 %v1790_v13, %v1392_v11  ;;  %v1780_v14 = vadd.f32 %v2682_v61, %v2689_v2  ;;  %v1782_v60 = vadd.f32 %v2684_v63, %v2691_v3 }
 0x16b   :  { %v1794_v19 = vadd.f32 %v1793_v17, %v1394_v15 }
 0x16d   :  { %v1252_v20 = vpop.f32.mrb[12].mxu1 }
 0x16e   :  { %v1398_v21 = vpop.f32.mrb[12].mxu0  ;;  %v1796_v22 = vadd.f32 %v1252_v20, %v2689_v2  ;;  %v1254_v23 = vpop.f32.mrb[13].mxu1 }
 0x16f   :  { %v1400_v24 = vpop.f32.mrb[13].mxu0  ;;  %v1799_v25 = vadd.f32 %v1254_v23, %v2691_v3  ;;  %v1256_v26 = vpop.f32.mrb[14].mxu1 }
 0x170   :  { %v1402_v27 = vpop.f32.mrb[14].mxu0  ;;  %v1797_v28 = vadd.f32 %v1796_v22, %v1398_v21  ;;  %v1802_v29 = vadd.f32 %v1256_v26, %v2689_v2  ;;  %v1258_v30 = vpop.f32.mrb[15].mxu1 }
 0x171   :  { %v1404_v31 = vpop.f32.mrb[15].mxu0  ;;  %v1800_v32 = vadd.f32 %v1799_v25, %v1400_v24  ;;  %v1805_v33 = vadd.f32 %v1258_v30, %v2691_v3 }
 0x172   :  { %v1803_v34 = vadd.f32 %v1802_v29, %v1402_v27 }
 0x173   :  { %v1806_v35 = vadd.f32 %v1805_v33, %v1404_v31 }
 0x175   :  { %v1461_v39 = vpop.f32.mrb[16].mxu1 }
 0x176   :  { %v1441_v38 = vpop.f32.mrb[0].mxu0  ;;  %v1786_v42 = vadd.f32 %v1785_v12, %v1461_v39  ;;  %v1463_v44 = vpop.f32.mrb[17].mxu1 }
 0x177   :  { %v1769_v41 = vadd.f32 %v1768_v36, %v1441_v38  ;;  %v1443_v43 = vpop.f32.mrb[1].mxu0  ;;  %v1789_v47 = vadd.f32 %v1788_v16, %v1463_v44  ;;  %v1465_v49 = vpop.f32.mrb[18].mxu1 }
 0x178   :  { %v1771_v46 = vadd.f32 %v1770_v37, %v1443_v43  ;;  %v1445_v48 = vpop.f32.mrb[2].mxu0  ;;  %v1488_v51 = vmax.f32 %v1786_v42, 0.0  ;;  %v1792_v53 = vadd.f32 %v1791_v18, %v1465_v49  ;;  %v1467_v54 = vpop.f32.mrb[19].mxu1 }
 0x179   :  { %v1480_v50 = vmax.f32 %v1769_v41, 0.0  ;;  %v1773_v52 = vadd.f32 %v1772_v40, %v1445_v48  ;;  %v1447_v56 = vpop.f32.mrb[3].mxu0  ;;  %v1489_v62 = vmax.f32 %v1789_v47, 0.0  ;;  %v1795_v55 = vadd.f32 %v1794_v19, %v1467_v54 }
 0x17a   :  { %v1481_v58 = vmax.f32 %v1771_v46, 0.0  ;;  %v1775_v0 = vadd.f32 %v1774_v45, %v1447_v56  ;;  %v1490_v4 = vmax.f32 %v1792_v53, 0.0 }
 0x17b   :  { %v1482_v1 = vmax.f32 %v1773_v52, 0.0  ;;  %v1748_v6 = vpack.c.bf16 %v1489_v62, %v1488_v51  ;;  %v1491_v57 = vmax.f32 %v1795_v55, 0.0 }
 0x17c   :  { %v1744_v5 = vpack.c.bf16 %v1481_v58, %v1480_v50  ;;  %v1483_v7 = vmax.f32 %v1775_v0, 0.0 }
 0x17d   :  { %1548 = vst [vmem:[%s2740_s3 + $0x20] sm:$0xff] %v1748_v6  ;;  %v1749_v11 = vpack.c.bf16 %v1491_v57, %v1490_v4  ;;  %v1471_v13 = vpop.f32.mrb[20].mxu1 }
 0x17e   :  { %1544 = vst [vmem:[%s2740_s3] sm:$0xff] %v1744_v5  ;;  %v1745_v10 = vpack.c.bf16 %v1483_v7, %v1482_v1  ;;  %v1451_v12 = vpop.f32.mrb[4].mxu0  ;;  %v1798_v59 = vadd.f32 %v1797_v28, %v1471_v13  ;;  %v1473_v17 = vpop.f32.mrb[21].mxu1 }
 0x17f   :  { %v1777_v15 = vadd.f32 %v1776_v8, %v1451_v12  ;;  %v1453_v16 = vpop.f32.mrb[5].mxu0  ;;  %1549 = vst [vmem:[%s2740_s3 + $0x28] sm:$0xff] %v1749_v11  ;;  %v1801_v19 = vadd.f32 %v1800_v32, %v1473_v17  ;;  %v1475_v21 = vpop.f32.mrb[22].mxu1 }
 0x180   :  { %1545 = vst [vmem:[%s2740_s3 + $0x8] sm:$0xff] %v1745_v10  ;;  %v1779_v18 = vadd.f32 %v1778_v9, %v1453_v16  ;;  %v1455_v20 = vpop.f32.mrb[6].mxu0  ;;  %v1492_v2 = vmax.f32 %v1798_v59, 0.0  ;;  %v1804_v23 = vadd.f32 %v1803_v34, %v1475_v21  ;;  %v1477_v25 = vpop.f32.mrb[23].mxu1 }
 0x181   :  { %v1484_v61 = vmax.f32 %v1777_v15, 0.0  ;;  %v1781_v22 = vadd.f32 %v1780_v14, %v1455_v20  ;;  %v1457_v24 = vpop.f32.mrb[7].mxu0  ;;  %v1493_v63 = vmax.f32 %v1801_v19, 0.0  ;;  %v1807_v27 = vadd.f32 %v1806_v35, %v1477_v25 }
 0x182   :  { %v1485_v26 = vmax.f32 %v1779_v18, 0.0  ;;  %v1783_v3 = vadd.f32 %v1782_v60, %v1457_v24  ;;  %v1494_v29 = vmax.f32 %v1804_v23, 0.0 }
 0x183   :  { %v1486_v28 = vmax.f32 %v1781_v22, 0.0  ;;  %v1750_v31 = vpack.c.bf16 %v1493_v63, %v1492_v2  ;;  %v1495_v36 = vmax.f32 %v1807_v27, 0.0 }
 0x184   :  { %v1746_v30 = vpack.c.bf16 %v1485_v26, %v1484_v61  ;;  %v1487_v33 = vmax.f32 %v1783_v3, 0.0 }
 0x185   :  { %1550 = vst [vmem:[%s2740_s3 + $0x30] sm:$0xff] %v1750_v31  ;;  %v1751_v34 = vpack.c.bf16 %v1495_v36, %v1494_v29 }
 0x186   :  { %1546 = vst [vmem:[%s2740_s3 + $0x10] sm:$0xff] %v1746_v30  ;;  %v1747_v32 = vpack.c.bf16 %v1487_v33, %v1486_v28 }
 0x187   :  { %1551 = vst [vmem:[%s2740_s3 + $0x38] sm:$0xff] %v1751_v34 }
 0x188   :  { %1547 = vst [vmem:[%s2740_s3 + $0x18] sm:$0xff] %v1747_v32 }

// kernel: cnn_plus_fc_forward.9
= control target key start
LH: loop header
LB: loop body
LE: loop exit
PB: predicated region body
PF: predicated region fallthrough
CT: control target
= control target key end

     0   :  { %s10071_s0 = inlined_call_operand.vmem [shape: bf16[1,16384], index: 0, kind: input, shape index: {}]   ;;  %s10072_s1 = inlined_call_operand.vmem [shape: bf16[16384,256], index: 1, kind: input, shape index: {}]   ;;  %s10073_s2 = inlined_call_operand.vmem [shape: f32[1,256], index: 2, kind: input, shape index: {}]   ;;  %s10074_s3 = inlined_call_operand.hbm [shape: f32[1,256], index: 3, kind: output, shape index: {}]  }
   0x1   :  { %10075 = sst [smem:[#allocation7_spill]] %s10072_s1 }
   0x2   :  { %8 = vsyncpa [#allocation5], 0 }
   0x3   :  { %10 = vsyncpa [#allocation5 + $0x1], 0  ;;  %s8546_s12 = smov 0   ;;  %s8548_s13 = smov 0  }
   0x4   :  { %s8550_s14 = smov 0   ;;  %s8552_s15 = smov 0  }
   0x5   :  { %s8554_s16 = smov 0   ;;  %s8556_s17 = smov 0  }
   0x6   :  { %s8558_s18 = smov 0   ;;  %s8560_s19 = smov 0  }
   0x7   :  { %s8562_s20 = smov 0   ;;  %s8564_s21 = smov 0  }
   0x8 LB: > { %s7437_s22 = sadd.s32 4294967295, %s8521_s21   ;;  %s7438_s23 = sadd.s32 4294967294, %s8521_s21   ;;  %s8521_s21 = sphi %s8564_s21, %s16_s21   ;;  %s8517_s20 = sphi %s8562_s20, %s10088_s20   ;;  %s8513_s19 = sphi %s8560_s19, %s10087_s19   ;;  %s8509_s18 = sphi %s8558_s18, %s10086_s18   ;;  %s8505_s17 = sphi %s8556_s17, %s10085_s17   ;;  %s8501_s16 = sphi %s8554_s16, %s10084_s16   ;;  %s8497_s15 = sphi %s8552_s15, %s10083_s15   ;;  %s8493_s14 = sphi %s8550_s14, %s10082_s14   ;;  %s8489_s13 = sphi %s8548_s13, %s10081_s13   ;;  %s8485_s12 = sphi %s8546_s12, %s10080_s12  }
   0x9   : > { %s25_s24 = sadd.s32 1, %s8513_s19  ;;  %s28_s25 = sadd.s32 1, %s8517_s20 }
   0xa   : > { %p26_p0 = scmp.ge.s32.totalorder %s25_s24, 4  ;;  %s63_s26 = sadd.s32 1, %s8501_s16 }
   0xb   : > { %p70_p1 = scmp.ne.s32.totalorder %s8501_s16, %s8497_s15  ;;  %p71_p2 = scmp.eq.s32.totalorder %s8521_s21, 0 }
   0xc   : > { %s10090_s24 = smov (%p26_p0, %s25_s24), 0  ;;  %s10092_s25 = smov (!%p26_p0, %s28_s25), %s8517_s20 }
   0xd   : > { %s58_s27 = ssub.s32 %s8513_s19, %s10090_s24  ;;  %p8609_p3 = por %p71_p2, %p70_p1 }
   0xe   : > { %p30_p4 = scmp.ge.s32.totalorder %s10092_s25, 2  ;;  %s115_s29 = sadd.s32 1, %s8493_s14 }
   0xf   : > { %p125_p5 = scmp.ne.s32.totalorder %s8493_s14, %s8489_s13  ;;  %p126_p6 = scmp.eq.s32.totalorder %s7437_s22, 7 }
  0x10   : > { %s10094_s25 = smov (%p30_p4, %s10092_s25), 0  ;;  %p131_p8 = scmp.ne.s32.totalorder %s8489_s13, %s8485_s12 }
  0x11   : > { %p8618_p7 = por %p126_p6, %p125_p5  ;;  %s59_s4 = ssub.s32 %s8517_s20, %s10094_s25 }
  0x12   : > { %p132_p9 = scmp.eq.s32.totalorder %s7438_s23, 7  ;;  %s60_s5 = sor.u32 %s59_s4, %s58_s27 }
  0x13   : > { %p113_p10 = scmp.eq.s32.totalorder %s59_s4, 0  ;;  %p61_p11 = scmp.eq.s32.totalorder %s60_s5, 0 }
  0x14   : > { %p8626_p12 = por %p132_p9, %p131_p8  ;;  %p7440_p13 = scmp.ge.s32.totalorder %s8521_s21, 8 }
  0x15   : > { %s8631_s7 = scalar_select %p113_p10, %s8493_s14, %s115_s29  }
  0x16   : > { %s8634_s8 = scalar_select %p61_p11, %s8501_s16, %s63_s26  }
  0x17   : > { %148 = sbr.rel (%p7440_p13) target bundleno = 381 (0x17d), region = 16 }
  0x1e   : > { %159 = sbr.rel (!%p8609_p3) target bundleno = 381 (0x17d), region = 24  ;;  %s161_s9 = sand.u32 (%p8609_p3), 1, %s8501_s16  }
  0x1f   : > { %s7709_s10 = sshll.u32 (%p8609_p3), %s8513_s19, 10  ;;  %s7441_s11 = sshll.u32 (%p8609_p3), %s161_s9, 11 }
  0x20   : > { %s166_s22 = sadd.s32 (%p8609_p3), %s8517_s20, %s7709_s10  ;;  %s10079_s1 = sld [smem:[#allocation7_spill]] (%p8609_p3) }
  0x21   : > { %s7444_s23 = sshll.u32 (%p8609_p3), %s166_s22, 2  ;;  %s8650_s26 = scalar_lea.vmem (%p8609_p3), [#allocation3], %s7441_s11 }
  0x26   : > { %s8645_s29 = scalar_lea.vmem %s10079_s1, %s7444_s23 }
  0x27   : > { %v184_v0 = vld [vmem:[%s8645_s29] sm:$0xf]  ;;  %v186_v1 = vld [vmem:[%s8645_s29 + $0x8] sm:$0xf]  ;;  %v188_v2 = vld [vmem:[%s8645_s29 + $0x10] sm:$0xf] }
  0x28   : > { %185 = vst [vmem:[%s8650_s26] sm:$0xf] %v184_v0  ;;  %187 = vst [vmem:[%s8650_s26 + $0x4] sm:$0xf] %v186_v1  ;;  %v190_v3 = vld [vmem:[%s8645_s29 + $0x18] sm:$0xf] }
  0x29   : > { %189 = vst [vmem:[%s8650_s26 + $0x8] sm:$0xf] %v188_v2  ;;  %v192_v4 = vld [vmem:[%s8645_s29 + $0x20] sm:$0xf]  ;;  %v194_v5 = vld [vmem:[%s8645_s29 + $0x28] sm:$0xf] }
  0x2a   : > { %191 = vst [vmem:[%s8650_s26 + $0xc] sm:$0xf] %v190_v3  ;;  %193 = vst [vmem:[%s8650_s26 + $0x10] sm:$0xf] %v192_v4  ;;  %v196_v6 = vld [vmem:[%s8645_s29 + $0x30] sm:$0xf] }
  0x2b   : > { %195 = vst [vmem:[%s8650_s26 + $0x14] sm:$0xf] %v194_v5  ;;  %v198_v7 = vld [vmem:[%s8645_s29 + $0x38] sm:$0xf]  ;;  %v200_v8 = vld [vmem:[%s8645_s29 + $0x40] sm:$0xf] }
  0x2c   : > { %197 = vst [vmem:[%s8650_s26 + $0x18] sm:$0xf] %v196_v6  ;;  %199 = vst [vmem:[%s8650_s26 + $0x1c] sm:$0xf] %v198_v7  ;;  %v202_v9 = vld [vmem:[%s8645_s29 + $0x48] sm:$0xf] }
  0x2d   : > { %201 = vst [vmem:[%s8650_s26 + $0x20] sm:$0xf] %v200_v8  ;;  %v204_v10 = vld [vmem:[%s8645_s29 + $0x50] sm:$0xf]  ;;  %v206_v11 = vld [vmem:[%s8645_s29 + $0x58] sm:$0xf] }
  0x2e   : > { %203 = vst [vmem:[%s8650_s26 + $0x24] sm:$0xf] %v202_v9  ;;  %205 = vst [vmem:[%s8650_s26 + $0x28] sm:$0xf] %v204_v10  ;;  %v208_v12 = vld [vmem:[%s8645_s29 + $0x60] sm:$0xf] }
  0x2f   : > { %207 = vst [vmem:[%s8650_s26 + $0x2c] sm:$0xf] %v206_v11  ;;  %v210_v13 = vld [vmem:[%s8645_s29 + $0x68] sm:$0xf]  ;;  %v212_v14 = vld [vmem:[%s8645_s29 + $0x70] sm:$0xf] }
  0x30   : > { %209 = vst [vmem:[%s8650_s26 + $0x30] sm:$0xf] %v208_v12  ;;  %211 = vst [vmem:[%s8650_s26 + $0x34] sm:$0xf] %v210_v13  ;;  %v214_v15 = vld [vmem:[%s8645_s29 + $0x78] sm:$0xf] }
  0x31   : > { %213 = vst [vmem:[%s8650_s26 + $0x38] sm:$0xf] %v212_v14  ;;  %v216_v16 = vld [vmem:[%s8645_s29 + $0x80] sm:$0xf]  ;;  %v218_v17 = vld [vmem:[%s8645_s29 + $0x88] sm:$0xf] }
  0x32   : > { %215 = vst [vmem:[%s8650_s26 + $0x3c] sm:$0xf] %v214_v15  ;;  %217 = vst [vmem:[%s8650_s26 + $0x40] sm:$0xf] %v216_v16  ;;  %v220_v18 = vld [vmem:[%s8645_s29 + $0x90] sm:$0xf] }
  0x33   : > { %219 = vst [vmem:[%s8650_s26 + $0x44] sm:$0xf] %v218_v17  ;;  %v222_v19 = vld [vmem:[%s8645_s29 + $0x98] sm:$0xf]  ;;  %v224_v20 = vld [vmem:[%s8645_s29 + $0xa0] sm:$0xf] }
  0x34   : > { %221 = vst [vmem:[%s8650_s26 + $0x48] sm:$0xf] %v220_v18  ;;  %223 = vst [vmem:[%s8650_s26 + $0x4c] sm:$0xf] %v222_v19  ;;  %v226_v21 = vld [vmem:[%s8645_s29 + $0xa8] sm:$0xf] }
  0x35   : > { %225 = vst [vmem:[%s8650_s26 + $0x50] sm:$0xf] %v224_v20  ;;  %v228_v22 = vld [vmem:[%s8645_s29 + $0xb0] sm:$0xf]  ;;  %v230_v23 = vld [vmem:[%s8645_s29 + $0xb8] sm:$0xf] }
  0x36   : > { %227 = vst [vmem:[%s8650_s26 + $0x54] sm:$0xf] %v226_v21  ;;  %229 = vst [vmem:[%s8650_s26 + $0x58] sm:$0xf] %v228_v22  ;;  %v232_v24 = vld [vmem:[%s8645_s29 + $0xc0] sm:$0xf] }
  0x37   : > { %231 = vst [vmem:[%s8650_s26 + $0x5c] sm:$0xf] %v230_v23  ;;  %v234_v25 = vld [vmem:[%s8645_s29 + $0xc8] sm:$0xf]  ;;  %v236_v26 = vld [vmem:[%s8645_s29 + $0xd0] sm:$0xf] }
  0x38   : > { %233 = vst [vmem:[%s8650_s26 + $0x60] sm:$0xf] %v232_v24  ;;  %235 = vst [vmem:[%s8650_s26 + $0x64] sm:$0xf] %v234_v25  ;;  %v238_v27 = vld [vmem:[%s8645_s29 + $0xd8] sm:$0xf] }
  0x39   : > { %237 = vst [vmem:[%s8650_s26 + $0x68] sm:$0xf] %v236_v26  ;;  %v240_v28 = vld [vmem:[%s8645_s29 + $0xe0] sm:$0xf]  ;;  %v242_v29 = vld [vmem:[%s8645_s29 + $0xe8] sm:$0xf] }
  0x3a   : > { %239 = vst [vmem:[%s8650_s26 + $0x6c] sm:$0xf] %v238_v27  ;;  %241 = vst [vmem:[%s8650_s26 + $0x70] sm:$0xf] %v240_v28  ;;  %v244_v30 = vld [vmem:[%s8645_s29 + $0xf0] sm:$0xf] }
  0x3b   : > { %243 = vst [vmem:[%s8650_s26 + $0x74] sm:$0xf] %v242_v29  ;;  %v246_v31 = vld [vmem:[%s8645_s29 + $0xf8] sm:$0xf]  ;;  %v248_v32 = vld [vmem:[%s8645_s29 + $0x100] sm:$0xf] }
  0x3c   : > { %245 = vst [vmem:[%s8650_s26 + $0x78] sm:$0xf] %v244_v30  ;;  %247 = vst [vmem:[%s8650_s26 + $0x7c] sm:$0xf] %v246_v31  ;;  %v250_v33 = vld [vmem:[%s8645_s29 + $0x108] sm:$0xf] }
  0x3d   : > { %249 = vst [vmem:[%s8650_s26 + $0x80] sm:$0xf] %v248_v32  ;;  %v252_v34 = vld [vmem:[%s8645_s29 + $0x110] sm:$0xf]  ;;  %v254_v35 = vld [vmem:[%s8645_s29 + $0x118] sm:$0xf] }
  0x3e   : > { %251 = vst [vmem:[%s8650_s26 + $0x84] sm:$0xf] %v250_v33  ;;  %253 = vst [vmem:[%s8650_s26 + $0x88] sm:$0xf] %v252_v34  ;;  %v256_v36 = vld [vmem:[%s8645_s29 + $0x120] sm:$0xf] }
  0x3f   : > { %255 = vst [vmem:[%s8650_s26 + $0x8c] sm:$0xf] %v254_v35  ;;  %v258_v37 = vld [vmem:[%s8645_s29 + $0x128] sm:$0xf]  ;;  %v260_v38 = vld [vmem:[%s8645_s29 + $0x130] sm:$0xf] }
  0x40   : > { %257 = vst [vmem:[%s8650_s26 + $0x90] sm:$0xf] %v256_v36  ;;  %259 = vst [vmem:[%s8650_s26 + $0x94] sm:$0xf] %v258_v37  ;;  %v262_v39 = vld [vmem:[%s8645_s29 + $0x138] sm:$0xf] }
  0x41   : > { %261 = vst [vmem:[%s8650_s26 + $0x98] sm:$0xf] %v260_v38  ;;  %v264_v40 = vld [vmem:[%s8645_s29 + $0x140] sm:$0xf]  ;;  %v266_v41 = vld [vmem:[%s8645_s29 + $0x148] sm:$0xf] }
  0x42   : > { %263 = vst [vmem:[%s8650_s26 + $0x9c] sm:$0xf] %v262_v39  ;;  %265 = vst [vmem:[%s8650_s26 + $0xa0] sm:$0xf] %v264_v40  ;;  %v268_v42 = vld [vmem:[%s8645_s29 + $0x150] sm:$0xf] }
  0x43   : > { %267 = vst [vmem:[%s8650_s26 + $0xa4] sm:$0xf] %v266_v41  ;;  %v270_v43 = vld [vmem:[%s8645_s29 + $0x158] sm:$0xf]  ;;  %v272_v44 = vld [vmem:[%s8645_s29 + $0x160] sm:$0xf] }
  0x44   : > { %269 = vst [vmem:[%s8650_s26 + $0xa8] sm:$0xf] %v268_v42  ;;  %271 = vst [vmem:[%s8650_s26 + $0xac] sm:$0xf] %v270_v43  ;;  %v274_v45 = vld [vmem:[%s8645_s29 + $0x168] sm:$0xf] }
  0x45   : > { %273 = vst [vmem:[%s8650_s26 + $0xb0] sm:$0xf] %v272_v44  ;;  %v276_v46 = vld [vmem:[%s8645_s29 + $0x170] sm:$0xf]  ;;  %v278_v47 = vld [vmem:[%s8645_s29 + $0x178] sm:$0xf] }
  0x46   : > { %275 = vst [vmem:[%s8650_s26 + $0xb4] sm:$0xf] %v274_v45  ;;  %277 = vst [vmem:[%s8650_s26 + $0xb8] sm:$0xf] %v276_v46  ;;  %v280_v48 = vld [vmem:[%s8645_s29 + $0x180] sm:$0xf] }
  0x47   : > { %279 = vst [vmem:[%s8650_s26 + $0xbc] sm:$0xf] %v278_v47  ;;  %v282_v49 = vld [vmem:[%s8645_s29 + $0x188] sm:$0xf]  ;;  %v284_v50 = vld [vmem:[%s8645_s29 + $0x190] sm:$0xf] }
  0x48   : > { %281 = vst [vmem:[%s8650_s26 + $0xc0] sm:$0xf] %v280_v48  ;;  %283 = vst [vmem:[%s8650_s26 + $0xc4] sm:$0xf] %v282_v49  ;;  %v286_v51 = vld [vmem:[%s8645_s29 + $0x198] sm:$0xf] }
  0x49   : > { %285 = vst [vmem:[%s8650_s26 + $0xc8] sm:$0xf] %v284_v50  ;;  %v288_v52 = vld [vmem:[%s8645_s29 + $0x1a0] sm:$0xf]  ;;  %v290_v53 = vld [vmem:[%s8645_s29 + $0x1a8] sm:$0xf] }
  0x4a   : > { %287 = vst [vmem:[%s8650_s26 + $0xcc] sm:$0xf] %v286_v51  ;;  %289 = vst [vmem:[%s8650_s26 + $0xd0] sm:$0xf] %v288_v52  ;;  %v292_v54 = vld [vmem:[%s8645_s29 + $0x1b0] sm:$0xf] }
  0x4b   : > { %291 = vst [vmem:[%s8650_s26 + $0xd4] sm:$0xf] %v290_v53  ;;  %v294_v55 = vld [vmem:[%s8645_s29 + $0x1b8] sm:$0xf]  ;;  %v296_v56 = vld [vmem:[%s8645_s29 + $0x1c0] sm:$0xf] }
  0x4c   : > { %293 = vst [vmem:[%s8650_s26 + $0xd8] sm:$0xf] %v292_v54  ;;  %295 = vst [vmem:[%s8650_s26 + $0xdc] sm:$0xf] %v294_v55  ;;  %v298_v57 = vld [vmem:[%s8645_s29 + $0x1c8] sm:$0xf] }
  0x4d   : > { %297 = vst [vmem:[%s8650_s26 + $0xe0] sm:$0xf] %v296_v56  ;;  %v300_v58 = vld [vmem:[%s8645_s29 + $0x1d0] sm:$0xf]  ;;  %v302_v59 = vld [vmem:[%s8645_s29 + $0x1d8] sm:$0xf] }
  0x4e   : > { %299 = vst [vmem:[%s8650_s26 + $0xe4] sm:$0xf] %v298_v57  ;;  %301 = vst [vmem:[%s8650_s26 + $0xe8] sm:$0xf] %v300_v58  ;;  %v304_v60 = vld [vmem:[%s8645_s29 + $0x1e0] sm:$0xf] }
  0x4f   : > { %303 = vst [vmem:[%s8650_s26 + $0xec] sm:$0xf] %v302_v59  ;;  %v306_v61 = vld [vmem:[%s8645_s29 + $0x1e8] sm:$0xf]  ;;  %v308_v62 = vld [vmem:[%s8645_s29 + $0x1f0] sm:$0xf] }
  0x50   : > { %305 = vst [vmem:[%s8650_s26 + $0xf0] sm:$0xf] %v304_v60  ;;  %307 = vst [vmem:[%s8650_s26 + $0xf4] sm:$0xf] %v306_v61  ;;  %v310_v63 = vld [vmem:[%s8645_s29 + $0x1f8] sm:$0xf] }
  0x51   : > { %309 = vst [vmem:[%s8650_s26 + $0xf8] sm:$0xf] %v308_v62  ;;  %v312_v0 = vld [vmem:[%s8645_s29 + $0x200] sm:$0xf]  ;;  %v314_v1 = vld [vmem:[%s8645_s29 + $0x208] sm:$0xf] }
  0x52   : > { %311 = vst [vmem:[%s8650_s26 + $0xfc] sm:$0xf] %v310_v63  ;;  %313 = vst [vmem:[%s8650_s26 + $0x100] sm:$0xf] %v312_v0  ;;  %v316_v2 = vld [vmem:[%s8645_s29 + $0x210] sm:$0xf] }
  0x53   : > { %315 = vst [vmem:[%s8650_s26 + $0x104] sm:$0xf] %v314_v1  ;;  %v318_v3 = vld [vmem:[%s8645_s29 + $0x218] sm:$0xf]  ;;  %v320_v4 = vld [vmem:[%s8645_s29 + $0x220] sm:$0xf] }
  0x54   : > { %317 = vst [vmem:[%s8650_s26 + $0x108] sm:$0xf] %v316_v2  ;;  %319 = vst [vmem:[%s8650_s26 + $0x10c] sm:$0xf] %v318_v3  ;;  %v322_v5 = vld [vmem:[%s8645_s29 + $0x228] sm:$0xf] }
  0x55   : > { %321 = vst [vmem:[%s8650_s26 + $0x110] sm:$0xf] %v320_v4  ;;  %v324_v6 = vld [vmem:[%s8645_s29 + $0x230] sm:$0xf]  ;;  %v326_v7 = vld [vmem:[%s8645_s29 + $0x238] sm:$0xf] }
  0x56   : > { %323 = vst [vmem:[%s8650_s26 + $0x114] sm:$0xf] %v322_v5  ;;  %325 = vst [vmem:[%s8650_s26 + $0x118] sm:$0xf] %v324_v6  ;;  %v328_v8 = vld [vmem:[%s8645_s29 + $0x240] sm:$0xf] }
  0x57   : > { %327 = vst [vmem:[%s8650_s26 + $0x11c] sm:$0xf] %v326_v7  ;;  %v330_v9 = vld [vmem:[%s8645_s29 + $0x248] sm:$0xf]  ;;  %v332_v10 = vld [vmem:[%s8645_s29 + $0x250] sm:$0xf] }
  0x58   : > { %329 = vst [vmem:[%s8650_s26 + $0x120] sm:$0xf] %v328_v8  ;;  %331 = vst [vmem:[%s8650_s26 + $0x124] sm:$0xf] %v330_v9  ;;  %v334_v11 = vld [vmem:[%s8645_s29 + $0x258] sm:$0xf] }
  0x59   : > { %333 = vst [vmem:[%s8650_s26 + $0x128] sm:$0xf] %v332_v10  ;;  %v336_v12 = vld [vmem:[%s8645_s29 + $0x260] sm:$0xf]  ;;  %v338_v13 = vld [vmem:[%s8645_s29 + $0x268] sm:$0xf] }
  0x5a   : > { %335 = vst [vmem:[%s8650_s26 + $0x12c] sm:$0xf] %v334_v11  ;;  %337 = vst [vmem:[%s8650_s26 + $0x130] sm:$0xf] %v336_v12  ;;  %v340_v14 = vld [vmem:[%s8645_s29 + $0x270] sm:$0xf] }
  0x5b   : > { %339 = vst [vmem:[%s8650_s26 + $0x134] sm:$0xf] %v338_v13  ;;  %v342_v15 = vld [vmem:[%s8645_s29 + $0x278] sm:$0xf]  ;;  %v344_v16 = vld [vmem:[%s8645_s29 + $0x280] sm:$0xf] }
  0x5c   : > { %341 = vst [vmem:[%s8650_s26 + $0x138] sm:$0xf] %v340_v14  ;;  %343 = vst [vmem:[%s8650_s26 + $0x13c] sm:$0xf] %v342_v15  ;;  %v346_v17 = vld [vmem:[%s8645_s29 + $0x288] sm:$0xf] }
  0x5d   : > { %345 = vst [vmem:[%s8650_s26 + $0x140] sm:$0xf] %v344_v16  ;;  %v348_v18 = vld [vmem:[%s8645_s29 + $0x290] sm:$0xf]  ;;  %v350_v19 = vld [vmem:[%s8645_s29 + $0x298] sm:$0xf] }
  0x5e   : > { %347 = vst [vmem:[%s8650_s26 + $0x144] sm:$0xf] %v346_v17  ;;  %349 = vst [vmem:[%s8650_s26 + $0x148] sm:$0xf] %v348_v18  ;;  %v352_v20 = vld [vmem:[%s8645_s29 + $0x2a0] sm:$0xf] }
  0x5f   : > { %351 = vst [vmem:[%s8650_s26 + $0x14c] sm:$0xf] %v350_v19  ;;  %v354_v21 = vld [vmem:[%s8645_s29 + $0x2a8] sm:$0xf]  ;;  %v356_v22 = vld [vmem:[%s8645_s29 + $0x2b0] sm:$0xf] }
  0x60   : > { %353 = vst [vmem:[%s8650_s26 + $0x150] sm:$0xf] %v352_v20  ;;  %355 = vst [vmem:[%s8650_s26 + $0x154] sm:$0xf] %v354_v21  ;;  %v358_v23 = vld [vmem:[%s8645_s29 + $0x2b8] sm:$0xf] }
  0x61   : > { %357 = vst [vmem:[%s8650_s26 + $0x158] sm:$0xf] %v356_v22  ;;  %v360_v24 = vld [vmem:[%s8645_s29 + $0x2c0] sm:$0xf]  ;;  %v362_v25 = vld [vmem:[%s8645_s29 + $0x2c8] sm:$0xf] }
  0x62   : > { %359 = vst [vmem:[%s8650_s26 + $0x15c] sm:$0xf] %v358_v23  ;;  %361 = vst [vmem:[%s8650_s26 + $0x160] sm:$0xf] %v360_v24  ;;  %v364_v26 = vld [vmem:[%s8645_s29 + $0x2d0] sm:$0xf] }
  0x63   : > { %363 = vst [vmem:[%s8650_s26 + $0x164] sm:$0xf] %v362_v25  ;;  %v366_v27 = vld [vmem:[%s8645_s29 + $0x2d8] sm:$0xf]  ;;  %v368_v28 = vld [vmem:[%s8645_s29 + $0x2e0] sm:$0xf] }
  0x64   : > { %365 = vst [vmem:[%s8650_s26 + $0x168] sm:$0xf] %v364_v26  ;;  %367 = vst [vmem:[%s8650_s26 + $0x16c] sm:$0xf] %v366_v27  ;;  %v370_v29 = vld [vmem:[%s8645_s29 + $0x2e8] sm:$0xf] }
  0x65   : > { %369 = vst [vmem:[%s8650_s26 + $0x170] sm:$0xf] %v368_v28  ;;  %v372_v30 = vld [vmem:[%s8645_s29 + $0x2f0] sm:$0xf]  ;;  %v374_v31 = vld [vmem:[%s8645_s29 + $0x2f8] sm:$0xf] }
  0x66   : > { %371 = vst [vmem:[%s8650_s26 + $0x174] sm:$0xf] %v370_v29  ;;  %373 = vst [vmem:[%s8650_s26 + $0x178] sm:$0xf] %v372_v30  ;;  %v376_v32 = vld [vmem:[%s8645_s29 + $0x300] sm:$0xf] }
  0x67   : > { %375 = vst [vmem:[%s8650_s26 + $0x17c] sm:$0xf] %v374_v31  ;;  %v378_v33 = vld [vmem:[%s8645_s29 + $0x308] sm:$0xf]  ;;  %v380_v34 = vld [vmem:[%s8645_s29 + $0x310] sm:$0xf] }
  0x68   : > { %377 = vst [vmem:[%s8650_s26 + $0x180] sm:$0xf] %v376_v32  ;;  %379 = vst [vmem:[%s8650_s26 + $0x184] sm:$0xf] %v378_v33  ;;  %v382_v35 = vld [vmem:[%s8645_s29 + $0x318] sm:$0xf] }
  0x69   : > { %381 = vst [vmem:[%s8650_s26 + $0x188] sm:$0xf] %v380_v34  ;;  %v384_v36 = vld [vmem:[%s8645_s29 + $0x320] sm:$0xf]  ;;  %v386_v37 = vld [vmem:[%s8645_s29 + $0x328] sm:$0xf] }
  0x6a   : > { %383 = vst [vmem:[%s8650_s26 + $0x18c] sm:$0xf] %v382_v35  ;;  %385 = vst [vmem:[%s8650_s26 + $0x190] sm:$0xf] %v384_v36  ;;  %v388_v38 = vld [vmem:[%s8645_s29 + $0x330] sm:$0xf] }
  0x6b   : > { %387 = vst [vmem:[%s8650_s26 + $0x194] sm:$0xf] %v386_v37  ;;  %v390_v39 = vld [vmem:[%s8645_s29 + $0x338] sm:$0xf]  ;;  %v392_v40 = vld [vmem:[%s8645_s29 + $0x340] sm:$0xf] }
  0x6c   : > { %389 = vst [vmem:[%s8650_s26 + $0x198] sm:$0xf] %v388_v38  ;;  %391 = vst [vmem:[%s8650_s26 + $0x19c] sm:$0xf] %v390_v39  ;;  %v394_v41 = vld [vmem:[%s8645_s29 + $0x348] sm:$0xf] }
  0x6d   : > { %393 = vst [vmem:[%s8650_s26 + $0x1a0] sm:$0xf] %v392_v40  ;;  %v396_v42 = vld [vmem:[%s8645_s29 + $0x350] sm:$0xf]  ;;  %v398_v43 = vld [vmem:[%s8645_s29 + $0x358] sm:$0xf] }
  0x6e   : > { %395 = vst [vmem:[%s8650_s26 + $0x1a4] sm:$0xf] %v394_v41  ;;  %397 = vst [vmem:[%s8650_s26 + $0x1a8] sm:$0xf] %v396_v42  ;;  %v400_v44 = vld [vmem:[%s8645_s29 + $0x360] sm:$0xf] }
  0x6f   : > { %399 = vst [vmem:[%s8650_s26 + $0x1ac] sm:$0xf] %v398_v43  ;;  %v402_v45 = vld [vmem:[%s8645_s29 + $0x368] sm:$0xf]  ;;  %v404_v46 = vld [vmem:[%s8645_s29 + $0x370] sm:$0xf] }
  0x70   : > { %401 = vst [vmem:[%s8650_s26 + $0x1b0] sm:$0xf] %v400_v44  ;;  %403 = vst [vmem:[%s8650_s26 + $0x1b4] sm:$0xf] %v402_v45  ;;  %v406_v47 = vld [vmem:[%s8645_s29 + $0x378] sm:$0xf] }
  0x71   : > { %405 = vst [vmem:[%s8650_s26 + $0x1b8] sm:$0xf] %v404_v46  ;;  %v408_v48 = vld [vmem:[%s8645_s29 + $0x380] sm:$0xf]  ;;  %v410_v49 = vld [vmem:[%s8645_s29 + $0x388] sm:$0xf] }
  0x72   : > { %407 = vst [vmem:[%s8650_s26 + $0x1bc] sm:$0xf] %v406_v47  ;;  %409 = vst [vmem:[%s8650_s26 + $0x1c0] sm:$0xf] %v408_v48  ;;  %v412_v50 = vld [vmem:[%s8645_s29 + $0x390] sm:$0xf] }
  0x73   : > { %411 = vst [vmem:[%s8650_s26 + $0x1c4] sm:$0xf] %v410_v49  ;;  %v414_v51 = vld [vmem:[%s8645_s29 + $0x398] sm:$0xf]  ;;  %v416_v52 = vld [vmem:[%s8645_s29 + $0x3a0] sm:$0xf] }
  0x74   : > { %413 = vst [vmem:[%s8650_s26 + $0x1c8] sm:$0xf] %v412_v50  ;;  %415 = vst [vmem:[%s8650_s26 + $0x1cc] sm:$0xf] %v414_v51  ;;  %v418_v53 = vld [vmem:[%s8645_s29 + $0x3a8] sm:$0xf] }
  0x75   : > { %417 = vst [vmem:[%s8650_s26 + $0x1d0] sm:$0xf] %v416_v52  ;;  %v420_v54 = vld [vmem:[%s8645_s29 + $0x3b0] sm:$0xf]  ;;  %v422_v55 = vld [vmem:[%s8645_s29 + $0x3b8] sm:$0xf] }
  0x76   : > { %419 = vst [vmem:[%s8650_s26 + $0x1d4] sm:$0xf] %v418_v53  ;;  %421 = vst [vmem:[%s8650_s26 + $0x1d8] sm:$0xf] %v420_v54  ;;  %v424_v56 = vld [vmem:[%s8645_s29 + $0x3c0] sm:$0xf] }
  0x77   : > { %423 = vst [vmem:[%s8650_s26 + $0x1dc] sm:$0xf] %v422_v55  ;;  %v426_v57 = vld [vmem:[%s8645_s29 + $0x3c8] sm:$0xf]  ;;  %v428_v58 = vld [vmem:[%s8645_s29 + $0x3d0] sm:$0xf] }
  0x78   : > { %425 = vst [vmem:[%s8650_s26 + $0x1e0] sm:$0xf] %v424_v56  ;;  %427 = vst [vmem:[%s8650_s26 + $0x1e4] sm:$0xf] %v426_v57  ;;  %v430_v59 = vld [vmem:[%s8645_s29 + $0x3d8] sm:$0xf] }
  0x79   : > { %429 = vst [vmem:[%s8650_s26 + $0x1e8] sm:$0xf] %v428_v58  ;;  %v432_v60 = vld [vmem:[%s8645_s29 + $0x3e0] sm:$0xf]  ;;  %v434_v61 = vld [vmem:[%s8645_s29 + $0x3e8] sm:$0xf] }
  0x7a   : > { %431 = vst [vmem:[%s8650_s26 + $0x1ec] sm:$0xf] %v430_v59  ;;  %433 = vst [vmem:[%s8650_s26 + $0x1f0] sm:$0xf] %v432_v60  ;;  %v436_v62 = vld [vmem:[%s8645_s29 + $0x3f0] sm:$0xf] }
  0x7b   : > { %435 = vst [vmem:[%s8650_s26 + $0x1f4] sm:$0xf] %v434_v61  ;;  %v438_v63 = vld [vmem:[%s8645_s29 + $0x3f8] sm:$0xf]  ;;  %v440_v0 = vld [vmem:[%s8645_s29 + $0x400] sm:$0xf] }
  0x7c   : > { %437 = vst [vmem:[%s8650_s26 + $0x1f8] sm:$0xf] %v436_v62  ;;  %439 = vst [vmem:[%s8650_s26 + $0x1fc] sm:$0xf] %v438_v63  ;;  %v442_v1 = vld [vmem:[%s8645_s29 + $0x408] sm:$0xf] }
  0x7d   : > { %441 = vst [vmem:[%s8650_s26 + $0x200] sm:$0xf] %v440_v0  ;;  %v444_v2 = vld [vmem:[%s8645_s29 + $0x410] sm:$0xf]  ;;  %v446_v3 = vld [vmem:[%s8645_s29 + $0x418] sm:$0xf] }
  0x7e   : > { %443 = vst [vmem:[%s8650_s26 + $0x204] sm:$0xf] %v442_v1  ;;  %445 = vst [vmem:[%s8650_s26 + $0x208] sm:$0xf] %v444_v2  ;;  %v448_v4 = vld [vmem:[%s8645_s29 + $0x420] sm:$0xf] }
  0x7f   : > { %447 = vst [vmem:[%s8650_s26 + $0x20c] sm:$0xf] %v446_v3  ;;  %v450_v5 = vld [vmem:[%s8645_s29 + $0x428] sm:$0xf]  ;;  %v452_v6 = vld [vmem:[%s8645_s29 + $0x430] sm:$0xf] }
  0x80   : > { %449 = vst [vmem:[%s8650_s26 + $0x210] sm:$0xf] %v448_v4  ;;  %451 = vst [vmem:[%s8650_s26 + $0x214] sm:$0xf] %v450_v5  ;;  %v454_v7 = vld [vmem:[%s8645_s29 + $0x438] sm:$0xf] }
  0x81   : > { %453 = vst [vmem:[%s8650_s26 + $0x218] sm:$0xf] %v452_v6  ;;  %v456_v8 = vld [vmem:[%s8645_s29 + $0x440] sm:$0xf]  ;;  %v458_v9 = vld [vmem:[%s8645_s29 + $0x448] sm:$0xf] }
  0x82   : > { %455 = vst [vmem:[%s8650_s26 + $0x21c] sm:$0xf] %v454_v7  ;;  %457 = vst [vmem:[%s8650_s26 + $0x220] sm:$0xf] %v456_v8  ;;  %v460_v10 = vld [vmem:[%s8645_s29 + $0x450] sm:$0xf] }
  0x83   : > { %459 = vst [vmem:[%s8650_s26 + $0x224] sm:$0xf] %v458_v9  ;;  %v462_v11 = vld [vmem:[%s8645_s29 + $0x458] sm:$0xf]  ;;  %v464_v12 = vld [vmem:[%s8645_s29 + $0x460] sm:$0xf] }
  0x84   : > { %461 = vst [vmem:[%s8650_s26 + $0x228] sm:$0xf] %v460_v10  ;;  %463 = vst [vmem:[%s8650_s26 + $0x22c] sm:$0xf] %v462_v11  ;;  %v466_v13 = vld [vmem:[%s8645_s29 + $0x468] sm:$0xf] }
  0x85   : > { %465 = vst [vmem:[%s8650_s26 + $0x230] sm:$0xf] %v464_v12  ;;  %v468_v14 = vld [vmem:[%s8645_s29 + $0x470] sm:$0xf]  ;;  %v470_v15 = vld [vmem:[%s8645_s29 + $0x478] sm:$0xf] }
  0x86   : > { %467 = vst [vmem:[%s8650_s26 + $0x234] sm:$0xf] %v466_v13  ;;  %469 = vst [vmem:[%s8650_s26 + $0x238] sm:$0xf] %v468_v14  ;;  %v472_v16 = vld [vmem:[%s8645_s29 + $0x480] sm:$0xf] }
  0x87   : > { %471 = vst [vmem:[%s8650_s26 + $0x23c] sm:$0xf] %v470_v15  ;;  %v474_v17 = vld [vmem:[%s8645_s29 + $0x488] sm:$0xf]  ;;  %v476_v18 = vld [vmem:[%s8645_s29 + $0x490] sm:$0xf] }
  0x88   : > { %473 = vst [vmem:[%s8650_s26 + $0x240] sm:$0xf] %v472_v16  ;;  %475 = vst [vmem:[%s8650_s26 + $0x244] sm:$0xf] %v474_v17  ;;  %v478_v19 = vld [vmem:[%s8645_s29 + $0x498] sm:$0xf] }
  0x89   : > { %477 = vst [vmem:[%s8650_s26 + $0x248] sm:$0xf] %v476_v18  ;;  %v480_v20 = vld [vmem:[%s8645_s29 + $0x4a0] sm:$0xf]  ;;  %v482_v21 = vld [vmem:[%s8645_s29 + $0x4a8] sm:$0xf] }
  0x8a   : > { %479 = vst [vmem:[%s8650_s26 + $0x24c] sm:$0xf] %v478_v19  ;;  %481 = vst [vmem:[%s8650_s26 + $0x250] sm:$0xf] %v480_v20  ;;  %v484_v22 = vld [vmem:[%s8645_s29 + $0x4b0] sm:$0xf] }
  0x8b   : > { %483 = vst [vmem:[%s8650_s26 + $0x254] sm:$0xf] %v482_v21  ;;  %v486_v23 = vld [vmem:[%s8645_s29 + $0x4b8] sm:$0xf]  ;;  %v488_v24 = vld [vmem:[%s8645_s29 + $0x4c0] sm:$0xf] }
  0x8c   : > { %485 = vst [vmem:[%s8650_s26 + $0x258] sm:$0xf] %v484_v22  ;;  %487 = vst [vmem:[%s8650_s26 + $0x25c] sm:$0xf] %v486_v23  ;;  %v490_v25 = vld [vmem:[%s8645_s29 + $0x4c8] sm:$0xf] }
  0x8d   : > { %489 = vst [vmem:[%s8650_s26 + $0x260] sm:$0xf] %v488_v24  ;;  %v492_v26 = vld [vmem:[%s8645_s29 + $0x4d0] sm:$0xf]  ;;  %v494_v27 = vld [vmem:[%s8645_s29 + $0x4d8] sm:$0xf] }
  0x8e   : > { %491 = vst [vmem:[%s8650_s26 + $0x264] sm:$0xf] %v490_v25  ;;  %493 = vst [vmem:[%s8650_s26 + $0x268] sm:$0xf] %v492_v26  ;;  %v496_v28 = vld [vmem:[%s8645_s29 + $0x4e0] sm:$0xf] }
  0x8f   : > { %495 = vst [vmem:[%s8650_s26 + $0x26c] sm:$0xf] %v494_v27  ;;  %v498_v29 = vld [vmem:[%s8645_s29 + $0x4e8] sm:$0xf]  ;;  %v500_v30 = vld [vmem:[%s8645_s29 + $0x4f0] sm:$0xf] }
  0x90   : > { %497 = vst [vmem:[%s8650_s26 + $0x270] sm:$0xf] %v496_v28  ;;  %499 = vst [vmem:[%s8650_s26 + $0x274] sm:$0xf] %v498_v29  ;;  %v502_v31 = vld [vmem:[%s8645_s29 + $0x4f8] sm:$0xf] }
  0x91   : > { %501 = vst [vmem:[%s8650_s26 + $0x278] sm:$0xf] %v500_v30  ;;  %v504_v32 = vld [vmem:[%s8645_s29 + $0x500] sm:$0xf]  ;;  %v506_v33 = vld [vmem:[%s8645_s29 + $0x508] sm:$0xf] }
  0x92   : > { %503 = vst [vmem:[%s8650_s26 + $0x27c] sm:$0xf] %v502_v31  ;;  %505 = vst [vmem:[%s8650_s26 + $0x280] sm:$0xf] %v504_v32  ;;  %v508_v34 = vld [vmem:[%s8645_s29 + $0x510] sm:$0xf] }
  0x93   : > { %507 = vst [vmem:[%s8650_s26 + $0x284] sm:$0xf] %v506_v33  ;;  %v510_v35 = vld [vmem:[%s8645_s29 + $0x518] sm:$0xf]  ;;  %v512_v36 = vld [vmem:[%s8645_s29 + $0x520] sm:$0xf] }
  0x94   : > { %509 = vst [vmem:[%s8650_s26 + $0x288] sm:$0xf] %v508_v34  ;;  %511 = vst [vmem:[%s8650_s26 + $0x28c] sm:$0xf] %v510_v35  ;;  %v514_v37 = vld [vmem:[%s8645_s29 + $0x528] sm:$0xf] }
  0x95   : > { %513 = vst [vmem:[%s8650_s26 + $0x290] sm:$0xf] %v512_v36  ;;  %v516_v38 = vld [vmem:[%s8645_s29 + $0x530] sm:$0xf]  ;;  %v518_v39 = vld [vmem:[%s8645_s29 + $0x538] sm:$0xf] }
  0x96   : > { %515 = vst [vmem:[%s8650_s26 + $0x294] sm:$0xf] %v514_v37  ;;  %517 = vst [vmem:[%s8650_s26 + $0x298] sm:$0xf] %v516_v38  ;;  %v520_v40 = vld [vmem:[%s8645_s29 + $0x540] sm:$0xf] }
  0x97   : > { %519 = vst [vmem:[%s8650_s26 + $0x29c] sm:$0xf] %v518_v39  ;;  %v522_v41 = vld [vmem:[%s8645_s29 + $0x548] sm:$0xf]  ;;  %v524_v42 = vld [vmem:[%s8645_s29 + $0x550] sm:$0xf] }
  0x98   : > { %521 = vst [vmem:[%s8650_s26 + $0x2a0] sm:$0xf] %v520_v40  ;;  %523 = vst [vmem:[%s8650_s26 + $0x2a4] sm:$0xf] %v522_v41  ;;  %v526_v43 = vld [vmem:[%s8645_s29 + $0x558] sm:$0xf] }
  0x99   : > { %525 = vst [vmem:[%s8650_s26 + $0x2a8] sm:$0xf] %v524_v42  ;;  %v528_v44 = vld [vmem:[%s8645_s29 + $0x560] sm:$0xf]  ;;  %v530_v45 = vld [vmem:[%s8645_s29 + $0x568] sm:$0xf] }
  0x9a   : > { %527 = vst [vmem:[%s8650_s26 + $0x2ac] sm:$0xf] %v526_v43  ;;  %529 = vst [vmem:[%s8650_s26 + $0x2b0] sm:$0xf] %v528_v44  ;;  %v532_v46 = vld [vmem:[%s8645_s29 + $0x570] sm:$0xf] }
  0x9b   : > { %531 = vst [vmem:[%s8650_s26 + $0x2b4] sm:$0xf] %v530_v45  ;;  %v534_v47 = vld [vmem:[%s8645_s29 + $0x578] sm:$0xf]  ;;  %v536_v48 = vld [vmem:[%s8645_s29 + $0x580] sm:$0xf] }
  0x9c   : > { %533 = vst [vmem:[%s8650_s26 + $0x2b8] sm:$0xf] %v532_v46  ;;  %535 = vst [vmem:[%s8650_s26 + $0x2bc] sm:$0xf] %v534_v47  ;;  %v538_v49 = vld [vmem:[%s8645_s29 + $0x588] sm:$0xf] }
  0x9d   : > { %537 = vst [vmem:[%s8650_s26 + $0x2c0] sm:$0xf] %v536_v48  ;;  %v540_v50 = vld [vmem:[%s8645_s29 + $0x590] sm:$0xf]  ;;  %v542_v51 = vld [vmem:[%s8645_s29 + $0x598] sm:$0xf] }
  0x9e   : > { %539 = vst [vmem:[%s8650_s26 + $0x2c4] sm:$0xf] %v538_v49  ;;  %541 = vst [vmem:[%s8650_s26 + $0x2c8] sm:$0xf] %v540_v50  ;;  %v544_v52 = vld [vmem:[%s8645_s29 + $0x5a0] sm:$0xf] }
  0x9f   : > { %543 = vst [vmem:[%s8650_s26 + $0x2cc] sm:$0xf] %v542_v51  ;;  %v546_v53 = vld [vmem:[%s8645_s29 + $0x5a8] sm:$0xf]  ;;  %v548_v54 = vld [vmem:[%s8645_s29 + $0x5b0] sm:$0xf] }
  0xa0   : > { %545 = vst [vmem:[%s8650_s26 + $0x2d0] sm:$0xf] %v544_v52  ;;  %547 = vst [vmem:[%s8650_s26 + $0x2d4] sm:$0xf] %v546_v53  ;;  %v550_v55 = vld [vmem:[%s8645_s29 + $0x5b8] sm:$0xf] }
  0xa1   : > { %549 = vst [vmem:[%s8650_s26 + $0x2d8] sm:$0xf] %v548_v54  ;;  %v552_v56 = vld [vmem:[%s8645_s29 + $0x5c0] sm:$0xf]  ;;  %v554_v57 = vld [vmem:[%s8645_s29 + $0x5c8] sm:$0xf] }
  0xa2   : > { %551 = vst [vmem:[%s8650_s26 + $0x2dc] sm:$0xf] %v550_v55  ;;  %553 = vst [vmem:[%s8650_s26 + $0x2e0] sm:$0xf] %v552_v56  ;;  %v556_v58 = vld [vmem:[%s8645_s29 + $0x5d0] sm:$0xf] }
  0xa3   : > { %555 = vst [vmem:[%s8650_s26 + $0x2e4] sm:$0xf] %v554_v57  ;;  %v558_v59 = vld [vmem:[%s8645_s29 + $0x5d8] sm:$0xf]  ;;  %v560_v60 = vld [vmem:[%s8645_s29 + $0x5e0] sm:$0xf] }
  0xa4   : > { %557 = vst [vmem:[%s8650_s26 + $0x2e8] sm:$0xf] %v556_v58  ;;  %559 = vst [vmem:[%s8650_s26 + $0x2ec] sm:$0xf] %v558_v59  ;;  %v562_v61 = vld [vmem:[%s8645_s29 + $0x5e8] sm:$0xf] }
  0xa5   : > { %561 = vst [vmem:[%s8650_s26 + $0x2f0] sm:$0xf] %v560_v60  ;;  %v564_v62 = vld [vmem:[%s8645_s29 + $0x5f0] sm:$0xf]  ;;  %v566_v63 = vld [vmem:[%s8645_s29 + $0x5f8] sm:$0xf] }
  0xa6   : > { %563 = vst [vmem:[%s8650_s26 + $0x2f4] sm:$0xf] %v562_v61  ;;  %565 = vst [vmem:[%s8650_s26 + $0x2f8] sm:$0xf] %v564_v62  ;;  %v568_v0 = vld [vmem:[%s8645_s29 + $0x600] sm:$0xf] }
  0xa7   : > { %567 = vst [vmem:[%s8650_s26 + $0x2fc] sm:$0xf] %v566_v63  ;;  %v570_v1 = vld [vmem:[%s8645_s29 + $0x608] sm:$0xf]  ;;  %v572_v2 = vld [vmem:[%s8645_s29 + $0x610] sm:$0xf] }
  0xa8   : > { %569 = vst [vmem:[%s8650_s26 + $0x300] sm:$0xf] %v568_v0  ;;  %571 = vst [vmem:[%s8650_s26 + $0x304] sm:$0xf] %v570_v1  ;;  %v574_v3 = vld [vmem:[%s8645_s29 + $0x618] sm:$0xf] }
  0xa9   : > { %573 = vst [vmem:[%s8650_s26 + $0x308] sm:$0xf] %v572_v2  ;;  %v576_v4 = vld [vmem:[%s8645_s29 + $0x620] sm:$0xf]  ;;  %v578_v5 = vld [vmem:[%s8645_s29 + $0x628] sm:$0xf] }
  0xaa   : > { %575 = vst [vmem:[%s8650_s26 + $0x30c] sm:$0xf] %v574_v3  ;;  %577 = vst [vmem:[%s8650_s26 + $0x310] sm:$0xf] %v576_v4  ;;  %v580_v6 = vld [vmem:[%s8645_s29 + $0x630] sm:$0xf] }
  0xab   : > { %579 = vst [vmem:[%s8650_s26 + $0x314] sm:$0xf] %v578_v5  ;;  %v582_v7 = vld [vmem:[%s8645_s29 + $0x638] sm:$0xf]  ;;  %v584_v8 = vld [vmem:[%s8645_s29 + $0x640] sm:$0xf] }
  0xac   : > { %581 = vst [vmem:[%s8650_s26 + $0x318] sm:$0xf] %v580_v6  ;;  %583 = vst [vmem:[%s8650_s26 + $0x31c] sm:$0xf] %v582_v7  ;;  %v586_v9 = vld [vmem:[%s8645_s29 + $0x648] sm:$0xf] }
  0xad   : > { %585 = vst [vmem:[%s8650_s26 + $0x320] sm:$0xf] %v584_v8  ;;  %v588_v10 = vld [vmem:[%s8645_s29 + $0x650] sm:$0xf]  ;;  %v590_v11 = vld [vmem:[%s8645_s29 + $0x658] sm:$0xf] }
  0xae   : > { %587 = vst [vmem:[%s8650_s26 + $0x324] sm:$0xf] %v586_v9  ;;  %589 = vst [vmem:[%s8650_s26 + $0x328] sm:$0xf] %v588_v10  ;;  %v592_v12 = vld [vmem:[%s8645_s29 + $0x660] sm:$0xf] }
  0xaf   : > { %591 = vst [vmem:[%s8650_s26 + $0x32c] sm:$0xf] %v590_v11  ;;  %v594_v13 = vld [vmem:[%s8645_s29 + $0x668] sm:$0xf]  ;;  %v596_v14 = vld [vmem:[%s8645_s29 + $0x670] sm:$0xf] }
  0xb0   : > { %593 = vst [vmem:[%s8650_s26 + $0x330] sm:$0xf] %v592_v12  ;;  %595 = vst [vmem:[%s8650_s26 + $0x334] sm:$0xf] %v594_v13  ;;  %v598_v15 = vld [vmem:[%s8645_s29 + $0x678] sm:$0xf] }
  0xb1   : > { %597 = vst [vmem:[%s8650_s26 + $0x338] sm:$0xf] %v596_v14  ;;  %v600_v16 = vld [vmem:[%s8645_s29 + $0x680] sm:$0xf]  ;;  %v602_v17 = vld [vmem:[%s8645_s29 + $0x688] sm:$0xf] }
  0xb2   : > { %599 = vst [vmem:[%s8650_s26 + $0x33c] sm:$0xf] %v598_v15  ;;  %601 = vst [vmem:[%s8650_s26 + $0x340] sm:$0xf] %v600_v16  ;;  %v604_v18 = vld [vmem:[%s8645_s29 + $0x690] sm:$0xf] }
  0xb3   : > { %603 = vst [vmem:[%s8650_s26 + $0x344] sm:$0xf] %v602_v17  ;;  %v606_v19 = vld [vmem:[%s8645_s29 + $0x698] sm:$0xf]  ;;  %v608_v20 = vld [vmem:[%s8645_s29 + $0x6a0] sm:$0xf] }
  0xb4   : > { %605 = vst [vmem:[%s8650_s26 + $0x348] sm:$0xf] %v604_v18  ;;  %607 = vst [vmem:[%s8650_s26 + $0x34c] sm:$0xf] %v606_v19  ;;  %v610_v21 = vld [vmem:[%s8645_s29 + $0x6a8] sm:$0xf] }
  0xb5   : > { %609 = vst [vmem:[%s8650_s26 + $0x350] sm:$0xf] %v608_v20  ;;  %v612_v22 = vld [vmem:[%s8645_s29 + $0x6b0] sm:$0xf]  ;;  %v614_v23 = vld [vmem:[%s8645_s29 + $0x6b8] sm:$0xf] }
  0xb6   : > { %611 = vst [vmem:[%s8650_s26 + $0x354] sm:$0xf] %v610_v21  ;;  %613 = vst [vmem:[%s8650_s26 + $0x358] sm:$0xf] %v612_v22  ;;  %v616_v24 = vld [vmem:[%s8645_s29 + $0x6c0] sm:$0xf] }
  0xb7   : > { %615 = vst [vmem:[%s8650_s26 + $0x35c] sm:$0xf] %v614_v23  ;;  %v618_v25 = vld [vmem:[%s8645_s29 + $0x6c8] sm:$0xf]  ;;  %v620_v26 = vld [vmem:[%s8645_s29 + $0x6d0] sm:$0xf] }
  0xb8   : > { %617 = vst [vmem:[%s8650_s26 + $0x360] sm:$0xf] %v616_v24  ;;  %619 = vst [vmem:[%s8650_s26 + $0x364] sm:$0xf] %v618_v25  ;;  %v622_v27 = vld [vmem:[%s8645_s29 + $0x6d8] sm:$0xf] }
  0xb9   : > { %621 = vst [vmem:[%s8650_s26 + $0x368] sm:$0xf] %v620_v26  ;;  %v624_v28 = vld [vmem:[%s8645_s29 + $0x6e0] sm:$0xf]  ;;  %v626_v29 = vld [vmem:[%s8645_s29 + $0x6e8] sm:$0xf] }
  0xba   : > { %623 = vst [vmem:[%s8650_s26 + $0x36c] sm:$0xf] %v622_v27  ;;  %625 = vst [vmem:[%s8650_s26 + $0x370] sm:$0xf] %v624_v28  ;;  %v628_v30 = vld [vmem:[%s8645_s29 + $0x6f0] sm:$0xf] }
  0xbb   : > { %627 = vst [vmem:[%s8650_s26 + $0x374] sm:$0xf] %v626_v29  ;;  %v630_v31 = vld [vmem:[%s8645_s29 + $0x6f8] sm:$0xf]  ;;  %v632_v32 = vld [vmem:[%s8645_s29 + $0x700] sm:$0xf] }
  0xbc   : > { %629 = vst [vmem:[%s8650_s26 + $0x378] sm:$0xf] %v628_v30  ;;  %631 = vst [vmem:[%s8650_s26 + $0x37c] sm:$0xf] %v630_v31  ;;  %v634_v33 = vld [vmem:[%s8645_s29 + $0x708] sm:$0xf] }
  0xbd   : > { %633 = vst [vmem:[%s8650_s26 + $0x380] sm:$0xf] %v632_v32  ;;  %v636_v34 = vld [vmem:[%s8645_s29 + $0x710] sm:$0xf]  ;;  %v638_v35 = vld [vmem:[%s8645_s29 + $0x718] sm:$0xf] }
  0xbe   : > { %635 = vst [vmem:[%s8650_s26 + $0x384] sm:$0xf] %v634_v33  ;;  %637 = vst [vmem:[%s8650_s26 + $0x388] sm:$0xf] %v636_v34  ;;  %v640_v36 = vld [vmem:[%s8645_s29 + $0x720] sm:$0xf] }
  0xbf   : > { %639 = vst [vmem:[%s8650_s26 + $0x38c] sm:$0xf] %v638_v35  ;;  %v642_v37 = vld [vmem:[%s8645_s29 + $0x728] sm:$0xf]  ;;  %v644_v38 = vld [vmem:[%s8645_s29 + $0x730] sm:$0xf] }
  0xc0   : > { %641 = vst [vmem:[%s8650_s26 + $0x390] sm:$0xf] %v640_v36  ;;  %643 = vst [vmem:[%s8650_s26 + $0x394] sm:$0xf] %v642_v37  ;;  %v646_v39 = vld [vmem:[%s8645_s29 + $0x738] sm:$0xf] }
  0xc1   : > { %645 = vst [vmem:[%s8650_s26 + $0x398] sm:$0xf] %v644_v38  ;;  %v648_v40 = vld [vmem:[%s8645_s29 + $0x740] sm:$0xf]  ;;  %v650_v41 = vld [vmem:[%s8645_s29 + $0x748] sm:$0xf] }
  0xc2   : > { %647 = vst [vmem:[%s8650_s26 + $0x39c] sm:$0xf] %v646_v39  ;;  %649 = vst [vmem:[%s8650_s26 + $0x3a0] sm:$0xf] %v648_v40  ;;  %v652_v42 = vld [vmem:[%s8645_s29 + $0x750] sm:$0xf] }
  0xc3   : > { %651 = vst [vmem:[%s8650_s26 + $0x3a4] sm:$0xf] %v650_v41  ;;  %v654_v43 = vld [vmem:[%s8645_s29 + $0x758] sm:$0xf]  ;;  %v656_v44 = vld [vmem:[%s8645_s29 + $0x760] sm:$0xf] }
  0xc4   : > { %653 = vst [vmem:[%s8650_s26 + $0x3a8] sm:$0xf] %v652_v42  ;;  %655 = vst [vmem:[%s8650_s26 + $0x3ac] sm:$0xf] %v654_v43  ;;  %v658_v45 = vld [vmem:[%s8645_s29 + $0x768] sm:$0xf] }
  0xc5   : > { %657 = vst [vmem:[%s8650_s26 + $0x3b0] sm:$0xf] %v656_v44  ;;  %v660_v46 = vld [vmem:[%s8645_s29 + $0x770] sm:$0xf]  ;;  %v662_v47 = vld [vmem:[%s8645_s29 + $0x778] sm:$0xf] }
  0xc6   : > { %659 = vst [vmem:[%s8650_s26 + $0x3b4] sm:$0xf] %v658_v45  ;;  %661 = vst [vmem:[%s8650_s26 + $0x3b8] sm:$0xf] %v660_v46  ;;  %v664_v48 = vld [vmem:[%s8645_s29 + $0x780] sm:$0xf] }
  0xc7   : > { %663 = vst [vmem:[%s8650_s26 + $0x3bc] sm:$0xf] %v662_v47  ;;  %v666_v49 = vld [vmem:[%s8645_s29 + $0x788] sm:$0xf]  ;;  %v668_v50 = vld [vmem:[%s8645_s29 + $0x790] sm:$0xf] }
  0xc8   : > { %665 = vst [vmem:[%s8650_s26 + $0x3c0] sm:$0xf] %v664_v48  ;;  %667 = vst [vmem:[%s8650_s26 + $0x3c4] sm:$0xf] %v666_v49  ;;  %v670_v51 = vld [vmem:[%s8645_s29 + $0x798] sm:$0xf] }
  0xc9   : > { %669 = vst [vmem:[%s8650_s26 + $0x3c8] sm:$0xf] %v668_v50  ;;  %v672_v52 = vld [vmem:[%s8645_s29 + $0x7a0] sm:$0xf]  ;;  %v674_v53 = vld [vmem:[%s8645_s29 + $0x7a8] sm:$0xf] }
  0xca   : > { %671 = vst [vmem:[%s8650_s26 + $0x3cc] sm:$0xf] %v670_v51  ;;  %673 = vst [vmem:[%s8650_s26 + $0x3d0] sm:$0xf] %v672_v52  ;;  %v676_v54 = vld [vmem:[%s8645_s29 + $0x7b0] sm:$0xf] }
  0xcb   : > { %675 = vst [vmem:[%s8650_s26 + $0x3d4] sm:$0xf] %v674_v53  ;;  %v678_v55 = vld [vmem:[%s8645_s29 + $0x7b8] sm:$0xf]  ;;  %v680_v56 = vld [vmem:[%s8645_s29 + $0x7c0] sm:$0xf] }
  0xcc   : > { %677 = vst [vmem:[%s8650_s26 + $0x3d8] sm:$0xf] %v676_v54  ;;  %679 = vst [vmem:[%s8650_s26 + $0x3dc] sm:$0xf] %v678_v55  ;;  %v682_v57 = vld [vmem:[%s8645_s29 + $0x7c8] sm:$0xf] }
  0xcd   : > { %681 = vst [vmem:[%s8650_s26 + $0x3e0] sm:$0xf] %v680_v56  ;;  %v684_v58 = vld [vmem:[%s8645_s29 + $0x7d0] sm:$0xf]  ;;  %v686_v59 = vld [vmem:[%s8645_s29 + $0x7d8] sm:$0xf] }
  0xce   : > { %683 = vst [vmem:[%s8650_s26 + $0x3e4] sm:$0xf] %v682_v57  ;;  %685 = vst [vmem:[%s8650_s26 + $0x3e8] sm:$0xf] %v684_v58  ;;  %v688_v60 = vld [vmem:[%s8645_s29 + $0x7e0] sm:$0xf] }
  0xcf   : > { %687 = vst [vmem:[%s8650_s26 + $0x3ec] sm:$0xf] %v686_v59  ;;  %v690_v61 = vld [vmem:[%s8645_s29 + $0x7e8] sm:$0xf]  ;;  %v692_v62 = vld [vmem:[%s8645_s29 + $0x7f0] sm:$0xf] }
  0xd0   : > { %689 = vst [vmem:[%s8650_s26 + $0x3f0] sm:$0xf] %v688_v60  ;;  %691 = vst [vmem:[%s8650_s26 + $0x3f4] sm:$0xf] %v690_v61  ;;  %v694_v63 = vld [vmem:[%s8645_s29 + $0x7f8] sm:$0xf] }
  0xd1   : > { %693 = vst [vmem:[%s8650_s26 + $0x3f8] sm:$0xf] %v692_v62  ;;  %v696_v0 = vld [vmem:[%s8645_s29 + $0x800] sm:$0xf]  ;;  %v698_v1 = vld [vmem:[%s8645_s29 + $0x808] sm:$0xf] }
  0xd2   : > { %695 = vst [vmem:[%s8650_s26 + $0x3fc] sm:$0xf] %v694_v63  ;;  %697 = vst [vmem:[%s8650_s26 + $0x400] sm:$0xf] %v696_v0  ;;  %v700_v2 = vld [vmem:[%s8645_s29 + $0x810] sm:$0xf] }
  0xd3   : > { %699 = vst [vmem:[%s8650_s26 + $0x404] sm:$0xf] %v698_v1  ;;  %v702_v3 = vld [vmem:[%s8645_s29 + $0x818] sm:$0xf]  ;;  %v704_v4 = vld [vmem:[%s8645_s29 + $0x820] sm:$0xf] }
  0xd4   : > { %701 = vst [vmem:[%s8650_s26 + $0x408] sm:$0xf] %v700_v2  ;;  %703 = vst [vmem:[%s8650_s26 + $0x40c] sm:$0xf] %v702_v3  ;;  %v706_v5 = vld [vmem:[%s8645_s29 + $0x828] sm:$0xf] }
  0xd5   : > { %705 = vst [vmem:[%s8650_s26 + $0x410] sm:$0xf] %v704_v4  ;;  %v708_v6 = vld [vmem:[%s8645_s29 + $0x830] sm:$0xf]  ;;  %v710_v7 = vld [vmem:[%s8645_s29 + $0x838] sm:$0xf] }
  0xd6   : > { %707 = vst [vmem:[%s8650_s26 + $0x414] sm:$0xf] %v706_v5  ;;  %709 = vst [vmem:[%s8650_s26 + $0x418] sm:$0xf] %v708_v6  ;;  %v712_v8 = vld [vmem:[%s8645_s29 + $0x840] sm:$0xf] }
  0xd7   : > { %711 = vst [vmem:[%s8650_s26 + $0x41c] sm:$0xf] %v710_v7  ;;  %v714_v9 = vld [vmem:[%s8645_s29 + $0x848] sm:$0xf]  ;;  %v716_v10 = vld [vmem:[%s8645_s29 + $0x850] sm:$0xf] }
  0xd8   : > { %713 = vst [vmem:[%s8650_s26 + $0x420] sm:$0xf] %v712_v8  ;;  %715 = vst [vmem:[%s8650_s26 + $0x424] sm:$0xf] %v714_v9  ;;  %v718_v11 = vld [vmem:[%s8645_s29 + $0x858] sm:$0xf] }
  0xd9   : > { %717 = vst [vmem:[%s8650_s26 + $0x428] sm:$0xf] %v716_v10  ;;  %v720_v12 = vld [vmem:[%s8645_s29 + $0x860] sm:$0xf]  ;;  %v722_v13 = vld [vmem:[%s8645_s29 + $0x868] sm:$0xf] }
  0xda   : > { %719 = vst [vmem:[%s8650_s26 + $0x42c] sm:$0xf] %v718_v11  ;;  %721 = vst [vmem:[%s8650_s26 + $0x430] sm:$0xf] %v720_v12  ;;  %v724_v14 = vld [vmem:[%s8645_s29 + $0x870] sm:$0xf] }
  0xdb   : > { %723 = vst [vmem:[%s8650_s26 + $0x434] sm:$0xf] %v722_v13  ;;  %v726_v15 = vld [vmem:[%s8645_s29 + $0x878] sm:$0xf]  ;;  %v728_v16 = vld [vmem:[%s8645_s29 + $0x880] sm:$0xf] }
  0xdc   : > { %725 = vst [vmem:[%s8650_s26 + $0x438] sm:$0xf] %v724_v14  ;;  %727 = vst [vmem:[%s8650_s26 + $0x43c] sm:$0xf] %v726_v15  ;;  %v730_v17 = vld [vmem:[%s8645_s29 + $0x888] sm:$0xf] }
  0xdd   : > { %729 = vst [vmem:[%s8650_s26 + $0x440] sm:$0xf] %v728_v16  ;;  %v732_v18 = vld [vmem:[%s8645_s29 + $0x890] sm:$0xf]  ;;  %v734_v19 = vld [vmem:[%s8645_s29 + $0x898] sm:$0xf] }
  0xde   : > { %731 = vst [vmem:[%s8650_s26 + $0x444] sm:$0xf] %v730_v17  ;;  %733 = vst [vmem:[%s8650_s26 + $0x448] sm:$0xf] %v732_v18  ;;  %v736_v20 = vld [vmem:[%s8645_s29 + $0x8a0] sm:$0xf] }
  0xdf   : > { %735 = vst [vmem:[%s8650_s26 + $0x44c] sm:$0xf] %v734_v19  ;;  %v738_v21 = vld [vmem:[%s8645_s29 + $0x8a8] sm:$0xf]  ;;  %v740_v22 = vld [vmem:[%s8645_s29 + $0x8b0] sm:$0xf] }
  0xe0   : > { %737 = vst [vmem:[%s8650_s26 + $0x450] sm:$0xf] %v736_v20  ;;  %739 = vst [vmem:[%s8650_s26 + $0x454] sm:$0xf] %v738_v21  ;;  %v742_v23 = vld [vmem:[%s8645_s29 + $0x8b8] sm:$0xf] }
  0xe1   : > { %741 = vst [vmem:[%s8650_s26 + $0x458] sm:$0xf] %v740_v22  ;;  %v744_v24 = vld [vmem:[%s8645_s29 + $0x8c0] sm:$0xf]  ;;  %v746_v25 = vld [vmem:[%s8645_s29 + $0x8c8] sm:$0xf] }
  0xe2   : > { %743 = vst [vmem:[%s8650_s26 + $0x45c] sm:$0xf] %v742_v23  ;;  %745 = vst [vmem:[%s8650_s26 + $0x460] sm:$0xf] %v744_v24  ;;  %v748_v26 = vld [vmem:[%s8645_s29 + $0x8d0] sm:$0xf] }
  0xe3   : > { %747 = vst [vmem:[%s8650_s26 + $0x464] sm:$0xf] %v746_v25  ;;  %v750_v27 = vld [vmem:[%s8645_s29 + $0x8d8] sm:$0xf]  ;;  %v752_v28 = vld [vmem:[%s8645_s29 + $0x8e0] sm:$0xf] }
  0xe4   : > { %749 = vst [vmem:[%s8650_s26 + $0x468] sm:$0xf] %v748_v26  ;;  %751 = vst [vmem:[%s8650_s26 + $0x46c] sm:$0xf] %v750_v27  ;;  %v754_v29 = vld [vmem:[%s8645_s29 + $0x8e8] sm:$0xf] }
  0xe5   : > { %753 = vst [vmem:[%s8650_s26 + $0x470] sm:$0xf] %v752_v28  ;;  %v756_v30 = vld [vmem:[%s8645_s29 + $0x8f0] sm:$0xf]  ;;  %v758_v31 = vld [vmem:[%s8645_s29 + $0x8f8] sm:$0xf] }
  0xe6   : > { %755 = vst [vmem:[%s8650_s26 + $0x474] sm:$0xf] %v754_v29  ;;  %757 = vst [vmem:[%s8650_s26 + $0x478] sm:$0xf] %v756_v30  ;;  %v760_v32 = vld [vmem:[%s8645_s29 + $0x900] sm:$0xf] }
  0xe7   : > { %759 = vst [vmem:[%s8650_s26 + $0x47c] sm:$0xf] %v758_v31  ;;  %v762_v33 = vld [vmem:[%s8645_s29 + $0x908] sm:$0xf]  ;;  %v764_v34 = vld [vmem:[%s8645_s29 + $0x910] sm:$0xf] }
  0xe8   : > { %761 = vst [vmem:[%s8650_s26 + $0x480] sm:$0xf] %v760_v32  ;;  %763 = vst [vmem:[%s8650_s26 + $0x484] sm:$0xf] %v762_v33  ;;  %v766_v35 = vld [vmem:[%s8645_s29 + $0x918] sm:$0xf] }
  0xe9   : > { %765 = vst [vmem:[%s8650_s26 + $0x488] sm:$0xf] %v764_v34  ;;  %v768_v36 = vld [vmem:[%s8645_s29 + $0x920] sm:$0xf]  ;;  %v770_v37 = vld [vmem:[%s8645_s29 + $0x928] sm:$0xf] }
  0xea   : > { %767 = vst [vmem:[%s8650_s26 + $0x48c] sm:$0xf] %v766_v35  ;;  %769 = vst [vmem:[%s8650_s26 + $0x490] sm:$0xf] %v768_v36  ;;  %v772_v38 = vld [vmem:[%s8645_s29 + $0x930] sm:$0xf] }
  0xeb   : > { %771 = vst [vmem:[%s8650_s26 + $0x494] sm:$0xf] %v770_v37  ;;  %v774_v39 = vld [vmem:[%s8645_s29 + $0x938] sm:$0xf]  ;;  %v776_v40 = vld [vmem:[%s8645_s29 + $0x940] sm:$0xf] }
  0xec   : > { %773 = vst [vmem:[%s8650_s26 + $0x498] sm:$0xf] %v772_v38  ;;  %775 = vst [vmem:[%s8650_s26 + $0x49c] sm:$0xf] %v774_v39  ;;  %v778_v41 = vld [vmem:[%s8645_s29 + $0x948] sm:$0xf] }
  0xed   : > { %777 = vst [vmem:[%s8650_s26 + $0x4a0] sm:$0xf] %v776_v40  ;;  %v780_v42 = vld [vmem:[%s8645_s29 + $0x950] sm:$0xf]  ;;  %v782_v43 = vld [vmem:[%s8645_s29 + $0x958] sm:$0xf] }
  0xee   : > { %779 = vst [vmem:[%s8650_s26 + $0x4a4] sm:$0xf] %v778_v41  ;;  %781 = vst [vmem:[%s8650_s26 + $0x4a8] sm:$0xf] %v780_v42  ;;  %v784_v44 = vld [vmem:[%s8645_s29 + $0x960] sm:$0xf] }
  0xef   : > { %783 = vst [vmem:[%s8650_s26 + $0x4ac] sm:$0xf] %v782_v43  ;;  %v786_v45 = vld [vmem:[%s8645_s29 + $0x968] sm:$0xf]  ;;  %v788_v46 = vld [vmem:[%s8645_s29 + $0x970] sm:$0xf] }
  0xf0   : > { %785 = vst [vmem:[%s8650_s26 + $0x4b0] sm:$0xf] %v784_v44  ;;  %787 = vst [vmem:[%s8650_s26 + $0x4b4] sm:$0xf] %v786_v45  ;;  %v790_v47 = vld [vmem:[%s8645_s29 + $0x978] sm:$0xf] }
  0xf1   : > { %789 = vst [vmem:[%s8650_s26 + $0x4b8] sm:$0xf] %v788_v46  ;;  %v792_v48 = vld [vmem:[%s8645_s29 + $0x980] sm:$0xf]  ;;  %v794_v49 = vld [vmem:[%s8645_s29 + $0x988] sm:$0xf] }
  0xf2   : > { %791 = vst [vmem:[%s8650_s26 + $0x4bc] sm:$0xf] %v790_v47  ;;  %793 = vst [vmem:[%s8650_s26 + $0x4c0] sm:$0xf] %v792_v48  ;;  %v796_v50 = vld [vmem:[%s8645_s29 + $0x990] sm:$0xf] }
  0xf3   : > { %795 = vst [vmem:[%s8650_s26 + $0x4c4] sm:$0xf] %v794_v49  ;;  %v798_v51 = vld [vmem:[%s8645_s29 + $0x998] sm:$0xf]  ;;  %v800_v52 = vld [vmem:[%s8645_s29 + $0x9a0] sm:$0xf] }
  0xf4   : > { %797 = vst [vmem:[%s8650_s26 + $0x4c8] sm:$0xf] %v796_v50  ;;  %799 = vst [vmem:[%s8650_s26 + $0x4cc] sm:$0xf] %v798_v51  ;;  %v802_v53 = vld [vmem:[%s8645_s29 + $0x9a8] sm:$0xf] }
  0xf5   : > { %801 = vst [vmem:[%s8650_s26 + $0x4d0] sm:$0xf] %v800_v52  ;;  %v804_v54 = vld [vmem:[%s8645_s29 + $0x9b0] sm:$0xf]  ;;  %v806_v55 = vld [vmem:[%s8645_s29 + $0x9b8] sm:$0xf] }
  0xf6   : > { %803 = vst [vmem:[%s8650_s26 + $0x4d4] sm:$0xf] %v802_v53  ;;  %805 = vst [vmem:[%s8650_s26 + $0x4d8] sm:$0xf] %v804_v54  ;;  %v808_v56 = vld [vmem:[%s8645_s29 + $0x9c0] sm:$0xf] }
  0xf7   : > { %807 = vst [vmem:[%s8650_s26 + $0x4dc] sm:$0xf] %v806_v55  ;;  %v810_v57 = vld [vmem:[%s8645_s29 + $0x9c8] sm:$0xf]  ;;  %v812_v58 = vld [vmem:[%s8645_s29 + $0x9d0] sm:$0xf] }
  0xf8   : > { %809 = vst [vmem:[%s8650_s26 + $0x4e0] sm:$0xf] %v808_v56  ;;  %811 = vst [vmem:[%s8650_s26 + $0x4e4] sm:$0xf] %v810_v57  ;;  %v814_v59 = vld [vmem:[%s8645_s29 + $0x9d8] sm:$0xf] }
  0xf9   : > { %813 = vst [vmem:[%s8650_s26 + $0x4e8] sm:$0xf] %v812_v58  ;;  %v816_v60 = vld [vmem:[%s8645_s29 + $0x9e0] sm:$0xf]  ;;  %v818_v61 = vld [vmem:[%s8645_s29 + $0x9e8] sm:$0xf] }
  0xfa   : > { %815 = vst [vmem:[%s8650_s26 + $0x4ec] sm:$0xf] %v814_v59  ;;  %817 = vst [vmem:[%s8650_s26 + $0x4f0] sm:$0xf] %v816_v60  ;;  %v820_v62 = vld [vmem:[%s8645_s29 + $0x9f0] sm:$0xf] }
  0xfb   : > { %819 = vst [vmem:[%s8650_s26 + $0x4f4] sm:$0xf] %v818_v61  ;;  %v822_v63 = vld [vmem:[%s8645_s29 + $0x9f8] sm:$0xf]  ;;  %v824_v0 = vld [vmem:[%s8645_s29 + $0xa00] sm:$0xf] }
  0xfc   : > { %821 = vst [vmem:[%s8650_s26 + $0x4f8] sm:$0xf] %v820_v62  ;;  %823 = vst [vmem:[%s8650_s26 + $0x4fc] sm:$0xf] %v822_v63  ;;  %v826_v1 = vld [vmem:[%s8645_s29 + $0xa08] sm:$0xf] }
  0xfd   : > { %825 = vst [vmem:[%s8650_s26 + $0x500] sm:$0xf] %v824_v0  ;;  %v828_v2 = vld [vmem:[%s8645_s29 + $0xa10] sm:$0xf]  ;;  %v830_v3 = vld [vmem:[%s8645_s29 + $0xa18] sm:$0xf] }
  0xfe   : > { %827 = vst [vmem:[%s8650_s26 + $0x504] sm:$0xf] %v826_v1  ;;  %829 = vst [vmem:[%s8650_s26 + $0x508] sm:$0xf] %v828_v2  ;;  %v832_v4 = vld [vmem:[%s8645_s29 + $0xa20] sm:$0xf] }
  0xff   : > { %831 = vst [vmem:[%s8650_s26 + $0x50c] sm:$0xf] %v830_v3  ;;  %v834_v5 = vld [vmem:[%s8645_s29 + $0xa28] sm:$0xf]  ;;  %v836_v6 = vld [vmem:[%s8645_s29 + $0xa30] sm:$0xf] }
 0x100   : > { %833 = vst [vmem:[%s8650_s26 + $0x510] sm:$0xf] %v832_v4  ;;  %835 = vst [vmem:[%s8650_s26 + $0x514] sm:$0xf] %v834_v5  ;;  %v838_v7 = vld [vmem:[%s8645_s29 + $0xa38] sm:$0xf] }
 0x101   : > { %837 = vst [vmem:[%s8650_s26 + $0x518] sm:$0xf] %v836_v6  ;;  %v840_v8 = vld [vmem:[%s8645_s29 + $0xa40] sm:$0xf]  ;;  %v842_v9 = vld [vmem:[%s8645_s29 + $0xa48] sm:$0xf] }
 0x102   : > { %839 = vst [vmem:[%s8650_s26 + $0x51c] sm:$0xf] %v838_v7  ;;  %841 = vst [vmem:[%s8650_s26 + $0x520] sm:$0xf] %v840_v8  ;;  %v844_v10 = vld [vmem:[%s8645_s29 + $0xa50] sm:$0xf] }
 0x103   : > { %843 = vst [vmem:[%s8650_s26 + $0x524] sm:$0xf] %v842_v9  ;;  %v846_v11 = vld [vmem:[%s8645_s29 + $0xa58] sm:$0xf]  ;;  %v848_v12 = vld [vmem:[%s8645_s29 + $0xa60] sm:$0xf] }
 0x104   : > { %845 = vst [vmem:[%s8650_s26 + $0x528] sm:$0xf] %v844_v10  ;;  %847 = vst [vmem:[%s8650_s26 + $0x52c] sm:$0xf] %v846_v11  ;;  %v850_v13 = vld [vmem:[%s8645_s29 + $0xa68] sm:$0xf] }
 0x105   : > { %849 = vst [vmem:[%s8650_s26 + $0x530] sm:$0xf] %v848_v12  ;;  %v852_v14 = vld [vmem:[%s8645_s29 + $0xa70] sm:$0xf]  ;;  %v854_v15 = vld [vmem:[%s8645_s29 + $0xa78] sm:$0xf] }
 0x106   : > { %851 = vst [vmem:[%s8650_s26 + $0x534] sm:$0xf] %v850_v13  ;;  %853 = vst [vmem:[%s8650_s26 + $0x538] sm:$0xf] %v852_v14  ;;  %v856_v16 = vld [vmem:[%s8645_s29 + $0xa80] sm:$0xf] }
 0x107   : > { %855 = vst [vmem:[%s8650_s26 + $0x53c] sm:$0xf] %v854_v15  ;;  %v858_v17 = vld [vmem:[%s8645_s29 + $0xa88] sm:$0xf]  ;;  %v860_v18 = vld [vmem:[%s8645_s29 + $0xa90] sm:$0xf] }
 0x108   : > { %857 = vst [vmem:[%s8650_s26 + $0x540] sm:$0xf] %v856_v16  ;;  %859 = vst [vmem:[%s8650_s26 + $0x544] sm:$0xf] %v858_v17  ;;  %v862_v19 = vld [vmem:[%s8645_s29 + $0xa98] sm:$0xf] }
 0x109   : > { %861 = vst [vmem:[%s8650_s26 + $0x548] sm:$0xf] %v860_v18  ;;  %v864_v20 = vld [vmem:[%s8645_s29 + $0xaa0] sm:$0xf]  ;;  %v866_v21 = vld [vmem:[%s8645_s29 + $0xaa8] sm:$0xf] }
 0x10a   : > { %863 = vst [vmem:[%s8650_s26 + $0x54c] sm:$0xf] %v862_v19  ;;  %865 = vst [vmem:[%s8650_s26 + $0x550] sm:$0xf] %v864_v20  ;;  %v868_v22 = vld [vmem:[%s8645_s29 + $0xab0] sm:$0xf] }
 0x10b   : > { %867 = vst [vmem:[%s8650_s26 + $0x554] sm:$0xf] %v866_v21  ;;  %v870_v23 = vld [vmem:[%s8645_s29 + $0xab8] sm:$0xf]  ;;  %v872_v24 = vld [vmem:[%s8645_s29 + $0xac0] sm:$0xf] }
 0x10c   : > { %869 = vst [vmem:[%s8650_s26 + $0x558] sm:$0xf] %v868_v22  ;;  %871 = vst [vmem:[%s8650_s26 + $0x55c] sm:$0xf] %v870_v23  ;;  %v874_v25 = vld [vmem:[%s8645_s29 + $0xac8] sm:$0xf] }
 0x10d   : > { %873 = vst [vmem:[%s8650_s26 + $0x560] sm:$0xf] %v872_v24  ;;  %v876_v26 = vld [vmem:[%s8645_s29 + $0xad0] sm:$0xf]  ;;  %v878_v27 = vld [vmem:[%s8645_s29 + $0xad8] sm:$0xf] }
 0x10e   : > { %875 = vst [vmem:[%s8650_s26 + $0x564] sm:$0xf] %v874_v25  ;;  %877 = vst [vmem:[%s8650_s26 + $0x568] sm:$0xf] %v876_v26  ;;  %v880_v28 = vld [vmem:[%s8645_s29 + $0xae0] sm:$0xf] }
 0x10f   : > { %879 = vst [vmem:[%s8650_s26 + $0x56c] sm:$0xf] %v878_v27  ;;  %v882_v29 = vld [vmem:[%s8645_s29 + $0xae8] sm:$0xf]  ;;  %v884_v30 = vld [vmem:[%s8645_s29 + $0xaf0] sm:$0xf] }
 0x110   : > { %881 = vst [vmem:[%s8650_s26 + $0x570] sm:$0xf] %v880_v28  ;;  %883 = vst [vmem:[%s8650_s26 + $0x574] sm:$0xf] %v882_v29  ;;  %v886_v31 = vld [vmem:[%s8645_s29 + $0xaf8] sm:$0xf] }
 0x111   : > { %885 = vst [vmem:[%s8650_s26 + $0x578] sm:$0xf] %v884_v30  ;;  %v888_v32 = vld [vmem:[%s8645_s29 + $0xb00] sm:$0xf]  ;;  %v890_v33 = vld [vmem:[%s8645_s29 + $0xb08] sm:$0xf] }
 0x112   : > { %887 = vst [vmem:[%s8650_s26 + $0x57c] sm:$0xf] %v886_v31  ;;  %889 = vst [vmem:[%s8650_s26 + $0x580] sm:$0xf] %v888_v32  ;;  %v892_v34 = vld [vmem:[%s8645_s29 + $0xb10] sm:$0xf] }
 0x113   : > { %891 = vst [vmem:[%s8650_s26 + $0x584] sm:$0xf] %v890_v33  ;;  %v894_v35 = vld [vmem:[%s8645_s29 + $0xb18] sm:$0xf]  ;;  %v896_v36 = vld [vmem:[%s8645_s29 + $0xb20] sm:$0xf] }
 0x114   : > { %893 = vst [vmem:[%s8650_s26 + $0x588] sm:$0xf] %v892_v34  ;;  %895 = vst [vmem:[%s8650_s26 + $0x58c] sm:$0xf] %v894_v35  ;;  %v898_v37 = vld [vmem:[%s8645_s29 + $0xb28] sm:$0xf] }
 0x115   : > { %897 = vst [vmem:[%s8650_s26 + $0x590] sm:$0xf] %v896_v36  ;;  %v900_v38 = vld [vmem:[%s8645_s29 + $0xb30] sm:$0xf]  ;;  %v902_v39 = vld [vmem:[%s8645_s29 + $0xb38] sm:$0xf] }
 0x116   : > { %899 = vst [vmem:[%s8650_s26 + $0x594] sm:$0xf] %v898_v37  ;;  %901 = vst [vmem:[%s8650_s26 + $0x598] sm:$0xf] %v900_v38  ;;  %v904_v40 = vld [vmem:[%s8645_s29 + $0xb40] sm:$0xf] }
 0x117   : > { %903 = vst [vmem:[%s8650_s26 + $0x59c] sm:$0xf] %v902_v39  ;;  %v906_v41 = vld [vmem:[%s8645_s29 + $0xb48] sm:$0xf]  ;;  %v908_v42 = vld [vmem:[%s8645_s29 + $0xb50] sm:$0xf] }
 0x118   : > { %905 = vst [vmem:[%s8650_s26 + $0x5a0] sm:$0xf] %v904_v40  ;;  %907 = vst [vmem:[%s8650_s26 + $0x5a4] sm:$0xf] %v906_v41  ;;  %v910_v43 = vld [vmem:[%s8645_s29 + $0xb58] sm:$0xf] }
 0x119   : > { %909 = vst [vmem:[%s8650_s26 + $0x5a8] sm:$0xf] %v908_v42  ;;  %v912_v44 = vld [vmem:[%s8645_s29 + $0xb60] sm:$0xf]  ;;  %v914_v45 = vld [vmem:[%s8645_s29 + $0xb68] sm:$0xf] }
 0x11a   : > { %911 = vst [vmem:[%s8650_s26 + $0x5ac] sm:$0xf] %v910_v43  ;;  %913 = vst [vmem:[%s8650_s26 + $0x5b0] sm:$0xf] %v912_v44  ;;  %v916_v46 = vld [vmem:[%s8645_s29 + $0xb70] sm:$0xf] }
 0x11b   : > { %915 = vst [vmem:[%s8650_s26 + $0x5b4] sm:$0xf] %v914_v45  ;;  %v918_v47 = vld [vmem:[%s8645_s29 + $0xb78] sm:$0xf]  ;;  %v920_v48 = vld [vmem:[%s8645_s29 + $0xb80] sm:$0xf] }
 0x11c   : > { %917 = vst [vmem:[%s8650_s26 + $0x5b8] sm:$0xf] %v916_v46  ;;  %919 = vst [vmem:[%s8650_s26 + $0x5bc] sm:$0xf] %v918_v47  ;;  %v922_v49 = vld [vmem:[%s8645_s29 + $0xb88] sm:$0xf] }
 0x11d   : > { %921 = vst [vmem:[%s8650_s26 + $0x5c0] sm:$0xf] %v920_v48  ;;  %v924_v50 = vld [vmem:[%s8645_s29 + $0xb90] sm:$0xf]  ;;  %v926_v51 = vld [vmem:[%s8645_s29 + $0xb98] sm:$0xf] }
 0x11e   : > { %923 = vst [vmem:[%s8650_s26 + $0x5c4] sm:$0xf] %v922_v49  ;;  %925 = vst [vmem:[%s8650_s26 + $0x5c8] sm:$0xf] %v924_v50  ;;  %v928_v52 = vld [vmem:[%s8645_s29 + $0xba0] sm:$0xf] }
 0x11f   : > { %927 = vst [vmem:[%s8650_s26 + $0x5cc] sm:$0xf] %v926_v51  ;;  %v930_v53 = vld [vmem:[%s8645_s29 + $0xba8] sm:$0xf]  ;;  %v932_v54 = vld [vmem:[%s8645_s29 + $0xbb0] sm:$0xf] }
 0x120   : > { %929 = vst [vmem:[%s8650_s26 + $0x5d0] sm:$0xf] %v928_v52  ;;  %931 = vst [vmem:[%s8650_s26 + $0x5d4] sm:$0xf] %v930_v53  ;;  %v934_v55 = vld [vmem:[%s8645_s29 + $0xbb8] sm:$0xf] }
 0x121   : > { %933 = vst [vmem:[%s8650_s26 + $0x5d8] sm:$0xf] %v932_v54  ;;  %v936_v56 = vld [vmem:[%s8645_s29 + $0xbc0] sm:$0xf]  ;;  %v938_v57 = vld [vmem:[%s8645_s29 + $0xbc8] sm:$0xf] }
 0x122   : > { %935 = vst [vmem:[%s8650_s26 + $0x5dc] sm:$0xf] %v934_v55  ;;  %937 = vst [vmem:[%s8650_s26 + $0x5e0] sm:$0xf] %v936_v56  ;;  %v940_v58 = vld [vmem:[%s8645_s29 + $0xbd0] sm:$0xf] }
 0x123   : > { %939 = vst [vmem:[%s8650_s26 + $0x5e4] sm:$0xf] %v938_v57  ;;  %v942_v59 = vld [vmem:[%s8645_s29 + $0xbd8] sm:$0xf]  ;;  %v944_v60 = vld [vmem:[%s8645_s29 + $0xbe0] sm:$0xf] }
 0x124   : > { %941 = vst [vmem:[%s8650_s26 + $0x5e8] sm:$0xf] %v940_v58  ;;  %943 = vst [vmem:[%s8650_s26 + $0x5ec] sm:$0xf] %v942_v59  ;;  %v946_v61 = vld [vmem:[%s8645_s29 + $0xbe8] sm:$0xf] }
 0x125   : > { %945 = vst [vmem:[%s8650_s26 + $0x5f0] sm:$0xf] %v944_v60  ;;  %v948_v62 = vld [vmem:[%s8645_s29 + $0xbf0] sm:$0xf]  ;;  %v950_v63 = vld [vmem:[%s8645_s29 + $0xbf8] sm:$0xf] }
 0x126   : > { %947 = vst [vmem:[%s8650_s26 + $0x5f4] sm:$0xf] %v946_v61  ;;  %949 = vst [vmem:[%s8650_s26 + $0x5f8] sm:$0xf] %v948_v62  ;;  %v952_v0 = vld [vmem:[%s8645_s29 + $0xc00] sm:$0xf] }
 0x127   : > { %951 = vst [vmem:[%s8650_s26 + $0x5fc] sm:$0xf] %v950_v63  ;;  %v954_v1 = vld [vmem:[%s8645_s29 + $0xc08] sm:$0xf]  ;;  %v956_v2 = vld [vmem:[%s8645_s29 + $0xc10] sm:$0xf] }
 0x128   : > { %953 = vst [vmem:[%s8650_s26 + $0x600] sm:$0xf] %v952_v0  ;;  %955 = vst [vmem:[%s8650_s26 + $0x604] sm:$0xf] %v954_v1  ;;  %v958_v3 = vld [vmem:[%s8645_s29 + $0xc18] sm:$0xf] }
 0x129   : > { %957 = vst [vmem:[%s8650_s26 + $0x608] sm:$0xf] %v956_v2  ;;  %v960_v4 = vld [vmem:[%s8645_s29 + $0xc20] sm:$0xf]  ;;  %v962_v5 = vld [vmem:[%s8645_s29 + $0xc28] sm:$0xf] }
 0x12a   : > { %959 = vst [vmem:[%s8650_s26 + $0x60c] sm:$0xf] %v958_v3  ;;  %961 = vst [vmem:[%s8650_s26 + $0x610] sm:$0xf] %v960_v4  ;;  %v964_v6 = vld [vmem:[%s8645_s29 + $0xc30] sm:$0xf] }
 0x12b   : > { %963 = vst [vmem:[%s8650_s26 + $0x614] sm:$0xf] %v962_v5  ;;  %v966_v7 = vld [vmem:[%s8645_s29 + $0xc38] sm:$0xf]  ;;  %v968_v8 = vld [vmem:[%s8645_s29 + $0xc40] sm:$0xf] }
 0x12c   : > { %965 = vst [vmem:[%s8650_s26 + $0x618] sm:$0xf] %v964_v6  ;;  %967 = vst [vmem:[%s8650_s26 + $0x61c] sm:$0xf] %v966_v7  ;;  %v970_v9 = vld [vmem:[%s8645_s29 + $0xc48] sm:$0xf] }
 0x12d   : > { %969 = vst [vmem:[%s8650_s26 + $0x620] sm:$0xf] %v968_v8  ;;  %v972_v10 = vld [vmem:[%s8645_s29 + $0xc50] sm:$0xf]  ;;  %v974_v11 = vld [vmem:[%s8645_s29 + $0xc58] sm:$0xf] }
 0x12e   : > { %971 = vst [vmem:[%s8650_s26 + $0x624] sm:$0xf] %v970_v9  ;;  %973 = vst [vmem:[%s8650_s26 + $0x628] sm:$0xf] %v972_v10  ;;  %v976_v12 = vld [vmem:[%s8645_s29 + $0xc60] sm:$0xf] }
 0x12f   : > { %975 = vst [vmem:[%s8650_s26 + $0x62c] sm:$0xf] %v974_v11  ;;  %v978_v13 = vld [vmem:[%s8645_s29 + $0xc68] sm:$0xf]  ;;  %v980_v14 = vld [vmem:[%s8645_s29 + $0xc70] sm:$0xf] }
 0x130   : > { %977 = vst [vmem:[%s8650_s26 + $0x630] sm:$0xf] %v976_v12  ;;  %979 = vst [vmem:[%s8650_s26 + $0x634] sm:$0xf] %v978_v13  ;;  %v982_v15 = vld [vmem:[%s8645_s29 + $0xc78] sm:$0xf] }
 0x131   : > { %981 = vst [vmem:[%s8650_s26 + $0x638] sm:$0xf] %v980_v14  ;;  %v984_v16 = vld [vmem:[%s8645_s29 + $0xc80] sm:$0xf]  ;;  %v986_v17 = vld [vmem:[%s8645_s29 + $0xc88] sm:$0xf] }
 0x132   : > { %983 = vst [vmem:[%s8650_s26 + $0x63c] sm:$0xf] %v982_v15  ;;  %985 = vst [vmem:[%s8650_s26 + $0x640] sm:$0xf] %v984_v16  ;;  %v988_v18 = vld [vmem:[%s8645_s29 + $0xc90] sm:$0xf] }
 0x133   : > { %987 = vst [vmem:[%s8650_s26 + $0x644] sm:$0xf] %v986_v17  ;;  %v990_v19 = vld [vmem:[%s8645_s29 + $0xc98] sm:$0xf]  ;;  %v992_v20 = vld [vmem:[%s8645_s29 + $0xca0] sm:$0xf] }
 0x134   : > { %989 = vst [vmem:[%s8650_s26 + $0x648] sm:$0xf] %v988_v18  ;;  %991 = vst [vmem:[%s8650_s26 + $0x64c] sm:$0xf] %v990_v19  ;;  %v994_v21 = vld [vmem:[%s8645_s29 + $0xca8] sm:$0xf] }
 0x135   : > { %993 = vst [vmem:[%s8650_s26 + $0x650] sm:$0xf] %v992_v20  ;;  %v996_v22 = vld [vmem:[%s8645_s29 + $0xcb0] sm:$0xf]  ;;  %v998_v23 = vld [vmem:[%s8645_s29 + $0xcb8] sm:$0xf] }
 0x136   : > { %995 = vst [vmem:[%s8650_s26 + $0x654] sm:$0xf] %v994_v21  ;;  %997 = vst [vmem:[%s8650_s26 + $0x658] sm:$0xf] %v996_v22  ;;  %v1000_v24 = vld [vmem:[%s8645_s29 + $0xcc0] sm:$0xf] }
 0x137   : > { %999 = vst [vmem:[%s8650_s26 + $0x65c] sm:$0xf] %v998_v23  ;;  %v1002_v25 = vld [vmem:[%s8645_s29 + $0xcc8] sm:$0xf]  ;;  %v1004_v26 = vld [vmem:[%s8645_s29 + $0xcd0] sm:$0xf] }
 0x138   : > { %1001 = vst [vmem:[%s8650_s26 + $0x660] sm:$0xf] %v1000_v24  ;;  %1003 = vst [vmem:[%s8650_s26 + $0x664] sm:$0xf] %v1002_v25  ;;  %v1006_v27 = vld [vmem:[%s8645_s29 + $0xcd8] sm:$0xf] }
 0x139   : > { %1005 = vst [vmem:[%s8650_s26 + $0x668] sm:$0xf] %v1004_v26  ;;  %v1008_v28 = vld [vmem:[%s8645_s29 + $0xce0] sm:$0xf]  ;;  %v1010_v29 = vld [vmem:[%s8645_s29 + $0xce8] sm:$0xf] }
 0x13a   : > { %1007 = vst [vmem:[%s8650_s26 + $0x66c] sm:$0xf] %v1006_v27  ;;  %1009 = vst [vmem:[%s8650_s26 + $0x670] sm:$0xf] %v1008_v28  ;;  %v1012_v30 = vld [vmem:[%s8645_s29 + $0xcf0] sm:$0xf] }
 0x13b   : > { %1011 = vst [vmem:[%s8650_s26 + $0x674] sm:$0xf] %v1010_v29  ;;  %v1014_v31 = vld [vmem:[%s8645_s29 + $0xcf8] sm:$0xf]  ;;  %v1016_v32 = vld [vmem:[%s8645_s29 + $0xd00] sm:$0xf] }
 0x13c   : > { %1013 = vst [vmem:[%s8650_s26 + $0x678] sm:$0xf] %v1012_v30  ;;  %1015 = vst [vmem:[%s8650_s26 + $0x67c] sm:$0xf] %v1014_v31  ;;  %v1018_v33 = vld [vmem:[%s8645_s29 + $0xd08] sm:$0xf] }
 0x13d   : > { %1017 = vst [vmem:[%s8650_s26 + $0x680] sm:$0xf] %v1016_v32  ;;  %v1020_v34 = vld [vmem:[%s8645_s29 + $0xd10] sm:$0xf]  ;;  %v1022_v35 = vld [vmem:[%s8645_s29 + $0xd18] sm:$0xf] }
 0x13e   : > { %1019 = vst [vmem:[%s8650_s26 + $0x684] sm:$0xf] %v1018_v33  ;;  %1021 = vst [vmem:[%s8650_s26 + $0x688] sm:$0xf] %v1020_v34  ;;  %v1024_v36 = vld [vmem:[%s8645_s29 + $0xd20] sm:$0xf] }
 0x13f   : > { %1023 = vst [vmem:[%s8650_s26 + $0x68c] sm:$0xf] %v1022_v35  ;;  %v1026_v37 = vld [vmem:[%s8645_s29 + $0xd28] sm:$0xf]  ;;  %v1028_v38 = vld [vmem:[%s8645_s29 + $0xd30] sm:$0xf] }
 0x140   : > { %1025 = vst [vmem:[%s8650_s26 + $0x690] sm:$0xf] %v1024_v36  ;;  %1027 = vst [vmem:[%s8650_s26 + $0x694] sm:$0xf] %v1026_v37  ;;  %v1030_v39 = vld [vmem:[%s8645_s29 + $0xd38] sm:$0xf] }
 0x141   : > { %1029 = vst [vmem:[%s8650_s26 + $0x698] sm:$0xf] %v1028_v38  ;;  %v1032_v40 = vld [vmem:[%s8645_s29 + $0xd40] sm:$0xf]  ;;  %v1034_v41 = vld [vmem:[%s8645_s29 + $0xd48] sm:$0xf] }
 0x142   : > { %1031 = vst [vmem:[%s8650_s26 + $0x69c] sm:$0xf] %v1030_v39  ;;  %1033 = vst [vmem:[%s8650_s26 + $0x6a0] sm:$0xf] %v1032_v40  ;;  %v1036_v42 = vld [vmem:[%s8645_s29 + $0xd50] sm:$0xf] }
 0x143   : > { %1035 = vst [vmem:[%s8650_s26 + $0x6a4] sm:$0xf] %v1034_v41  ;;  %v1038_v43 = vld [vmem:[%s8645_s29 + $0xd58] sm:$0xf]  ;;  %v1040_v44 = vld [vmem:[%s8645_s29 + $0xd60] sm:$0xf] }
 0x144   : > { %1037 = vst [vmem:[%s8650_s26 + $0x6a8] sm:$0xf] %v1036_v42  ;;  %1039 = vst [vmem:[%s8650_s26 + $0x6ac] sm:$0xf] %v1038_v43  ;;  %v1042_v45 = vld [vmem:[%s8645_s29 + $0xd68] sm:$0xf] }
 0x145   : > { %1041 = vst [vmem:[%s8650_s26 + $0x6b0] sm:$0xf] %v1040_v44  ;;  %v1044_v46 = vld [vmem:[%s8645_s29 + $0xd70] sm:$0xf]  ;;  %v1046_v47 = vld [vmem:[%s8645_s29 + $0xd78] sm:$0xf] }
 0x146   : > { %1043 = vst [vmem:[%s8650_s26 + $0x6b4] sm:$0xf] %v1042_v45  ;;  %1045 = vst [vmem:[%s8650_s26 + $0x6b8] sm:$0xf] %v1044_v46  ;;  %v1048_v48 = vld [vmem:[%s8645_s29 + $0xd80] sm:$0xf] }
 0x147   : > { %1047 = vst [vmem:[%s8650_s26 + $0x6bc] sm:$0xf] %v1046_v47  ;;  %v1050_v49 = vld [vmem:[%s8645_s29 + $0xd88] sm:$0xf]  ;;  %v1052_v50 = vld [vmem:[%s8645_s29 + $0xd90] sm:$0xf] }
 0x148   : > { %1049 = vst [vmem:[%s8650_s26 + $0x6c0] sm:$0xf] %v1048_v48  ;;  %1051 = vst [vmem:[%s8650_s26 + $0x6c4] sm:$0xf] %v1050_v49  ;;  %v1054_v51 = vld [vmem:[%s8645_s29 + $0xd98] sm:$0xf] }
 0x149   : > { %1053 = vst [vmem:[%s8650_s26 + $0x6c8] sm:$0xf] %v1052_v50  ;;  %v1056_v52 = vld [vmem:[%s8645_s29 + $0xda0] sm:$0xf]  ;;  %v1058_v53 = vld [vmem:[%s8645_s29 + $0xda8] sm:$0xf] }
 0x14a   : > { %1055 = vst [vmem:[%s8650_s26 + $0x6cc] sm:$0xf] %v1054_v51  ;;  %1057 = vst [vmem:[%s8650_s26 + $0x6d0] sm:$0xf] %v1056_v52  ;;  %v1060_v54 = vld [vmem:[%s8645_s29 + $0xdb0] sm:$0xf] }
 0x14b   : > { %1059 = vst [vmem:[%s8650_s26 + $0x6d4] sm:$0xf] %v1058_v53  ;;  %v1062_v55 = vld [vmem:[%s8645_s29 + $0xdb8] sm:$0xf]  ;;  %v1064_v56 = vld [vmem:[%s8645_s29 + $0xdc0] sm:$0xf] }
 0x14c   : > { %1061 = vst [vmem:[%s8650_s26 + $0x6d8] sm:$0xf] %v1060_v54  ;;  %1063 = vst [vmem:[%s8650_s26 + $0x6dc] sm:$0xf] %v1062_v55  ;;  %v1066_v57 = vld [vmem:[%s8645_s29 + $0xdc8] sm:$0xf] }
 0x14d   : > { %1065 = vst [vmem:[%s8650_s26 + $0x6e0] sm:$0xf] %v1064_v56  ;;  %v1068_v58 = vld [vmem:[%s8645_s29 + $0xdd0] sm:$0xf]  ;;  %v1070_v59 = vld [vmem:[%s8645_s29 + $0xdd8] sm:$0xf] }
 0x14e   : > { %1067 = vst [vmem:[%s8650_s26 + $0x6e4] sm:$0xf] %v1066_v57  ;;  %1069 = vst [vmem:[%s8650_s26 + $0x6e8] sm:$0xf] %v1068_v58  ;;  %v1072_v60 = vld [vmem:[%s8645_s29 + $0xde0] sm:$0xf] }
 0x14f   : > { %1071 = vst [vmem:[%s8650_s26 + $0x6ec] sm:$0xf] %v1070_v59  ;;  %v1074_v61 = vld [vmem:[%s8645_s29 + $0xde8] sm:$0xf]  ;;  %v1076_v62 = vld [vmem:[%s8645_s29 + $0xdf0] sm:$0xf] }
 0x150   : > { %1073 = vst [vmem:[%s8650_s26 + $0x6f0] sm:$0xf] %v1072_v60  ;;  %1075 = vst [vmem:[%s8650_s26 + $0x6f4] sm:$0xf] %v1074_v61  ;;  %v1078_v63 = vld [vmem:[%s8645_s29 + $0xdf8] sm:$0xf] }
 0x151   : > { %1077 = vst [vmem:[%s8650_s26 + $0x6f8] sm:$0xf] %v1076_v62  ;;  %v1080_v0 = vld [vmem:[%s8645_s29 + $0xe00] sm:$0xf]  ;;  %v1082_v1 = vld [vmem:[%s8645_s29 + $0xe08] sm:$0xf] }
 0x152   : > { %1079 = vst [vmem:[%s8650_s26 + $0x6fc] sm:$0xf] %v1078_v63  ;;  %1081 = vst [vmem:[%s8650_s26 + $0x700] sm:$0xf] %v1080_v0  ;;  %v1084_v2 = vld [vmem:[%s8645_s29 + $0xe10] sm:$0xf] }
 0x153   : > { %1083 = vst [vmem:[%s8650_s26 + $0x704] sm:$0xf] %v1082_v1  ;;  %v1086_v3 = vld [vmem:[%s8645_s29 + $0xe18] sm:$0xf]  ;;  %v1088_v4 = vld [vmem:[%s8645_s29 + $0xe20] sm:$0xf] }
 0x154   : > { %1085 = vst [vmem:[%s8650_s26 + $0x708] sm:$0xf] %v1084_v2  ;;  %1087 = vst [vmem:[%s8650_s26 + $0x70c] sm:$0xf] %v1086_v3  ;;  %v1090_v5 = vld [vmem:[%s8645_s29 + $0xe28] sm:$0xf] }
 0x155   : > { %1089 = vst [vmem:[%s8650_s26 + $0x710] sm:$0xf] %v1088_v4  ;;  %v1092_v6 = vld [vmem:[%s8645_s29 + $0xe30] sm:$0xf]  ;;  %v1094_v7 = vld [vmem:[%s8645_s29 + $0xe38] sm:$0xf] }
 0x156   : > { %1091 = vst [vmem:[%s8650_s26 + $0x714] sm:$0xf] %v1090_v5  ;;  %1093 = vst [vmem:[%s8650_s26 + $0x718] sm:$0xf] %v1092_v6  ;;  %v1096_v8 = vld [vmem:[%s8645_s29 + $0xe40] sm:$0xf] }
 0x157   : > { %1095 = vst [vmem:[%s8650_s26 + $0x71c] sm:$0xf] %v1094_v7  ;;  %v1098_v9 = vld [vmem:[%s8645_s29 + $0xe48] sm:$0xf]  ;;  %v1100_v10 = vld [vmem:[%s8645_s29 + $0xe50] sm:$0xf] }
 0x158   : > { %1097 = vst [vmem:[%s8650_s26 + $0x720] sm:$0xf] %v1096_v8  ;;  %1099 = vst [vmem:[%s8650_s26 + $0x724] sm:$0xf] %v1098_v9  ;;  %v1102_v11 = vld [vmem:[%s8645_s29 + $0xe58] sm:$0xf] }
 0x159   : > { %1101 = vst [vmem:[%s8650_s26 + $0x728] sm:$0xf] %v1100_v10  ;;  %v1104_v12 = vld [vmem:[%s8645_s29 + $0xe60] sm:$0xf]  ;;  %v1106_v13 = vld [vmem:[%s8645_s29 + $0xe68] sm:$0xf] }
 0x15a   : > { %1103 = vst [vmem:[%s8650_s26 + $0x72c] sm:$0xf] %v1102_v11  ;;  %1105 = vst [vmem:[%s8650_s26 + $0x730] sm:$0xf] %v1104_v12  ;;  %v1108_v14 = vld [vmem:[%s8645_s29 + $0xe70] sm:$0xf] }
 0x15b   : > { %1107 = vst [vmem:[%s8650_s26 + $0x734] sm:$0xf] %v1106_v13  ;;  %v1110_v15 = vld [vmem:[%s8645_s29 + $0xe78] sm:$0xf]  ;;  %v1112_v16 = vld [vmem:[%s8645_s29 + $0xe80] sm:$0xf] }
 0x15c   : > { %1109 = vst [vmem:[%s8650_s26 + $0x738] sm:$0xf] %v1108_v14  ;;  %1111 = vst [vmem:[%s8650_s26 + $0x73c] sm:$0xf] %v1110_v15  ;;  %v1114_v17 = vld [vmem:[%s8645_s29 + $0xe88] sm:$0xf] }
 0x15d   : > { %1113 = vst [vmem:[%s8650_s26 + $0x740] sm:$0xf] %v1112_v16  ;;  %v1116_v18 = vld [vmem:[%s8645_s29 + $0xe90] sm:$0xf]  ;;  %v1118_v19 = vld [vmem:[%s8645_s29 + $0xe98] sm:$0xf] }
 0x15e   : > { %1115 = vst [vmem:[%s8650_s26 + $0x744] sm:$0xf] %v1114_v17  ;;  %1117 = vst [vmem:[%s8650_s26 + $0x748] sm:$0xf] %v1116_v18  ;;  %v1120_v20 = vld [vmem:[%s8645_s29 + $0xea0] sm:$0xf] }
 0x15f   : > { %1119 = vst [vmem:[%s8650_s26 + $0x74c] sm:$0xf] %v1118_v19  ;;  %v1122_v21 = vld [vmem:[%s8645_s29 + $0xea8] sm:$0xf]  ;;  %v1124_v22 = vld [vmem:[%s8645_s29 + $0xeb0] sm:$0xf] }
 0x160   : > { %1121 = vst [vmem:[%s8650_s26 + $0x750] sm:$0xf] %v1120_v20  ;;  %1123 = vst [vmem:[%s8650_s26 + $0x754] sm:$0xf] %v1122_v21  ;;  %v1126_v23 = vld [vmem:[%s8645_s29 + $0xeb8] sm:$0xf] }
 0x161   : > { %1125 = vst [vmem:[%s8650_s26 + $0x758] sm:$0xf] %v1124_v22  ;;  %v1128_v24 = vld [vmem:[%s8645_s29 + $0xec0] sm:$0xf]  ;;  %v1130_v25 = vld [vmem:[%s8645_s29 + $0xec8] sm:$0xf] }
 0x162   : > { %1127 = vst [vmem:[%s8650_s26 + $0x75c] sm:$0xf] %v1126_v23  ;;  %1129 = vst [vmem:[%s8650_s26 + $0x760] sm:$0xf] %v1128_v24  ;;  %v1132_v26 = vld [vmem:[%s8645_s29 + $0xed0] sm:$0xf] }
 0x163   : > { %1131 = vst [vmem:[%s8650_s26 + $0x764] sm:$0xf] %v1130_v25  ;;  %v1134_v27 = vld [vmem:[%s8645_s29 + $0xed8] sm:$0xf]  ;;  %v1136_v28 = vld [vmem:[%s8645_s29 + $0xee0] sm:$0xf] }
 0x164   : > { %1133 = vst [vmem:[%s8650_s26 + $0x768] sm:$0xf] %v1132_v26  ;;  %1135 = vst [vmem:[%s8650_s26 + $0x76c] sm:$0xf] %v1134_v27  ;;  %v1138_v29 = vld [vmem:[%s8645_s29 + $0xee8] sm:$0xf] }
 0x165   : > { %1137 = vst [vmem:[%s8650_s26 + $0x770] sm:$0xf] %v1136_v28  ;;  %v1140_v30 = vld [vmem:[%s8645_s29 + $0xef0] sm:$0xf]  ;;  %v1142_v31 = vld [vmem:[%s8645_s29 + $0xef8] sm:$0xf] }
 0x166   : > { %1139 = vst [vmem:[%s8650_s26 + $0x774] sm:$0xf] %v1138_v29  ;;  %1141 = vst [vmem:[%s8650_s26 + $0x778] sm:$0xf] %v1140_v30  ;;  %v1144_v32 = vld [vmem:[%s8645_s29 + $0xf00] sm:$0xf] }
 0x167   : > { %1143 = vst [vmem:[%s8650_s26 + $0x77c] sm:$0xf] %v1142_v31  ;;  %v1146_v33 = vld [vmem:[%s8645_s29 + $0xf08] sm:$0xf]  ;;  %v1148_v34 = vld [vmem:[%s8645_s29 + $0xf10] sm:$0xf] }
 0x168   : > { %1145 = vst [vmem:[%s8650_s26 + $0x780] sm:$0xf] %v1144_v32  ;;  %1147 = vst [vmem:[%s8650_s26 + $0x784] sm:$0xf] %v1146_v33  ;;  %v1150_v35 = vld [vmem:[%s8645_s29 + $0xf18] sm:$0xf] }
 0x169   : > { %1149 = vst [vmem:[%s8650_s26 + $0x788] sm:$0xf] %v1148_v34  ;;  %v1152_v36 = vld [vmem:[%s8645_s29 + $0xf20] sm:$0xf]  ;;  %v1154_v37 = vld [vmem:[%s8645_s29 + $0xf28] sm:$0xf] }
 0x16a   : > { %1151 = vst [vmem:[%s8650_s26 + $0x78c] sm:$0xf] %v1150_v35  ;;  %1153 = vst [vmem:[%s8650_s26 + $0x790] sm:$0xf] %v1152_v36  ;;  %v1156_v38 = vld [vmem:[%s8645_s29 + $0xf30] sm:$0xf] }
 0x16b   : > { %1155 = vst [vmem:[%s8650_s26 + $0x794] sm:$0xf] %v1154_v37  ;;  %v1158_v39 = vld [vmem:[%s8645_s29 + $0xf38] sm:$0xf]  ;;  %v1160_v40 = vld [vmem:[%s8645_s29 + $0xf40] sm:$0xf] }
 0x16c   : > { %1157 = vst [vmem:[%s8650_s26 + $0x798] sm:$0xf] %v1156_v38  ;;  %1159 = vst [vmem:[%s8650_s26 + $0x79c] sm:$0xf] %v1158_v39  ;;  %v1162_v41 = vld [vmem:[%s8645_s29 + $0xf48] sm:$0xf] }
 0x16d   : > { %1161 = vst [vmem:[%s8650_s26 + $0x7a0] sm:$0xf] %v1160_v40  ;;  %v1164_v42 = vld [vmem:[%s8645_s29 + $0xf50] sm:$0xf]  ;;  %v1166_v43 = vld [vmem:[%s8645_s29 + $0xf58] sm:$0xf] }
 0x16e   : > { %1163 = vst [vmem:[%s8650_s26 + $0x7a4] sm:$0xf] %v1162_v41  ;;  %1165 = vst [vmem:[%s8650_s26 + $0x7a8] sm:$0xf] %v1164_v42  ;;  %v1168_v44 = vld [vmem:[%s8645_s29 + $0xf60] sm:$0xf] }
 0x16f   : > { %1167 = vst [vmem:[%s8650_s26 + $0x7ac] sm:$0xf] %v1166_v43  ;;  %v1170_v45 = vld [vmem:[%s8645_s29 + $0xf68] sm:$0xf]  ;;  %v1172_v46 = vld [vmem:[%s8645_s29 + $0xf70] sm:$0xf] }
 0x170   : > { %1169 = vst [vmem:[%s8650_s26 + $0x7b0] sm:$0xf] %v1168_v44  ;;  %1171 = vst [vmem:[%s8650_s26 + $0x7b4] sm:$0xf] %v1170_v45  ;;  %v1174_v47 = vld [vmem:[%s8645_s29 + $0xf78] sm:$0xf] }
 0x171   : > { %1173 = vst [vmem:[%s8650_s26 + $0x7b8] sm:$0xf] %v1172_v46  ;;  %v1176_v48 = vld [vmem:[%s8645_s29 + $0xf80] sm:$0xf]  ;;  %v1178_v49 = vld [vmem:[%s8645_s29 + $0xf88] sm:$0xf] }
 0x172   : > { %1175 = vst [vmem:[%s8650_s26 + $0x7bc] sm:$0xf] %v1174_v47  ;;  %1177 = vst [vmem:[%s8650_s26 + $0x7c0] sm:$0xf] %v1176_v48  ;;  %v1180_v50 = vld [vmem:[%s8645_s29 + $0xf90] sm:$0xf] }
 0x173   : > { %1179 = vst [vmem:[%s8650_s26 + $0x7c4] sm:$0xf] %v1178_v49  ;;  %v1182_v51 = vld [vmem:[%s8645_s29 + $0xf98] sm:$0xf]  ;;  %v1184_v52 = vld [vmem:[%s8645_s29 + $0xfa0] sm:$0xf] }
 0x174   : > { %1181 = vst [vmem:[%s8650_s26 + $0x7c8] sm:$0xf] %v1180_v50  ;;  %1183 = vst [vmem:[%s8650_s26 + $0x7cc] sm:$0xf] %v1182_v51  ;;  %v1186_v53 = vld [vmem:[%s8645_s29 + $0xfa8] sm:$0xf] }
 0x175   : > { %1185 = vst [vmem:[%s8650_s26 + $0x7d0] sm:$0xf] %v1184_v52  ;;  %v1188_v54 = vld [vmem:[%s8645_s29 + $0xfb0] sm:$0xf]  ;;  %v1190_v55 = vld [vmem:[%s8645_s29 + $0xfb8] sm:$0xf] }
 0x176   : > { %1187 = vst [vmem:[%s8650_s26 + $0x7d4] sm:$0xf] %v1186_v53  ;;  %1189 = vst [vmem:[%s8650_s26 + $0x7d8] sm:$0xf] %v1188_v54  ;;  %v1192_v56 = vld [vmem:[%s8645_s29 + $0xfc0] sm:$0xf] }
 0x177   : > { %1191 = vst [vmem:[%s8650_s26 + $0x7dc] sm:$0xf] %v1190_v55  ;;  %v1194_v57 = vld [vmem:[%s8645_s29 + $0xfc8] sm:$0xf]  ;;  %v1196_v58 = vld [vmem:[%s8645_s29 + $0xfd0] sm:$0xf] }
 0x178   : > { %1193 = vst [vmem:[%s8650_s26 + $0x7e0] sm:$0xf] %v1192_v56  ;;  %1195 = vst [vmem:[%s8650_s26 + $0x7e4] sm:$0xf] %v1194_v57  ;;  %v1198_v59 = vld [vmem:[%s8645_s29 + $0xfd8] sm:$0xf] }
 0x179   : > { %1197 = vst [vmem:[%s8650_s26 + $0x7e8] sm:$0xf] %v1196_v58  ;;  %v1200_v60 = vld [vmem:[%s8645_s29 + $0xfe0] sm:$0xf]  ;;  %v1202_v61 = vld [vmem:[%s8645_s29 + $0xfe8] sm:$0xf] }
 0x17a   : > { %1199 = vst [vmem:[%s8650_s26 + $0x7ec] sm:$0xf] %v1198_v59  ;;  %1201 = vst [vmem:[%s8650_s26 + $0x7f0] sm:$0xf] %v1200_v60  ;;  %v1204_v62 = vld [vmem:[%s8645_s29 + $0xff0] sm:$0xf] }
 0x17b   : > { %1203 = vst [vmem:[%s8650_s26 + $0x7f4] sm:$0xf] %v1202_v61  ;;  %v1206_v63 = vld [vmem:[%s8645_s29 + $0xff8] sm:$0xf]  ;;  %1205 = vst [vmem:[%s8650_s26 + $0x7f8] sm:$0xf] %v1204_v62 }
 0x17c   : > { %1207 = vst [vmem:[%s8650_s26 + $0x7fc] sm:$0xf] %v1206_v63 }
 0x17d PF: > { %p7445_p0 = scmp.ge.s32.totalorder %s8521_s21, 1  ;;  %p4337_p1 = scmp.lt.s32.totalorder %s8521_s21, 9 }
 0x17f   : > { %p4338_p2 = pnand %p7445_p0, %p4337_p1 }
 0x180   : > { %s4344_s28 = sand.u32 (!%p4338_p2), 1, %s8497_s15   ;;  %s4371_s5 = sand.u32 (!%p4338_p2), 1, %s8489_s13  }
 0x181   : > { %4341 = sbr.rel (%p4338_p2) target bundleno = 915 (0x393), region = 80  ;;  %s7446_s9 = sshll.u32 (!%p4338_p2), %s4344_s28, 11 }
 0x182   : > { %s7447_s10 = sshll.u32 (!%p4338_p2), %s8505_s17, 5  ;;  %p4379_p4 = scmp.lt.s32.totalorder (!%p4338_p2), %s8509_s18, 1 }
 0x183   : > { %p4374_p3 = scmp.lt.s32.totalorder (!%p4338_p2), %s7447_s10, 127  ;;  %s9691_s1 = scalar_lea.vmem (!%p4338_p2), [#allocation3], %s7446_s9 }
 0x184   : > { %s9695_s15 = scalar_lea.vmem (!%p4338_p2), [#allocation4], %s4371_s5  ;;  %p7448_p5 = scmp.ne.s32.totalorder (!%p4338_p2), %s8505_s17, 0 }
 0x188   : > { %s10096_s10 = smov (!%p4374_p3, %s7447_s10), 127  ;;  %4386 = sbr.rel (%p7448_p5) target bundleno = 399 (0x18f), region = 88 }
 0x189   : > { %s9680_s11 = scalar_select %p4379_p4, %s8509_s18, 1 }
 0x18a   : > { %s9685_s27 = scalar_lea.vmem %s10071_s0, %s10096_s10  ;;  %v8523_v0 = vmov (!%p7448_p5), 0.0  }
 0x18b   : > { %s4381_s26 = scalar_lea.vmem %s10073_s2, %s9680_s11  ;;  %4387 = vst [vmem:[#allocation2] sm:$0x1] (!%p7448_p5), %v8523_v0 }
 0x18f PF: > { %v8151_v1 = vld [vmem:[%s9691_s1 + $0x40] sm:$0xff]   ;;  %v8155_v5 = vld [vmem:[%s9691_s1 + $0x48] sm:$0xff]   ;;  %v8159_v9 = vld [vmem:[%s9691_s1 + $0x50] sm:$0xff]   ;;  %v4913_v29 = vlaneseq  ;;  %v8524_v37 = vmov 1966171168   ;;  %p7705_p6 = scmp.ne.s32.totalorder %s8505_s17, 3 }
 0x190   : > { %v8152_v2 = vld [vmem:[%s9691_s1 + $0xc0] sm:$0xff]   ;;  %7710 = vmatprep.subr.bf16.mxu0 %v8151_v1  ;;  %v8156_v6 = vld [vmem:[%s9691_s1 + $0xc8] sm:$0xff]   ;;  %v8160_v10 = vld [vmem:[%s9691_s1 + $0xd0] sm:$0xff]   ;;  %v4911_v38 = vunpack.c.l.s4 %v8524_v37 }
 0x191   : > { %v8153_v3 = vld [vmem:[%s9691_s1] sm:$0xff]   ;;  %7732 = vmatprep.subr.bf16.mxu1 %v8152_v2  ;;  %v8157_v7 = vld [vmem:[%s9691_s1 + $0x8] sm:$0xff]   ;;  %v8161_v11 = vld [vmem:[%s9691_s1 + $0x10] sm:$0xff]   ;;  %v4914_v34 = vshrl.u32 %v4913_v29, 7 }
 0x192   : > { %v8154_v4 = vld [vmem:[%s9691_s1 + $0x80] sm:$0xff]   ;;  %7711 = vmatpush3.bf16.msra.mxu0 %v8153_v3  ;;  %v8158_v8 = vld [vmem:[%s9691_s1 + $0x88] sm:$0xff]   ;;  %v8162_v12 = vld [vmem:[%s9691_s1 + $0x90] sm:$0xff]   ;;  %v4912_v41 = vunpack.c.0.s8 %v4911_v38 }
 0x193   : > { %7733 = vmatpush3.bf16.msra.mxu1 %v8154_v4  ;;  %7712 = vmatprep.subr.bf16.mxu0 %v8155_v5  ;;  %v8163_v13 = vld [vmem:[%s9691_s1 + $0x58] sm:$0xff]   ;;  %v8167_v17 = vld [vmem:[%s9691_s1 + $0x60] sm:$0xff]   ;;  %v8171_v21 = vld [vmem:[%s9691_s1 + $0x68] sm:$0xff]  }
 0x194   : > { %7734 = vmatprep.subr.bf16.mxu1 %v8156_v6  ;;  %v8164_v14 = vld [vmem:[%s9691_s1 + $0xd8] sm:$0xff]   ;;  %v8168_v18 = vld [vmem:[%s9691_s1 + $0xe0] sm:$0xff]   ;;  %v8172_v22 = vld [vmem:[%s9691_s1 + $0xe8] sm:$0xff]   ;;  %v9733_v42 = vsub.s32 %v4912_v41, %v4914_v34 }
 0x195   : > { %v8165_v15 = vld [vmem:[%s9691_s1 + $0x18] sm:$0xff]   ;;  %v8169_v19 = vld [vmem:[%s9691_s1 + $0x20] sm:$0xff]   ;;  %v8173_v23 = vld [vmem:[%s9691_s1 + $0x28] sm:$0xff]  }
 0x196   : > { %7713 = vmatpush3.bf16.msra.mxu0 %v8157_v7  ;;  %v8166_v16 = vld [vmem:[%s9691_s1 + $0x98] sm:$0xff]   ;;  %v8170_v20 = vld [vmem:[%s9691_s1 + $0xa0] sm:$0xff]   ;;  %v8174_v24 = vld [vmem:[%s9691_s1 + $0xa8] sm:$0xff]  }
 0x197   : > { %7735 = vmatpush3.bf16.msra.mxu1 %v8158_v8  ;;  %7714 = vmatprep.subr.bf16.mxu0 %v8159_v9  ;;  %v8175_v25 = vld [vmem:[%s9691_s1 + $0x70] sm:$0xff]   ;;  %v8179_v30 = vld [vmem:[%s9691_s1 + $0x78] sm:$0xff]   ;;  %v8184_v36 = vld [vmem:[%s9691_s1 + $0x140] sm:$0xff]  }
 0x198   : > { %7736 = vmatprep.subr.bf16.mxu1 %v8160_v10  ;;  %v8176_v26 = vld [vmem:[%s9691_s1 + $0xf0] sm:$0xff]   ;;  %v8180_v31 = vld [vmem:[%s9691_s1 + $0xf8] sm:$0xff]   ;;  %v8185_v39 = vld [vmem:[%s9691_s1 + $0x1c0] sm:$0xff]  }
 0x199   : > { %v8177_v27 = vld [vmem:[%s9691_s1 + $0x30] sm:$0xff]   ;;  %v8181_v32 = vld [vmem:[%s9691_s1 + $0x38] sm:$0xff]   ;;  %v8186_v48 = vld [vmem:[%s9691_s1 + $0x100] sm:$0xff]  }
 0x19a   : > { %7715 = vmatpush3.bf16.msra.mxu0 %v8161_v11  ;;  %v8178_v28 = vld [vmem:[%s9691_s1 + $0xb0] sm:$0xff]   ;;  %v8182_v33 = vld [vmem:[%s9691_s1 + $0xb8] sm:$0xff]   ;;  %v8187_v50 = vld [vmem:[%s9691_s1 + $0x180] sm:$0xff]  }
 0x19b   : > { %7737 = vmatpush3.bf16.msra.mxu1 %v8162_v12  ;;  %7716 = vmatprep.subr.bf16.mxu0 %v8163_v13  ;;  %v4389_v35 = vld [vmem:[%s9685_s27] sm:$0xff]  ;;  %v8188_v53 = vld [vmem:[%s9691_s1 + $0x148] sm:$0xff]   ;;  %v8192_v59 = vld [vmem:[%s9691_s1 + $0x150] sm:$0xff]  }
 0x19c   : > { %7738 = vmatprep.subr.bf16.mxu1 %v8164_v14  ;;  %v4909_v40 = vcombine.high %v4389_v35, %v4389_v35  ;;  %v4916_v43 = vrot.slane %v4389_v35, %v9733_v42  ;;  %v8189_v55 = vld [vmem:[%s9691_s1 + $0x1c8] sm:$0xff]   ;;  %v8193_v60 = vld [vmem:[%s9691_s1 + $0x1d0] sm:$0xff]   ;;  %v8196_v63 = vld [vmem:[%s9691_s1 + $0x158] sm:$0xff]  }
 0x19d   : > { %v8190_v56 = vld [vmem:[%s9691_s1 + $0x108] sm:$0xff]   ;;  %v8194_v61 = vld [vmem:[%s9691_s1 + $0x110] sm:$0xff]   ;;  %v8197_v0 = vld [vmem:[%s9691_s1 + $0x1d8] sm:$0xff]  }
 0x19e   : > { %7717 = vmatpush3.bf16.msra.mxu0 %v8165_v15  ;;  %v9737_v44 = vrot.slane %v4909_v40, %v9733_v42  ;;  %v4924_v45 = vcombine.high %v4916_v43, %v4916_v43  ;;  %v4932_v46 = vrot.slane %v4916_v43, %v9733_v42  ;;  %v8191_v58 = vld [vmem:[%s9691_s1 + $0x188] sm:$0xff]   ;;  %v8195_v62 = vld [vmem:[%s9691_s1 + $0x190] sm:$0xff]   ;;  %v8198_v1 = vld [vmem:[%s9691_s1 + $0x118] sm:$0xff]  }
 0x19f   : > { %7739 = vmatpush3.bf16.msra.mxu1 %v8166_v16  ;;  %7718 = vmatprep.subr.bf16.mxu0 %v8167_v17  ;;  %v8199_v2 = vld [vmem:[%s9691_s1 + $0x198] sm:$0xff]   ;;  %v8200_v3 = vld [vmem:[%s9691_s1 + $0x160] sm:$0xff]   ;;  %v8204_v7 = vld [vmem:[%s9691_s1 + $0x168] sm:$0xff]  }
 0x1a0   : > { %7740 = vmatprep.subr.bf16.mxu1 %v8168_v18  ;;  %v4925_v47 = vcombine.high %v9737_v44, %v9737_v44  ;;  %v4946_v49 = vrot.slane %v4924_v45, %v9733_v42  ;;  %v4954_v52 = vcombine.high %v4932_v46, %v4932_v46  ;;  %v8201_v4 = vld [vmem:[%s9691_s1 + $0x1e0] sm:$0xff]   ;;  %v8205_v8 = vld [vmem:[%s9691_s1 + $0x1e8] sm:$0xff]   ;;  %v8208_v11 = vld [vmem:[%s9691_s1 + $0x170] sm:$0xff]  }
 0x1a1   : > { %v8202_v5 = vld [vmem:[%s9691_s1 + $0x120] sm:$0xff]   ;;  %v8206_v9 = vld [vmem:[%s9691_s1 + $0x128] sm:$0xff]   ;;  %v8209_v12 = vld [vmem:[%s9691_s1 + $0x1f0] sm:$0xff]  }
 0x1a2   : > { %7719 = vmatpush3.bf16.msra.mxu0 %v8169_v19  ;;  %v4953_v51 = vrot.slane %v4925_v47, %v9733_v42  ;;  %6705 = vmatprep.mubr.bf16.mxu0 %v4946_v49  ;;  %v4956_v54 = vcombine.high %v4946_v49, %v4946_v49  ;;  %v8203_v6 = vld [vmem:[%s9691_s1 + $0x1a0] sm:$0xff]   ;;  %v8207_v10 = vld [vmem:[%s9691_s1 + $0x1a8] sm:$0xff]   ;;  %v8210_v13 = vld [vmem:[%s9691_s1 + $0x130] sm:$0xff]   ;;  %v4939_v19 = vrot.slane %v9737_v44, %v9733_v42 }
 0x1a3   : > { %7741 = vmatpush3.bf16.msra.mxu1 %v8170_v20  ;;  %7720 = vmatprep.subr.bf16.mxu0 %v8171_v21  ;;  %v8211_v14 = vld [vmem:[%s9691_s1 + $0x1b0] sm:$0xff]   ;;  %v8212_v15 = vld [vmem:[%s9691_s1 + $0x178] sm:$0xff]   ;;  %v8216_v20 = vld [vmem:[%s9691_s1 + $0x240] sm:$0xff]  }
 0x1a4   : > { %7742 = vmatprep.subr.bf16.mxu1 %v8172_v22  ;;  %v4957_v57 = vcombine.high %v4953_v51, %v4953_v51  ;;  %6745 = vmatprep.mubr.bf16.mxu1 %v4956_v54  ;;  %v8213_v16 = vld [vmem:[%s9691_s1 + $0x1f8] sm:$0xff]   ;;  %v8217_v21 = vld [vmem:[%s9691_s1 + $0x2c0] sm:$0xff]   ;;  %v8224_v29 = vld [vmem:[%s9691_s1 + $0x250] sm:$0xff]  }
 0x1a5   : > { %v8214_v17 = vld [vmem:[%s9691_s1 + $0x138] sm:$0xff]   ;;  %v8218_v22 = vld [vmem:[%s9691_s1 + $0x200] sm:$0xff]   ;;  %v8236_v41 = vld [vmem:[%s9691_s1 + $0x268] sm:$0xff]  }
 0x1a6   : > { %7721 = vmatpush3.bf16.msra.mxu0 %v8173_v23  ;;  %v8215_v18 = vld [vmem:[%s9691_s1 + $0x1b8] sm:$0xff]   ;;  %v8219_v23 = vld [vmem:[%s9691_s1 + $0x280] sm:$0xff]   ;;  %v8237_v43 = vld [vmem:[%s9691_s1 + $0x2e8] sm:$0xff]  }
 0x1a7   : > { %7743 = vmatpush3.bf16.msra.mxu1 %v8174_v24  ;;  %7722 = vmatprep.subr.bf16.mxu0 %v8175_v25  ;;  %v4955_v24 = vcombine.high %v4939_v19, %v4939_v19  ;;  %v8220_v25 = vld [vmem:[%s9691_s1 + $0x248] sm:$0xff]   ;;  %v8229_v34 = vld [vmem:[%s9691_s1 + $0x2d8] sm:$0xff]   ;;  %v8232_v37 = vld [vmem:[%s9691_s1 + $0x260] sm:$0xff]  }
 0x1a8   : > { %7744 = vmatprep.subr.bf16.mxu1 %v8176_v26  ;;  %v8221_v26 = vld [vmem:[%s9691_s1 + $0x2c8] sm:$0xff]   ;;  %v8230_v35 = vld [vmem:[%s9691_s1 + $0x218] sm:$0xff]   ;;  %v8233_v38 = vld [vmem:[%s9691_s1 + $0x2e0] sm:$0xff]  }
 0x1a9   : > { %v8235_v40 = vld [vmem:[%s9691_s1 + $0x2a0] sm:$0xff]   ;;  %v8238_v44 = vld [vmem:[%s9691_s1 + $0x228] sm:$0xff]  }
 0x1aa   : > { %7723 = vmatpush3.bf16.msra.mxu0 %v8177_v27  ;;  %v8222_v27 = vld [vmem:[%s9691_s1 + $0x208] sm:$0xff]  }
 0x1ab   : > { %7745 = vmatpush3.bf16.msra.mxu1 %v8178_v28  ;;  %7724 = vmatprep.subr.bf16.mxu0 %v8179_v30  ;;  %v8223_v28 = vld [vmem:[%s9691_s1 + $0x288] sm:$0xff]   ;;  %v8225_v30 = vld [vmem:[%s9691_s1 + $0x2d0] sm:$0xff]  }
 0x1ac   : > { %7746 = vmatprep.subr.bf16.mxu1 %v8180_v31  ;;  %v8226_v31 = vld [vmem:[%s9691_s1 + $0x210] sm:$0xff]   ;;  %v8239_v45 = vld [vmem:[%s9691_s1 + $0x2a8] sm:$0xff]  }
 0x1ad   : > { %v4390_v47 = vld [vmem:[%s9685_s27 + $0x8] sm:$0xff] }
 0x1ae   : > { %7725 = vmatpush3.bf16.msra.mxu0 %v8181_v32  ;;  %v8227_v32 = vld [vmem:[%s9691_s1 + $0x290] sm:$0xff]   ;;  %v4965_v49 = vrot.slane %v4390_v47, %v9733_v42 }
 0x1af   : > { %7747 = vmatpush3.bf16.msra.mxu1 %v8182_v33  ;;  %7754 = vmatprep.subr.bf16.mxu0 %v8184_v36  ;;  %v8228_v33 = vld [vmem:[%s9691_s1 + $0x258] sm:$0xff]  }
 0x1b0   : > { %7776 = vmatprep.subr.bf16.mxu1 %v8185_v39  ;;  %v8231_v36 = vld [vmem:[%s9691_s1 + $0x298] sm:$0xff]   ;;  %v8234_v39 = vld [vmem:[%s9691_s1 + $0x220] sm:$0xff]  }
 0x1b1   : > { %6706 = vmatmul.mubr.bf16.vlgmr.msra.gmra.mrb[0].mxu0 %v4932_v46  ;;  %v8240_v46 = vld [vmem:[%s9691_s1 + $0x270] sm:$0xff]  }
 0x1b2   : > { %7755 = vmatpush3.bf16.msra.mxu0 %v8186_v48  ;;  %6746 = vmatmul.mubr.bf16.vlgmr.msra.gmra.mrb[0].mxu1 %v4954_v52  ;;  %v8241_v48 = vld [vmem:[%s9691_s1 + $0x2f0] sm:$0xff]  }
 0x1b3   : > { %7756 = vmatprep.subr.bf16.mxu0 %v8188_v53  ;;  %7777 = vmatpush3.bf16.msra.mxu1 %v8187_v50  ;;  %v4958_v50 = vcombine.high %v4390_v47, %v4390_v47  ;;  %v8243_v52 = vld [vmem:[%s9691_s1 + $0x2b0] sm:$0xff]   ;;  %v4973_v53 = vcombine.high %v4965_v49, %v4965_v49 }
 0x1b4   : > { %6785 = vmatprep.mubr.bf16.mxu0 %v4953_v51  ;;  %7778 = vmatprep.subr.bf16.mxu1 %v8189_v55  ;;  %v8242_v51 = vld [vmem:[%s9691_s1 + $0x230] sm:$0xff]   ;;  %v8244_v55 = vld [vmem:[%s9691_s1 + $0x278] sm:$0xff]  }
 0x1b5   : > { %6825 = vmatprep.mubr.bf16.mxu1 %v4957_v57  ;;  %v9807_v54 = vrot.slane %v4958_v50, %v9733_v42  ;;  %v4995_v57 = vrot.slane %v4973_v53, %v9733_v42  ;;  %v8291_v47 = vld [vmem:[%s9691_s1 + $0x410] sm:$0xff]   ;;  %v8294_v50 = vld [vmem:[%s9691_s1 + $0x4d8] sm:$0xff]   ;;  %v8297_v53 = vld [vmem:[%s9691_s1 + $0x460] sm:$0xff]  }
 0x1b6   : > { %7757 = vmatpush3.bf16.msra.mxu0 %v8190_v56  ;;  %v8245_v56 = vld [vmem:[%s9691_s1 + $0x2f8] sm:$0xff]  }
 0x1b7   : > { %7758 = vmatprep.subr.bf16.mxu0 %v8192_v59  ;;  %7779 = vmatpush3.bf16.msra.mxu1 %v8191_v58  ;;  %v4974_v58 = vcombine.high %v9807_v54, %v9807_v54  ;;  %v8246_v59 = vld [vmem:[%s9691_s1 + $0x238] sm:$0xff]  }
 0x1b8   : > { %7780 = vmatprep.subr.bf16.mxu1 %v8193_v60  ;;  %v8247_v60 = vld [vmem:[%s9691_s1 + $0x2b8] sm:$0xff]  }
 0x1ba   : > { %7759 = vmatpush3.bf16.msra.mxu0 %v8194_v61  ;;  %v5005_v61 = vcombine.high %v4995_v57, %v4995_v57 }
 0x1bb   : > { %7760 = vmatprep.subr.bf16.mxu0 %v8196_v63  ;;  %7781 = vmatpush3.bf16.msra.mxu1 %v8195_v62  ;;  %v4981_v62 = vrot.slane %v4965_v49, %v9733_v42  ;;  %v8248_v63 = vld [vmem:[%s9691_s1 + $0x340] sm:$0xff]   ;;  %v8293_v49 = vld [vmem:[%s9691_s1 + $0x458] sm:$0xff]  }
 0x1bc   : > { %7782 = vmatprep.subr.bf16.mxu1 %v8197_v0  ;;  %v8249_v0 = vld [vmem:[%s9691_s1 + $0x3c0] sm:$0xff]  }
 0x1be   : > { %7761 = vmatpush3.bf16.msra.mxu0 %v8198_v1  ;;  %v5002_v1 = vrot.slane %v4974_v58, %v9733_v42  ;;  %v8302_v58 = vld [vmem:[%s9691_s1 + $0x4e8] sm:$0xff]  }
 0x1bf   : > { %7762 = vmatprep.subr.bf16.mxu0 %v8200_v3  ;;  %7783 = vmatpush3.bf16.msra.mxu1 %v8199_v2  ;;  %v8250_v2 = vld [vmem:[%s9691_s1 + $0x300] sm:$0xff]  }
 0x1c0   : > { %7784 = vmatprep.subr.bf16.mxu1 %v8201_v4  ;;  %v8251_v3 = vld [vmem:[%s9691_s1 + $0x380] sm:$0xff]   ;;  %v5003_v4 = vcombine.high %v4981_v62, %v4981_v62 }
 0x1c2   : > { %7763 = vmatpush3.bf16.msra.mxu0 %v8202_v5  ;;  %v8252_v5 = vld [vmem:[%s9691_s1 + $0x348] sm:$0xff]  }
 0x1c3   : > { %7764 = vmatprep.subr.bf16.mxu0 %v8204_v7  ;;  %7785 = vmatpush3.bf16.msra.mxu1 %v8203_v6  ;;  %v8253_v6 = vld [vmem:[%s9691_s1 + $0x3c8] sm:$0xff]   ;;  %v5006_v7 = vcombine.high %v5002_v1, %v5002_v1 }
 0x1c4   : > { %7786 = vmatprep.subr.bf16.mxu1 %v8205_v8  ;;  %v8254_v8 = vld [vmem:[%s9691_s1 + $0x308] sm:$0xff]  }
 0x1c6   : > { %7765 = vmatpush3.bf16.msra.mxu0 %v8206_v9  ;;  %v8255_v9 = vld [vmem:[%s9691_s1 + $0x388] sm:$0xff]  }
 0x1c7   : > { %7766 = vmatprep.subr.bf16.mxu0 %v8208_v11  ;;  %7787 = vmatpush3.bf16.msra.mxu1 %v8207_v10  ;;  %v8256_v10 = vld [vmem:[%s9691_s1 + $0x350] sm:$0xff]  }
 0x1c8   : > { %7788 = vmatprep.subr.bf16.mxu1 %v8209_v12  ;;  %v8257_v11 = vld [vmem:[%s9691_s1 + $0x3d0] sm:$0xff]  }
 0x1c9   : > { %v8258_v12 = vld [vmem:[%s9691_s1 + $0x310] sm:$0xff]  }
 0x1ca   : > { %7767 = vmatpush3.bf16.msra.mxu0 %v8210_v13  ;;  %v8259_v13 = vld [vmem:[%s9691_s1 + $0x390] sm:$0xff]  }
 0x1cb   : > { %7768 = vmatprep.subr.bf16.mxu0 %v8212_v15  ;;  %7789 = vmatpush3.bf16.msra.mxu1 %v8211_v14  ;;  %v8260_v14 = vld [vmem:[%s9691_s1 + $0x358] sm:$0xff]  }
 0x1cc   : > { %7790 = vmatprep.subr.bf16.mxu1 %v8213_v16  ;;  %v8261_v15 = vld [vmem:[%s9691_s1 + $0x3d8] sm:$0xff]  }
 0x1cd   : > { %v8262_v16 = vld [vmem:[%s9691_s1 + $0x318] sm:$0xff]  }
 0x1ce   : > { %7769 = vmatpush3.bf16.msra.mxu0 %v8214_v17  ;;  %v8263_v17 = vld [vmem:[%s9691_s1 + $0x398] sm:$0xff]  }
 0x1cf   : > { %7798 = vmatprep.subr.bf16.mxu0 %v8216_v20  ;;  %7791 = vmatpush3.bf16.msra.mxu1 %v8215_v18  ;;  %v8264_v18 = vld [vmem:[%s9691_s1 + $0x360] sm:$0xff]  }
 0x1d0   : > { %7820 = vmatprep.subr.bf16.mxu1 %v8217_v21  ;;  %v8266_v20 = vld [vmem:[%s9691_s1 + $0x320] sm:$0xff]  }
 0x1d1   : > { %6786 = vmatmul.mubr.bf16.vlgmr.msra.gmra.mrb[4].mxu0 %v4939_v19  ;;  %v8265_v19 = vld [vmem:[%s9691_s1 + $0x3e0] sm:$0xff]  }
 0x1d2   : > { %7799 = vmatpush3.bf16.msra.mxu0 %v8218_v22  ;;  %6826 = vmatmul.mubr.bf16.vlgmr.msra.gmra.mrb[4].mxu1 %v4955_v24  ;;  %v8267_v21 = vld [vmem:[%s9691_s1 + $0x3a0] sm:$0xff]   ;;  %v8268_v22 = vld [vmem:[%s9691_s1 + $0x368] sm:$0xff]  }
 0x1d3   : > { %7800 = vmatprep.subr.bf16.mxu0 %v8220_v25  ;;  %7821 = vmatpush3.bf16.msra.mxu1 %v8219_v23  ;;  %v8269_v23 = vld [vmem:[%s9691_s1 + $0x3e8] sm:$0xff]  }
 0x1d4   : > { %7822 = vmatprep.subr.bf16.mxu1 %v8221_v26  ;;  %6865 = vmatprep.mubr.bf16.mxu0 %v4995_v57  ;;  %v8270_v24 = vld [vmem:[%s9691_s1 + $0x328] sm:$0xff]   ;;  %v8272_v26 = vld [vmem:[%s9691_s1 + $0x370] sm:$0xff]  }
 0x1d5   : > { %6905 = vmatprep.mubr.bf16.mxu1 %v5005_v61  ;;  %v8271_v25 = vld [vmem:[%s9691_s1 + $0x3a8] sm:$0xff]   ;;  %v8305_v61 = vld [vmem:[%s9691_s1 + $0x470] sm:$0xff]  }
 0x1d6   : > { %7801 = vmatpush3.bf16.msra.mxu0 %v8222_v27  ;;  %v8273_v27 = vld [vmem:[%s9691_s1 + $0x3f0] sm:$0xff]   ;;  %v8301_v57 = vld [vmem:[%s9691_s1 + $0x468] sm:$0xff]  }
 0x1d7   : > { %7802 = vmatprep.subr.bf16.mxu0 %v8224_v29  ;;  %7823 = vmatpush3.bf16.msra.mxu1 %v8223_v28  ;;  %v8274_v28 = vld [vmem:[%s9691_s1 + $0x330] sm:$0xff]  }
 0x1d8   : > { %7824 = vmatprep.subr.bf16.mxu1 %v8225_v30  ;;  %v8275_v29 = vld [vmem:[%s9691_s1 + $0x3b0] sm:$0xff]   ;;  %v8276_v30 = vld [vmem:[%s9691_s1 + $0x378] sm:$0xff]  }
 0x1da   : > { %7803 = vmatpush3.bf16.msra.mxu0 %v8226_v31  ;;  %v8277_v31 = vld [vmem:[%s9691_s1 + $0x3f8] sm:$0xff]  }
 0x1db   : > { %7804 = vmatprep.subr.bf16.mxu0 %v8228_v33  ;;  %7825 = vmatpush3.bf16.msra.mxu1 %v8227_v32  ;;  %v8278_v32 = vld [vmem:[%s9691_s1 + $0x338] sm:$0xff]  }
 0x1dc   : > { %7826 = vmatprep.subr.bf16.mxu1 %v8229_v34  ;;  %v8279_v33 = vld [vmem:[%s9691_s1 + $0x3b8] sm:$0xff]   ;;  %v4988_v34 = vrot.slane %v9807_v54, %v9733_v42  ;;  %v8298_v54 = vld [vmem:[%s9691_s1 + $0x4e0] sm:$0xff]  }
 0x1de   : > { %7805 = vmatpush3.bf16.msra.mxu0 %v8230_v35  ;;  %v8281_v35 = vld [vmem:[%s9691_s1 + $0x440] sm:$0xff]  }
 0x1df   : > { %7806 = vmatprep.subr.bf16.mxu0 %v8232_v37  ;;  %7827 = vmatpush3.bf16.msra.mxu1 %v8231_v36  ;;  %v8282_v36 = vld [vmem:[%s9691_s1 + $0x4c0] sm:$0xff]  }
 0x1e0   : > { %7828 = vmatprep.subr.bf16.mxu1 %v8233_v38  ;;  %v8283_v37 = vld [vmem:[%s9691_s1 + $0x400] sm:$0xff]  }
 0x1e1   : > { %v8284_v38 = vld [vmem:[%s9691_s1 + $0x480] sm:$0xff]  }
 0x1e2   : > { %7807 = vmatpush3.bf16.msra.mxu0 %v8234_v39  ;;  %v5004_v39 = vcombine.high %v4988_v34, %v4988_v34 }
 0x1e3   : > { %7808 = vmatprep.subr.bf16.mxu0 %v8236_v41  ;;  %7829 = vmatpush3.bf16.msra.mxu1 %v8235_v40  ;;  %v8285_v40 = vld [vmem:[%s9691_s1 + $0x448] sm:$0xff]  }
 0x1e4   : > { %7830 = vmatprep.subr.bf16.mxu1 %v8237_v43  ;;  %v8286_v41 = vld [vmem:[%s9691_s1 + $0x4c8] sm:$0xff]  }
 0x1e5   : > { %v8287_v43 = vld [vmem:[%s9691_s1 + $0x408] sm:$0xff]  }
 0x1e6   : > { %7809 = vmatpush3.bf16.msra.mxu0 %v8238_v44  ;;  %v8288_v44 = vld [vmem:[%s9691_s1 + $0x488] sm:$0xff]  }
 0x1e7   : > { %7810 = vmatprep.subr.bf16.mxu0 %v8240_v46  ;;  %7831 = vmatpush3.bf16.msra.mxu1 %v8239_v45  ;;  %v8289_v45 = vld [vmem:[%s9691_s1 + $0x450] sm:$0xff]  }
 0x1e8   : > { %7832 = vmatprep.subr.bf16.mxu1 %v8241_v48  ;;  %v8290_v46 = vld [vmem:[%s9691_s1 + $0x4d0] sm:$0xff]  }
 0x1e9   : > { %v8292_v48 = vld [vmem:[%s9691_s1 + $0x490] sm:$0xff]  }
 0x1ea   : > { %7811 = vmatpush3.bf16.msra.mxu0 %v8242_v51  ;;  %v8295_v51 = vld [vmem:[%s9691_s1 + $0x418] sm:$0xff]  }
 0x1eb   : > { %7812 = vmatprep.subr.bf16.mxu0 %v8244_v55  ;;  %7833 = vmatpush3.bf16.msra.mxu1 %v8243_v52  ;;  %v8296_v52 = vld [vmem:[%s9691_s1 + $0x498] sm:$0xff]   ;;  %v8299_v55 = vld [vmem:[%s9691_s1 + $0x420] sm:$0xff]  }
 0x1ec   : > { %7834 = vmatprep.subr.bf16.mxu1 %v8245_v56  ;;  %v8300_v56 = vld [vmem:[%s9691_s1 + $0x4a0] sm:$0xff]  }
 0x1ee   : > { %7813 = vmatpush3.bf16.msra.mxu0 %v8246_v59  ;;  %v8303_v59 = vld [vmem:[%s9691_s1 + $0x428] sm:$0xff]  }
 0x1ef   : > { %7842 = vmatprep.subr.bf16.mxu0 %v8248_v63  ;;  %7835 = vmatpush3.bf16.msra.mxu1 %v8247_v60  ;;  %v8304_v60 = vld [vmem:[%s9691_s1 + $0x4a8] sm:$0xff]   ;;  %v8306_v63 = vld [vmem:[%s9691_s1 + $0x4f0] sm:$0xff]  }
 0x1f0   : > { %7864 = vmatprep.subr.bf16.mxu1 %v8249_v0 }
 0x1f1   : > { %6866 = vmatmul.mubr.bf16.vlgmr.msra.gmra.mrb[8].mxu0 %v4981_v62  ;;  %v4391_v62 = vld [vmem:[%s9685_s27 + $0x10] sm:$0xff] }
 0x1f2   : > { %7843 = vmatpush3.bf16.msra.mxu0 %v8250_v2  ;;  %6945 = vmatprep.mubr.bf16.mxu0 %v5002_v1  ;;  %v5014_v0 = vrot.slane %v4391_v62, %v9733_v42  ;;  %v5007_v1 = vcombine.high %v4391_v62, %v4391_v62  ;;  %v8307_v2 = vld [vmem:[%s9691_s1 + $0x430] sm:$0xff]  }
 0x1f3   : > { %6906 = vmatmul.mubr.bf16.vlgmr.msra.gmra.mrb[8].mxu1 %v5003_v4  ;;  %7844 = vmatprep.subr.bf16.mxu0 %v8252_v5  ;;  %v8356_v62 = vld [vmem:[%s9691_s1 + $0x610] sm:$0xff]  }
 0x1f4   : > { %7865 = vmatpush3.bf16.msra.mxu1 %v8251_v3  ;;  %6985 = vmatprep.mubr.bf16.mxu1 %v5006_v7  ;;  %v8308_v3 = vld [vmem:[%s9691_s1 + $0x4b0] sm:$0xff]   ;;  %v5022_v4 = vcombine.high %v5014_v0, %v5014_v0  ;;  %v9883_v5 = vrot.slane %v5007_v1, %v9733_v42  ;;  %v8310_v7 = vld [vmem:[%s9691_s1 + $0x4f8] sm:$0xff]  }
 0x1f5   : > { %7866 = vmatprep.subr.bf16.mxu1 %v8253_v6  ;;  %v8309_v6 = vld [vmem:[%s9691_s1 + $0x478] sm:$0xff]  }
 0x1f6   : > { %7845 = vmatpush3.bf16.msra.mxu0 %v8254_v8  ;;  %v5044_v8 = vrot.slane %v5022_v4, %v9733_v42  ;;  %v8359_v1 = vld [vmem:[%s9691_s1 + $0x6d8] sm:$0xff]   ;;  %v8362_v4 = vld [vmem:[%s9691_s1 + $0x660] sm:$0xff]  }
 0x1f7   : > { %7846 = vmatprep.subr.bf16.mxu0 %v8256_v10  ;;  %v8311_v10 = vld [vmem:[%s9691_s1 + $0x438] sm:$0xff]  }
 0x1f8   : > { %7867 = vmatpush3.bf16.msra.mxu1 %v8255_v9  ;;  %v5023_v9 = vcombine.high %v9883_v5, %v9883_v5 }
 0x1f9   : > { %7868 = vmatprep.subr.bf16.mxu1 %v8257_v11  ;;  %v8312_v11 = vld [vmem:[%s9691_s1 + $0x4b8] sm:$0xff]  }
 0x1fa   : > { %7847 = vmatpush3.bf16.msra.mxu0 %v8258_v12  ;;  %v5054_v12 = vcombine.high %v5044_v8, %v5044_v8 }
 0x1fb   : > { %7848 = vmatprep.subr.bf16.mxu0 %v8260_v14  ;;  %v8313_v14 = vld [vmem:[%s9691_s1 + $0x540] sm:$0xff]  }
 0x1fc   : > { %7869 = vmatpush3.bf16.msra.mxu1 %v8259_v13  ;;  %v5030_v13 = vrot.slane %v5014_v0, %v9733_v42  ;;  %v8358_v0 = vld [vmem:[%s9691_s1 + $0x658] sm:$0xff]  }
 0x1fd   : > { %7870 = vmatprep.subr.bf16.mxu1 %v8261_v15  ;;  %v8314_v15 = vld [vmem:[%s9691_s1 + $0x5c0] sm:$0xff]  }
 0x1fe   : > { %7849 = vmatpush3.bf16.msra.mxu0 %v8262_v16  ;;  %v5051_v16 = vrot.slane %v5023_v9, %v9733_v42  ;;  %v8367_v9 = vld [vmem:[%s9691_s1 + $0x6e8] sm:$0xff]  }
 0x1ff   : > { %7850 = vmatprep.subr.bf16.mxu0 %v8264_v18  ;;  %v8316_v18 = vld [vmem:[%s9691_s1 + $0x580] sm:$0xff]  }
 0x200   : > { %7871 = vmatpush3.bf16.msra.mxu1 %v8263_v17  ;;  %v8315_v17 = vld [vmem:[%s9691_s1 + $0x500] sm:$0xff]  }
 0x201   : > { %7872 = vmatprep.subr.bf16.mxu1 %v8265_v19  ;;  %v5052_v19 = vcombine.high %v5030_v13, %v5030_v13 }
 0x202   : > { %7851 = vmatpush3.bf16.msra.mxu0 %v8266_v20  ;;  %v8317_v20 = vld [vmem:[%s9691_s1 + $0x548] sm:$0xff]  }
 0x203   : > { %7852 = vmatprep.subr.bf16.mxu0 %v8268_v22  ;;  %v5055_v22 = vcombine.high %v5051_v16, %v5051_v16 }
 0x204   : > { %7873 = vmatpush3.bf16.msra.mxu1 %v8267_v21  ;;  %v8318_v21 = vld [vmem:[%s9691_s1 + $0x5c8] sm:$0xff]  }
 0x205   : > { %7874 = vmatprep.subr.bf16.mxu1 %v8269_v23  ;;  %v8319_v23 = vld [vmem:[%s9691_s1 + $0x508] sm:$0xff]  }
 0x206   : > { %7853 = vmatpush3.bf16.msra.mxu0 %v8270_v24  ;;  %v8320_v24 = vld [vmem:[%s9691_s1 + $0x588] sm:$0xff]  }
 0x207   : > { %7854 = vmatprep.subr.bf16.mxu0 %v8272_v26  ;;  %v8322_v26 = vld [vmem:[%s9691_s1 + $0x5d0] sm:$0xff]  }
 0x208   : > { %7875 = vmatpush3.bf16.msra.mxu1 %v8271_v25  ;;  %v8321_v25 = vld [vmem:[%s9691_s1 + $0x550] sm:$0xff]  }
 0x209   : > { %7876 = vmatprep.subr.bf16.mxu1 %v8273_v27  ;;  %v8323_v27 = vld [vmem:[%s9691_s1 + $0x510] sm:$0xff]  }
 0x20a   : > { %7855 = vmatpush3.bf16.msra.mxu0 %v8274_v28  ;;  %v8324_v28 = vld [vmem:[%s9691_s1 + $0x590] sm:$0xff]  }
 0x20b   : > { %7856 = vmatprep.subr.bf16.mxu0 %v8276_v30  ;;  %v8326_v30 = vld [vmem:[%s9691_s1 + $0x5d8] sm:$0xff]  }
 0x20c   : > { %7877 = vmatpush3.bf16.msra.mxu1 %v8275_v29  ;;  %v8325_v29 = vld [vmem:[%s9691_s1 + $0x558] sm:$0xff]  }
 0x20d   : > { %7878 = vmatprep.subr.bf16.mxu1 %v8277_v31  ;;  %v8327_v31 = vld [vmem:[%s9691_s1 + $0x518] sm:$0xff]  }
 0x20e   : > { %7857 = vmatpush3.bf16.msra.mxu0 %v8278_v32  ;;  %v8328_v32 = vld [vmem:[%s9691_s1 + $0x598] sm:$0xff]  }
 0x20f   : > { %7886 = vmatprep.subr.bf16.mxu0 %v8281_v35  ;;  %v8331_v35 = vld [vmem:[%s9691_s1 + $0x520] sm:$0xff]  }
 0x210   : > { %7879 = vmatpush3.bf16.msra.mxu1 %v8279_v33  ;;  %v8329_v33 = vld [vmem:[%s9691_s1 + $0x560] sm:$0xff]  }
 0x211   : > { %6946 = vmatmul.mubr.bf16.vlgmr.msra.gmra.mrb[12].mxu0 %v4988_v34  ;;  %7908 = vmatprep.subr.bf16.mxu1 %v8282_v36  ;;  %v8330_v34 = vld [vmem:[%s9691_s1 + $0x5e0] sm:$0xff]  }
 0x212   : > { %7887 = vmatpush3.bf16.msra.mxu0 %v8283_v37  ;;  %7025 = vmatprep.mubr.bf16.mxu0 %v5044_v8  ;;  %v8332_v36 = vld [vmem:[%s9691_s1 + $0x5a0] sm:$0xff]   ;;  %v8333_v37 = vld [vmem:[%s9691_s1 + $0x568] sm:$0xff]  }
 0x213   : > { %6986 = vmatmul.mubr.bf16.vlgmr.msra.gmra.mrb[12].mxu1 %v5004_v39  ;;  %7888 = vmatprep.subr.bf16.mxu0 %v8285_v40  ;;  %v8335_v39 = vld [vmem:[%s9691_s1 + $0x528] sm:$0xff]  }
 0x214   : > { %7909 = vmatpush3.bf16.msra.mxu1 %v8284_v38  ;;  %7065 = vmatprep.mubr.bf16.mxu1 %v5054_v12  ;;  %v8334_v38 = vld [vmem:[%s9691_s1 + $0x5e8] sm:$0xff]   ;;  %v8370_v12 = vld [vmem:[%s9691_s1 + $0x670] sm:$0xff]  }
 0x215   : > { %7910 = vmatprep.subr.bf16.mxu1 %v8286_v41  ;;  %v8336_v40 = vld [vmem:[%s9691_s1 + $0x5a8] sm:$0xff]   ;;  %v8337_v41 = vld [vmem:[%s9691_s1 + $0x570] sm:$0xff]  }
 0x216   : > { %7889 = vmatpush3.bf16.msra.mxu0 %v8287_v43  ;;  %v8338_v43 = vld [vmem:[%s9691_s1 + $0x5f0] sm:$0xff]   ;;  %v8366_v8 = vld [vmem:[%s9691_s1 + $0x668] sm:$0xff]  }
 0x217   : > { %7890 = vmatprep.subr.bf16.mxu0 %v8289_v45  ;;  %v8340_v45 = vld [vmem:[%s9691_s1 + $0x5b0] sm:$0xff]  }
 0x218   : > { %7911 = vmatpush3.bf16.msra.mxu1 %v8288_v44  ;;  %v8339_v44 = vld [vmem:[%s9691_s1 + $0x530] sm:$0xff]  }
 0x219   : > { %7912 = vmatprep.subr.bf16.mxu1 %v8290_v46  ;;  %v8341_v46 = vld [vmem:[%s9691_s1 + $0x578] sm:$0xff]  }
 0x21a   : > { %7891 = vmatpush3.bf16.msra.mxu0 %v8291_v47  ;;  %v8342_v47 = vld [vmem:[%s9691_s1 + $0x5f8] sm:$0xff]  }
 0x21b   : > { %7892 = vmatprep.subr.bf16.mxu0 %v8293_v49  ;;  %v8344_v49 = vld [vmem:[%s9691_s1 + $0x5b8] sm:$0xff]  }
 0x21c   : > { %7913 = vmatpush3.bf16.msra.mxu1 %v8292_v48  ;;  %v8343_v48 = vld [vmem:[%s9691_s1 + $0x538] sm:$0xff]  }
 0x21d   : > { %7914 = vmatprep.subr.bf16.mxu1 %v8294_v50  ;;  %v5037_v50 = vrot.slane %v9883_v5, %v9733_v42  ;;  %v8363_v5 = vld [vmem:[%s9691_s1 + $0x6e0] sm:$0xff]  }
 0x21e   : > { %7893 = vmatpush3.bf16.msra.mxu0 %v8295_v51  ;;  %v8346_v51 = vld [vmem:[%s9691_s1 + $0x640] sm:$0xff]  }
 0x21f   : > { %7894 = vmatprep.subr.bf16.mxu0 %v8297_v53  ;;  %v8348_v53 = vld [vmem:[%s9691_s1 + $0x600] sm:$0xff]  }
 0x220   : > { %7915 = vmatpush3.bf16.msra.mxu1 %v8296_v52  ;;  %v8347_v52 = vld [vmem:[%s9691_s1 + $0x6c0] sm:$0xff]  }
 0x221   : > { %7916 = vmatprep.subr.bf16.mxu1 %v8298_v54  ;;  %v8349_v54 = vld [vmem:[%s9691_s1 + $0x680] sm:$0xff]  }
 0x222   : > { %7895 = vmatpush3.bf16.msra.mxu0 %v8299_v55  ;;  %v5053_v55 = vcombine.high %v5037_v50, %v5037_v50 }
 0x223   : > { %7896 = vmatprep.subr.bf16.mxu0 %v8301_v57  ;;  %v8351_v57 = vld [vmem:[%s9691_s1 + $0x6c8] sm:$0xff]  }
 0x224   : > { %7917 = vmatpush3.bf16.msra.mxu1 %v8300_v56  ;;  %v8350_v56 = vld [vmem:[%s9691_s1 + $0x648] sm:$0xff]  }
 0x225   : > { %7918 = vmatprep.subr.bf16.mxu1 %v8302_v58  ;;  %v8352_v58 = vld [vmem:[%s9691_s1 + $0x608] sm:$0xff]  }
 0x226   : > { %7897 = vmatpush3.bf16.msra.mxu0 %v8303_v59  ;;  %v8353_v59 = vld [vmem:[%s9691_s1 + $0x688] sm:$0xff]  }
 0x227   : > { %7898 = vmatprep.subr.bf16.mxu0 %v8305_v61  ;;  %v8355_v61 = vld [vmem:[%s9691_s1 + $0x6d0] sm:$0xff]  }
 0x228   : > { %7919 = vmatpush3.bf16.msra.mxu1 %v8304_v60  ;;  %v8354_v60 = vld [vmem:[%s9691_s1 + $0x650] sm:$0xff]  }
 0x229   : > { %7920 = vmatprep.subr.bf16.mxu1 %v8306_v63  ;;  %v8357_v63 = vld [vmem:[%s9691_s1 + $0x690] sm:$0xff]  }
 0x22a   : > { %7899 = vmatpush3.bf16.msra.mxu0 %v8307_v2  ;;  %v8360_v2 = vld [vmem:[%s9691_s1 + $0x618] sm:$0xff]  }
 0x22b   : > { %7900 = vmatprep.subr.bf16.mxu0 %v8309_v6  ;;  %v8364_v6 = vld [vmem:[%s9691_s1 + $0x620] sm:$0xff]  }
 0x22c   : > { %7921 = vmatpush3.bf16.msra.mxu1 %v8308_v3  ;;  %v8361_v3 = vld [vmem:[%s9691_s1 + $0x698] sm:$0xff]  }
 0x22d   : > { %7922 = vmatprep.subr.bf16.mxu1 %v8310_v7  ;;  %v8365_v7 = vld [vmem:[%s9691_s1 + $0x6a0] sm:$0xff]  }
 0x22e   : > { %7901 = vmatpush3.bf16.msra.mxu0 %v8311_v10  ;;  %v8368_v10 = vld [vmem:[%s9691_s1 + $0x628] sm:$0xff]  }
 0x22f   : > { %7930 = vmatprep.subr.bf16.mxu0 %v8313_v14  ;;  %v8371_v14 = vld [vmem:[%s9691_s1 + $0x6f0] sm:$0xff]  }
 0x230   : > { %7923 = vmatpush3.bf16.msra.mxu1 %v8312_v11  ;;  %v8369_v11 = vld [vmem:[%s9691_s1 + $0x6a8] sm:$0xff]  }
 0x231   : > { %7026 = vmatmul.mubr.bf16.vlgmr.msra.gmra.mrb[16].mxu0 %v5030_v13  ;;  %7952 = vmatprep.subr.bf16.mxu1 %v8314_v15  ;;  %v4392_v13 = vld [vmem:[%s9685_s27 + $0x18] sm:$0xff] }
 0x232   : > { %7931 = vmatpush3.bf16.msra.mxu0 %v8315_v17  ;;  %7105 = vmatprep.mubr.bf16.mxu0 %v5051_v16  ;;  %v5063_v15 = vrot.slane %v4392_v13, %v9733_v42  ;;  %v5056_v16 = vcombine.high %v4392_v13, %v4392_v13  ;;  %v8372_v17 = vld [vmem:[%s9691_s1 + $0x630] sm:$0xff]  }
 0x233   : > { %7066 = vmatmul.mubr.bf16.vlgmr.msra.gmra.mrb[16].mxu1 %v5052_v19  ;;  %7932 = vmatprep.subr.bf16.mxu0 %v8317_v20 }
 0x234   : > { %7953 = vmatpush3.bf16.msra.mxu1 %v8316_v18  ;;  %7145 = vmatprep.mubr.bf16.mxu1 %v5055_v22  ;;  %v8374_v18 = vld [vmem:[%s9691_s1 + $0x678] sm:$0xff]   ;;  %v5071_v19 = vcombine.high %v5063_v15, %v5063_v15  ;;  %v9959_v20 = vrot.slane %v5056_v16, %v9733_v42 }
 0x235   : > { %7954 = vmatprep.subr.bf16.mxu1 %v8318_v21  ;;  %v8373_v21 = vld [vmem:[%s9691_s1 + $0x6b0] sm:$0xff]   ;;  %v8375_v22 = vld [vmem:[%s9691_s1 + $0x6f8] sm:$0xff]  }
 0x236   : > { %7933 = vmatpush3.bf16.msra.mxu0 %v8319_v23  ;;  %v5093_v23 = vrot.slane %v5071_v19, %v9733_v42 }
 0x237   : > { %7934 = vmatprep.subr.bf16.mxu0 %v8321_v25  ;;  %v8376_v25 = vld [vmem:[%s9691_s1 + $0x638] sm:$0xff]  }
 0x238   : > { %7955 = vmatpush3.bf16.msra.mxu1 %v8320_v24  ;;  %v5072_v24 = vcombine.high %v9959_v20, %v9959_v20 }
 0x239   : > { %7956 = vmatprep.subr.bf16.mxu1 %v8322_v26  ;;  %v5103_v26 = vcombine.high %v5093_v23, %v5093_v23 }
 0x23a   : > { %7935 = vmatpush3.bf16.msra.mxu0 %v8323_v27  ;;  %v5079_v27 = vrot.slane %v5063_v15, %v9733_v42 }
 0x23b   : > { %7936 = vmatprep.subr.bf16.mxu0 %v8325_v29  ;;  %v8377_v29 = vld [vmem:[%s9691_s1 + $0x6b8] sm:$0xff]  }
 0x23c   : > { %7957 = vmatpush3.bf16.msra.mxu1 %v8324_v28  ;;  %v8378_v28 = vld [vmem:[%s9691_s1 + $0x740] sm:$0xff]  }
 0x23d   : > { %7958 = vmatprep.subr.bf16.mxu1 %v8326_v30  ;;  %v5100_v30 = vrot.slane %v5072_v24, %v9733_v42 }
 0x23e   : > { %7937 = vmatpush3.bf16.msra.mxu0 %v8327_v31  ;;  %v8379_v31 = vld [vmem:[%s9691_s1 + $0x7c0] sm:$0xff]  }
 0x23f   : > { %7938 = vmatprep.subr.bf16.mxu0 %v8329_v33  ;;  %v5101_v33 = vcombine.high %v5079_v27, %v5079_v27 }
 0x240   : > { %7959 = vmatpush3.bf16.msra.mxu1 %v8328_v32  ;;  %v8380_v32 = vld [vmem:[%s9691_s1 + $0x700] sm:$0xff]  }
 0x241   : > { %7960 = vmatprep.subr.bf16.mxu1 %v8330_v34  ;;  %v8382_v34 = vld [vmem:[%s9691_s1 + $0x748] sm:$0xff]  }
 0x242   : > { %7939 = vmatpush3.bf16.msra.mxu0 %v8331_v35  ;;  %v8381_v35 = vld [vmem:[%s9691_s1 + $0x780] sm:$0xff]  }
 0x243   : > { %7940 = vmatprep.subr.bf16.mxu0 %v8333_v37  ;;  %v8383_v37 = vld [vmem:[%s9691_s1 + $0x7c8] sm:$0xff]  }
 0x244   : > { %7961 = vmatpush3.bf16.msra.mxu1 %v8332_v36  ;;  %v5104_v36 = vcombine.high %v5100_v30, %v5100_v30 }
 0x245   : > { %7962 = vmatprep.subr.bf16.mxu1 %v8334_v38  ;;  %v8384_v38 = vld [vmem:[%s9691_s1 + $0x708] sm:$0xff]  }
 0x246   : > { %7941 = vmatpush3.bf16.msra.mxu0 %v8335_v39  ;;  %v8386_v39 = vld [vmem:[%s9691_s1 + $0x750] sm:$0xff]  }
 0x247   : > { %7942 = vmatprep.subr.bf16.mxu0 %v8337_v41  ;;  %v8387_v41 = vld [vmem:[%s9691_s1 + $0x7d0] sm:$0xff]  }
 0x248   : > { %7963 = vmatpush3.bf16.msra.mxu1 %v8336_v40  ;;  %v8385_v40 = vld [vmem:[%s9691_s1 + $0x788] sm:$0xff]  }
 0x249   : > { %7964 = vmatprep.subr.bf16.mxu1 %v8338_v43  ;;  %v8388_v43 = vld [vmem:[%s9691_s1 + $0x710] sm:$0xff]  }
 0x24a   : > { %7943 = vmatpush3.bf16.msra.mxu0 %v8339_v44  ;;  %v8390_v44 = vld [vmem:[%s9691_s1 + $0x758] sm:$0xff]  }
 0x24b   : > { %7944 = vmatprep.subr.bf16.mxu0 %v8341_v46  ;;  %v8391_v46 = vld [vmem:[%s9691_s1 + $0x7d8] sm:$0xff]  }
 0x24c   : > { %7965 = vmatpush3.bf16.msra.mxu1 %v8340_v45  ;;  %v8389_v45 = vld [vmem:[%s9691_s1 + $0x790] sm:$0xff]  }
 0x24d   : > { %7966 = vmatprep.subr.bf16.mxu1 %v8342_v47  ;;  %v8392_v47 = vld [vmem:[%s9691_s1 + $0x718] sm:$0xff]  }
 0x24e   : > { %7945 = vmatpush3.bf16.msra.mxu0 %v8343_v48  ;;  %v8394_v48 = vld [vmem:[%s9691_s1 + $0x760] sm:$0xff]  }
 0x24f   : > { %7974 = vmatprep.subr.bf16.mxu0 %v8346_v51  ;;  %v8396_v51 = vld [vmem:[%s9691_s1 + $0x720] sm:$0xff]  }
 0x250   : > { %7967 = vmatpush3.bf16.msra.mxu1 %v8344_v49  ;;  %v8393_v49 = vld [vmem:[%s9691_s1 + $0x798] sm:$0xff]  }
 0x251   : > { %7106 = vmatmul.mubr.bf16.vlgmr.msra.gmra.mrb[20].mxu0 %v5037_v50  ;;  %7996 = vmatprep.subr.bf16.mxu1 %v8347_v52  ;;  %v8395_v50 = vld [vmem:[%s9691_s1 + $0x7e0] sm:$0xff]   ;;  %v8398_v52 = vld [vmem:[%s9691_s1 + $0x768] sm:$0xff]  }
 0x252   : > { %7975 = vmatpush3.bf16.msra.mxu0 %v8348_v53  ;;  %7185 = vmatprep.mubr.bf16.mxu0 %v5093_v23  ;;  %v8397_v53 = vld [vmem:[%s9691_s1 + $0x7a0] sm:$0xff]  }
 0x253   : > { %7146 = vmatmul.mubr.bf16.vlgmr.msra.gmra.mrb[20].mxu1 %v5053_v55  ;;  %7976 = vmatprep.subr.bf16.mxu0 %v8350_v56  ;;  %v8400_v55 = vld [vmem:[%s9691_s1 + $0x728] sm:$0xff]   ;;  %v8402_v56 = vld [vmem:[%s9691_s1 + $0x770] sm:$0xff]  }
 0x254   : > { %7997 = vmatpush3.bf16.msra.mxu1 %v8349_v54  ;;  %7225 = vmatprep.mubr.bf16.mxu1 %v5103_v26  ;;  %v8399_v54 = vld [vmem:[%s9691_s1 + $0x7e8] sm:$0xff]  }
 0x255   : > { %7998 = vmatprep.subr.bf16.mxu1 %v8351_v57 }
 0x256   : > { %7977 = vmatpush3.bf16.msra.mxu0 %v8352_v58  ;;  %v8401_v58 = vld [vmem:[%s9691_s1 + $0x7a8] sm:$0xff]  }
 0x257   : > { %7978 = vmatprep.subr.bf16.mxu0 %v8354_v60  ;;  %v8403_v60 = vld [vmem:[%s9691_s1 + $0x7f0] sm:$0xff]  }
 0x258   : > { %7999 = vmatpush3.bf16.msra.mxu1 %v8353_v59 }
 0x259   : > { %8000 = vmatprep.subr.bf16.mxu1 %v8355_v61 }
 0x25a   : > { %7979 = vmatpush3.bf16.msra.mxu0 %v8356_v62 }
 0x25b   : > { %7980 = vmatprep.subr.bf16.mxu0 %v8358_v0  ;;  %v8404_v0 = vld [vmem:[%s9691_s1 + $0x730] sm:$0xff]  }
 0x25c   : > { %8001 = vmatpush3.bf16.msra.mxu1 %v8357_v63 }
 0x25d   : > { %8002 = vmatprep.subr.bf16.mxu1 %v8359_v1 }
 0x25e   : > { %7981 = vmatpush3.bf16.msra.mxu0 %v8360_v2 }
 0x25f   : > { %7982 = vmatprep.subr.bf16.mxu0 %v8362_v4 }
 0x260   : > { %8003 = vmatpush3.bf16.msra.mxu1 %v8361_v3  ;;  %v8406_v3 = vld [vmem:[%s9691_s1 + $0x778] sm:$0xff]  }
 0x261   : > { %8004 = vmatprep.subr.bf16.mxu1 %v8363_v5 }
 0x262   : > { %7983 = vmatpush3.bf16.msra.mxu0 %v8364_v6  ;;  %v8405_v6 = vld [vmem:[%s9691_s1 + $0x7b0] sm:$0xff]  }
 0x263   : > { %7984 = vmatprep.subr.bf16.mxu0 %v8366_v8  ;;  %v8407_v8 = vld [vmem:[%s9691_s1 + $0x7f8] sm:$0xff]  }
 0x264   : > { %8005 = vmatpush3.bf16.msra.mxu1 %v8365_v7 }
 0x265   : > { %8006 = vmatprep.subr.bf16.mxu1 %v8367_v9 }
 0x266   : > { %7985 = vmatpush3.bf16.msra.mxu0 %v8368_v10  ;;  %v8408_v10 = vld [vmem:[%s9691_s1 + $0x738] sm:$0xff]  }
 0x267   : > { %7986 = vmatprep.subr.bf16.mxu0 %v8370_v12  ;;  %v8409_v12 = vld [vmem:[%s9691_s1 + $0x7b8] sm:$0xff]  }
 0x268   : > { %8007 = vmatpush3.bf16.msra.mxu1 %v8369_v11  ;;  %v5086_v11 = vrot.slane %v9959_v20, %v9733_v42 }
 0x269   : > { %8008 = vmatprep.subr.bf16.mxu1 %v8371_v14 }
 0x26a   : > { %7987 = vmatpush3.bf16.msra.mxu0 %v8372_v17  ;;  %v5102_v13 = vcombine.high %v5086_v11, %v5086_v11 }
 0x26b   : > { %7988 = vmatprep.subr.bf16.mxu0 %v8374_v18 }
 0x26c   : > { %8009 = vmatpush3.bf16.msra.mxu1 %v8373_v21 }
 0x26d   : > { %8010 = vmatprep.subr.bf16.mxu1 %v8375_v22 }
 0x26e   : > { %7989 = vmatpush3.bf16.msra.mxu0 %v8376_v25 }
 0x26f   : > { %8018 = vmatprep.subr.bf16.mxu0 %v8378_v28 }
 0x270   : > { %8011 = vmatpush3.bf16.msra.mxu1 %v8377_v29 }
 0x271   : > { %7186 = vmatmul.mubr.bf16.vlgmr.msra.gmra.mrb[24].mxu0 %v5079_v27  ;;  %8040 = vmatprep.subr.bf16.mxu1 %v8379_v31 }
 0x272   : > { %8019 = vmatpush3.bf16.msra.mxu0 %v8380_v32  ;;  %7265 = vmatprep.mubr.bf16.mxu0 %v5100_v30 }
 0x273   : > { %7226 = vmatmul.mubr.bf16.vlgmr.msra.gmra.mrb[24].mxu1 %v5101_v33  ;;  %8020 = vmatprep.subr.bf16.mxu0 %v8382_v34 }
 0x274   : > { %8041 = vmatpush3.bf16.msra.mxu1 %v8381_v35  ;;  %7305 = vmatprep.mubr.bf16.mxu1 %v5104_v36 }
 0x275   : > { %8042 = vmatprep.subr.bf16.mxu1 %v8383_v37 }
 0x276   : > { %8021 = vmatpush3.bf16.msra.mxu0 %v8384_v38 }
 0x277   : > { %8022 = vmatprep.subr.bf16.mxu0 %v8386_v39 }
 0x278   : > { %8043 = vmatpush3.bf16.msra.mxu1 %v8385_v40 }
 0x279   : > { %8044 = vmatprep.subr.bf16.mxu1 %v8387_v41 }
 0x27a   : > { %8023 = vmatpush3.bf16.msra.mxu0 %v8388_v43 }
 0x27b   : > { %8024 = vmatprep.subr.bf16.mxu0 %v8390_v44 }
 0x27c   : > { %8045 = vmatpush3.bf16.msra.mxu1 %v8389_v45 }
 0x27d   : > { %8046 = vmatprep.subr.bf16.mxu1 %v8391_v46 }
 0x27e   : > { %8025 = vmatpush3.bf16.msra.mxu0 %v8392_v47 }
 0x27f   : > { %8026 = vmatprep.subr.bf16.mxu0 %v8394_v48 }
 0x280   : > { %8047 = vmatpush3.bf16.msra.mxu1 %v8393_v49 }
 0x281   : > { %8048 = vmatprep.subr.bf16.mxu1 %v8395_v50 }
 0x282   : > { %8027 = vmatpush3.bf16.msra.mxu0 %v8396_v51 }
 0x283   : > { %8028 = vmatprep.subr.bf16.mxu0 %v8398_v52 }
 0x284   : > { %8049 = vmatpush3.bf16.msra.mxu1 %v8397_v53  ;;  %v7726_v57 = vpop.f32.mrb[0].mxu0 }
 0x285   : > { %v7727_v59 = vpop.f32.mrb[1].mxu0  ;;  %8050 = vmatprep.subr.bf16.mxu1 %v8399_v54  ;;  %v7748_v61 = vpop.f32.mrb[0].mxu1 }
 0x286   : > { %v7728_v62 = vadd.f32 %v7727_v59, %v7726_v57  ;;  %v7729_v63 = vpop.f32.mrb[2].mxu0  ;;  %8029 = vmatpush3.bf16.msra.mxu0 %v8400_v55  ;;  %v7749_v1 = vpop.f32.mrb[1].mxu1 }
 0x287   : > { %v7730_v2 = vpop.f32.mrb[3].mxu0  ;;  %8030 = vmatprep.subr.bf16.mxu0 %v8402_v56  ;;  %v7750_v4 = vadd.f32 %v7749_v1, %v7748_v61  ;;  %v7751_v5 = vpop.f32.mrb[2].mxu1 }
 0x288   : > { %8051 = vmatpush3.bf16.msra.mxu1 %v8401_v58  ;;  %v7752_v7 = vpop.f32.mrb[3].mxu1 }
 0x289   : > { %8052 = vmatprep.subr.bf16.mxu1 %v8403_v60  ;;  %v6748_v9 = vadd.f32 %v7750_v4, %v7728_v62 }
 0x28a   : > { %8031 = vmatpush3.bf16.msra.mxu0 %v8404_v0 }
 0x28b   : > { %8032 = vmatprep.subr.bf16.mxu0 %v8406_v3 }
 0x28c   : > { %8053 = vmatpush3.bf16.msra.mxu1 %v8405_v6 }
 0x28d   : > { %8054 = vmatprep.subr.bf16.mxu1 %v8407_v8 }
 0x28e   : > { %8033 = vmatpush3.bf16.msra.mxu0 %v8408_v10 }
 0x290   : > { %8055 = vmatpush3.bf16.msra.mxu1 %v8409_v12 }
 0x291   : > { %7266 = vmatmul.mubr.bf16.vlgmr.msra.gmra.mrb[28].mxu0 %v5086_v11 }
 0x293   : > { %7306 = vmatmul.mubr.bf16.vlgmr.msra.gmra.mrb[28].mxu1 %v5102_v13 }
 0x2a4   : > { %v7770_v14 = vpop.f32.mrb[4].mxu0 }
 0x2a5   : > { %v7771_v15 = vpop.f32.mrb[5].mxu0  ;;  %v7792_v16 = vpop.f32.mrb[4].mxu1 }
 0x2a6   : > { %v7772_v17 = vadd.f32 %v7771_v15, %v7770_v14  ;;  %v7773_v18 = vpop.f32.mrb[6].mxu0  ;;  %v7793_v19 = vpop.f32.mrb[5].mxu1 }
 0x2a7   : > { %v7774_v21 = vpop.f32.mrb[7].mxu0  ;;  %v7794_v23 = vadd.f32 %v7793_v19, %v7792_v16  ;;  %v7795_v24 = vpop.f32.mrb[6].mxu1 }
 0x2a8   : > { %v6788_v22 = vadd.f32 %v7772_v17, %v6748_v9  ;;  %v7796_v25 = vpop.f32.mrb[7].mxu1 }
 0x2aa   : > { %v6828_v42 = vadd.f32 %v7794_v23, %v6788_v22 }
 0x2c4   : > { %v7814_v20 = vpop.f32.mrb[8].mxu0 }
 0x2c5   : > { %v7815_v26 = vpop.f32.mrb[9].mxu0 }
 0x2c6   : > { %v7836_v27 = vpop.f32.mrb[8].mxu1  ;;  %v7816_v28 = vadd.f32 %v7815_v26, %v7814_v20  ;;  %v7817_v29 = vpop.f32.mrb[10].mxu0 }
 0x2c7   : > { %v7837_v30 = vpop.f32.mrb[9].mxu1  ;;  %v7818_v31 = vpop.f32.mrb[11].mxu0 }
 0x2c8   : > { %v6868_v32 = vadd.f32 %v7816_v28, %v6828_v42  ;;  %v7838_v33 = vadd.f32 %v7837_v30, %v7836_v27  ;;  %v7839_v34 = vpop.f32.mrb[10].mxu1  ;;  %v4388_v31 = vld [vmem:[#allocation2] sm:$0x1] }
 0x2c9   : > { %v7840_v35 = vpop.f32.mrb[11].mxu1 }
 0x2ca   : > { %v6908_v36 = vadd.f32 %v7838_v33, %v6868_v32 }
 0x2e4   : > { %v7858_v37 = vpop.f32.mrb[12].mxu0 }
 0x2e5   : > { %v7859_v38 = vpop.f32.mrb[13].mxu0 }
 0x2e6   : > { %v7880_v39 = vpop.f32.mrb[12].mxu1  ;;  %v7860_v40 = vadd.f32 %v7859_v38, %v7858_v37  ;;  %v7861_v41 = vpop.f32.mrb[14].mxu0 }
 0x2e7   : > { %v7881_v43 = vpop.f32.mrb[13].mxu1  ;;  %v7862_v44 = vpop.f32.mrb[15].mxu0 }
 0x2e8   : > { %v6948_v45 = vadd.f32 %v7860_v40, %v6908_v36  ;;  %v7882_v46 = vadd.f32 %v7881_v43, %v7880_v39  ;;  %v7883_v47 = vpop.f32.mrb[14].mxu1  ;;  %v7320_v36 = vld [vmem:[%s4381_s26] sm:$0x1] (!%p7705_p6) }
 0x2e9   : > { %v7884_v48 = vpop.f32.mrb[15].mxu1 }
 0x2ea   : > { %v6988_v49 = vadd.f32 %v7882_v46, %v6948_v45 }
 0x304   : > { %v7902_v50 = vpop.f32.mrb[16].mxu0 }
 0x305   : > { %v7903_v51 = vpop.f32.mrb[17].mxu0 }
 0x306   : > { %v7924_v52 = vpop.f32.mrb[16].mxu1  ;;  %v7904_v53 = vadd.f32 %v7903_v51, %v7902_v50  ;;  %v7905_v54 = vpop.f32.mrb[18].mxu0 }
 0x307   : > { %v7925_v55 = vpop.f32.mrb[17].mxu1  ;;  %v7906_v56 = vpop.f32.mrb[19].mxu0 }
 0x308   : > { %v7028_v57 = vadd.f32 %v7904_v53, %v6988_v49  ;;  %v7926_v58 = vadd.f32 %v7925_v55, %v7924_v52  ;;  %v7927_v59 = vpop.f32.mrb[18].mxu1 }
 0x309   : > { %v7928_v60 = vpop.f32.mrb[19].mxu1 }
 0x30a   : > { %v7068_v61 = vadd.f32 %v7926_v58, %v7028_v57 }
 0x324   : > { %v7946_v62 = vpop.f32.mrb[20].mxu0 }
 0x325   : > { %v7947_v63 = vpop.f32.mrb[21].mxu0 }
 0x326   : > { %v7968_v0 = vpop.f32.mrb[20].mxu1  ;;  %v7948_v1 = vadd.f32 %v7947_v63, %v7946_v62  ;;  %v7949_v2 = vpop.f32.mrb[22].mxu0 }
 0x327   : > { %v7969_v3 = vpop.f32.mrb[21].mxu1  ;;  %v7950_v4 = vpop.f32.mrb[23].mxu0 }
 0x328   : > { %v7108_v5 = vadd.f32 %v7948_v1, %v7068_v61  ;;  %v7970_v6 = vadd.f32 %v7969_v3, %v7968_v0  ;;  %v7971_v7 = vpop.f32.mrb[22].mxu1 }
 0x329   : > { %v7972_v8 = vpop.f32.mrb[23].mxu1 }
 0x32a   : > { %v7148_v9 = vadd.f32 %v7970_v6, %v7108_v5 }
 0x344   : > { %v7990_v10 = vpop.f32.mrb[24].mxu0 }
 0x345   : > { %v7991_v11 = vpop.f32.mrb[25].mxu0 }
 0x346   : > { %v8012_v12 = vpop.f32.mrb[24].mxu1  ;;  %v7992_v13 = vadd.f32 %v7991_v11, %v7990_v10  ;;  %v7993_v14 = vpop.f32.mrb[26].mxu0 }
 0x347   : > { %v8013_v15 = vpop.f32.mrb[25].mxu1  ;;  %v7994_v16 = vpop.f32.mrb[27].mxu0 }
 0x348   : > { %v7188_v17 = vadd.f32 %v7992_v13, %v7148_v9  ;;  %v8014_v18 = vadd.f32 %v8013_v15, %v8012_v12  ;;  %v8015_v19 = vpop.f32.mrb[26].mxu1 }
 0x349   : > { %v8016_v21 = vpop.f32.mrb[27].mxu1 }
 0x34a   : > { %v7228_v22 = vadd.f32 %v8014_v18, %v7188_v17 }
 0x364   : > { %v8034_v23 = vpop.f32.mrb[28].mxu0 }
 0x365   : > { %v8035_v24 = vpop.f32.mrb[29].mxu0 }
 0x366   : > { %v8056_v25 = vpop.f32.mrb[28].mxu1  ;;  %v8036_v42 = vadd.f32 %v8035_v24, %v8034_v23  ;;  %v8037_v20 = vpop.f32.mrb[30].mxu0 }
 0x367   : > { %v8057_v26 = vpop.f32.mrb[29].mxu1  ;;  %v8038_v27 = vpop.f32.mrb[31].mxu0 }
 0x368   : > { %v7268_v28 = vadd.f32 %v8036_v42, %v7228_v22  ;;  %v8058_v29 = vadd.f32 %v8057_v26, %v8056_v25  ;;  %v8059_v30 = vpop.f32.mrb[30].mxu1  ;;  %7318 = sbr.rel (%p7705_p6) target bundleno = 891 (0x37b), region = 92 }
 0x369   : > { %v8060_v32 = vpop.f32.mrb[31].mxu1 }
 0x36a   : > { %v7308_v33 = vadd.f32 %v8058_v29, %v7268_v28 }
 0x36c   : > { %v7313_v34 = vadd.f32 %v7308_v33, %v4388_v31 }
 0x36e   : > { %7314 = vst [vmem:[#allocation2] sm:$0x1] %v7313_v34 }
 0x375   : > { %v7319_v35 = vld [vmem:[#allocation2] sm:$0x1] }
 0x376   : > { %v7321_v37 = vadd.f32 %v7320_v36, %v7319_v35 }
 0x378   : > { %v7322_v38 = vmax.f32 %v7321_v37, 0.0 }
 0x37a   : > { %7323 = vst [vmem:[%s9695_s15] sm:$0x1] %v7322_v38 }
 0x37b PF: > { %s7706_s9 = sshll.u32 %s8509_s18, 4  ;;  %s7337_s23 = sshll.u32 %s9695_s15, 4  ;;  %s7338_s23 = int_to_ptr.vmem [resolvable:$true] %s7337_s23 }
 0x37c   : > { %s10015_s22 = scalar_lea.hbm %s10074_s3, %s7706_s9  ;;  %s7325_s11 = scalar_lea.sflag [#allocation5], %s4371_s5 }
 0x37d   : > { %s8411_s27 = scalar_lea.vmem %s7338_s23, 16  ;;  %s8525_s4 = smov [#allocation4]  }
 0x37e   : > { %p8412_p8 = scmp.ne.s32.totalorder %s7338_s23, %s8411_s27  ;;  %s8415_s29 = sshll.u32 %s8525_s4, 4  ;;  %s8416_s29 = int_to_ptr.vmem [resolvable:$false] %s8415_s29 }
 0x37f   : > { %s8417_s26 = scalar_lea.vmem %s8416_s29, 32  ;;  %p8418_p11 = scmp.lt.s32.totalorder %s7338_s23, %s8416_s29 }
 0x380   : > { %p8413_p9 = pnand %p8412_p8, %p8618_p7  ;;  %p8419_p13 = scmp.lt.s32.totalorder %s8417_s26, %s8411_s27 }
 0x382   : > { %p8414_p10 = pneg %p8413_p9  ;;  %p8420_p0 = por %p8419_p13, %p8418_p11 }
 0x384   : > { %p8421_p1 = pnand %p8420_p0, %p8414_p10 }
 0x386   : > { %8424 = shalt.err (!%p8421_p1)
}
 0x387   : > { %s8425_s18 = scalar_lea.hbm %s10015_s22, 16  ;;  %s8429_s1 = scalar_lea.hbm %s10074_s3, 32 }
 0x388   : > { %p8426_p2 = scmp.ne.s32.totalorder %s10015_s22, %s8425_s18  ;;  %p8430_p5 = scmp.lt.u32.totalorder %s10015_s22, %s10074_s3 }
 0x389   : > { %p8431_p6 = scmp.lt.u32.totalorder %s8429_s1, %s8425_s18  ;;  %p8433_p9 = scmp.lt.u32.totalorder %s8425_s18, %s10015_s22 }
 0x38a   : > { %p8427_p3 = pnand %p8426_p2, %p8618_p7 }
 0x38b   : > { %p8432_p8 = por %p8431_p6, %p8430_p5 }
 0x38c   : > { %p8428_p4 = pneg %p8427_p3 }
 0x38d   : > { %p8434_p10 = por %p8433_p9, %p8432_p8 }
 0x38f   : > { %p8435_p11 = pnand %p8434_p10, %p8428_p4 }
 0x391   : > { %8438 = shalt.err (!%p8435_p11)
}
 0x392   : > { %8062 = dma.vmem_to_hbm [thread:$0]  (%p8618_p7), %s7338_s23, 16, %s10015_s22, %s7325_s11  }
 0x393 PF: > { %p8068_p13 = scmp.ge.s32.totalorder %s8521_s21, 2  ;;  %s7349_s10 = sand.u32 1, %s8485_s12  }
 0x394   : > { %s7350_s17 = scalar_lea.sflag [#allocation5], %s7349_s10 }
 0x395   : > { %p8065_p0 = pnand %p8068_p13, %p8626_p12 }
 0x397   : > { %8480 = dma.done.wait (!%p8065_p0), %s7350_s17, 16  }
 0x398   : > { %8482 = vsyncadd (!%p8065_p0), %s7350_s17, 4294967280  ;;  %s16_s21 = sadd.s32 1, %s8521_s21   ;;  %s10080_s12 = smov %s8489_s13 }
 0x399   : > { %p13_p1 = scmp.ge.s32.totalorder %s16_s21, 10   ;;  %s10081_s13 = smov %s8493_s14 }
 0x39a   : > { %s10082_s14 = smov %s8631_s7  ;;  %s10083_s15 = smov %s8501_s16 }
 0x39b   : > { %s10084_s16 = smov %s8634_s8  ;;  %s10085_s17 = smov %s8513_s19 }
 0x39c   : > { %s10086_s18 = smov %s8517_s20  ;;  %s10087_s19 = smov %s10090_s24 }
 0x39d   : > { %s10088_s20 = smov %s10094_s25  ;;  %15 = sbr.rel (!%p13_p1) target bundleno = 8 (0x8), region = 142 }
 0x3a4   :  { %7354 = vsyncpa [#allocation5], 1 }
 0x3a5   :  { %7356 = vsyncpa [#allocation5 + $0x1], 1 }

</bundles_post_ra>
